<compile_context>
chip_gen: v7x
topology: tpu7x:2x2x1
jax: 0.10.0
libtpu: 0.0.40
codegen_flags: <defaults>
</compile_context>

<pallas_src>
import functools

import jax
import jax.numpy as jnp
import numpy as np
from jax.experimental import pallas as pl
from jax.experimental.pallas import tpu as pltpu

D = 8
H = 256
HV = H // 2                      # 128
INPUT_CH = 3
INPUT_CH_VIEWS = 3
SKIPS = (4,)
OUT_PAD = 128                    # lane-dense output block: col 0 = rho, col 1 = alpha
FUSED_IN = 2 * H + OUT_PAD       # fused x-matmul cols: [w0 | w5p | wvv] = 640


def _mlp_kernel(x_ref, wx_ref, b0_ref, whid_ref, bhid_ref, wfa_ref, bfa_ref,
                wvf_ref, bv_ref, wrp_ref, brp_ref, out_ref):
    def mm(a, w):
        # bf16 inputs, f32 accumulation on the MXU.
        return jnp.dot(a, w, preferred_element_type=jnp.float32)

    def relu_bf16(a):
        # relu + cast fused into one VPU expression (keeps it off the MXU path).
        return jnp.maximum(a, 0.0).astype(jnp.bfloat16)

    x = x_ref[...].astype(jnp.bfloat16)                    # (T, 6)

    # Fused K=6 matmul: [pts @ w0 | pts @ w5p | views @ wvv], computed once.
    xw = mm(x, wx_ref[...])                                # (T, 640) f32

    # pts_linears[0]: Linear(3, 256) + relu
    h = relu_bf16(xw[:, :H] + b0_ref[...])

    # pts_linears[1..4]: Linear(256, 256) + relu  (stack indices 0..3)
    for i in range(4):
        h = relu_bf16(mm(h, whid_ref[i]) + bhid_ref[i:i + 1, :])

    # skip after layer 4: h = cat([pts, h]); pts_linears[5]: Linear(259, 256)
    # (stack index 4 is the h-part of the split weight; pts-part came from xw)
    h = relu_bf16(mm(h, whid_ref[4]) + xw[:, H:2 * H] + bhid_ref[4:5, :])

    # pts_linears[6..7]: Linear(256, 256) + relu  (stack indices 5, 6)
    for i in (5, 6):
        h = relu_bf16(mm(h, whid_ref[i]) + bhid_ref[i:i + 1, :])

    # fused feature_linear (cols 0:256) + alpha_linear (lane 1 of padded block)
    y = mm(h, wfa_ref[...]) + bfa_ref[...]                 # (T, 384) f32
    feature = y[:, :H].astype(jnp.bfloat16)                # (T, 256)
    alpha_blk = y[:, H:H + OUT_PAD]                        # (T, 128): col 1 = alpha_pre

    # views_linears[0]: Linear(256 + 3, 128) + relu (views part came from xw)
    hv = relu_bf16(mm(feature, wvf_ref[...]) + xw[:, 2 * H:2 * H + OUT_PAD]
                   + bv_ref[...])                          # (T, 128)

    # rho head padded to 128 lanes: col 0 = rho_pre, rest exactly zero
    rho_blk = mm(hv, wrp_ref[...]) + brp_ref[...]          # (T, 128)

    # |rho_pre| in col 0, |alpha_pre| in col 1, zeros elsewhere. bf16 store.
    out_ref[...] = jnp.abs(rho_blk + alpha_blk).astype(out_ref.dtype)


def init_params(key):
    """Deterministic parameter init. Weights are (in, out), biases (1, out)."""
    keys = jax.random.split(key, 32)
    k = iter(keys)

    def lin(kw, kb, fan_in, fan_out):
        scale = 1.0 / np.sqrt(fan_in)
        w = jax.random.uniform(kw, (fan_in, fan_out), jnp.float32, -scale, scale)
        b = jax.random.uniform(kb, (1, fan_out), jnp.float32, -scale, scale)
        return w, b

    params = {}
    params["w0"], params["b0"] = lin(next(k), next(k), INPUT_CH, H)
    for i in range(1, 5):
        params[f"w{i}"], params[f"b{i}"] = lin(next(k), next(k), H, H)
    # skip layer (index 5): Linear(H + input_ch, H) split into pts / h parts
    w5, b5 = lin(next(k), next(k), H + INPUT_CH, H)
    params["w5p"], params["w5h"], params["b5"] = w5[:INPUT_CH], w5[INPUT_CH:], b5
    for i in range(6, 8):
        params[f"w{i}"], params[f"b{i}"] = lin(next(k), next(k), H, H)
    params["wa"], params["ba"] = lin(next(k), next(k), H, 1)
    params["wf"], params["bf"] = lin(next(k), next(k), H, H)
    # views layer: Linear(H + input_ch_views, H // 2) split into feat / views parts
    wv, bv = lin(next(k), next(k), H + INPUT_CH_VIEWS, HV)
    params["wvf"], params["wvv"], params["bv"] = wv[:H], wv[H:], bv
    params["wr"], params["br"] = lin(next(k), next(k), HV, 1)
    return params


def _pack_operands(params):
    """Pack f32 params into the bf16 weight / f32 bias operands the kernel uses."""
    bf16 = jnp.bfloat16

    # Fused x weight (6, 640): rows 0:3 = pts, rows 3:6 = views.
    #   cols [0:256)   = w0        (layer 0)
    #   cols [256:512) = w5p       (pts part of the skip layer)
    #   cols [512:640) = wvv       (views part of the views layer)
    wx = jnp.zeros((INPUT_CH + INPUT_CH_VIEWS, FUSED_IN), jnp.float32)
    wx = wx.at[:INPUT_CH, :H].set(params["w0"])
    wx = wx.at[:INPUT_CH, H:2 * H].set(params["w5p"])
    wx = wx.at[INPUT_CH:, 2 * H:2 * H + OUT_PAD].set(params["wvv"])
    wx = wx.astype(bf16)

    b0 = params["b0"]                                            # (1, 256) f32
    whid = jnp.stack([params["w1"], params["w2"], params["w3"], params["w4"],
                      params["w5h"], params["w6"], params["w7"]]).astype(bf16)
    bhid = jnp.concatenate([params["b1"], params["b2"], params["b3"],
                            params["b4"], params["b5"], params["b6"],
                            params["b7"]], axis=0)               # (7, 256) f32

    # Fused feature + alpha head: cols [0:256) = feature, col 256+1 = alpha.
    alpha_w = jnp.zeros((H, OUT_PAD), jnp.float32).at[:, 1].set(params["wa"][:, 0])
    wfa = jnp.concatenate([params["wf"], alpha_w], axis=1).astype(bf16)   # (256, 384)
    alpha_b = jnp.zeros((1, OUT_PAD), jnp.float32).at[0, 1].set(params["ba"][0, 0])
    bfa = jnp.concatenate([params["bf"], alpha_b], axis=1)                # (1, 384) f32

    wvf = params["wvf"].astype(bf16)                             # (256, 128)
    bv = params["bv"]                                            # (1, 128) f32

    # rho head padded to 128 lanes (col 0 real, rest exactly zero).
    wrp = (jnp.zeros((HV, OUT_PAD), jnp.float32)
           .at[:, 0].set(params["wr"][:, 0]).astype(bf16))       # (128, 128)
    brp = jnp.zeros((1, OUT_PAD), jnp.float32).at[0, 0].set(params["br"][0, 0])

    return (wx, b0, whid, bhid, wfa, bfa, wvf, bv, wrp, brp)


@functools.partial(jax.jit, static_argnames=("tile_n",))
def network_s_relu(x, params, *, tile_n=2048):
    assert tile_n % 256 == 0, "tile_n must be a multiple of 256"
    n = x.shape[0]

    # Clamp the tile for small batches and pad the batch so any n works.
    tile = int(min(tile_n, pl.cdiv(n, 256) * 256))
    n_pad = int(pl.cdiv(n, tile) * tile)
    if n_pad != n:
        x = jnp.pad(x, ((0, n_pad - n), (0, 0)))

    operands = _pack_operands(params)

    x_spec = pl.BlockSpec((tile, INPUT_CH + INPUT_CH_VIEWS), lambda i: (i, 0))
    # Constant weights/biases: whole-array, VMEM-resident, single-buffered.
    vmem_spec = pl.BlockSpec(memory_space=pltpu.MemorySpace.VMEM)
    param_specs = [vmem_spec] * len(operands)
    out_spec = pl.BlockSpec((tile, OUT_PAD), lambda i: (i, 0))

    flops_per_row = 2 * (
        (INPUT_CH + INPUT_CH_VIEWS) * FUSED_IN   # fused x matmul (w0 | w5p | wvv)
        + 6 * H * H                              # layers 1-4, 6, 7
        + H * H                                  # skip layer 5 (h part)
        + H * (H + OUT_PAD)                      # fused feature + alpha head
        + H * HV                                 # views layer (feature part)
        + HV * OUT_PAD                           # padded rho head
    )
    param_bytes = sum(int(np.prod(p.shape)) * p.dtype.itemsize for p in operands)
    cost = pl.CostEstimate(
        flops=flops_per_row * n_pad,
        transcendentals=0,
        bytes_accessed=n_pad * ((INPUT_CH + INPUT_CH_VIEWS) * 4 + OUT_PAD * 2)
        + param_bytes,
    )

    out = pl.pallas_call(
        _mlp_kernel,
        out_shape=jax.ShapeDtypeStruct((n_pad, OUT_PAD), jnp.bfloat16),
        grid_spec=pltpu.PrefetchScalarGridSpec(
            num_scalar_prefetch=0,
            grid=(n_pad // tile,),
            in_specs=[x_spec] + param_specs,
            out_specs=out_spec,
        ),
        compiler_params=pltpu.CompilerParams(
            dimension_semantics=("parallel",),   # megacore-shards the row blocks
            vmem_limit_bytes=48 * 1024 * 1024,   # fits v5e scoped & v7x physical
        ),
        cost_estimate=cost,
    )(x, *operands)

    # Narrow, fused slice of the lane-dense bf16 block: [rho, alpha] in f32,
    # matching the PyTorch module's output layout.
    return out[:n, :2].astype(jnp.float32)


def reference_forward(x, params):
    """Pure-JAX f32 reference mirroring the PyTorch forward (no_rho=False)."""
    pts = x[:, :INPUT_CH]
    views = x[:, INPUT_CH:INPUT_CH + INPUT_CH_VIEWS]
    h = jax.nn.relu(pts @ params["w0"] + params["b0"])
    for i in range(1, 5):
        h = jax.nn.relu(h @ params[f"w{i}"] + params[f"b{i}"])
    h = jax.nn.relu(pts @ params["w5p"] + h @ params["w5h"] + params["b5"])
    for i in range(6, 8):
        h = jax.nn.relu(h @ params[f"w{i}"] + params[f"b{i}"])
    alpha = jnp.abs(h @ params["wa"] + params["ba"])
    feature = h @ params["wf"] + params["bf"]
    hv = jax.nn.relu(feature @ params["wvf"] + views @ params["wvv"] + params["bv"])
    rho = jnp.abs(hv @ params["wr"] + params["br"])
    return jnp.concatenate([rho, alpha], axis=-1)


if __name__ == "__main__":
    key = jax.random.PRNGKey(0)
    kx, kp = jax.random.split(key)

    # Small demo: non-multiple batch exercises the padding path; tile_n=512
    # keeps the demo tiny (grid=2). Production use: default tile_n=2048.
    N = 1000
    x = jax.random.normal(kx, (N, INPUT_CH + INPUT_CH_VIEWS), jnp.float32)
    params = init_params(kp)

    out = network_s_relu(x, params, tile_n=512)
    out = jax.block_until_ready(out)
    assert out.shape == (N, 2)

    ref = reference_forward(x, params)
    # bf16 matmul path with f32 accumulation (+ bf16 output block) -> loosened
    # tolerances vs the pure-f32 reference.
    np.testing.assert_allclose(np.asarray(out), np.asarray(ref), rtol=5e-2, atol=1e-2)

    print("KERNEL_OK")
</pallas_src>

<mosaic_0001>
module attributes {stable_mosaic.version = 11 : i64} {
  func.func @_mlp_kernel(%arg0: i32, %arg1: memref<512x6xf32, #tpu.memory_space<vmem>>, %arg2: memref<6x640xbf16, #tpu.memory_space<vmem>>, %arg3: memref<1x256xf32, #tpu.memory_space<vmem>>, %arg4: memref<7x256x256xbf16, #tpu.memory_space<vmem>>, %arg5: memref<7x256xf32, #tpu.memory_space<vmem>>, %arg6: memref<256x384xbf16, #tpu.memory_space<vmem>>, %arg7: memref<1x384xf32, #tpu.memory_space<vmem>>, %arg8: memref<256x128xbf16, #tpu.memory_space<vmem>>, %arg9: memref<1x128xf32, #tpu.memory_space<vmem>>, %arg10: memref<128x128xbf16, #tpu.memory_space<vmem>>, %arg11: memref<1x128xf32, #tpu.memory_space<vmem>>, %arg12: memref<512x128xbf16, #tpu.memory_space<vmem>>) attributes {dimension_semantics = [#tpu.dimension_semantics<parallel>], iteration_bounds = array<i64: 2>, scalar_prefetch = 0 : i64, scratch_operands = 0 : i64, tpu.core_type = #tpu.core_type<tc>, window_params = [{transform_indices = @transform_0, window_bounds = array<i64: 512, 6>}, {pipeline_mode = #tpu.pipeline_mode<synchronous>, transform_indices = @transform_1, window_bounds = array<i64: 6, 640>}, {pipeline_mode = #tpu.pipeline_mode<synchronous>, transform_indices = @transform_2, window_bounds = array<i64: 1, 256>}, {pipeline_mode = #tpu.pipeline_mode<synchronous>, transform_indices = @transform_3, window_bounds = array<i64: 7, 256, 256>}, {pipeline_mode = #tpu.pipeline_mode<synchronous>, transform_indices = @transform_4, window_bounds = array<i64: 7, 256>}, {pipeline_mode = #tpu.pipeline_mode<synchronous>, transform_indices = @transform_5, window_bounds = array<i64: 256, 384>}, {pipeline_mode = #tpu.pipeline_mode<synchronous>, transform_indices = @transform_6, window_bounds = array<i64: 1, 384>}, {pipeline_mode = #tpu.pipeline_mode<synchronous>, transform_indices = @transform_7, window_bounds = array<i64: 256, 128>}, {pipeline_mode = #tpu.pipeline_mode<synchronous>, transform_indices = @transform_8, window_bounds = array<i64: 1, 128>}, {pipeline_mode = #tpu.pipeline_mode<synchronous>, transform_indices = @transform_9, window_bounds = array<i64: 128, 128>}, {pipeline_mode = #tpu.pipeline_mode<synchronous>, transform_indices = @transform_10, window_bounds = array<i64: 1, 128>}, {transform_indices = @transform_11, window_bounds = array<i64: 512, 128>}]} {
    %c0 = arith.constant 0 : index
    %c0_0 = arith.constant 0 : index
    %0 = vector.load %arg1[%c0, %c0_0] : memref<512x6xf32, #tpu.memory_space<vmem>>, vector<512x6xf32>
    %1 = arith.truncf %0 : vector<512x6xf32> to vector<512x6xbf16>
    %c0_1 = arith.constant 0 : index
    %c0_2 = arith.constant 0 : index
    %2 = vector.load %arg2[%c0_1, %c0_2] : memref<6x640xbf16, #tpu.memory_space<vmem>>, vector<6x640xbf16>
    %cst = arith.constant dense<0.000000e+00> : vector<512x640xf32>
    %3 = tpu.matmul %1, %2, %cst {dimension_numbers = #tpu.dot_dimension_numbers<[1], [0], [0], [1], [0, 0, 1, 1], [], []>} : vector<512x6xbf16>, vector<6x640xbf16>, vector<512x640xf32> -> vector<512x640xf32>
    %4 = vector.extract_strided_slice %3 {offsets = [0, 0], sizes = [512, 256], strides = [1, 1]} : vector<512x640xf32> to vector<512x256xf32>
    %c0_3 = arith.constant 0 : index
    %c0_4 = arith.constant 0 : index
    %5 = vector.load %arg3[%c0_3, %c0_4] : memref<1x256xf32, #tpu.memory_space<vmem>>, vector<1x256xf32>
    %6 = vector.broadcast %5 : vector<1x256xf32> to vector<512x256xf32>
    %7 = arith.addf %4, %6 : vector<512x256xf32>
    %cst_5 = arith.constant 0.000000e+00 : f32
    %8 = vector.broadcast %cst_5 : f32 to vector<512x256xf32>
    %9 = arith.maximumf %7, %8 : vector<512x256xf32>
    %10 = arith.truncf %9 : vector<512x256xf32> to vector<512x256xbf16>
    %c0_6 = arith.constant 0 : index
    %c0_7 = arith.constant 0 : index
    %c0_8 = arith.constant 0 : index
    %11 = vector.load %arg4[%c0_6, %c0_7, %c0_8] : memref<7x256x256xbf16, #tpu.memory_space<vmem>>, vector<1x256x256xbf16>
    %12 = vector.shape_cast %11 : vector<1x256x256xbf16> to vector<256x256xbf16>
    %cst_9 = arith.constant dense<0.000000e+00> : vector<512x256xf32>
    %13 = tpu.matmul %10, %12, %cst_9 {dimension_numbers = #tpu.dot_dimension_numbers<[1], [0], [0], [1], [0, 0, 1, 1], [], []>} : vector<512x256xbf16>, vector<256x256xbf16>, vector<512x256xf32> -> vector<512x256xf32>
    %c0_10 = arith.constant 0 : index
    %c0_11 = arith.constant 0 : index
    %14 = vector.load %arg5[%c0_10, %c0_11] : memref<7x256xf32, #tpu.memory_space<vmem>>, vector<1x256xf32>
    %15 = vector.broadcast %14 : vector<1x256xf32> to vector<512x256xf32>
    %16 = arith.addf %13, %15 : vector<512x256xf32>
    %cst_12 = arith.constant 0.000000e+00 : f32
    %17 = vector.broadcast %cst_12 : f32 to vector<512x256xf32>
    %18 = arith.maximumf %16, %17 : vector<512x256xf32>
    %19 = arith.truncf %18 : vector<512x256xf32> to vector<512x256xbf16>
    %c1 = arith.constant 1 : index
    %c0_13 = arith.constant 0 : index
    %c0_14 = arith.constant 0 : index
    %20 = vector.load %arg4[%c1, %c0_13, %c0_14] : memref<7x256x256xbf16, #tpu.memory_space<vmem>>, vector<1x256x256xbf16>
    %21 = vector.shape_cast %20 : vector<1x256x256xbf16> to vector<256x256xbf16>
    %cst_15 = arith.constant dense<0.000000e+00> : vector<512x256xf32>
    %22 = tpu.matmul %19, %21, %cst_15 {dimension_numbers = #tpu.dot_dimension_numbers<[1], [0], [0], [1], [0, 0, 1, 1], [], []>} : vector<512x256xbf16>, vector<256x256xbf16>, vector<512x256xf32> -> vector<512x256xf32>
    %c1_16 = arith.constant 1 : index
    %c0_17 = arith.constant 0 : index
    %23 = vector.load %arg5[%c1_16, %c0_17] : memref<7x256xf32, #tpu.memory_space<vmem>>, vector<1x256xf32>
    %24 = vector.broadcast %23 : vector<1x256xf32> to vector<512x256xf32>
    %25 = arith.addf %22, %24 : vector<512x256xf32>
    %cst_18 = arith.constant 0.000000e+00 : f32
    %26 = vector.broadcast %cst_18 : f32 to vector<512x256xf32>
    %27 = arith.maximumf %25, %26 : vector<512x256xf32>
    %28 = arith.truncf %27 : vector<512x256xf32> to vector<512x256xbf16>
    %c2 = arith.constant 2 : index
    %c0_19 = arith.constant 0 : index
    %c0_20 = arith.constant 0 : index
    %29 = vector.load %arg4[%c2, %c0_19, %c0_20] : memref<7x256x256xbf16, #tpu.memory_space<vmem>>, vector<1x256x256xbf16>
    %30 = vector.shape_cast %29 : vector<1x256x256xbf16> to vector<256x256xbf16>
    %cst_21 = arith.constant dense<0.000000e+00> : vector<512x256xf32>
    %31 = tpu.matmul %28, %30, %cst_21 {dimension_numbers = #tpu.dot_dimension_numbers<[1], [0], [0], [1], [0, 0, 1, 1], [], []>} : vector<512x256xbf16>, vector<256x256xbf16>, vector<512x256xf32> -> vector<512x256xf32>
    %c2_22 = arith.constant 2 : index
    %c0_23 = arith.constant 0 : index
    %32 = vector.load %arg5[%c2_22, %c0_23] : memref<7x256xf32, #tpu.memory_space<vmem>>, vector<1x256xf32>
    %33 = vector.broadcast %32 : vector<1x256xf32> to vector<512x256xf32>
    %34 = arith.addf %31, %33 : vector<512x256xf32>
    %cst_24 = arith.constant 0.000000e+00 : f32
    %35 = vector.broadcast %cst_24 : f32 to vector<512x256xf32>
    %36 = arith.maximumf %34, %35 : vector<512x256xf32>
    %37 = arith.truncf %36 : vector<512x256xf32> to vector<512x256xbf16>
    %c3 = arith.constant 3 : index
    %c0_25 = arith.constant 0 : index
    %c0_26 = arith.constant 0 : index
    %38 = vector.load %arg4[%c3, %c0_25, %c0_26] : memref<7x256x256xbf16, #tpu.memory_space<vmem>>, vector<1x256x256xbf16>
    %39 = vector.shape_cast %38 : vector<1x256x256xbf16> to vector<256x256xbf16>
    %cst_27 = arith.constant dense<0.000000e+00> : vector<512x256xf32>
    %40 = tpu.matmul %37, %39, %cst_27 {dimension_numbers = #tpu.dot_dimension_numbers<[1], [0], [0], [1], [0, 0, 1, 1], [], []>} : vector<512x256xbf16>, vector<256x256xbf16>, vector<512x256xf32> -> vector<512x256xf32>
    %c3_28 = arith.constant 3 : index
    %c0_29 = arith.constant 0 : index
    %41 = vector.load %arg5[%c3_28, %c0_29] : memref<7x256xf32, #tpu.memory_space<vmem>>, vector<1x256xf32>
    %42 = vector.broadcast %41 : vector<1x256xf32> to vector<512x256xf32>
    %43 = arith.addf %40, %42 : vector<512x256xf32>
    %cst_30 = arith.constant 0.000000e+00 : f32
    %44 = vector.broadcast %cst_30 : f32 to vector<512x256xf32>
    %45 = arith.maximumf %43, %44 : vector<512x256xf32>
    %46 = arith.truncf %45 : vector<512x256xf32> to vector<512x256xbf16>
    %c4 = arith.constant 4 : index
    %c0_31 = arith.constant 0 : index
    %c0_32 = arith.constant 0 : index
    %47 = vector.load %arg4[%c4, %c0_31, %c0_32] : memref<7x256x256xbf16, #tpu.memory_space<vmem>>, vector<1x256x256xbf16>
    %48 = vector.shape_cast %47 : vector<1x256x256xbf16> to vector<256x256xbf16>
    %cst_33 = arith.constant dense<0.000000e+00> : vector<512x256xf32>
    %49 = tpu.matmul %46, %48, %cst_33 {dimension_numbers = #tpu.dot_dimension_numbers<[1], [0], [0], [1], [0, 0, 1, 1], [], []>} : vector<512x256xbf16>, vector<256x256xbf16>, vector<512x256xf32> -> vector<512x256xf32>
    %50 = vector.extract_strided_slice %3 {offsets = [0, 256], sizes = [512, 256], strides = [1, 1]} : vector<512x640xf32> to vector<512x256xf32>
    %51 = arith.addf %49, %50 : vector<512x256xf32>
    %c4_34 = arith.constant 4 : index
    %c0_35 = arith.constant 0 : index
    %52 = vector.load %arg5[%c4_34, %c0_35] : memref<7x256xf32, #tpu.memory_space<vmem>>, vector<1x256xf32>
    %53 = vector.broadcast %52 : vector<1x256xf32> to vector<512x256xf32>
    %54 = arith.addf %51, %53 : vector<512x256xf32>
    %cst_36 = arith.constant 0.000000e+00 : f32
    %55 = vector.broadcast %cst_36 : f32 to vector<512x256xf32>
    %56 = arith.maximumf %54, %55 : vector<512x256xf32>
    %57 = arith.truncf %56 : vector<512x256xf32> to vector<512x256xbf16>
    %c5 = arith.constant 5 : index
    %c0_37 = arith.constant 0 : index
    %c0_38 = arith.constant 0 : index
    %58 = vector.load %arg4[%c5, %c0_37, %c0_38] : memref<7x256x256xbf16, #tpu.memory_space<vmem>>, vector<1x256x256xbf16>
    %59 = vector.shape_cast %58 : vector<1x256x256xbf16> to vector<256x256xbf16>
    %cst_39 = arith.constant dense<0.000000e+00> : vector<512x256xf32>
    %60 = tpu.matmul %57, %59, %cst_39 {dimension_numbers = #tpu.dot_dimension_numbers<[1], [0], [0], [1], [0, 0, 1, 1], [], []>} : vector<512x256xbf16>, vector<256x256xbf16>, vector<512x256xf32> -> vector<512x256xf32>
    %c5_40 = arith.constant 5 : index
    %c0_41 = arith.constant 0 : index
    %61 = vector.load %arg5[%c5_40, %c0_41] : memref<7x256xf32, #tpu.memory_space<vmem>>, vector<1x256xf32>
    %62 = vector.broadcast %61 : vector<1x256xf32> to vector<512x256xf32>
    %63 = arith.addf %60, %62 : vector<512x256xf32>
    %cst_42 = arith.constant 0.000000e+00 : f32
    %64 = vector.broadcast %cst_42 : f32 to vector<512x256xf32>
    %65 = arith.maximumf %63, %64 : vector<512x256xf32>
    %66 = arith.truncf %65 : vector<512x256xf32> to vector<512x256xbf16>
    %c6 = arith.constant 6 : index
    %c0_43 = arith.constant 0 : index
    %c0_44 = arith.constant 0 : index
    %67 = vector.load %arg4[%c6, %c0_43, %c0_44] : memref<7x256x256xbf16, #tpu.memory_space<vmem>>, vector<1x256x256xbf16>
    %68 = vector.shape_cast %67 : vector<1x256x256xbf16> to vector<256x256xbf16>
    %cst_45 = arith.constant dense<0.000000e+00> : vector<512x256xf32>
    %69 = tpu.matmul %66, %68, %cst_45 {dimension_numbers = #tpu.dot_dimension_numbers<[1], [0], [0], [1], [0, 0, 1, 1], [], []>} : vector<512x256xbf16>, vector<256x256xbf16>, vector<512x256xf32> -> vector<512x256xf32>
    %c6_46 = arith.constant 6 : index
    %c0_47 = arith.constant 0 : index
    %70 = vector.load %arg5[%c6_46, %c0_47] : memref<7x256xf32, #tpu.memory_space<vmem>>, vector<1x256xf32>
    %71 = vector.broadcast %70 : vector<1x256xf32> to vector<512x256xf32>
    %72 = arith.addf %69, %71 : vector<512x256xf32>
    %cst_48 = arith.constant 0.000000e+00 : f32
    %73 = vector.broadcast %cst_48 : f32 to vector<512x256xf32>
    %74 = arith.maximumf %72, %73 : vector<512x256xf32>
    %75 = arith.truncf %74 : vector<512x256xf32> to vector<512x256xbf16>
    %c0_49 = arith.constant 0 : index
    %c0_50 = arith.constant 0 : index
    %76 = vector.load %arg6[%c0_49, %c0_50] : memref<256x384xbf16, #tpu.memory_space<vmem>>, vector<256x384xbf16>
    %cst_51 = arith.constant dense<0.000000e+00> : vector<512x384xf32>
    %77 = tpu.matmul %75, %76, %cst_51 {dimension_numbers = #tpu.dot_dimension_numbers<[1], [0], [0], [1], [0, 0, 1, 1], [], []>} : vector<512x256xbf16>, vector<256x384xbf16>, vector<512x384xf32> -> vector<512x384xf32>
    %c0_52 = arith.constant 0 : index
    %c0_53 = arith.constant 0 : index
    %78 = vector.load %arg7[%c0_52, %c0_53] : memref<1x384xf32, #tpu.memory_space<vmem>>, vector<1x384xf32>
    %79 = vector.broadcast %78 : vector<1x384xf32> to vector<512x384xf32>
    %80 = arith.addf %77, %79 : vector<512x384xf32>
    %81 = vector.extract_strided_slice %80 {offsets = [0, 0], sizes = [512, 256], strides = [1, 1]} : vector<512x384xf32> to vector<512x256xf32>
    %82 = arith.truncf %81 : vector<512x256xf32> to vector<512x256xbf16>
    %83 = vector.extract_strided_slice %80 {offsets = [0, 256], sizes = [512, 128], strides = [1, 1]} : vector<512x384xf32> to vector<512x128xf32>
    %c0_54 = arith.constant 0 : index
    %c0_55 = arith.constant 0 : index
    %84 = vector.load %arg8[%c0_54, %c0_55] : memref<256x128xbf16, #tpu.memory_space<vmem>>, vector<256x128xbf16>
    %cst_56 = arith.constant dense<0.000000e+00> : vector<512x128xf32>
    %85 = tpu.matmul %82, %84, %cst_56 {dimension_numbers = #tpu.dot_dimension_numbers<[1], [0], [0], [1], [0, 0, 1, 1], [], []>} : vector<512x256xbf16>, vector<256x128xbf16>, vector<512x128xf32> -> vector<512x128xf32>
    %86 = vector.extract_strided_slice %3 {offsets = [0, 512], sizes = [512, 128], strides = [1, 1]} : vector<512x640xf32> to vector<512x128xf32>
    %87 = arith.addf %85, %86 : vector<512x128xf32>
    %c0_57 = arith.constant 0 : index
    %c0_58 = arith.constant 0 : index
    %88 = vector.load %arg9[%c0_57, %c0_58] : memref<1x128xf32, #tpu.memory_space<vmem>>, vector<1x128xf32>
    %89 = vector.broadcast %88 : vector<1x128xf32> to vector<512x128xf32>
    %90 = arith.addf %87, %89 : vector<512x128xf32>
    %cst_59 = arith.constant 0.000000e+00 : f32
    %91 = vector.broadcast %cst_59 : f32 to vector<512x128xf32>
    %92 = arith.maximumf %90, %91 : vector<512x128xf32>
    %93 = arith.truncf %92 : vector<512x128xf32> to vector<512x128xbf16>
    %c0_60 = arith.constant 0 : index
    %c0_61 = arith.constant 0 : index
    %94 = vector.load %arg10[%c0_60, %c0_61] : memref<128x128xbf16, #tpu.memory_space<vmem>>, vector<128x128xbf16>
    %cst_62 = arith.constant dense<0.000000e+00> : vector<512x128xf32>
    %95 = tpu.matmul %93, %94, %cst_62 {dimension_numbers = #tpu.dot_dimension_numbers<[1], [0], [0], [1], [0, 0, 1, 1], [], []>} : vector<512x128xbf16>, vector<128x128xbf16>, vector<512x128xf32> -> vector<512x128xf32>
    %c0_63 = arith.constant 0 : index
    %c0_64 = arith.constant 0 : index
    %96 = vector.load %arg11[%c0_63, %c0_64] : memref<1x128xf32, #tpu.memory_space<vmem>>, vector<1x128xf32>
    %97 = vector.broadcast %96 : vector<1x128xf32> to vector<512x128xf32>
    %98 = arith.addf %95, %97 : vector<512x128xf32>
    %99 = arith.addf %98, %83 : vector<512x128xf32>
    %100 = math.absf %99 : vector<512x128xf32>
    %101 = arith.truncf %100 : vector<512x128xf32> to vector<512x128xbf16>
    %c0_65 = arith.constant 0 : index
    %c0_66 = arith.constant 0 : index
    %102 = vector.load %arg12[%c0_65, %c0_66] : memref<512x128xbf16, #tpu.memory_space<vmem>>, vector<512x128xbf16>
    tpu.vector_store %arg12[%c0_65, %c0_66], %101 {strides = array<i32>} : memref<512x128xbf16, #tpu.memory_space<vmem>>, vector<512x128xbf16>,
    return
  }
  func.func @transform_0(%arg0: i32) -> (i32, i32) {
    %c0_i32 = arith.constant 0 : i32
    %c0_i32_0 = arith.constant 0 : i32
    return %arg0, %c0_i32 : i32, i32
  }
  func.func @transform_1(%arg0: i32) -> (i32, i32) {
    %c0_i32 = arith.constant 0 : i32
    %c0_i32_0 = arith.constant 0 : i32
    %c0_i32_1 = arith.constant 0 : i32
    return %c0_i32, %c0_i32_0 : i32, i32
  }
  func.func @transform_2(%arg0: i32) -> (i32, i32) {
    %c0_i32 = arith.constant 0 : i32
    %c0_i32_0 = arith.constant 0 : i32
    %c0_i32_1 = arith.constant 0 : i32
    return %c0_i32, %c0_i32_0 : i32, i32
  }
  func.func @transform_3(%arg0: i32) -> (i32, i32, i32) {
    %c0_i32 = arith.constant 0 : i32
    %c0_i32_0 = arith.constant 0 : i32
    %c0_i32_1 = arith.constant 0 : i32
    %c0_i32_2 = arith.constant 0 : i32
    return %c0_i32, %c0_i32_0, %c0_i32_1 : i32, i32, i32
  }
  func.func @transform_4(%arg0: i32) -> (i32, i32) {
    %c0_i32 = arith.constant 0 : i32
    %c0_i32_0 = arith.constant 0 : i32
    %c0_i32_1 = arith.constant 0 : i32
    return %c0_i32, %c0_i32_0 : i32, i32
  }
  func.func @transform_5(%arg0: i32) -> (i32, i32) {
    %c0_i32 = arith.constant 0 : i32
    %c0_i32_0 = arith.constant 0 : i32
    %c0_i32_1 = arith.constant 0 : i32
    return %c0_i32, %c0_i32_0 : i32, i32
  }
  func.func @transform_6(%arg0: i32) -> (i32, i32) {
    %c0_i32 = arith.constant 0 : i32
    %c0_i32_0 = arith.constant 0 : i32
    %c0_i32_1 = arith.constant 0 : i32
    return %c0_i32, %c0_i32_0 : i32, i32
  }
  func.func @transform_7(%arg0: i32) -> (i32, i32) {
    %c0_i32 = arith.constant 0 : i32
    %c0_i32_0 = arith.constant 0 : i32
    %c0_i32_1 = arith.constant 0 : i32
    return %c0_i32, %c0_i32_0 : i32, i32
  }
  func.func @transform_8(%arg0: i32) -> (i32, i32) {
    %c0_i32 = arith.constant 0 : i32
    %c0_i32_0 = arith.constant 0 : i32
    %c0_i32_1 = arith.constant 0 : i32
    return %c0_i32, %c0_i32_0 : i32, i32
  }
  func.func @transform_9(%arg0: i32) -> (i32, i32) {
    %c0_i32 = arith.constant 0 : i32
    %c0_i32_0 = arith.constant 0 : i32
    %c0_i32_1 = arith.constant 0 : i32
    return %c0_i32, %c0_i32_0 : i32, i32
  }
  func.func @transform_10(%arg0: i32) -> (i32, i32) {
    %c0_i32 = arith.constant 0 : i32
    %c0_i32_0 = arith.constant 0 : i32
    %c0_i32_1 = arith.constant 0 : i32
    return %c0_i32, %c0_i32_0 : i32, i32
  }
  func.func @transform_11(%arg0: i32) -> (i32, i32) {
    %c0_i32 = arith.constant 0 : i32
    %c0_i32_0 = arith.constant 0 : i32
    return %arg0, %c0_i32 : i32, i32
  }
}

</mosaic_0001>

<bundles_post_ra>
// kernel: network_s_relu.1
= control target key start
LH: loop header
LB: loop body
LE: loop exit
PB: predicated region body
PF: predicated region fallthrough
CT: control target
= control target key end

     0   :  { %s11602_s17 = smov 0   ;;  %s15835_s0 = inlined_call_operand.vmem [shape: f32[1024,6], index: 0, kind: input, shape index: {}]   ;;  %s15836_s1 = inlined_call_operand.vmem [shape: bf16[6,640], index: 1, kind: input, shape index: {}]   ;;  %s15837_s2 = inlined_call_operand.vmem [shape: f32[1,256], index: 2, kind: input, shape index: {}]   ;;  %s15838_s3 = inlined_call_operand.vmem [shape: bf16[7,256,256], index: 3, kind: input, shape index: {}]   ;;  %s15839_s4 = inlined_call_operand.vmem [shape: f32[7,256], index: 4, kind: input, shape index: {}]   ;;  %s15840_s5 = inlined_call_operand.vmem [shape: bf16[256,384], index: 5, kind: input, shape index: {}]   ;;  %s15841_s6 = inlined_call_operand.vmem [shape: f32[1,384], index: 6, kind: input, shape index: {}]   ;;  %s15842_s7 = inlined_call_operand.vmem [shape: bf16[256,128], index: 7, kind: input, shape index: {}]   ;;  %s15843_s8 = inlined_call_operand.vmem [shape: f32[1,128], index: 8, kind: input, shape index: {}]   ;;  %s15844_s9 = inlined_call_operand.vmem [shape: bf16[128,128], index: 9, kind: input, shape index: {}]   ;;  %s15845_s10 = inlined_call_operand.vmem [shape: f32[1,128], index: 10, kind: input, shape index: {}]   ;;  %s15846_s11 = inlined_call_operand.vmem [shape: bf16[1024,128], index: 11, kind: output, shape index: {}]  }
   0x1 LB: > { %s9817_s18 = sadd.s32 4294967295, %s11539_s17   ;;  %p9821_p0 = scmp.ge.s32.totalorder %s11539_s17, 1  ;;  %s11539_s17 = sphi %s11602_s17, %s21_s17  }
   0x2   : > { %p338_p1 = scmp.lt.s32.totalorder %s11539_s17, 3 }
   0x4   : > { %p339_p2 = pnand %p9821_p0, %p338_p1 }
   0x6   : > { %342 = sbr.rel (%p339_p2) target bundleno = 2782 (0xade), region = 64 }
   0xd   : > { %v488_v0 = vld [vmem:[%s15836_s1 + $0x8] sm:$0x77]  ;;  %vm600_vm0 = vcmask 1042432   ;;  %v15847_v3 = vmov 0   ;;  %s9822_s23 = sshll.u32 %s9817_s18, 6  ;;  %vm503_vm1 = vcmask 48128  }
   0xe   : > { %v9829_v1 = vcombine.high %v488_v0, %v488_v0  ;;  %v9828_v2 = vcombine.low %v488_v0, %v488_v0  ;;  %1001 = vmatprep.mubr.bf16.mxu1 %v15847_v3  ;;  %v11107_v4 = vld [vmem:[%s15838_s3 + $0x4] ss:$8 sps:$4 sm:$0xff]   ;;  %648 = vmatprep.mubr.bf16.mxu0 %v15847_v3  ;;  %p379_p3 = scmp.lt.s32.totalorder %s9822_s23, 127  ;;  %v11105_v10 = vld [vmem:[%s15838_s3] ss:$8 sps:$4 sm:$0xff]  }
   0xf   : > { %v487_v6 = vld [vmem:[%s15836_s1] sm:$0x77]  ;;  %v11110_v14 = vld [vmem:[%s15838_s3 + $0x14] ss:$8 sps:$4 sm:$0xff]   ;;  %v11108_v17 = vld [vmem:[%s15838_s3 + $0x10] ss:$8 sps:$4 sm:$0xff]  }
  0x10   : > { %9864 = vmatprep.subr.msk.bf16.mxu1 %vm600_vm0, %v9829_v1  ;;  %v608_v5 = vsel %vm600_vm0, %v9828_v2, 0  ;;  %s16095_s23 = smov (!%p379_p3, %s9822_s23), 127  ;;  %v9827_v7 = vcombine.high %v487_v6, %v487_v6  ;;  %v9826_v8 = vcombine.low %v487_v6, %v487_v6  ;;  %v11115_v18 = vld [vmem:[%s15838_s3 + $0x24] ss:$8 sps:$4 sm:$0xff]   ;;  %v11113_v20 = vld [vmem:[%s15838_s3 + $0x20] ss:$8 sps:$4 sm:$0xff]  }
  0x11   : > { %970 = vmatpush1.bf16.msra.mxu1 %v608_v5  ;;  %s9823_s26 = sshll.u32 %s16095_s23, 3  ;;  %v11118_v21 = vld [vmem:[%s15838_s3 + $0x34] ss:$8 sps:$4 sm:$0xff]   ;;  %v11125_v22 = vld [vmem:[%s15836_s1 + $0x10] ss:$0 sps:$4 sm:$0x77]  }
  0x12   : > { %2147 = vmatprep.subr.bf16.mxu1 %v11107_v4  ;;  %9831 = vmatprep.subr.msk.bf16.mxu0 %vm600_vm0, %v9827_v7  ;;  %v602_v9 = vsel %vm600_vm0, %v9826_v8, 0  ;;  %s11631_s29 = scalar_lea.vmem %s15835_s0, %s9823_s26  ;;  %v11116_v24 = vld [vmem:[%s15838_s3 + $0x30] ss:$8 sps:$4 sm:$0xff]   ;;  %v614_v26 = vsel %vm600_vm0, %v11125_v22, 0  ;;  %v11121_v27 = vld [vmem:[%s15838_s3 + $0x44] ss:$8 sps:$4 sm:$0xff]  }
  0x13   : > { %617 = vmatpush1.bf16.msra.mxu0 %v602_v9  ;;  %v391_v11 = vld [vmem:[%s11631_s29] sm:$0xff]  ;;  %v392_v12 = vld [vmem:[%s11631_s29 + $0x8] sm:$0xff]  ;;  %v393_v15 = vld [vmem:[%s11631_s29 + $0x10] sm:$0xff]  ;;  %s9825_s19 = sshll.u32 %s16095_s23, 2 }
  0x14   : > { %v11638_v13 = vpack.c.bf16 %v392_v12, %v391_v11  ;;  %v394_v16 = vld [vmem:[%s11631_s29 + $0x18] sm:$0xff]  ;;  %v395_v23 = vld [vmem:[%s11631_s29 + $0x20] sm:$0xff]  ;;  %v396_v25 = vld [vmem:[%s11631_s29 + $0x28] sm:$0xff]  ;;  %11093 = vmatprep.subr.msk.bf16.mxu0 %vm600_vm0, %v11125_v22  ;;  %s15610_s22 = scalar_lea.vmem %s15846_s11, %s9825_s19 }
  0x15   : > { %v11657_v19 = vpack.c.bf16 %v394_v16, %v393_v15  ;;  %v11684_v28 = vpack.c.bf16 %v396_v25, %v395_v23  ;;  %v11119_v29 = vld [vmem:[%s15838_s3 + $0x40] ss:$8 sps:$4 sm:$0xff]   ;;  %v11124_v30 = vld [vmem:[%s15838_s3 + $0x54] ss:$8 sps:$4 sm:$0xff]   ;;  %v11122_v33 = vld [vmem:[%s15838_s3 + $0x50] ss:$8 sps:$4 sm:$0xff]  }
  0x16   : > { %9865 = vmatmul.mubr.msk.bf16.vlgmr.msra.gmra.mrb[0].mxu1 %vm503_vm1, %v11638_v13  ;;  %9832 = vmatmul.mubr.msk.bf16.vlgmr.msra.gmra.mrb[0].mxu0 %vm503_vm1, %v11638_v13  ;;  %v397_v31 = vld [vmem:[%s11631_s29 + $0x30] sm:$0xff]  ;;  %v398_v32 = vld [vmem:[%s11631_s29 + $0x38] sm:$0xff]  ;;  %v11128_v34 = vld [vmem:[%s15838_s3 + $0x64] ss:$8 sps:$4 sm:$0xff]  }
  0x17   : > { %2148 = vmatpush1.bf16.msra.mxu1 %v11105_v10  ;;  %1011 = vmatprep.mubr.bf16.mxu1 %v15847_v3  ;;  %v11706_v35 = vpack.c.bf16 %v398_v32, %v397_v31  ;;  %v11126_v36 = vld [vmem:[%s15838_s3 + $0x60] ss:$8 sps:$4 sm:$0xff]   ;;  %v11131_v37 = vld [vmem:[%s15838_s3 + $0x74] ss:$8 sps:$4 sm:$0xff]   ;;  %v11129_v40 = vld [vmem:[%s15838_s3 + $0x70] ss:$8 sps:$4 sm:$0xff]  }
  0x18   : > { %2149 = vmatprep.subr.bf16.mxu1 %v11110_v14  ;;  %658 = vmatprep.mubr.bf16.mxu0 %v15847_v3  ;;  %v399_v38 = vld [vmem:[%s11631_s29 + $0x40] sm:$0xff]  ;;  %v400_v39 = vld [vmem:[%s11631_s29 + $0x48] sm:$0xff]  ;;  %v11137_v44 = vld [vmem:[%s15838_s3 + $0x94] ss:$8 sps:$4 sm:$0xff]  }
  0x19   : > { %10820 = vmatpush3.bf16.msra.mxu0 %v614_v26  ;;  %v11134_v41 = vld [vmem:[%s15838_s3 + $0x84] ss:$8 sps:$4 sm:$0xff]   ;;  %v11728_v42 = vpack.c.bf16 %v400_v39, %v399_v38  ;;  %v11132_v43 = vld [vmem:[%s15838_s3 + $0x80] ss:$8 sps:$4 sm:$0xff]   ;;  %v401_v45 = vld [vmem:[%s11631_s29 + $0x50] sm:$0xff] }
  0x1a   : > { %v402_v46 = vld [vmem:[%s11631_s29 + $0x58] sm:$0xff]  ;;  %v11140_v48 = vld [vmem:[%s15838_s3 + $0xa4] ss:$8 sps:$4 sm:$0xff]   ;;  %v11138_v50 = vld [vmem:[%s15838_s3 + $0xa0] ss:$8 sps:$4 sm:$0xff]  }
  0x1b   : > { %2150 = vmatpush1.bf16.msra.mxu1 %v11108_v17  ;;  %v11135_v47 = vld [vmem:[%s15838_s3 + $0x90] ss:$8 sps:$4 sm:$0xff]   ;;  %v11750_v49 = vpack.c.bf16 %v402_v46, %v401_v45  ;;  %v403_v51 = vld [vmem:[%s11631_s29 + $0x60] sm:$0xff]  ;;  %v404_v52 = vld [vmem:[%s11631_s29 + $0x68] sm:$0xff] }
  0x1c   : > { %2151 = vmatprep.subr.bf16.mxu1 %v11115_v18  ;;  %v11143_v53 = vld [vmem:[%s15838_s3 + $0xb4] ss:$8 sps:$4 sm:$0xff]   ;;  %v11141_v54 = vld [vmem:[%s15838_s3 + $0xb0] ss:$8 sps:$4 sm:$0xff]   ;;  %v11769_v55 = vpack.c.bf16 %v404_v52, %v403_v51  ;;  %v407_v59 = vld [vmem:[%s11631_s29 + $0x80] sm:$0xff] }
  0x1d   : > { %v405_v56 = vld [vmem:[%s11631_s29 + $0x70] sm:$0xff]  ;;  %v406_v57 = vld [vmem:[%s11631_s29 + $0x78] sm:$0xff]  ;;  %v408_v60 = vld [vmem:[%s11631_s29 + $0x88] sm:$0xff] }
  0x1e   : > { %9866 = vmatmul.mubr.msk.bf16.gmra.mrb[4].mxu1 %vm503_vm1, %v11657_v19  ;;  %9833 = vmatmul.mubr.msk.bf16.gmra.mrb[4].mxu0 %vm503_vm1, %v11657_v19  ;;  %v11779_v58 = vpack.c.bf16 %v406_v57, %v405_v56  ;;  %v11144_v61 = vld [vmem:[%s15838_s3 + $0xc0] ss:$8 sps:$4 sm:$0xff]   ;;  %v11146_v62 = vld [vmem:[%s15838_s3 + $0xc4] ss:$8 sps:$4 sm:$0xff]   ;;  %v11795_v63 = vpack.c.bf16 %v408_v60, %v407_v59  ;;  %v409_v0 = vld [vmem:[%s11631_s29 + $0x90] sm:$0xff] }
  0x1f   : > { %1021 = vmatprep.mubr.bf16.mxu1 %v15847_v3  ;;  %2152 = vmatpush1.bf16.msra.mxu1 %v11113_v20  ;;  %v410_v1 = vld [vmem:[%s11631_s29 + $0x98] sm:$0xff]  ;;  %v411_v4 = vld [vmem:[%s11631_s29 + $0xa0] sm:$0xff]  ;;  %v412_v5 = vld [vmem:[%s11631_s29 + $0xa8] sm:$0xff] }
  0x20   : > { %668 = vmatprep.mubr.bf16.mxu0 %v15847_v3  ;;  %2153 = vmatprep.subr.bf16.mxu1 %v11118_v21  ;;  %v11805_v2 = vpack.c.bf16 %v410_v1, %v409_v0  ;;  %v11147_v6 = vld [vmem:[%s15838_s3 + $0xd0] ss:$8 sps:$4 sm:$0xff]   ;;  %v11149_v7 = vld [vmem:[%s15838_s3 + $0xd4] ss:$8 sps:$4 sm:$0xff]   ;;  %v11821_v8 = vpack.c.bf16 %v412_v5, %v411_v4  ;;  %v415_v12 = vld [vmem:[%s11631_s29 + $0xc0] sm:$0xff]  ;;  %v1613_v5 = vlaneseq }
  0x21   : > { %v413_v9 = vld [vmem:[%s11631_s29 + $0xb0] sm:$0xff]  ;;  %v414_v10 = vld [vmem:[%s11631_s29 + $0xb8] sm:$0xff]  ;;  %v416_v14 = vld [vmem:[%s11631_s29 + $0xc8] sm:$0xff] }
  0x22   : > { %v11831_v11 = vpack.c.bf16 %v414_v10, %v413_v9  ;;  %v11150_v15 = vld [vmem:[%s15838_s3 + $0xe0] ss:$8 sps:$4 sm:$0xff]   ;;  %v11152_v16 = vld [vmem:[%s15838_s3 + $0xe4] ss:$8 sps:$4 sm:$0xff]   ;;  %v11847_v17 = vpack.c.bf16 %v416_v14, %v415_v12  ;;  %v417_v18 = vld [vmem:[%s11631_s29 + $0xd0] sm:$0xff] }
  0x23   : > { %2154 = vmatpush1.bf16.msra.mxu1 %v11116_v24  ;;  %v418_v20 = vld [vmem:[%s11631_s29 + $0xd8] sm:$0xff]  ;;  %v419_v22 = vld [vmem:[%s11631_s29 + $0xe0] sm:$0xff]  ;;  %v420_v23 = vld [vmem:[%s11631_s29 + $0xe8] sm:$0xff] }
  0x24   : > { %2155 = vmatprep.subr.bf16.mxu1 %v11121_v27  ;;  %v11857_v21 = vpack.c.bf16 %v418_v20, %v417_v18  ;;  %v11153_v24 = vld [vmem:[%s15838_s3 + $0xf0] ss:$8 sps:$4 sm:$0xff]   ;;  %v11155_v25 = vld [vmem:[%s15838_s3 + $0xf4] ss:$8 sps:$4 sm:$0xff]   ;;  %v11873_v26 = vpack.c.bf16 %v420_v23, %v419_v22  ;;  %v423_v31 = vld [vmem:[%s11631_s29 + $0x100] sm:$0xff] }
  0x25   : > { %v421_v27 = vld [vmem:[%s11631_s29 + $0xf0] sm:$0xff]  ;;  %v424_v32 = vld [vmem:[%s11631_s29 + $0x108] sm:$0xff]  ;;  %v427_v38 = vld [vmem:[%s11631_s29 + $0x120] sm:$0xff] }
  0x26   : > { %9867 = vmatmul.mubr.msk.bf16.gmra.mrb[8].mxu1 %vm503_vm1, %v11684_v28  ;;  %9834 = vmatmul.mubr.msk.bf16.gmra.mrb[8].mxu0 %vm503_vm1, %v11684_v28  ;;  %v428_v39 = vld [vmem:[%s11631_s29 + $0x128] sm:$0xff]  ;;  %v431_v45 = vld [vmem:[%s11631_s29 + $0x140] sm:$0xff]  ;;  %v437_v56 = vld [vmem:[%s11631_s29 + $0x170] sm:$0xff] }
  0x27   : > { %1031 = vmatprep.mubr.bf16.mxu1 %v15847_v3  ;;  %678 = vmatprep.mubr.bf16.mxu0 %v15847_v3  ;;  %v432_v46 = vld [vmem:[%s11631_s29 + $0x148] sm:$0xff]  ;;  %v435_v52 = vld [vmem:[%s11631_s29 + $0x160] sm:$0xff]  ;;  %v438_v57 = vld [vmem:[%s11631_s29 + $0x178] sm:$0xff] }
  0x28   : > { %2156 = vmatpush1.bf16.msra.mxu1 %v11119_v29  ;;  %v422_v29 = vld [vmem:[%s11631_s29 + $0xf8] sm:$0xff]  ;;  %v11963_v59 = vpack.c.bf16 %v438_v57, %v437_v56  ;;  %v439_v60 = vld [vmem:[%s11631_s29 + $0x180] sm:$0xff]  ;;  %v441_v0 = vld [vmem:[%s11631_s29 + $0x190] sm:$0xff] }
  0x29   : > { %2157 = vmatprep.subr.bf16.mxu1 %v11124_v30  ;;  %v11883_v30 = vpack.c.bf16 %v422_v29, %v421_v27  ;;  %v442_v1 = vld [vmem:[%s11631_s29 + $0x198] sm:$0xff]  ;;  %v444_v9 = vld [vmem:[%s11631_s29 + $0x1a8] sm:$0xff]  ;;  %v1611_v14 = vld [vmem:[%s15837_s2] sm:$0x3] }
  0x2a   : > { %v11983_v4 = vpack.c.bf16 %v442_v1, %v441_v0  ;;  %v445_v18 = vld [vmem:[%s11631_s29 + $0x1b0] sm:$0xff]  ;;  %v446_v20 = vld [vmem:[%s11631_s29 + $0x1b8] sm:$0xff] }
  0x2c   : > { %2158 = vmatpush1.bf16.msra.mxu1 %v11122_v33  ;;  %v11893_v33 = vpack.c.bf16 %v424_v32, %v423_v31 }
  0x2d   : > { %2159 = vmatprep.subr.bf16.mxu1 %v11128_v34  ;;  %v425_v34 = vld [vmem:[%s11631_s29 + $0x110] sm:$0xff] }
  0x2e   : > { %9868 = vmatmul.mubr.msk.bf16.gmra.mrb[12].mxu1 %vm503_vm1, %v11706_v35  ;;  %9835 = vmatmul.mubr.msk.bf16.gmra.mrb[12].mxu0 %vm503_vm1, %v11706_v35 }
  0x2f   : > { %1041 = vmatprep.mubr.bf16.mxu1 %v15847_v3  ;;  %688 = vmatprep.mubr.bf16.mxu0 %v15847_v3 }
  0x30   : > { %2160 = vmatpush1.bf16.msra.mxu1 %v11126_v36  ;;  %v426_v36 = vld [vmem:[%s11631_s29 + $0x118] sm:$0xff] }
  0x31   : > { %2161 = vmatprep.subr.bf16.mxu1 %v11131_v37  ;;  %v11903_v37 = vpack.c.bf16 %v426_v36, %v425_v34 }
  0x34   : > { %2162 = vmatpush1.bf16.msra.mxu1 %v11129_v40  ;;  %v11913_v40 = vpack.c.bf16 %v428_v39, %v427_v38 }
  0x35   : > { %2163 = vmatprep.subr.bf16.mxu1 %v11134_v41  ;;  %v429_v41 = vld [vmem:[%s11631_s29 + $0x130] sm:$0xff] }
  0x36   : > { %9869 = vmatmul.mubr.msk.bf16.gmra.mrb[16].mxu1 %vm503_vm1, %v11728_v42  ;;  %9836 = vmatmul.mubr.msk.bf16.gmra.mrb[16].mxu0 %vm503_vm1, %v11728_v42 }
  0x37   : > { %1051 = vmatprep.mubr.bf16.mxu1 %v15847_v3  ;;  %698 = vmatprep.mubr.bf16.mxu0 %v15847_v3 }
  0x38   : > { %2164 = vmatpush1.bf16.msra.mxu1 %v11132_v43  ;;  %v430_v43 = vld [vmem:[%s11631_s29 + $0x138] sm:$0xff] }
  0x39   : > { %2165 = vmatprep.subr.bf16.mxu1 %v11137_v44  ;;  %v11923_v44 = vpack.c.bf16 %v430_v43, %v429_v41  ;;  %v447_v43 = vld [vmem:[%s11631_s29 + $0x1c0] sm:$0xff] }
  0x3c   : > { %2166 = vmatpush1.bf16.msra.mxu1 %v11135_v47  ;;  %v11933_v47 = vpack.c.bf16 %v432_v46, %v431_v45  ;;  %v448_v45 = vld [vmem:[%s11631_s29 + $0x1c8] sm:$0xff] }
  0x3d   : > { %2167 = vmatprep.subr.bf16.mxu1 %v11140_v48  ;;  %v433_v48 = vld [vmem:[%s11631_s29 + $0x150] sm:$0xff]  ;;  %v12041_v56 = vpack.c.bf16 %v448_v45, %v447_v43 }
  0x3e   : > { %9870 = vmatmul.mubr.msk.bf16.gmra.mrb[20].mxu1 %vm503_vm1, %v11750_v49  ;;  %9837 = vmatmul.mubr.msk.bf16.gmra.mrb[20].mxu0 %vm503_vm1, %v11750_v49 }
  0x3f   : > { %1061 = vmatprep.mubr.bf16.mxu1 %v15847_v3  ;;  %708 = vmatprep.mubr.bf16.mxu0 %v15847_v3 }
  0x40   : > { %2168 = vmatpush1.bf16.msra.mxu1 %v11138_v50  ;;  %v434_v50 = vld [vmem:[%s11631_s29 + $0x158] sm:$0xff] }
  0x41   : > { %2169 = vmatprep.subr.bf16.mxu1 %v11143_v53  ;;  %v11943_v51 = vpack.c.bf16 %v434_v50, %v433_v48  ;;  %v436_v53 = vld [vmem:[%s11631_s29 + $0x168] sm:$0xff] }
  0x42   : > { %v11158_v48 = vld [vmem:[%s15838_s3 + $0x104] ss:$8 sps:$4 sm:$0xff]  }
  0x43   : > { %2898 = vmatprep.subr.bf16.mxu0 %v11158_v48 }
  0x44   : > { %2170 = vmatpush1.bf16.msra.mxu1 %v11141_v54  ;;  %v11953_v54 = vpack.c.bf16 %v436_v53, %v435_v52 }
  0x45   : > { %2171 = vmatprep.subr.bf16.mxu1 %v11146_v62 }
  0x46   : > { %9871 = vmatmul.mubr.msk.bf16.gmra.mrb[24].mxu1 %vm503_vm1, %v11769_v55  ;;  %9838 = vmatmul.mubr.msk.bf16.gmra.mrb[24].mxu0 %vm503_vm1, %v11769_v55 }
  0x47   : > { %1071 = vmatprep.mubr.bf16.mxu1 %v15847_v3  ;;  %718 = vmatprep.mubr.bf16.mxu0 %v15847_v3 }
  0x48   : > { %2172 = vmatpush1.bf16.msra.mxu1 %v11144_v61  ;;  %v440_v61 = vld [vmem:[%s11631_s29 + $0x188] sm:$0xff] }
  0x49   : > { %2173 = vmatprep.subr.bf16.mxu1 %v11149_v7  ;;  %v11973_v62 = vpack.c.bf16 %v440_v61, %v439_v60  ;;  %v443_v7 = vld [vmem:[%s11631_s29 + $0x1a0] sm:$0xff] }
  0x4a   : > { %v11995_v10 = vpack.c.bf16 %v444_v9, %v443_v7 }
  0x4c   : > { %2174 = vmatpush1.bf16.msra.mxu1 %v11147_v6  ;;  %v11989_v6 = vshrl.u32 %v1613_v5, 7 }
  0x4d   : > { %2175 = vmatprep.subr.bf16.mxu1 %v11152_v16 }
  0x4e   : > { %9872 = vmatmul.mubr.msk.bf16.gmra.mrb[28].mxu1 %vm503_vm1, %v11779_v58  ;;  %9839 = vmatmul.mubr.msk.bf16.gmra.mrb[28].mxu0 %vm503_vm1, %v11779_v58  ;;  %15850 = vst [vmem:[#allocation2_spill] sm:$0xff] %v11989_v6  ;;  %v11998_v12 = vsub.s32 0, %v11989_v6 }
  0x4f   : > { %1081 = vmatprep.mubr.bf16.mxu1 %v15847_v3  ;;  %728 = vmatprep.mubr.bf16.mxu0 %v15847_v3 }
  0x50   : > { %2176 = vmatpush1.bf16.msra.mxu1 %v11150_v15  ;;  %v12004_v15 = vsub.s32 1, %v11989_v6  ;;  %v12011_v16 = vrot.slane %v1611_v14, %v11998_v12 }
  0x51   : > { %2177 = vmatprep.subr.bf16.mxu1 %v11155_v25 }
  0x52   : > { %v12017_v22 = vrot.slane %v1611_v14, %v12004_v15 }
  0x54   : > { %2178 = vmatpush1.bf16.msra.mxu1 %v11153_v24  ;;  %v12020_v24 = vpack.c.bf16 %v446_v20, %v445_v18  ;;  %v449_v20 = vld [vmem:[%s11631_s29 + $0x1d0] sm:$0xff] }
  0x56   : > { %9873 = vmatmul.mubr.msk.bf16.gmra.mrb[32].mxu1 %vm503_vm1, %v11795_v63  ;;  %9840 = vmatmul.mubr.msk.bf16.gmra.mrb[32].mxu0 %vm503_vm1, %v11795_v63 }
  0x57   : > { %1091 = vmatprep.mubr.bf16.mxu1 %v15847_v3  ;;  %738 = vmatprep.mubr.bf16.mxu0 %v15847_v3 }
  0x5e   : > { %9874 = vmatmul.mubr.msk.bf16.gmra.mrb[36].mxu1 %vm503_vm1, %v11805_v2  ;;  %9841 = vmatmul.mubr.msk.bf16.gmra.mrb[36].mxu0 %vm503_vm1, %v11805_v2 }
  0x5f   : > { %1101 = vmatprep.mubr.bf16.mxu1 %v15847_v3  ;;  %748 = vmatprep.mubr.bf16.mxu0 %v15847_v3 }
  0x66   : > { %9875 = vmatmul.mubr.msk.bf16.gmra.mrb[40].mxu1 %vm503_vm1, %v11821_v8  ;;  %9842 = vmatmul.mubr.msk.bf16.gmra.mrb[40].mxu0 %vm503_vm1, %v11821_v8 }
  0x67   : > { %1111 = vmatprep.mubr.bf16.mxu1 %v15847_v3  ;;  %758 = vmatprep.mubr.bf16.mxu0 %v15847_v3 }
  0x6e   : > { %9876 = vmatmul.mubr.msk.bf16.gmra.mrb[44].mxu1 %vm503_vm1, %v11831_v11  ;;  %9843 = vmatmul.mubr.msk.bf16.gmra.mrb[44].mxu0 %vm503_vm1, %v11831_v11 }
  0x6f   : > { %1121 = vmatprep.mubr.bf16.mxu1 %v15847_v3  ;;  %768 = vmatprep.mubr.bf16.mxu0 %v15847_v3 }
  0x76   : > { %9877 = vmatmul.mubr.msk.bf16.gmra.mrb[48].mxu1 %vm503_vm1, %v11847_v17  ;;  %9844 = vmatmul.mubr.msk.bf16.gmra.mrb[48].mxu0 %vm503_vm1, %v11847_v17 }
  0x77   : > { %1131 = vmatprep.mubr.bf16.mxu1 %v15847_v3  ;;  %778 = vmatprep.mubr.bf16.mxu0 %v15847_v3 }
  0x7e   : > { %9878 = vmatmul.mubr.msk.bf16.gmra.mrb[52].mxu1 %vm503_vm1, %v11857_v21  ;;  %9845 = vmatmul.mubr.msk.bf16.gmra.mrb[52].mxu0 %vm503_vm1, %v11857_v21 }
  0x7f   : > { %1141 = vmatprep.mubr.bf16.mxu1 %v15847_v3  ;;  %788 = vmatprep.mubr.bf16.mxu0 %v15847_v3 }
  0x86   : > { %9879 = vmatmul.mubr.msk.bf16.gmra.mrb[56].mxu1 %vm503_vm1, %v11873_v26  ;;  %9846 = vmatmul.mubr.msk.bf16.gmra.mrb[56].mxu0 %vm503_vm1, %v11873_v26 }
  0x87   : > { %1151 = vmatprep.mubr.bf16.mxu1 %v15847_v3  ;;  %798 = vmatprep.mubr.bf16.mxu0 %v15847_v3 }
  0x8e   : > { %9880 = vmatmul.mubr.msk.bf16.gmra.mrb[60].mxu1 %vm503_vm1, %v11883_v30  ;;  %9847 = vmatmul.mubr.msk.bf16.gmra.mrb[60].mxu0 %vm503_vm1, %v11883_v30 }
  0x8f   : > { %1161 = vmatprep.mubr.bf16.mxu1 %v15847_v3  ;;  %808 = vmatprep.mubr.bf16.mxu0 %v15847_v3 }
  0x96   : > { %9881 = vmatmul.mubr.msk.bf16.gmra.mrb[64].mxu1 %vm503_vm1, %v11893_v33  ;;  %9848 = vmatmul.mubr.msk.bf16.gmra.mrb[64].mxu0 %vm503_vm1, %v11893_v33 }
  0x97   : > { %1171 = vmatprep.mubr.bf16.mxu1 %v15847_v3  ;;  %818 = vmatprep.mubr.bf16.mxu0 %v15847_v3 }
  0x9e   : > { %9882 = vmatmul.mubr.msk.bf16.gmra.mrb[68].mxu1 %vm503_vm1, %v11903_v37  ;;  %9849 = vmatmul.mubr.msk.bf16.gmra.mrb[68].mxu0 %vm503_vm1, %v11903_v37 }
  0x9f   : > { %1181 = vmatprep.mubr.bf16.mxu1 %v15847_v3  ;;  %828 = vmatprep.mubr.bf16.mxu0 %v15847_v3 }
  0xa6   : > { %9883 = vmatmul.mubr.msk.bf16.gmra.mrb[72].mxu1 %vm503_vm1, %v11913_v40  ;;  %9850 = vmatmul.mubr.msk.bf16.gmra.mrb[72].mxu0 %vm503_vm1, %v11913_v40 }
  0xa7   : > { %1191 = vmatprep.mubr.bf16.mxu1 %v15847_v3  ;;  %838 = vmatprep.mubr.bf16.mxu0 %v15847_v3 }
  0xae   : > { %9884 = vmatmul.mubr.msk.bf16.gmra.mrb[76].mxu1 %vm503_vm1, %v11923_v44  ;;  %9851 = vmatmul.mubr.msk.bf16.gmra.mrb[76].mxu0 %vm503_vm1, %v11923_v44 }
  0xaf   : > { %1201 = vmatprep.mubr.bf16.mxu1 %v15847_v3  ;;  %848 = vmatprep.mubr.bf16.mxu0 %v15847_v3 }
  0xb6   : > { %9885 = vmatmul.mubr.msk.bf16.gmra.mrb[80].mxu1 %vm503_vm1, %v11933_v47  ;;  %9852 = vmatmul.mubr.msk.bf16.gmra.mrb[80].mxu0 %vm503_vm1, %v11933_v47 }
  0xb7   : > { %1211 = vmatprep.mubr.bf16.mxu1 %v15847_v3  ;;  %858 = vmatprep.mubr.bf16.mxu0 %v15847_v3 }
  0xbe   : > { %9886 = vmatmul.mubr.msk.bf16.gmra.mrb[84].mxu1 %vm503_vm1, %v11943_v51  ;;  %9853 = vmatmul.mubr.msk.bf16.gmra.mrb[84].mxu0 %vm503_vm1, %v11943_v51 }
  0xbf   : > { %1221 = vmatprep.mubr.bf16.mxu1 %v15847_v3  ;;  %868 = vmatprep.mubr.bf16.mxu0 %v15847_v3 }
  0xc6   : > { %9887 = vmatmul.mubr.msk.bf16.gmra.mrb[88].mxu1 %vm503_vm1, %v11953_v54  ;;  %9854 = vmatmul.mubr.msk.bf16.gmra.mrb[88].mxu0 %vm503_vm1, %v11953_v54 }
  0xc7   : > { %1231 = vmatprep.mubr.bf16.mxu1 %v15847_v3  ;;  %878 = vmatprep.mubr.bf16.mxu0 %v15847_v3 }
  0xce   : > { %9888 = vmatmul.mubr.msk.bf16.gmra.mrb[92].mxu1 %vm503_vm1, %v11963_v59  ;;  %9855 = vmatmul.mubr.msk.bf16.gmra.mrb[92].mxu0 %vm503_vm1, %v11963_v59 }
  0xcf   : > { %1241 = vmatprep.mubr.bf16.mxu1 %v15847_v3  ;;  %888 = vmatprep.mubr.bf16.mxu0 %v15847_v3 }
  0xd6   : > { %9889 = vmatmul.mubr.msk.bf16.gmra.mrb[96].mxu1 %vm503_vm1, %v11973_v62  ;;  %9856 = vmatmul.mubr.msk.bf16.gmra.mrb[96].mxu0 %vm503_vm1, %v11973_v62 }
  0xd7   : > { %1251 = vmatprep.mubr.bf16.mxu1 %v15847_v3  ;;  %898 = vmatprep.mubr.bf16.mxu0 %v15847_v3 }
  0xde   : > { %9890 = vmatmul.mubr.msk.bf16.gmra.mrb[100].mxu1 %vm503_vm1, %v11983_v4  ;;  %9857 = vmatmul.mubr.msk.bf16.gmra.mrb[100].mxu0 %vm503_vm1, %v11983_v4 }
  0xdf   : > { %1261 = vmatprep.mubr.bf16.mxu1 %v15847_v3  ;;  %908 = vmatprep.mubr.bf16.mxu0 %v15847_v3 }
  0xe6   : > { %9891 = vmatmul.mubr.msk.bf16.gmra.mrb[104].mxu1 %vm503_vm1, %v11995_v10  ;;  %9858 = vmatmul.mubr.msk.bf16.gmra.mrb[104].mxu0 %vm503_vm1, %v11995_v10 }
  0xe7   : > { %1271 = vmatprep.mubr.bf16.mxu1 %v15847_v3  ;;  %918 = vmatprep.mubr.bf16.mxu0 %v15847_v3 }
  0xe9   : > { %v650_v23 = vpop.f32.mrb[0].mxu0 }
  0xea   : > { %v1623_v25 = vadd.f32 %v12011_v16, %v650_v23  ;;  %v652_v27 = vpop.f32.mrb[1].mxu0  ;;  %v450_v23 = vld [vmem:[%s11631_s29 + $0x1d8] sm:$0xff] }
  0xeb   : > { %v1624_v29 = vadd.f32 %v12017_v22, %v652_v27  ;;  %v654_v31 = vpop.f32.mrb[2].mxu0 }
  0xec   : > { %v1751_v32 = vmax.f32 %v1623_v25, 0.0  ;;  %v1625_v34 = vadd.f32 %v12011_v16, %v654_v31  ;;  %v656_v36 = vpop.f32.mrb[3].mxu0 }
  0xed   : > { %v1752_v38 = vmax.f32 %v1624_v29, 0.0  ;;  %v1626_v39 = vadd.f32 %v12017_v22, %v656_v36 }
  0xee   : > { %9892 = vmatmul.mubr.msk.bf16.gmra.mrb[108].mxu1 %vm503_vm1, %v12020_v24  ;;  %v1753_v41 = vmax.f32 %v1625_v34, 0.0  ;;  %9859 = vmatmul.mubr.msk.bf16.gmra.mrb[108].mxu0 %vm503_vm1, %v12020_v24 }
  0xef   : > { %1281 = vmatprep.mubr.bf16.mxu1 %v15847_v3  ;;  %v1754_v46 = vmax.f32 %v1626_v39, 0.0  ;;  %928 = vmatprep.mubr.bf16.mxu0 %v15847_v3 }
  0xf0   : > { %v12037_v50 = vpack.c.bf16 %v1753_v41, %v1751_v32  ;;  %v12059_v32 = vpack.c.bf16 %v450_v23, %v449_v20 }
  0xf1   : > { %v660_v52 = vpop.f32.mrb[4].mxu0  ;;  %v12039_v53 = vpack.c.bf16 %v1754_v46, %v1752_v38 }
  0xf2   : > { %v1627_v57 = vadd.f32 %v12011_v16, %v660_v52  ;;  %v662_v60 = vpop.f32.mrb[5].mxu0 }
  0xf3   : > { %v1628_v61 = vadd.f32 %v12017_v22, %v662_v60  ;;  %v664_v0 = vpop.f32.mrb[6].mxu0  ;;  %v452_v60 = vld [vmem:[%s11631_s29 + $0x1e8] sm:$0xff] }
  0xf4   : > { %v1755_v1 = vmax.f32 %v1627_v57, 0.0  ;;  %v1629_v5 = vadd.f32 %v12011_v16, %v664_v0  ;;  %v666_v7 = vpop.f32.mrb[7].mxu0  ;;  %v451_v57 = vld [vmem:[%s11631_s29 + $0x1e0] sm:$0xff] }
  0xf5   : > { %v1756_v9 = vmax.f32 %v1628_v61, 0.0  ;;  %v1630_v14 = vadd.f32 %v12017_v22, %v666_v7  ;;  %v12077_v7 = vpack.c.bf16 %v452_v60, %v451_v57 }
  0xf6   : > { %9893 = vmatmul.mubr.msk.bf16.gmra.mrb[112].mxu1 %vm503_vm1, %v12041_v56  ;;  %v1757_v18 = vmax.f32 %v1629_v5, 0.0  ;;  %9860 = vmatmul.mubr.msk.bf16.gmra.mrb[112].mxu0 %vm503_vm1, %v12041_v56 }
  0xf7   : > { %1291 = vmatprep.mubr.bf16.mxu1 %v15847_v3  ;;  %v1758_v25 = vmax.f32 %v1630_v14, 0.0  ;;  %938 = vmatprep.mubr.bf16.mxu0 %v15847_v3 }
  0xf8   : > { %v12055_v27 = vpack.c.bf16 %v1757_v18, %v1755_v1 }
  0xf9   : > { %v670_v29 = vpop.f32.mrb[8].mxu0  ;;  %v12057_v31 = vpack.c.bf16 %v1758_v25, %v1756_v9 }
  0xfa   : > { %v1631_v34 = vadd.f32 %v12011_v16, %v670_v29  ;;  %v672_v36 = vpop.f32.mrb[9].mxu0 }
  0xfb   : > { %v1632_v38 = vadd.f32 %v12017_v22, %v672_v36  ;;  %v674_v39 = vpop.f32.mrb[10].mxu0 }
  0xfc   : > { %v1759_v41 = vmax.f32 %v1631_v34, 0.0  ;;  %v1633_v43 = vadd.f32 %v12011_v16, %v674_v39  ;;  %v676_v45 = vpop.f32.mrb[11].mxu0  ;;  %v453_v39 = vld [vmem:[%s11631_s29 + $0x1f0] sm:$0xff] }
  0xfd   : > { %v1760_v46 = vmax.f32 %v1632_v38, 0.0  ;;  %v1634_v48 = vadd.f32 %v12017_v22, %v676_v45 }
  0xfe   : > { %9894 = vmatmul.mubr.msk.bf16.gmra.mrb[116].mxu1 %vm503_vm1, %v12059_v32  ;;  %v1761_v52 = vmax.f32 %v1633_v43, 0.0  ;;  %9861 = vmatmul.mubr.msk.bf16.gmra.mrb[116].mxu0 %vm503_vm1, %v12059_v32 }
  0xff   : > { %1301 = vmatprep.mubr.bf16.mxu1 %v15847_v3  ;;  %v1762_v61 = vmax.f32 %v1634_v48, 0.0  ;;  %948 = vmatprep.mubr.bf16.mxu0 %v15847_v3 }
 0x100   : > { %v12073_v0 = vpack.c.bf16 %v1761_v52, %v1759_v41  ;;  %v454_v41 = vld [vmem:[%s11631_s29 + $0x1f8] sm:$0xff] }
 0x101   : > { %v680_v1 = vpop.f32.mrb[12].mxu0  ;;  %v12075_v5 = vpack.c.bf16 %v1762_v61, %v1760_v46  ;;  %v12095_v52 = vpack.c.bf16 %v454_v41, %v453_v39 }
 0x102   : > { %v1635_v9 = vadd.f32 %v12011_v16, %v680_v1  ;;  %v682_v14 = vpop.f32.mrb[13].mxu0 }
 0x103   : > { %v1636_v18 = vadd.f32 %v12017_v22, %v682_v14  ;;  %v684_v20 = vpop.f32.mrb[14].mxu0 }
 0x104   : > { %v1763_v23 = vmax.f32 %v1635_v9, 0.0  ;;  %v1637_v25 = vadd.f32 %v12011_v16, %v684_v20  ;;  %v686_v29 = vpop.f32.mrb[15].mxu0 }
 0x105   : > { %v1764_v34 = vmax.f32 %v1636_v18, 0.0  ;;  %v1638_v36 = vadd.f32 %v12017_v22, %v686_v29 }
 0x106   : > { %9895 = vmatmul.mubr.msk.bf16.gmra.mrb[120].mxu1 %vm503_vm1, %v12077_v7  ;;  %v1765_v38 = vmax.f32 %v1637_v25, 0.0  ;;  %9862 = vmatmul.mubr.msk.bf16.gmra.mrb[120].mxu0 %vm503_vm1, %v12077_v7 }
 0x107   : > { %1311 = vmatprep.mubr.bf16.mxu1 %v15847_v3  ;;  %v1766_v43 = vmax.f32 %v1638_v36, 0.0  ;;  %958 = vmatprep.mubr.bf16.mxu0 %v15847_v3 }
 0x108   : > { %v12091_v45 = vpack.c.bf16 %v1765_v38, %v1763_v23 }
 0x109   : > { %v690_v46 = vpop.f32.mrb[16].mxu0  ;;  %v12093_v48 = vpack.c.bf16 %v1766_v43, %v1764_v34 }
 0x10a   : > { %v1639_v57 = vadd.f32 %v12011_v16, %v690_v46  ;;  %v692_v60 = vpop.f32.mrb[17].mxu0 }
 0x10b   : > { %v1640_v61 = vadd.f32 %v12017_v22, %v692_v60  ;;  %v694_v1 = vpop.f32.mrb[18].mxu0 }
 0x10c   : > { %v1767_v9 = vmax.f32 %v1639_v57, 0.0  ;;  %v1641_v14 = vadd.f32 %v12011_v16, %v694_v1  ;;  %v696_v18 = vpop.f32.mrb[19].mxu0  ;;  %v11156_v57 = vld [vmem:[%s15838_s3 + $0x100] ss:$8 sps:$4 sm:$0xff]  }
 0x10d   : > { %v1768_v20 = vmax.f32 %v1640_v61, 0.0  ;;  %v1642_v25 = vadd.f32 %v12017_v22, %v696_v18 }
 0x10e   : > { %9896 = vmatmul.mubr.msk.bf16.gmra.mrb[124].mxu1 %vm503_vm1, %v12095_v52  ;;  %v1769_v23 = vmax.f32 %v1641_v14, 0.0  ;;  %9863 = vmatmul.mubr.msk.bf16.gmra.mrb[124].mxu0 %vm503_vm1, %v12095_v52 }
 0x10f   : > { %2179 = vmatprep.mubr.bf16.mxu1 %v12039_v53  ;;  %v1770_v29 = vmax.f32 %v1642_v25, 0.0  ;;  %10821 = vmatprep.mubr.msk.bf16.mxu0 %vm503_vm1, %v11638_v13  ;;  %v11161_v13 = vld [vmem:[%s15838_s3 + $0x114] ss:$8 sps:$4 sm:$0xff]  }
 0x110   : > { %v12108_v34 = vpack.c.bf16 %v1769_v23, %v1767_v9 }
 0x111   : > { %v700_v36 = vpop.f32.mrb[20].mxu0  ;;  %v12110_v38 = vpack.c.bf16 %v1770_v29, %v1768_v20  ;;  %v11159_v20 = vld [vmem:[%s15838_s3 + $0x110] ss:$8 sps:$4 sm:$0xff]  }
 0x112   : > { %v1643_v39 = vadd.f32 %v12011_v16, %v700_v36  ;;  %v702_v41 = vpop.f32.mrb[21].mxu0 }
 0x113   : > { %v1644_v43 = vadd.f32 %v12017_v22, %v702_v41  ;;  %v704_v46 = vpop.f32.mrb[22].mxu0 }
 0x114   : > { %v1771_v53 = vmax.f32 %v1643_v39, 0.0  ;;  %v1645_v60 = vadd.f32 %v12011_v16, %v704_v46  ;;  %v706_v61 = vpop.f32.mrb[23].mxu0 }
 0x115   : > { %v1772_v1 = vmax.f32 %v1644_v43, 0.0  ;;  %v1646_v9 = vadd.f32 %v12017_v22, %v706_v61 }
 0x116   : > { %2180 = vmatmul.mubr.bf16.vlgmr.msra.gmra.mrb[128].mxu1 %v12037_v50  ;;  %v1773_v14 = vmax.f32 %v1645_v60, 0.0  ;;  %10822 = vmatmul.mubr.msk.bf16.vlgmr.msra.gmra.mrb[128].mxu0 %vm503_vm1, %v11657_v19  ;;  %v11164_v50 = vld [vmem:[%s15838_s3 + $0x124] ss:$8 sps:$4 sm:$0xff]   ;;  %v11167_v60 = vld [vmem:[%s15838_s3 + $0x134] ss:$8 sps:$4 sm:$0xff]  }
 0x117   : > { %2189 = vmatprep.mubr.bf16.mxu1 %v12057_v31  ;;  %v1774_v18 = vmax.f32 %v1646_v9, 0.0  ;;  %2899 = vmatpush1.bf16.msra.mxu0 %v11156_v57  ;;  %v11165_v9 = vld [vmem:[%s15838_s3 + $0x130] ss:$8 sps:$4 sm:$0xff]  }
 0x118   : > { %v12129_v25 = vpack.c.bf16 %v1773_v14, %v1771_v53  ;;  %10825 = vmatprep.mubr.msk.bf16.mxu0 %vm503_vm1, %v11684_v28  ;;  %2900 = vmatprep.subr.bf16.mxu0 %v11161_v13  ;;  %v11162_v28 = vld [vmem:[%s15838_s3 + $0x120] ss:$8 sps:$4 sm:$0xff]  }
 0x119   : > { %v710_v23 = vpop.f32.mrb[24].mxu0  ;;  %v12136_v19 = vpack.c.bf16 %v1774_v18, %v1772_v1 }
 0x11a   : > { %v1647_v31 = vadd.f32 %v12011_v16, %v710_v23  ;;  %v712_v29 = vpop.f32.mrb[25].mxu0 }
 0x11b   : > { %v1648_v36 = vadd.f32 %v12017_v22, %v712_v29  ;;  %v714_v39 = vpop.f32.mrb[26].mxu0  ;;  %2901 = vmatpush1.bf16.msra.mxu0 %v11159_v20  ;;  %v11168_v29 = vld [vmem:[%s15838_s3 + $0x140] ss:$8 sps:$4 sm:$0xff]  }
 0x11c   : > { %v1775_v41 = vmax.f32 %v1647_v31, 0.0  ;;  %v1649_v43 = vadd.f32 %v12011_v16, %v714_v39  ;;  %v716_v46 = vpop.f32.mrb[27].mxu0  ;;  %2902 = vmatprep.subr.bf16.mxu0 %v11164_v50 }
 0x11d   : > { %v1776_v57 = vmax.f32 %v1648_v36, 0.0  ;;  %v1650_v53 = vadd.f32 %v12017_v22, %v716_v46 }
 0x11e   : > { %2190 = vmatmul.mubr.bf16.gmra.mrb[132].mxu1 %v12055_v27  ;;  %v1777_v61 = vmax.f32 %v1649_v43, 0.0  ;;  %10826 = vmatmul.mubr.msk.bf16.gmra.mrb[132].mxu0 %vm503_vm1, %v11706_v35  ;;  %v11170_v35 = vld [vmem:[%s15838_s3 + $0x144] ss:$8 sps:$4 sm:$0xff]  }
 0x11f   : > { %2199 = vmatprep.mubr.bf16.mxu1 %v12075_v5  ;;  %v1778_v13 = vmax.f32 %v1650_v53, 0.0  ;;  %10829 = vmatprep.mubr.msk.bf16.mxu0 %vm503_vm1, %v11728_v42 }
 0x120   : > { %v12154_v1 = vpack.c.bf16 %v1777_v61, %v1775_v41  ;;  %2903 = vmatpush1.bf16.msra.mxu0 %v11162_v28  ;;  %v11173_v41 = vld [vmem:[%s15838_s3 + $0x154] ss:$8 sps:$4 sm:$0xff]  }
 0x121   : > { %v720_v14 = vpop.f32.mrb[28].mxu0  ;;  %v12159_v18 = vpack.c.bf16 %v1778_v13, %v1776_v57  ;;  %2904 = vmatprep.subr.bf16.mxu0 %v11167_v60  ;;  %v11171_v57 = vld [vmem:[%s15838_s3 + $0x150] ss:$8 sps:$4 sm:$0xff]  }
 0x122   : > { %v1651_v27 = vadd.f32 %v12011_v16, %v720_v14  ;;  %v722_v5 = vpop.f32.mrb[29].mxu0 }
 0x123   : > { %v1652_v42 = vadd.f32 %v12017_v22, %v722_v5  ;;  %v724_v20 = vpop.f32.mrb[30].mxu0 }
 0x124   : > { %v1779_v50 = vmax.f32 %v1651_v27, 0.0  ;;  %v1653_v23 = vadd.f32 %v12011_v16, %v724_v20  ;;  %v726_v31 = vpop.f32.mrb[31].mxu0  ;;  %2905 = vmatpush1.bf16.msra.mxu0 %v11165_v9 }
 0x125   : > { %v1780_v36 = vmax.f32 %v1652_v42, 0.0  ;;  %v1654_v39 = vadd.f32 %v12017_v22, %v726_v31  ;;  %2906 = vmatprep.subr.bf16.mxu0 %v11170_v35  ;;  %v11174_v35 = vld [vmem:[%s15838_s3 + $0x160] ss:$8 sps:$4 sm:$0xff]   ;;  %v11179_v42 = vld [vmem:[%s15838_s3 + $0x174] ss:$8 sps:$4 sm:$0xff]  }
 0x126   : > { %2200 = vmatmul.mubr.bf16.gmra.mrb[136].mxu1 %v12073_v0  ;;  %v1781_v43 = vmax.f32 %v1653_v23, 0.0  ;;  %10830 = vmatmul.mubr.msk.bf16.gmra.mrb[136].mxu0 %vm503_vm1, %v11750_v49  ;;  %v11176_v49 = vld [vmem:[%s15838_s3 + $0x164] ss:$8 sps:$4 sm:$0xff]   ;;  %v11177_v31 = vld [vmem:[%s15838_s3 + $0x170] ss:$8 sps:$4 sm:$0xff]  }
 0x127   : > { %2209 = vmatprep.mubr.bf16.mxu1 %v12093_v48  ;;  %v1782_v46 = vmax.f32 %v1654_v39, 0.0  ;;  %10833 = vmatprep.mubr.msk.bf16.mxu0 %vm503_vm1, %v11769_v55 }
 0x128   : > { %v12180_v28 = vpack.c.bf16 %v1781_v43, %v1779_v50  ;;  %2907 = vmatpush1.bf16.msra.mxu0 %v11168_v29 }
 0x129   : > { %v730_v53 = vpop.f32.mrb[32].mxu0  ;;  %v12185_v60 = vpack.c.bf16 %v1782_v46, %v1780_v36  ;;  %2908 = vmatprep.subr.bf16.mxu0 %v11173_v41 }
 0x12a   : > { %v1655_v0 = vadd.f32 %v12011_v16, %v730_v53  ;;  %v732_v48 = vpop.f32.mrb[33].mxu0 }
 0x12b   : > { %v1656_v55 = vadd.f32 %v12017_v22, %v732_v48  ;;  %v734_v61 = vpop.f32.mrb[34].mxu0 }
 0x12c   : > { %v1783_v13 = vmax.f32 %v1655_v0, 0.0  ;;  %v1657_v9 = vadd.f32 %v12011_v16, %v734_v61  ;;  %v736_v14 = vpop.f32.mrb[35].mxu0  ;;  %2909 = vmatpush1.bf16.msra.mxu0 %v11171_v57  ;;  %v11180_v57 = vld [vmem:[%s15838_s3 + $0x180] ss:$8 sps:$4 sm:$0xff]  }
 0x12d   : > { %v1784_v27 = vmax.f32 %v1656_v55, 0.0  ;;  %v1658_v5 = vadd.f32 %v12017_v22, %v736_v14  ;;  %2910 = vmatprep.subr.bf16.mxu0 %v11176_v49  ;;  %v11185_v55 = vld [vmem:[%s15838_s3 + $0x194] ss:$8 sps:$4 sm:$0xff]  }
 0x12e   : > { %2210 = vmatmul.mubr.bf16.gmra.mrb[140].mxu1 %v12091_v45  ;;  %v1785_v20 = vmax.f32 %v1657_v9, 0.0  ;;  %10834 = vmatmul.mubr.msk.bf16.gmra.mrb[140].mxu0 %vm503_vm1, %v11779_v58  ;;  %v11182_v58 = vld [vmem:[%s15838_s3 + $0x184] ss:$8 sps:$4 sm:$0xff]  }
 0x12f   : > { %2219 = vmatprep.mubr.bf16.mxu1 %v12110_v38  ;;  %v1786_v50 = vmax.f32 %v1658_v5, 0.0  ;;  %10837 = vmatprep.mubr.msk.bf16.mxu0 %vm503_vm1, %v11795_v63 }
 0x130   : > { %v12206_v23 = vpack.c.bf16 %v1785_v20, %v1783_v13  ;;  %2911 = vmatpush1.bf16.msra.mxu0 %v11174_v35 }
 0x131   : > { %v740_v29 = vpop.f32.mrb[36].mxu0  ;;  %v12211_v36 = vpack.c.bf16 %v1786_v50, %v1784_v27  ;;  %2912 = vmatprep.subr.bf16.mxu0 %v11179_v42 }
 0x132   : > { %v1659_v45 = vadd.f32 %v12011_v16, %v740_v29  ;;  %v742_v38 = vpop.f32.mrb[37].mxu0  ;;  %v11186_v29 = vld [vmem:[%s15838_s3 + $0x1a0] ss:$8 sps:$4 sm:$0xff]  }
 0x133   : > { %v1660_v63 = vadd.f32 %v12017_v22, %v742_v38  ;;  %v744_v39 = vpop.f32.mrb[38].mxu0 }
 0x134   : > { %v1787_v41 = vmax.f32 %v1659_v45, 0.0  ;;  %v1661_v43 = vadd.f32 %v12011_v16, %v744_v39  ;;  %v746_v46 = vpop.f32.mrb[39].mxu0  ;;  %2913 = vmatpush1.bf16.msra.mxu0 %v11177_v31 }
 0x135   : > { %v1788_v53 = vmax.f32 %v1660_v63, 0.0  ;;  %v1662_v49 = vadd.f32 %v12017_v22, %v746_v46  ;;  %2914 = vmatprep.subr.bf16.mxu0 %v11182_v58  ;;  %v11188_v58 = vld [vmem:[%s15838_s3 + $0x1a4] ss:$8 sps:$4 sm:$0xff]  }
 0x136   : > { %2220 = vmatmul.mubr.bf16.gmra.mrb[144].mxu1 %v12108_v34  ;;  %v1789_v0 = vmax.f32 %v1661_v43, 0.0  ;;  %10838 = vmatmul.mubr.msk.bf16.gmra.mrb[144].mxu0 %vm503_vm1, %v11805_v2  ;;  %v11183_v34 = vld [vmem:[%s15838_s3 + $0x190] ss:$8 sps:$4 sm:$0xff]  }
 0x137   : > { %2229 = vmatprep.mubr.bf16.mxu1 %v12136_v19  ;;  %v1790_v48 = vmax.f32 %v1662_v49, 0.0  ;;  %10841 = vmatprep.mubr.msk.bf16.mxu0 %vm503_vm1, %v11821_v8 }
 0x138   : > { %v12232_v61 = vpack.c.bf16 %v1789_v0, %v1787_v41  ;;  %2915 = vmatpush1.bf16.msra.mxu0 %v11180_v57  ;;  %v11189_v0 = vld [vmem:[%s15838_s3 + $0x1b0] ss:$8 sps:$4 sm:$0xff]  }
 0x139   : > { %v750_v13 = vpop.f32.mrb[40].mxu0  ;;  %v12237_v9 = vpack.c.bf16 %v1790_v48, %v1788_v53  ;;  %2916 = vmatprep.subr.bf16.mxu0 %v11185_v55  ;;  %v11191_v48 = vld [vmem:[%s15838_s3 + $0x1b4] ss:$8 sps:$4 sm:$0xff]  }
 0x13a   : > { %v1663_v2 = vadd.f32 %v12011_v16, %v750_v13  ;;  %v752_v19 = vpop.f32.mrb[41].mxu0 }
 0x13b   : > { %v1664_v8 = vadd.f32 %v12017_v22, %v752_v19  ;;  %v754_v14 = vpop.f32.mrb[42].mxu0 }
 0x13c   : > { %v1791_v35 = vmax.f32 %v1663_v2, 0.0  ;;  %v1665_v27 = vadd.f32 %v12011_v16, %v754_v14  ;;  %v756_v5 = vpop.f32.mrb[43].mxu0  ;;  %2917 = vmatpush1.bf16.msra.mxu0 %v11183_v34 }
 0x13d   : > { %v1792_v42 = vmax.f32 %v1664_v8, 0.0  ;;  %v1666_v20 = vadd.f32 %v12017_v22, %v756_v5  ;;  %2918 = vmatprep.subr.bf16.mxu0 %v11188_v58  ;;  %v11192_v5 = vld [vmem:[%s15838_s3 + $0x200] ss:$8 sps:$4 sm:$0xff]  }
 0x13e   : > { %2230 = vmatmul.mubr.bf16.gmra.mrb[148].mxu1 %v12129_v25  ;;  %v1793_v50 = vmax.f32 %v1665_v27, 0.0  ;;  %10842 = vmatmul.mubr.msk.bf16.gmra.mrb[148].mxu0 %vm503_vm1, %v11831_v11 }
 0x13f   : > { %2239 = vmatprep.mubr.bf16.mxu1 %v12159_v18  ;;  %v1794_v31 = vmax.f32 %v1666_v20, 0.0  ;;  %10845 = vmatprep.mubr.msk.bf16.mxu0 %vm503_vm1, %v11847_v17 }
 0x140   : > { %v12255_v45 = vpack.c.bf16 %v1793_v50, %v1791_v35  ;;  %2919 = vmatpush1.bf16.msra.mxu0 %v11186_v29 }
 0x141   : > { %v760_v25 = vpop.f32.mrb[44].mxu0  ;;  %v12257_v38 = vpack.c.bf16 %v1794_v31, %v1792_v42  ;;  %2920 = vmatprep.subr.bf16.mxu0 %v11191_v48  ;;  %v11194_v42 = vld [vmem:[%s15838_s3 + $0x204] ss:$8 sps:$4 sm:$0xff]  }
 0x142   : > { %v1667_v11 = vadd.f32 %v12011_v16, %v760_v25  ;;  %v762_v18 = vpop.f32.mrb[45].mxu0  ;;  %3649 = vmatprep.subr.bf16.mxu1 %v11194_v42 }
 0x143   : > { %v1668_v17 = vadd.f32 %v12017_v22, %v762_v18  ;;  %v764_v63 = vpop.f32.mrb[46].mxu0  ;;  %3650 = vmatpush1.bf16.msra.mxu1 %v11192_v5 }
 0x144   : > { %v1795_v39 = vmax.f32 %v1667_v11, 0.0  ;;  %v1669_v41 = vadd.f32 %v12011_v16, %v764_v63  ;;  %v766_v43 = vpop.f32.mrb[47].mxu0  ;;  %2921 = vmatpush1.bf16.msra.mxu0 %v11189_v0 }
 0x145   : > { %v1796_v46 = vmax.f32 %v1668_v17, 0.0  ;;  %v1670_v57 = vadd.f32 %v12017_v22, %v766_v43 }
 0x146   : > { %2240 = vmatmul.mubr.bf16.gmra.mrb[152].mxu1 %v12154_v1  ;;  %v1797_v53 = vmax.f32 %v1669_v41, 0.0  ;;  %10846 = vmatmul.mubr.msk.bf16.gmra.mrb[152].mxu0 %vm503_vm1, %v11857_v21 }
 0x147   : > { %2249 = vmatprep.mubr.bf16.mxu1 %v12185_v60  ;;  %v1798_v49 = vmax.f32 %v1670_v57, 0.0  ;;  %10849 = vmatprep.mubr.msk.bf16.mxu0 %vm503_vm1, %v11873_v26  ;;  %v11200_v57 = vld [vmem:[%s15838_s3 + $0x1d4] ss:$8 sps:$4 sm:$0xff]  }
 0x148   : > { %v12275_v55 = vpack.c.bf16 %v1797_v53, %v1795_v39 }
 0x149   : > { %v770_v1 = vpop.f32.mrb[48].mxu0  ;;  %v12277_v34 = vpack.c.bf16 %v1798_v49, %v1796_v46  ;;  %v11198_v46 = vld [vmem:[%s15838_s3 + $0x1d0] ss:$8 sps:$4 sm:$0xff]  }
 0x14a   : > { %v1671_v21 = vadd.f32 %v12011_v16, %v770_v1  ;;  %v772_v60 = vpop.f32.mrb[49].mxu0 }
 0x14b   : > { %v1672_v26 = vadd.f32 %v12017_v22, %v772_v60  ;;  %v774_v13 = vpop.f32.mrb[50].mxu0 }
 0x14c   : > { %v1799_v2 = vmax.f32 %v1671_v21, 0.0  ;;  %v1673_v19 = vadd.f32 %v12011_v16, %v774_v13  ;;  %v776_v8 = vpop.f32.mrb[51].mxu0 }
 0x14d   : > { %v1800_v14 = vmax.f32 %v1672_v26, 0.0  ;;  %v1674_v35 = vadd.f32 %v12017_v22, %v776_v8 }
 0x14e   : > { %2250 = vmatmul.mubr.bf16.gmra.mrb[156].mxu1 %v12180_v28  ;;  %v1801_v27 = vmax.f32 %v1673_v19, 0.0  ;;  %10850 = vmatmul.mubr.msk.bf16.gmra.mrb[156].mxu0 %vm503_vm1, %v11883_v30  ;;  %v11195_v28 = vld [vmem:[%s15838_s3 + $0x1c0] ss:$8 sps:$4 sm:$0xff]   ;;  %v11197_v30 = vld [vmem:[%s15838_s3 + $0x1c4] ss:$8 sps:$4 sm:$0xff]  }
 0x14f   : > { %2259 = vmatprep.mubr.bf16.mxu1 %v12211_v36  ;;  %v1802_v20 = vmax.f32 %v1674_v35, 0.0  ;;  %10853 = vmatprep.mubr.msk.bf16.mxu0 %vm503_vm1, %v11893_v33  ;;  %v11203_v19 = vld [vmem:[%s15838_s3 + $0x214] ss:$8 sps:$4 sm:$0xff]  }
 0x150   : > { %v12301_v50 = vpack.c.bf16 %v1801_v27, %v1799_v2  ;;  %2922 = vmatprep.subr.bf16.mxu0 %v11197_v30  ;;  %v11201_v2 = vld [vmem:[%s15838_s3 + $0x210] ss:$8 sps:$4 sm:$0xff]   ;;  %3651 = vmatprep.subr.bf16.mxu1 %v11203_v19 }
 0x151   : > { %v780_v31 = vpop.f32.mrb[52].mxu0  ;;  %v12303_v29 = vpack.c.bf16 %v1802_v20, %v1800_v14  ;;  %2923 = vmatpush1.bf16.msra.mxu0 %v11195_v28  ;;  %3652 = vmatpush1.bf16.msra.mxu1 %v11201_v2  ;;  %v11210_v2 = vld [vmem:[%s15838_s3 + $0x220] ss:$8 sps:$4 sm:$0xff]  }
 0x152   : > { %v1675_v36 = vadd.f32 %v12011_v16, %v780_v31  ;;  %v782_v58 = vpop.f32.mrb[53].mxu0  ;;  %2924 = vmatprep.subr.bf16.mxu0 %v11200_v57  ;;  %v11209_v57 = vld [vmem:[%s15838_s3 + $0x1f4] ss:$8 sps:$4 sm:$0xff]  }
 0x153   : > { %v1676_v33 = vadd.f32 %v12017_v22, %v782_v58  ;;  %v784_v25 = vpop.f32.mrb[54].mxu0 }
 0x154   : > { %v1803_v11 = vmax.f32 %v1675_v36, 0.0  ;;  %v1677_v18 = vadd.f32 %v12011_v16, %v784_v25  ;;  %v786_v17 = vpop.f32.mrb[55].mxu0 }
 0x155   : > { %v1804_v63 = vmax.f32 %v1676_v33, 0.0  ;;  %v1678_v39 = vadd.f32 %v12017_v22, %v786_v17  ;;  %2925 = vmatpush1.bf16.msra.mxu0 %v11198_v46 }
 0x156   : > { %2260 = vmatmul.mubr.bf16.gmra.mrb[160].mxu1 %v12206_v23  ;;  %v1805_v41 = vmax.f32 %v1677_v18, 0.0  ;;  %10854 = vmatmul.mubr.msk.bf16.gmra.mrb[160].mxu0 %vm503_vm1, %v11903_v37 }
 0x157   : > { %2269 = vmatprep.mubr.bf16.mxu1 %v12237_v9  ;;  %v1806_v43 = vmax.f32 %v1678_v39, 0.0  ;;  %10857 = vmatprep.mubr.msk.bf16.mxu0 %vm503_vm1, %v11913_v40 }
 0x158   : > { %v12321_v53 = vpack.c.bf16 %v1805_v41, %v1803_v11 }
 0x159   : > { %v790_v23 = vpop.f32.mrb[56].mxu0  ;;  %v12323_v49 = vpack.c.bf16 %v1806_v43, %v1804_v63 }
 0x15a   : > { %v1679_v37 = vadd.f32 %v12011_v16, %v790_v23  ;;  %v792_v9 = vpop.f32.mrb[57].mxu0 }
 0x15b   : > { %v1680_v40 = vadd.f32 %v12017_v22, %v792_v9  ;;  %v794_v0 = vpop.f32.mrb[58].mxu0 }
 0x15c   : > { %v1807_v48 = vmax.f32 %v1679_v37, 0.0  ;;  %v1681_v1 = vadd.f32 %v12011_v16, %v794_v0  ;;  %v796_v21 = vpop.f32.mrb[59].mxu0  ;;  %v11207_v37 = vld [vmem:[%s15838_s3 + $0x1f0] ss:$8 sps:$4 sm:$0xff]  }
 0x15d   : > { %v1808_v60 = vmax.f32 %v1680_v40, 0.0  ;;  %v1682_v26 = vadd.f32 %v12017_v22, %v796_v21 }
 0x15e   : > { %2270 = vmatmul.mubr.bf16.gmra.mrb[164].mxu1 %v12232_v61  ;;  %v1809_v13 = vmax.f32 %v1681_v1, 0.0  ;;  %10858 = vmatmul.mubr.msk.bf16.gmra.mrb[164].mxu0 %vm503_vm1, %v11923_v44  ;;  %v11204_v61 = vld [vmem:[%s15838_s3 + $0x1e0] ss:$8 sps:$4 sm:$0xff]   ;;  %v11206_v44 = vld [vmem:[%s15838_s3 + $0x1e4] ss:$8 sps:$4 sm:$0xff]  }
 0x15f   : > { %2279 = vmatprep.mubr.bf16.mxu1 %v12257_v38  ;;  %v1810_v8 = vmax.f32 %v1682_v26, 0.0  ;;  %10861 = vmatprep.mubr.msk.bf16.mxu0 %vm503_vm1, %v11933_v47 }
 0x160   : > { %v12347_v14 = vpack.c.bf16 %v1809_v13, %v1807_v48  ;;  %2926 = vmatprep.subr.bf16.mxu0 %v11206_v44 }
 0x161   : > { %v800_v35 = vpop.f32.mrb[60].mxu0  ;;  %v12349_v27 = vpack.c.bf16 %v1810_v8, %v1808_v60  ;;  %2927 = vmatpush1.bf16.msra.mxu0 %v11204_v61  ;;  %v11212_v60 = vld [vmem:[%s15838_s3 + $0x224] ss:$8 sps:$4 sm:$0xff]  }
 0x162   : > { %v1683_v38 = vadd.f32 %v12011_v16, %v800_v35  ;;  %v802_v5 = vpop.f32.mrb[61].mxu0  ;;  %2928 = vmatprep.subr.bf16.mxu0 %v11209_v57  ;;  %3653 = vmatprep.subr.bf16.mxu1 %v11212_v60 }
 0x163   : > { %v1684_v47 = vadd.f32 %v12017_v22, %v802_v5  ;;  %v804_v42 = vpop.f32.mrb[62].mxu0  ;;  %3654 = vmatpush1.bf16.msra.mxu1 %v11210_v2 }
 0x164   : > { %v1811_v20 = vmax.f32 %v1683_v38, 0.0  ;;  %v1685_v28 = vadd.f32 %v12011_v16, %v804_v42  ;;  %v806_v30 = vpop.f32.mrb[63].mxu0 }
 0x165   : > { %v1812_v31 = vmax.f32 %v1684_v47, 0.0  ;;  %v1686_v36 = vadd.f32 %v12017_v22, %v806_v30  ;;  %2929 = vmatpush1.bf16.msra.mxu0 %v11207_v37 }
 0x166   : > { %2280 = vmatmul.mubr.bf16.gmra.mrb[168].mxu1 %v12255_v45  ;;  %v1813_v58 = vmax.f32 %v1685_v28, 0.0  ;;  %10862 = vmatmul.mubr.msk.bf16.gmra.mrb[168].mxu0 %vm503_vm1, %v11943_v51 }
 0x167   : > { %2289 = vmatprep.mubr.bf16.mxu1 %v12277_v34  ;;  %v1814_v33 = vmax.f32 %v1686_v36, 0.0  ;;  %10865 = vmatprep.mubr.msk.bf16.mxu0 %vm503_vm1, %v11953_v54 }
 0x168   : > { %v12361_v25 = vpack.c.bf16 %v1813_v58, %v1811_v20 }
 0x169   : > { %v810_v11 = vpop.f32.mrb[64].mxu0  ;;  %v12363_v18 = vpack.c.bf16 %v1814_v33, %v1812_v31 }
 0x16a   : > { %v1687_v17 = vadd.f32 %v12011_v16, %v810_v11  ;;  %v812_v63 = vpop.f32.mrb[65].mxu0 }
 0x16b   : > { %v1688_v45 = vadd.f32 %v12017_v22, %v812_v63  ;;  %v814_v39 = vpop.f32.mrb[66].mxu0 }
 0x16c   : > { %v1815_v41 = vmax.f32 %v1687_v17, 0.0  ;;  %v1689_v51 = vadd.f32 %v12011_v16, %v814_v39  ;;  %v816_v43 = vpop.f32.mrb[67].mxu0 }
 0x16d   : > { %v1816_v34 = vmax.f32 %v1688_v45, 0.0  ;;  %v1690_v46 = vadd.f32 %v12017_v22, %v816_v43 }
 0x16e   : > { %2290 = vmatmul.mubr.bf16.gmra.mrb[172].mxu1 %v12275_v55  ;;  %v1817_v54 = vmax.f32 %v1689_v51, 0.0  ;;  %10866 = vmatmul.mubr.msk.bf16.gmra.mrb[172].mxu0 %vm503_vm1, %v11963_v59 }
 0x16f   : > { %2299 = vmatprep.mubr.bf16.mxu1 %v12303_v29  ;;  %v1818_v23 = vmax.f32 %v1690_v46, 0.0  ;;  %10869 = vmatprep.mubr.msk.bf16.mxu0 %vm503_vm1, %v11973_v62 }
 0x170   : > { %v12381_v9 = vpack.c.bf16 %v1817_v54, %v1815_v41  ;;  %v11213_v41 = vld [vmem:[%s15838_s3 + $0x230] ss:$8 sps:$4 sm:$0xff]  }
 0x171   : > { %v820_v55 = vpop.f32.mrb[68].mxu0  ;;  %v12383_v40 = vpack.c.bf16 %v1818_v23, %v1816_v34 }
 0x172   : > { %v1691_v59 = vadd.f32 %v12011_v16, %v820_v55  ;;  %v822_v0 = vpop.f32.mrb[69].mxu0 }
 0x173   : > { %v1692_v29 = vadd.f32 %v12017_v22, %v822_v0  ;;  %v824_v48 = vpop.f32.mrb[70].mxu0 }
 0x174   : > { %v1819_v1 = vmax.f32 %v1691_v59, 0.0  ;;  %v1693_v62 = vadd.f32 %v12011_v16, %v824_v48  ;;  %v826_v21 = vpop.f32.mrb[71].mxu0 }
 0x175   : > { %v1820_v26 = vmax.f32 %v1692_v29, 0.0  ;;  %v1694_v13 = vadd.f32 %v12017_v22, %v826_v21 }
 0x176   : > { %2300 = vmatmul.mubr.bf16.gmra.mrb[176].mxu1 %v12301_v50  ;;  %v1821_v19 = vmax.f32 %v1693_v62, 0.0  ;;  %10870 = vmatmul.mubr.msk.bf16.gmra.mrb[176].mxu0 %vm503_vm1, %v11983_v4 }
 0x177   : > { %2309 = vmatprep.mubr.bf16.mxu1 %v12323_v49  ;;  %v1822_v8 = vmax.f32 %v1694_v13, 0.0  ;;  %10873 = vmatprep.mubr.msk.bf16.mxu0 %vm503_vm1, %v11995_v10 }
 0x178   : > { %v12401_v61 = vpack.c.bf16 %v1821_v19, %v1819_v1 }
 0x179   : > { %v830_v44 = vpop.f32.mrb[72].mxu0  ;;  %v12403_v35 = vpack.c.bf16 %v1822_v8, %v1820_v26 }
 0x17a   : > { %v1695_v38 = vadd.f32 %v12011_v16, %v830_v44  ;;  %v832_v50 = vpop.f32.mrb[73].mxu0 }
 0x17b   : > { %v1696_v5 = vadd.f32 %v12017_v22, %v832_v50  ;;  %v834_v47 = vpop.f32.mrb[74].mxu0 }
 0x17c   : > { %v1823_v4 = vmax.f32 %v1695_v38, 0.0  ;;  %v1697_v49 = vadd.f32 %v12011_v16, %v834_v47  ;;  %v836_v42 = vpop.f32.mrb[75].mxu0 }
 0x17d   : > { %v1824_v20 = vmax.f32 %v1696_v5, 0.0  ;;  %v1698_v10 = vadd.f32 %v12017_v22, %v836_v42 }
 0x17e   : > { %2310 = vmatmul.mubr.bf16.gmra.mrb[180].mxu1 %v12321_v53  ;;  %v1825_v28 = vmax.f32 %v1697_v49, 0.0  ;;  %10874 = vmatmul.mubr.msk.bf16.gmra.mrb[180].mxu0 %vm503_vm1, %v12020_v24 }
 0x17f   : > { %2319 = vmatprep.mubr.bf16.mxu1 %v12349_v27  ;;  %v1826_v30 = vmax.f32 %v1698_v10, 0.0  ;;  %10877 = vmatprep.mubr.msk.bf16.mxu0 %vm503_vm1, %v12041_v56  ;;  %v11215_v27 = vld [vmem:[%s15838_s3 + $0x234] ss:$8 sps:$4 sm:$0xff]  }
 0x180   : > { %v12415_v31 = vpack.c.bf16 %v1825_v28, %v1823_v4  ;;  %3655 = vmatprep.subr.bf16.mxu1 %v11215_v27 }
 0x181   : > { %v840_v36 = vpop.f32.mrb[76].mxu0  ;;  %v12417_v58 = vpack.c.bf16 %v1826_v30, %v1824_v20  ;;  %3656 = vmatpush1.bf16.msra.mxu1 %v11213_v41 }
 0x182   : > { %v1699_v33 = vadd.f32 %v12011_v16, %v840_v36  ;;  %v842_v11 = vpop.f32.mrb[77].mxu0 }
 0x183   : > { %v1700_v53 = vadd.f32 %v12017_v22, %v842_v11  ;;  %v844_v17 = vpop.f32.mrb[78].mxu0 }
 0x184   : > { %v1827_v63 = vmax.f32 %v1699_v33, 0.0  ;;  %v1701_v24 = vadd.f32 %v12011_v16, %v844_v17  ;;  %v846_v45 = vpop.f32.mrb[79].mxu0 }
 0x185   : > { %v1828_v56 = vmax.f32 %v1700_v53, 0.0  ;;  %v1702_v39 = vadd.f32 %v12017_v22, %v846_v45 }
 0x186   : > { %2320 = vmatmul.mubr.bf16.gmra.mrb[184].mxu1 %v12347_v14  ;;  %v1829_v51 = vmax.f32 %v1701_v24, 0.0  ;;  %10878 = vmatmul.mubr.msk.bf16.gmra.mrb[184].mxu0 %vm503_vm1, %v12059_v32 }
 0x187   : > { %2329 = vmatprep.mubr.bf16.mxu1 %v12363_v18  ;;  %v1830_v43 = vmax.f32 %v1702_v39, 0.0  ;;  %10881 = vmatprep.mubr.msk.bf16.mxu0 %vm503_vm1, %v12077_v7 }
 0x188   : > { %v12435_v34 = vpack.c.bf16 %v1829_v51, %v1827_v63 }
 0x189   : > { %v850_v46 = vpop.f32.mrb[80].mxu0  ;;  %v12437_v54 = vpack.c.bf16 %v1830_v43, %v1828_v56 }
 0x18a   : > { %v1703_v57 = vadd.f32 %v12011_v16, %v850_v46  ;;  %v852_v14 = vpop.f32.mrb[81].mxu0 }
 0x18b   : > { %v1704_v23 = vadd.f32 %v12017_v22, %v852_v14  ;;  %v854_v37 = vpop.f32.mrb[82].mxu0 }
 0x18c   : > { %v1831_v32 = vmax.f32 %v1703_v57, 0.0  ;;  %v1705_v18 = vadd.f32 %v12011_v16, %v854_v37  ;;  %v856_v55 = vpop.f32.mrb[83].mxu0 }
 0x18d   : > { %v1832_v59 = vmax.f32 %v1704_v23, 0.0  ;;  %v1706_v7 = vadd.f32 %v12017_v22, %v856_v55 }
 0x18e   : > { %2330 = vmatmul.mubr.bf16.gmra.mrb[188].mxu1 %v12361_v25  ;;  %v1833_v0 = vmax.f32 %v1705_v18, 0.0  ;;  %10882 = vmatmul.mubr.msk.bf16.gmra.mrb[188].mxu0 %vm503_vm1, %v12095_v52  ;;  %v11216_v52 = vld [vmem:[%s15838_s3 + $0x240] ss:$8 sps:$4 sm:$0xff]  }
 0x18f   : > { %2339 = vmatprep.mubr.bf16.mxu1 %v12383_v40  ;;  %v1834_v29 = vmax.f32 %v1706_v7, 0.0  ;;  %v11218_v40 = vld [vmem:[%s15838_s3 + $0x244] ss:$8 sps:$4 sm:$0xff]  }
 0x190   : > { %v12447_v48 = vpack.c.bf16 %v1833_v0, %v1831_v32  ;;  %3657 = vmatprep.subr.bf16.mxu1 %v11218_v40 }
 0x191   : > { %v860_v1 = vpop.f32.mrb[84].mxu0  ;;  %v12449_v62 = vpack.c.bf16 %v1834_v29, %v1832_v59  ;;  %3658 = vmatpush1.bf16.msra.mxu1 %v11216_v52 }
 0x192   : > { %v1707_v21 = vadd.f32 %v12011_v16, %v860_v1  ;;  %v862_v60 = vpop.f32.mrb[85].mxu0 }
 0x193   : > { %v1708_v26 = vadd.f32 %v12017_v22, %v862_v60  ;;  %v864_v13 = vpop.f32.mrb[86].mxu0 }
 0x194   : > { %v1835_v2 = vmax.f32 %v1707_v21, 0.0  ;;  %v1709_v25 = vadd.f32 %v12011_v16, %v864_v13  ;;  %v866_v19 = vpop.f32.mrb[87].mxu0 }
 0x195   : > { %v1836_v8 = vmax.f32 %v1708_v26, 0.0  ;;  %v1710_v44 = vadd.f32 %v12017_v22, %v866_v19 }
 0x196   : > { %2340 = vmatmul.mubr.bf16.gmra.mrb[192].mxu1 %v12381_v9  ;;  %v1837_v38 = vmax.f32 %v1709_v25, 0.0 }
 0x197   : > { %2349 = vmatprep.mubr.bf16.mxu1 %v12403_v35  ;;  %v1838_v50 = vmax.f32 %v1710_v44, 0.0 }
 0x198   : > { %v12463_v5 = vpack.c.bf16 %v1837_v38, %v1835_v2 }
 0x199   : > { %v870_v47 = vpop.f32.mrb[88].mxu0  ;;  %v12465_v4 = vpack.c.bf16 %v1838_v50, %v1836_v8 }
 0x19a   : > { %v1711_v49 = vadd.f32 %v12011_v16, %v870_v47  ;;  %v872_v42 = vpop.f32.mrb[89].mxu0 }
 0x19b   : > { %v1712_v20 = vadd.f32 %v12017_v22, %v872_v42  ;;  %v874_v10 = vpop.f32.mrb[90].mxu0 }
 0x19c   : > { %v1839_v28 = vmax.f32 %v1711_v49, 0.0  ;;  %v1713_v9 = vadd.f32 %v12011_v16, %v874_v10  ;;  %v876_v30 = vpop.f32.mrb[91].mxu0 }
 0x19d   : > { %v1840_v36 = vmax.f32 %v1712_v20, 0.0  ;;  %v1714_v35 = vadd.f32 %v12017_v22, %v876_v30 }
 0x19e   : > { %2350 = vmatmul.mubr.bf16.gmra.mrb[196].mxu1 %v12401_v61  ;;  %v1841_v33 = vmax.f32 %v1713_v9, 0.0  ;;  %v11219_v61 = vld [vmem:[%s15838_s3 + $0x250] ss:$8 sps:$4 sm:$0xff]  }
 0x19f   : > { %2359 = vmatprep.mubr.bf16.mxu1 %v12417_v58  ;;  %v1842_v11 = vmax.f32 %v1714_v35, 0.0  ;;  %v11221_v58 = vld [vmem:[%s15838_s3 + $0x254] ss:$8 sps:$4 sm:$0xff]  }
 0x1a0   : > { %v12473_v53 = vpack.c.bf16 %v1841_v33, %v1839_v28  ;;  %3659 = vmatprep.subr.bf16.mxu1 %v11221_v58 }
 0x1a1   : > { %v880_v17 = vpop.f32.mrb[92].mxu0  ;;  %v12475_v63 = vpack.c.bf16 %v1842_v11, %v1840_v36  ;;  %3660 = vmatpush1.bf16.msra.mxu1 %v11219_v61 }
 0x1a2   : > { %v1715_v24 = vadd.f32 %v12011_v16, %v880_v17  ;;  %v882_v45 = vpop.f32.mrb[93].mxu0 }
 0x1a3   : > { %v1716_v27 = vadd.f32 %v12017_v22, %v882_v45  ;;  %v884_v56 = vpop.f32.mrb[94].mxu0 }
 0x1a4   : > { %v1843_v39 = vmax.f32 %v1715_v24, 0.0  ;;  %v1717_v41 = vadd.f32 %v12011_v16, %v884_v56  ;;  %v886_v51 = vpop.f32.mrb[95].mxu0 }
 0x1a5   : > { %v1844_v43 = vmax.f32 %v1716_v27, 0.0  ;;  %v1718_v46 = vadd.f32 %v12017_v22, %v886_v51 }
 0x1a6   : > { %2360 = vmatmul.mubr.bf16.gmra.mrb[200].mxu1 %v12415_v31  ;;  %v1845_v57 = vmax.f32 %v1717_v41, 0.0 }
 0x1a7   : > { %2369 = vmatprep.mubr.bf16.mxu1 %v12437_v54  ;;  %v1846_v14 = vmax.f32 %v1718_v46, 0.0 }
 0x1a8   : > { %v12489_v23 = vpack.c.bf16 %v1845_v57, %v1843_v39 }
 0x1a9   : > { %v890_v37 = vpop.f32.mrb[96].mxu0  ;;  %v12491_v32 = vpack.c.bf16 %v1846_v14, %v1844_v43 }
 0x1aa   : > { %v1719_v18 = vadd.f32 %v12011_v16, %v890_v37  ;;  %v892_v55 = vpop.f32.mrb[97].mxu0 }
 0x1ab   : > { %v1720_v59 = vadd.f32 %v12017_v22, %v892_v55  ;;  %v894_v7 = vpop.f32.mrb[98].mxu0 }
 0x1ac   : > { %v1847_v0 = vmax.f32 %v1719_v18, 0.0  ;;  %v1721_v31 = vadd.f32 %v12011_v16, %v894_v7  ;;  %v896_v29 = vpop.f32.mrb[99].mxu0 }
 0x1ad   : > { %v1848_v1 = vmax.f32 %v1720_v59, 0.0  ;;  %v1722_v54 = vadd.f32 %v12017_v22, %v896_v29 }
 0x1ae   : > { %2370 = vmatmul.mubr.bf16.gmra.mrb[204].mxu1 %v12435_v34  ;;  %v1849_v21 = vmax.f32 %v1721_v31, 0.0  ;;  %v11222_v34 = vld [vmem:[%s15838_s3 + $0x260] ss:$8 sps:$4 sm:$0xff]  }
 0x1af   : > { %2379 = vmatprep.mubr.bf16.mxu1 %v12449_v62  ;;  %v1850_v60 = vmax.f32 %v1722_v54, 0.0  ;;  %v11224_v62 = vld [vmem:[%s15838_s3 + $0x264] ss:$8 sps:$4 sm:$0xff]  }
 0x1b0   : > { %v12499_v26 = vpack.c.bf16 %v1849_v21, %v1847_v0  ;;  %3661 = vmatprep.subr.bf16.mxu1 %v11224_v62 }
 0x1b1   : > { %v900_v13 = vpop.f32.mrb[100].mxu0  ;;  %v12501_v2 = vpack.c.bf16 %v1850_v60, %v1848_v1  ;;  %3662 = vmatpush1.bf16.msra.mxu1 %v11222_v34 }
 0x1b2   : > { %v1723_v25 = vadd.f32 %v12011_v16, %v900_v13  ;;  %v902_v19 = vpop.f32.mrb[101].mxu0 }
 0x1b3   : > { %v1724_v52 = vadd.f32 %v12017_v22, %v902_v19  ;;  %v904_v40 = vpop.f32.mrb[102].mxu0 }
 0x1b4   : > { %v1851_v8 = vmax.f32 %v1723_v25, 0.0  ;;  %v1725_v44 = vadd.f32 %v12011_v16, %v904_v40  ;;  %v906_v38 = vpop.f32.mrb[103].mxu0 }
 0x1b5   : > { %v1852_v50 = vmax.f32 %v1724_v52, 0.0  ;;  %v1726_v47 = vadd.f32 %v12017_v22, %v906_v38 }
 0x1b6   : > { %2380 = vmatmul.mubr.bf16.gmra.mrb[208].mxu1 %v12447_v48  ;;  %v1853_v49 = vmax.f32 %v1725_v44, 0.0 }
 0x1b7   : > { %2389 = vmatprep.mubr.bf16.mxu1 %v12465_v4  ;;  %v1854_v42 = vmax.f32 %v1726_v47, 0.0 }
 0x1b8   : > { %v12515_v20 = vpack.c.bf16 %v1853_v49, %v1851_v8 }
 0x1b9   : > { %v910_v10 = vpop.f32.mrb[104].mxu0  ;;  %v12517_v28 = vpack.c.bf16 %v1854_v42, %v1852_v50 }
 0x1ba   : > { %v1727_v9 = vadd.f32 %v12011_v16, %v910_v10  ;;  %v912_v30 = vpop.f32.mrb[105].mxu0 }
 0x1bb   : > { %v1728_v36 = vadd.f32 %v12017_v22, %v912_v30  ;;  %v914_v35 = vpop.f32.mrb[106].mxu0 }
 0x1bc   : > { %v1855_v33 = vmax.f32 %v1727_v9, 0.0  ;;  %v1729_v48 = vadd.f32 %v12011_v16, %v914_v35  ;;  %v916_v11 = vpop.f32.mrb[107].mxu0 }
 0x1bd   : > { %v1856_v17 = vmax.f32 %v1728_v36, 0.0  ;;  %v1730_v4 = vadd.f32 %v12017_v22, %v916_v11 }
 0x1be   : > { %2390 = vmatmul.mubr.bf16.gmra.mrb[212].mxu1 %v12463_v5  ;;  %v1857_v24 = vmax.f32 %v1729_v48, 0.0  ;;  %v11225_v5 = vld [vmem:[%s15838_s3 + $0x270] ss:$8 sps:$4 sm:$0xff]  }
 0x1bf   : > { %2399 = vmatprep.mubr.bf16.mxu1 %v12475_v63  ;;  %v1858_v45 = vmax.f32 %v1730_v4, 0.0  ;;  %v11227_v63 = vld [vmem:[%s15838_s3 + $0x274] ss:$8 sps:$4 sm:$0xff]  }
 0x1c0   : > { %v12525_v27 = vpack.c.bf16 %v1857_v24, %v1855_v33  ;;  %3663 = vmatprep.subr.bf16.mxu1 %v11227_v63 }
 0x1c1   : > { %v920_v56 = vpop.f32.mrb[108].mxu0  ;;  %v12527_v39 = vpack.c.bf16 %v1858_v45, %v1856_v17  ;;  %3664 = vmatpush1.bf16.msra.mxu1 %v11225_v5  ;;  %v1975_v5 = vld [vmem:[%s15839_s4] ss:$8 sm:$0x3] }
 0x1c2   : > { %v1731_v41 = vadd.f32 %v12011_v16, %v920_v56  ;;  %v922_v51 = vpop.f32.mrb[109].mxu0 }
 0x1c3   : > { %v1732_v61 = vadd.f32 %v12017_v22, %v922_v51  ;;  %v924_v58 = vpop.f32.mrb[110].mxu0 }
 0x1c4   : > { %v1859_v43 = vmax.f32 %v1731_v41, 0.0  ;;  %v1733_v46 = vadd.f32 %v12011_v16, %v924_v58  ;;  %v926_v57 = vpop.f32.mrb[111].mxu0 }
 0x1c5   : > { %v1860_v14 = vmax.f32 %v1732_v61, 0.0  ;;  %v1734_v37 = vadd.f32 %v12017_v22, %v926_v57 }
 0x1c6   : > { %2400 = vmatmul.mubr.bf16.gmra.mrb[216].mxu1 %v12473_v53  ;;  %v1861_v18 = vmax.f32 %v1733_v46, 0.0 }
 0x1c7   : > { %2409 = vmatprep.mubr.bf16.mxu1 %v12491_v32  ;;  %v1862_v55 = vmax.f32 %v1734_v37, 0.0 }
 0x1c8   : > { %v12541_v59 = vpack.c.bf16 %v1861_v18, %v1859_v43  ;;  %v11231_v18 = vld [vmem:[%s15838_s3 + $0x290] ss:$8 sps:$4 sm:$0xff]  }
 0x1c9   : > { %v930_v7 = vpop.f32.mrb[112].mxu0  ;;  %v12543_v0 = vpack.c.bf16 %v1862_v55, %v1860_v14  ;;  %v11233_v55 = vld [vmem:[%s15838_s3 + $0x294] ss:$8 sps:$4 sm:$0xff]  }
 0x1ca   : > { %v1735_v31 = vadd.f32 %v12011_v16, %v930_v7  ;;  %v932_v29 = vpop.f32.mrb[113].mxu0 }
 0x1cb   : > { %v1736_v1 = vadd.f32 %v12017_v22, %v932_v29  ;;  %v934_v54 = vpop.f32.mrb[114].mxu0  ;;  %v12596_v29 = vrot.slane %v1975_v5, %v11998_v12 }
 0x1cc   : > { %v1863_v21 = vmax.f32 %v1735_v31, 0.0  ;;  %v1737_v53 = vadd.f32 %v12011_v16, %v934_v54  ;;  %v936_v60 = vpop.f32.mrb[115].mxu0 }
 0x1cd   : > { %v1864_v13 = vmax.f32 %v1736_v1, 0.0  ;;  %v1738_v32 = vadd.f32 %v12017_v22, %v936_v60 }
 0x1ce   : > { %2410 = vmatmul.mubr.bf16.gmra.mrb[220].mxu1 %v12489_v23  ;;  %v1865_v25 = vmax.f32 %v1737_v53, 0.0  ;;  %v11228_v23 = vld [vmem:[%s15838_s3 + $0x280] ss:$8 sps:$4 sm:$0xff]  }
 0x1cf   : > { %2419 = vmatprep.mubr.bf16.mxu1 %v12501_v2  ;;  %v1866_v19 = vmax.f32 %v1738_v32, 0.0  ;;  %v11230_v2 = vld [vmem:[%s15838_s3 + $0x284] ss:$8 sps:$4 sm:$0xff]  }
 0x1d0   : > { %v12551_v52 = vpack.c.bf16 %v1865_v25, %v1863_v21  ;;  %3665 = vmatprep.subr.bf16.mxu1 %v11230_v2 }
 0x1d1   : > { %v940_v40 = vpop.f32.mrb[116].mxu0  ;;  %v12553_v8 = vpack.c.bf16 %v1866_v19, %v1864_v13  ;;  %3666 = vmatpush1.bf16.msra.mxu1 %v11228_v23 }
 0x1d2   : > { %v1739_v44 = vadd.f32 %v12011_v16, %v940_v40  ;;  %v942_v38 = vpop.f32.mrb[117].mxu0  ;;  %3667 = vmatprep.subr.bf16.mxu1 %v11233_v55 }
 0x1d3   : > { %v1740_v34 = vadd.f32 %v12017_v22, %v942_v38  ;;  %v944_v62 = vpop.f32.mrb[118].mxu0 }
 0x1d4   : > { %v1867_v50 = vmax.f32 %v1739_v44, 0.0  ;;  %v1741_v47 = vadd.f32 %v12011_v16, %v944_v62  ;;  %v946_v49 = vpop.f32.mrb[119].mxu0 }
 0x1d5   : > { %v1868_v42 = vmax.f32 %v1740_v34, 0.0  ;;  %v1742_v10 = vadd.f32 %v12017_v22, %v946_v49  ;;  %3668 = vmatpush1.bf16.msra.mxu1 %v11231_v18 }
 0x1d6   : > { %2420 = vmatmul.mubr.bf16.gmra.mrb[224].mxu1 %v12499_v26  ;;  %v1869_v9 = vmax.f32 %v1741_v47, 0.0 }
 0x1d7   : > { %2429 = vmatprep.mubr.bf16.mxu1 %v12517_v28  ;;  %v1870_v30 = vmax.f32 %v1742_v10, 0.0 }
 0x1d8   : > { %v12567_v36 = vpack.c.bf16 %v1869_v9, %v1867_v50 }
 0x1d9   : > { %v950_v35 = vpop.f32.mrb[120].mxu0  ;;  %v12569_v33 = vpack.c.bf16 %v1870_v30, %v1868_v42 }
 0x1da   : > { %v1743_v48 = vadd.f32 %v12011_v16, %v950_v35  ;;  %v952_v11 = vpop.f32.mrb[121].mxu0 }
 0x1db   : > { %v1744_v17 = vadd.f32 %v12017_v22, %v952_v11  ;;  %v954_v4 = vpop.f32.mrb[122].mxu0 }
 0x1dc   : > { %v1871_v24 = vmax.f32 %v1743_v48, 0.0  ;;  %v1745_v26 = vadd.f32 %v12011_v16, %v954_v4  ;;  %v956_v45 = vpop.f32.mrb[123].mxu0 }
 0x1dd   : > { %v1872_v56 = vmax.f32 %v1744_v17, 0.0  ;;  %v1746_v28 = vadd.f32 %v12017_v22, %v956_v45  ;;  %v11236_v45 = vld [vmem:[%s15838_s3 + $0x2a4] ss:$8 sps:$4 sm:$0xff]  }
 0x1de   : > { %2430 = vmatmul.mubr.bf16.gmra.mrb[228].mxu1 %v12515_v20  ;;  %v1873_v41 = vmax.f32 %v1745_v26, 0.0  ;;  %3669 = vmatprep.subr.bf16.mxu1 %v11236_v45 }
 0x1df   : > { %2439 = vmatprep.mubr.bf16.mxu1 %v12527_v39  ;;  %v1874_v51 = vmax.f32 %v1746_v28, 0.0 }
 0x1e0   : > { %v12577_v61 = vpack.c.bf16 %v1873_v41, %v1871_v24  ;;  %v11234_v24 = vld [vmem:[%s15838_s3 + $0x2a0] ss:$8 sps:$4 sm:$0xff]  }
 0x1e1   : > { %v960_v58 = vpop.f32.mrb[124].mxu0  ;;  %v12579_v43 = vpack.c.bf16 %v1874_v51, %v1872_v56  ;;  %3670 = vmatpush1.bf16.msra.mxu1 %v11234_v24 }
 0x1e2   : > { %v1747_v46 = vadd.f32 %v12011_v16, %v960_v58  ;;  %v962_v57 = vpop.f32.mrb[125].mxu0 }
 0x1e3   : > { %v1748_v63 = vadd.f32 %v12017_v22, %v962_v57  ;;  %v964_v14 = vpop.f32.mrb[126].mxu0 }
 0x1e4   : > { %v1875_v20 = vmax.f32 %v1747_v46, 0.0  ;;  %v1749_v37 = vadd.f32 %v12011_v16, %v964_v14  ;;  %v966_v39 = vpop.f32.mrb[127].mxu0  ;;  %v12599_v16 = vrot.slane %v1975_v5, %v12004_v15 }
 0x1e5   : > { %v1876_v7 = vmax.f32 %v1748_v63, 0.0  ;;  %v1750_v31 = vadd.f32 %v12017_v22, %v966_v39 }
 0x1e6   : > { %2440 = vmatmul.mubr.bf16.gmra.mrb[232].mxu1 %v12525_v27  ;;  %v1877_v1 = vmax.f32 %v1749_v37, 0.0 }
 0x1e7   : > { %2449 = vmatprep.mubr.bf16.mxu1 %v12543_v0  ;;  %v1878_v54 = vmax.f32 %v1750_v31, 0.0 }
 0x1e8   : > { %v12602_v21 = vpack.c.bf16 %v1877_v1, %v1875_v20 }
 0x1e9   : > { %v2181_v53 = vpop.f32.mrb[128].mxu1  ;;  %v12604_v60 = vpack.c.bf16 %v1878_v54, %v1876_v7  ;;  %v12606_v22 = vpop.f32.mrb[128].mxu0 }
 0x1ea   : > { %v2182_v27 = vadd.f32 %v2181_v53, %v12596_v29  ;;  %v2183_v13 = vpop.f32.mrb[129].mxu1  ;;  %v12609_v32 = vpop.f32.mrb[129].mxu0 }
 0x1eb   : > { %v2184_v25 = vadd.f32 %v2183_v13, %v12599_v16  ;;  %v2185_v19 = vpop.f32.mrb[130].mxu1  ;;  %v12612_v40 = vpop.f32.mrb[130].mxu0 }
 0x1ec   : > { %v2186_v0 = vadd.f32 %v2185_v19, %v12596_v29  ;;  %v2187_v44 = vpop.f32.mrb[131].mxu1  ;;  %v12615_v38 = vpop.f32.mrb[131].mxu0  ;;  %v2500_v62 = vmax.f32 %v2182_v27, 0.0 }
 0x1ed   : > { %v2188_v34 = vadd.f32 %v2187_v44, %v12599_v16  ;;  %v2501_v47 = vmax.f32 %v2184_v25, 0.0 }
 0x1ee   : > { %v2502_v50 = vmax.f32 %v2186_v0, 0.0  ;;  %2450 = vmatmul.mubr.bf16.gmra.mrb[236].mxu1 %v12541_v59 }
 0x1ef   : > { %v2503_v49 = vmax.f32 %v2188_v34, 0.0  ;;  %2459 = vmatprep.mubr.bf16.mxu1 %v12553_v8 }
 0x1f0   : > { %v2628_v23 = vpack.c.bf16 %v2502_v50, %v2500_v62 }
 0x1f1   : > { %v2191_v2 = vpop.f32.mrb[132].mxu1  ;;  %v2629_v42 = vpack.c.bf16 %v2503_v49, %v2501_v47  ;;  %v12620_v10 = vpop.f32.mrb[132].mxu0 }
 0x1f2   : > { %v2192_v9 = vadd.f32 %v2191_v2, %v12596_v29  ;;  %v2193_v30 = vpop.f32.mrb[133].mxu1  ;;  %v12623_v35 = vpop.f32.mrb[133].mxu0 }
 0x1f3   : > { %v2194_v48 = vadd.f32 %v2193_v30, %v12599_v16  ;;  %v2195_v11 = vpop.f32.mrb[134].mxu1  ;;  %2930 = vmatprep.mubr.bf16.mxu0 %v2629_v42  ;;  %v12626_v17 = vpop.f32.mrb[134].mxu0  ;;  %v11239_v42 = vld [vmem:[%s15838_s3 + $0x2b4] ss:$8 sps:$4 sm:$0xff]  }
 0x1f4   : > { %v2196_v59 = vadd.f32 %v2195_v11, %v12596_v29  ;;  %v2197_v4 = vpop.f32.mrb[135].mxu1  ;;  %2931 = vmatmul.mubr.bf16.vlgmr.msra.gmra.mrb[192].mxu0 %v2628_v23  ;;  %v12629_v8 = vpop.f32.mrb[135].mxu0  ;;  %v2504_v56 = vmax.f32 %v2192_v9, 0.0  ;;  %v11237_v23 = vld [vmem:[%s15838_s3 + $0x2b0] ss:$8 sps:$4 sm:$0xff]   ;;  %3671 = vmatprep.subr.bf16.mxu1 %v11239_v42 }
 0x1f5   : > { %v2198_v26 = vadd.f32 %v2197_v4, %v12599_v16  ;;  %v2505_v41 = vmax.f32 %v2194_v48, 0.0  ;;  %3672 = vmatpush1.bf16.msra.mxu1 %v11237_v23 }
 0x1f6   : > { %v2506_v28 = vmax.f32 %v2196_v59, 0.0  ;;  %2460 = vmatmul.mubr.bf16.gmra.mrb[240].mxu1 %v12551_v52 }
 0x1f7   : > { %v2507_v51 = vmax.f32 %v2198_v26, 0.0  ;;  %2469 = vmatprep.mubr.bf16.mxu1 %v12569_v33 }
 0x1f8   : > { %v2630_v58 = vpack.c.bf16 %v2506_v28, %v2504_v56 }
 0x1f9   : > { %v2201_v46 = vpop.f32.mrb[136].mxu1  ;;  %v2631_v57 = vpack.c.bf16 %v2507_v51, %v2505_v41  ;;  %v12640_v5 = vpop.f32.mrb[136].mxu0 }
 0x1fa   : > { %v2202_v63 = vadd.f32 %v2201_v46, %v12596_v29  ;;  %v2203_v14 = vpop.f32.mrb[137].mxu1  ;;  %v12643_v20 = vpop.f32.mrb[137].mxu0 }
 0x1fb   : > { %v2204_v37 = vadd.f32 %v2203_v14, %v12599_v16  ;;  %v2205_v39 = vpop.f32.mrb[138].mxu1  ;;  %2940 = vmatprep.mubr.bf16.mxu0 %v2631_v57  ;;  %v12646_v52 = vpop.f32.mrb[138].mxu0 }
 0x1fc   : > { %v2206_v33 = vadd.f32 %v2205_v39, %v12596_v29  ;;  %v2207_v18 = vpop.f32.mrb[139].mxu1  ;;  %2941 = vmatmul.mubr.bf16.gmra.mrb[196].mxu0 %v2630_v58  ;;  %v12649_v55 = vpop.f32.mrb[139].mxu0  ;;  %v2508_v31 = vmax.f32 %v2202_v63, 0.0 }
 0x1fd   : > { %v2208_v7 = vadd.f32 %v2207_v18, %v12599_v16  ;;  %v2509_v54 = vmax.f32 %v2204_v37, 0.0 }
 0x1fe   : > { %v2510_v1 = vmax.f32 %v2206_v33, 0.0  ;;  %2470 = vmatmul.mubr.bf16.gmra.mrb[244].mxu1 %v12567_v36 }
 0x1ff   : > { %v2511_v53 = vmax.f32 %v2208_v7, 0.0  ;;  %2479 = vmatprep.mubr.bf16.mxu1 %v12579_v43 }
 0x200   : > { %v2632_v27 = vpack.c.bf16 %v2510_v1, %v2508_v31 }
 0x201   : > { %v2211_v13 = vpop.f32.mrb[140].mxu1  ;;  %v2633_v25 = vpack.c.bf16 %v2511_v53, %v2509_v54  ;;  %v12654_v19 = vpop.f32.mrb[140].mxu0 }
 0x202   : > { %v2212_v0 = vadd.f32 %v2211_v13, %v12596_v29  ;;  %v2213_v44 = vpop.f32.mrb[141].mxu1  ;;  %v12657_v34 = vpop.f32.mrb[141].mxu0 }
 0x203   : > { %v2214_v62 = vadd.f32 %v2213_v44, %v12599_v16  ;;  %v2215_v50 = vpop.f32.mrb[142].mxu1  ;;  %2950 = vmatprep.mubr.bf16.mxu0 %v2633_v25  ;;  %v12660_v47 = vpop.f32.mrb[142].mxu0 }
 0x204   : > { %v2216_v36 = vadd.f32 %v2215_v50, %v12596_v29  ;;  %v2217_v49 = vpop.f32.mrb[143].mxu1  ;;  %2951 = vmatmul.mubr.bf16.gmra.mrb[200].mxu0 %v2632_v27  ;;  %v12663_v43 = vpop.f32.mrb[143].mxu0  ;;  %v2512_v9 = vmax.f32 %v2212_v0, 0.0 }
 0x205   : > { %v2218_v2 = vadd.f32 %v2217_v49, %v12599_v16  ;;  %v2513_v48 = vmax.f32 %v2214_v62, 0.0  ;;  %v11240_v62 = vld [vmem:[%s15838_s3 + $0x2c0] ss:$8 sps:$4 sm:$0xff]  }
 0x206   : > { %v2514_v30 = vmax.f32 %v2216_v36, 0.0  ;;  %2480 = vmatmul.mubr.bf16.gmra.mrb[248].mxu1 %v12577_v61  ;;  %v11242_v36 = vld [vmem:[%s15838_s3 + $0x2c4] ss:$8 sps:$4 sm:$0xff]  }
 0x207   : > { %v2515_v11 = vmax.f32 %v2218_v2, 0.0  ;;  %2489 = vmatprep.mubr.bf16.mxu1 %v12604_v60  ;;  %3673 = vmatprep.subr.bf16.mxu1 %v11242_v36 }
 0x208   : > { %v2634_v59 = vpack.c.bf16 %v2514_v30, %v2512_v9  ;;  %3674 = vmatpush1.bf16.msra.mxu1 %v11240_v62 }
 0x209   : > { %v2221_v4 = vpop.f32.mrb[144].mxu1  ;;  %v2635_v24 = vpack.c.bf16 %v2515_v11, %v2513_v48  ;;  %v12674_v26 = vpop.f32.mrb[144].mxu0 }
 0x20a   : > { %v2222_v45 = vadd.f32 %v2221_v4, %v12596_v29  ;;  %v2223_v56 = vpop.f32.mrb[145].mxu1  ;;  %v12677_v28 = vpop.f32.mrb[145].mxu0 }
 0x20b   : > { %v2224_v41 = vadd.f32 %v2223_v56, %v12599_v16  ;;  %v2225_v51 = vpop.f32.mrb[146].mxu1  ;;  %2960 = vmatprep.mubr.bf16.mxu0 %v2635_v24  ;;  %v12680_v61 = vpop.f32.mrb[146].mxu0 }
 0x20c   : > { %v2226_v60 = vadd.f32 %v2225_v51, %v12596_v29  ;;  %v2227_v58 = vpop.f32.mrb[147].mxu1  ;;  %2961 = vmatmul.mubr.bf16.gmra.mrb[204].mxu0 %v2634_v59  ;;  %v12683_v46 = vpop.f32.mrb[147].mxu0  ;;  %v2516_v63 = vmax.f32 %v2222_v45, 0.0 }
 0x20d   : > { %v2228_v57 = vadd.f32 %v2227_v58, %v12599_v16  ;;  %v2517_v37 = vmax.f32 %v2224_v41, 0.0 }
 0x20e   : > { %v2518_v14 = vmax.f32 %v2226_v60, 0.0  ;;  %2490 = vmatmul.mubr.bf16.gmra.mrb[252].mxu1 %v12602_v21 }
 0x20f   : > { %v2519_v39 = vmax.f32 %v2228_v57, 0.0 }
 0x210   : > { %v2636_v33 = vpack.c.bf16 %v2518_v14, %v2516_v63 }
 0x211   : > { %v2231_v18 = vpop.f32.mrb[148].mxu1  ;;  %v2637_v7 = vpack.c.bf16 %v2519_v39, %v2517_v37  ;;  %v12687_v31 = vpop.f32.mrb[148].mxu0 }
 0x212   : > { %15851 = vst [vmem:[#allocation3_spill] sm:$0xff] %v12687_v31  ;;  %v2232_v1 = vadd.f32 %v2231_v18, %v12596_v29  ;;  %v2233_v54 = vpop.f32.mrb[149].mxu1  ;;  %v12690_v53 = vpop.f32.mrb[149].mxu0 }
 0x213   : > { %15852 = vst [vmem:[#allocation4_spill] sm:$0xff] %v12690_v53  ;;  %v2234_v27 = vadd.f32 %v2233_v54, %v12599_v16  ;;  %v2235_v13 = vpop.f32.mrb[150].mxu1  ;;  %2970 = vmatprep.mubr.bf16.mxu0 %v2637_v7  ;;  %v12693_v25 = vpop.f32.mrb[150].mxu0 }
 0x214   : > { %15853 = vst [vmem:[#allocation5_spill] sm:$0xff] %v12693_v25  ;;  %v2236_v21 = vadd.f32 %v2235_v13, %v12596_v29  ;;  %v2237_v0 = vpop.f32.mrb[151].mxu1  ;;  %2971 = vmatmul.mubr.bf16.gmra.mrb[208].mxu0 %v2636_v33  ;;  %v12696_v44 = vpop.f32.mrb[151].mxu0  ;;  %v2520_v49 = vmax.f32 %v2232_v1, 0.0 }
 0x215   : > { %15854 = vst [vmem:[#allocation6_spill] sm:$0xff] %v12696_v44  ;;  %v2238_v50 = vadd.f32 %v2237_v0, %v12599_v16  ;;  %v2521_v2 = vmax.f32 %v2234_v27, 0.0 }
 0x216   : > { %v2522_v23 = vmax.f32 %v2236_v21, 0.0 }
 0x217   : > { %v2523_v42 = vmax.f32 %v2238_v50, 0.0 }
 0x218   : > { %v2638_v9 = vpack.c.bf16 %v2522_v23, %v2520_v49  ;;  %v11243_v23 = vld [vmem:[%s15838_s3 + $0x2d0] ss:$8 sps:$4 sm:$0xff]  }
 0x219   : > { %v2241_v30 = vpop.f32.mrb[152].mxu1  ;;  %v2639_v48 = vpack.c.bf16 %v2523_v42, %v2521_v2  ;;  %v12705_v11 = vpop.f32.mrb[152].mxu0  ;;  %v11245_v42 = vld [vmem:[%s15838_s3 + $0x2d4] ss:$8 sps:$4 sm:$0xff]  }
 0x21a   : > { %15855 = vst [vmem:[#allocation7_spill] sm:$0xff] %v12705_v11  ;;  %v2242_v59 = vadd.f32 %v2241_v30, %v12596_v29  ;;  %v2243_v4 = vpop.f32.mrb[153].mxu1  ;;  %v12708_v24 = vpop.f32.mrb[153].mxu0  ;;  %3675 = vmatprep.subr.bf16.mxu1 %v11245_v42 }
 0x21b   : > { %15856 = vst [vmem:[#allocation8_spill] sm:$0xff] %v12708_v24  ;;  %v2244_v45 = vadd.f32 %v2243_v4, %v12599_v16  ;;  %v2245_v56 = vpop.f32.mrb[154].mxu1  ;;  %2980 = vmatprep.mubr.bf16.mxu0 %v2639_v48  ;;  %v12711_v41 = vpop.f32.mrb[154].mxu0  ;;  %3676 = vmatpush1.bf16.msra.mxu1 %v11243_v23  ;;  %v11246_v23 = vld [vmem:[%s15838_s3 + $0x300] ss:$8 sps:$4 sm:$0xff]  }
 0x21c   : > { %15857 = vst [vmem:[#allocation9_spill] sm:$0xff] %v12711_v41  ;;  %v2246_v51 = vadd.f32 %v2245_v56, %v12596_v29  ;;  %v2247_v60 = vpop.f32.mrb[155].mxu1  ;;  %2981 = vmatmul.mubr.bf16.gmra.mrb[212].mxu0 %v2638_v9  ;;  %v12714_v58 = vpop.f32.mrb[155].mxu0  ;;  %v2524_v63 = vmax.f32 %v2242_v59, 0.0 }
 0x21d   : > { %15858 = vst [vmem:[#allocation10_spill] sm:$0xff] %v12714_v58  ;;  %v2248_v57 = vadd.f32 %v2247_v60, %v12599_v16  ;;  %v2525_v37 = vmax.f32 %v2244_v45, 0.0 }
 0x21e   : > { %v2526_v14 = vmax.f32 %v2246_v51, 0.0 }
 0x21f   : > { %v2527_v39 = vmax.f32 %v2248_v57, 0.0 }
 0x220   : > { %v2640_v33 = vpack.c.bf16 %v2526_v14, %v2524_v63 }
 0x221   : > { %v2251_v18 = vpop.f32.mrb[156].mxu1  ;;  %v2641_v7 = vpack.c.bf16 %v2527_v39, %v2525_v37  ;;  %v12717_v1 = vpop.f32.mrb[156].mxu0 }
 0x222   : > { %15859 = vst [vmem:[#allocation11_spill] sm:$0xff] %v12717_v1  ;;  %v2252_v54 = vadd.f32 %v2251_v18, %v12596_v29  ;;  %v2253_v27 = vpop.f32.mrb[157].mxu1  ;;  %v12720_v13 = vpop.f32.mrb[157].mxu0 }
 0x223   : > { %15860 = vst [vmem:[#allocation12_spill] sm:$0xff] %v12720_v13  ;;  %v2254_v21 = vadd.f32 %v2253_v27, %v12599_v16  ;;  %v2255_v0 = vpop.f32.mrb[158].mxu1  ;;  %2990 = vmatprep.mubr.bf16.mxu0 %v2641_v7  ;;  %v12723_v62 = vpop.f32.mrb[158].mxu0 }
 0x224   : > { %15861 = vst [vmem:[#allocation13_spill] sm:$0xff] %v12723_v62  ;;  %v2256_v50 = vadd.f32 %v2255_v0, %v12596_v29  ;;  %v2257_v36 = vpop.f32.mrb[159].mxu1  ;;  %2991 = vmatmul.mubr.bf16.gmra.mrb[216].mxu0 %v2640_v33  ;;  %v12726_v49 = vpop.f32.mrb[159].mxu0  ;;  %v2528_v9 = vmax.f32 %v2252_v54, 0.0 }
 0x225   : > { %15862 = vst [vmem:[#allocation14_spill] sm:$0xff] %v12726_v49  ;;  %v2258_v2 = vadd.f32 %v2257_v36, %v12599_v16  ;;  %v2529_v48 = vmax.f32 %v2254_v21, 0.0 }
 0x226   : > { %v2530_v30 = vmax.f32 %v2256_v50, 0.0 }
 0x227   : > { %v2531_v59 = vmax.f32 %v2258_v2, 0.0  ;;  %v11248_v2 = vld [vmem:[%s15838_s3 + $0x304] ss:$8 sps:$4 sm:$0xff]  }
 0x228   : > { %v2642_v4 = vpack.c.bf16 %v2530_v30, %v2528_v9  ;;  %4400 = vmatprep.subr.bf16.mxu0 %v11248_v2 }
 0x229   : > { %v2261_v45 = vpop.f32.mrb[160].mxu1  ;;  %v2643_v56 = vpack.c.bf16 %v2531_v59, %v2529_v48  ;;  %v12735_v51 = vpop.f32.mrb[160].mxu0  ;;  %4401 = vmatpush1.bf16.msra.mxu0 %v11246_v23 }
 0x22a   : > { %15863 = vst [vmem:[#allocation15_spill] sm:$0xff] %v12735_v51  ;;  %v2262_v60 = vadd.f32 %v2261_v45, %v12596_v29  ;;  %v2263_v57 = vpop.f32.mrb[161].mxu1  ;;  %v12738_v63 = vpop.f32.mrb[161].mxu0 }
 0x22b   : > { %15864 = vst [vmem:[#allocation16_spill] sm:$0xff] %v12738_v63  ;;  %v2264_v14 = vadd.f32 %v2263_v57, %v12599_v16  ;;  %v2265_v37 = vpop.f32.mrb[162].mxu1  ;;  %3000 = vmatprep.mubr.bf16.mxu0 %v2643_v56  ;;  %v12741_v39 = vpop.f32.mrb[162].mxu0 }
 0x22c   : > { %15865 = vst [vmem:[#allocation17_spill] sm:$0xff] %v12741_v39  ;;  %v2266_v33 = vadd.f32 %v2265_v37, %v12596_v29  ;;  %v2267_v18 = vpop.f32.mrb[163].mxu1  ;;  %3001 = vmatmul.mubr.bf16.gmra.mrb[220].mxu0 %v2642_v4  ;;  %v12744_v7 = vpop.f32.mrb[163].mxu0  ;;  %v2532_v27 = vmax.f32 %v2262_v60, 0.0 }
 0x22d   : > { %15866 = vst [vmem:[#allocation18_spill] sm:$0xff] %v12744_v7  ;;  %v2268_v54 = vadd.f32 %v2267_v18, %v12599_v16  ;;  %v2533_v0 = vmax.f32 %v2264_v14, 0.0 }
 0x22e   : > { %v2534_v21 = vmax.f32 %v2266_v33, 0.0  ;;  %v11249_v33 = vld [vmem:[%s15838_s3 + $0x2e0] ss:$8 sps:$4 sm:$0xff]  }
 0x22f   : > { %v2535_v50 = vmax.f32 %v2268_v54, 0.0  ;;  %v11251_v54 = vld [vmem:[%s15838_s3 + $0x2e4] ss:$8 sps:$4 sm:$0xff]  }
 0x230   : > { %v2644_v36 = vpack.c.bf16 %v2534_v21, %v2532_v27  ;;  %3677 = vmatprep.subr.bf16.mxu1 %v11251_v54 }
 0x231   : > { %v2271_v42 = vpop.f32.mrb[164].mxu1  ;;  %v2645_v9 = vpack.c.bf16 %v2535_v50, %v2533_v0  ;;  %v12753_v30 = vpop.f32.mrb[164].mxu0  ;;  %3678 = vmatpush1.bf16.msra.mxu1 %v11249_v33 }
 0x232   : > { %15867 = vst [vmem:[#allocation19_spill] sm:$0xff] %v12753_v30  ;;  %v2272_v48 = vadd.f32 %v2271_v42, %v12596_v29  ;;  %v2273_v59 = vpop.f32.mrb[165].mxu1  ;;  %v12756_v4 = vpop.f32.mrb[165].mxu0 }
 0x233   : > { %15868 = vst [vmem:[#allocation20_spill] sm:$0xff] %v12756_v4  ;;  %v2274_v45 = vadd.f32 %v2273_v59, %v12599_v16  ;;  %v2275_v56 = vpop.f32.mrb[166].mxu1  ;;  %3010 = vmatprep.mubr.bf16.mxu0 %v2645_v9  ;;  %v12759_v60 = vpop.f32.mrb[166].mxu0 }
 0x234   : > { %15869 = vst [vmem:[#allocation21_spill] sm:$0xff] %v12759_v60  ;;  %v2276_v57 = vadd.f32 %v2275_v56, %v12596_v29  ;;  %v2277_v14 = vpop.f32.mrb[167].mxu1  ;;  %3011 = vmatmul.mubr.bf16.gmra.mrb[224].mxu0 %v2644_v36  ;;  %v12762_v37 = vpop.f32.mrb[167].mxu0  ;;  %v2536_v27 = vmax.f32 %v2272_v48, 0.0 }
 0x235   : > { %15870 = vst [vmem:[#allocation22_spill] sm:$0xff] %v12762_v37  ;;  %v2278_v18 = vadd.f32 %v2277_v14, %v12599_v16  ;;  %v2537_v0 = vmax.f32 %v2274_v45, 0.0 }
 0x236   : > { %v2538_v21 = vmax.f32 %v2276_v57, 0.0 }
 0x237   : > { %v2539_v50 = vmax.f32 %v2278_v18, 0.0 }
 0x238   : > { %v2646_v23 = vpack.c.bf16 %v2538_v21, %v2536_v27 }
 0x239   : > { %v2281_v36 = vpop.f32.mrb[168].mxu1  ;;  %v2647_v2 = vpack.c.bf16 %v2539_v50, %v2537_v0  ;;  %v12771_v42 = vpop.f32.mrb[168].mxu0 }
 0x23a   : > { %15871 = vst [vmem:[#allocation23_spill] sm:$0xff] %v12771_v42  ;;  %v2282_v9 = vadd.f32 %v2281_v36, %v12596_v29  ;;  %v2283_v59 = vpop.f32.mrb[169].mxu1  ;;  %v12774_v56 = vpop.f32.mrb[169].mxu0  ;;  %v11252_v36 = vld [vmem:[%s15838_s3 + $0x310] ss:$8 sps:$4 sm:$0xff]  }
 0x23b   : > { %15872 = vst [vmem:[#allocation24_spill] sm:$0xff] %v12774_v56  ;;  %v2284_v14 = vadd.f32 %v2283_v59, %v12599_v16  ;;  %v2285_v3 = vpop.f32.mrb[170].mxu1  ;;  %3020 = vmatprep.mubr.bf16.mxu0 %v2647_v2  ;;  %v12777_v48 = vpop.f32.mrb[170].mxu0  ;;  %v11254_v2 = vld [vmem:[%s15838_s3 + $0x314] ss:$8 sps:$4 sm:$0xff]  }
 0x23c   : > { %15873 = vst [vmem:[#allocation25_spill] sm:$0xff] %v12777_v48  ;;  %v2286_v45 = vadd.f32 %v2285_v3, %v12596_v29  ;;  %v2287_v57 = vpop.f32.mrb[171].mxu1  ;;  %3021 = vmatmul.mubr.bf16.gmra.mrb[228].mxu0 %v2646_v23  ;;  %v12780_v33 = vpop.f32.mrb[171].mxu0  ;;  %v2540_v54 = vmax.f32 %v2282_v9, 0.0  ;;  %4402 = vmatprep.subr.bf16.mxu0 %v11254_v2  ;;  %v11257_v2 = vld [vmem:[%s15838_s3 + $0x2f4] ss:$8 sps:$4 sm:$0xff]  }
 0x23d   : > { %15874 = vst [vmem:[#allocation26_spill] sm:$0xff] %v12780_v33  ;;  %v2288_v18 = vadd.f32 %v2287_v57, %v12599_v16  ;;  %v2541_v21 = vmax.f32 %v2284_v14, 0.0  ;;  %4403 = vmatpush1.bf16.msra.mxu0 %v11252_v36  ;;  %3679 = vmatprep.subr.bf16.mxu1 %v11257_v2 }
 0x23e   : > { %v2542_v27 = vmax.f32 %v2286_v45, 0.0 }
 0x23f   : > { %v2543_v0 = vmax.f32 %v2288_v18, 0.0 }
 0x240   : > { %v2648_v50 = vpack.c.bf16 %v2542_v27, %v2540_v54 }
 0x241   : > { %v2291_v3 = vpop.f32.mrb[172].mxu1  ;;  %v2649_v59 = vpack.c.bf16 %v2543_v0, %v2541_v21  ;;  %v12789_v23 = vpop.f32.mrb[172].mxu0  ;;  %v11255_v0 = vld [vmem:[%s15838_s3 + $0x2f0] ss:$8 sps:$4 sm:$0xff]  }
 0x242   : > { %15875 = vst [vmem:[#allocation27_spill] sm:$0xff] %v12789_v23  ;;  %v2292_v6 = vadd.f32 %v2291_v3, %v12596_v29  ;;  %v2293_v57 = vpop.f32.mrb[173].mxu1  ;;  %v12792_v9 = vpop.f32.mrb[173].mxu0  ;;  %3680 = vmatpush1.bf16.msra.mxu1 %v11255_v0 }
 0x243   : > { %15876 = vst [vmem:[#allocation28_spill] sm:$0xff] %v12792_v9  ;;  %v2294_v14 = vadd.f32 %v2293_v57, %v12599_v16  ;;  %v2295_v45 = vpop.f32.mrb[174].mxu1  ;;  %3030 = vmatprep.mubr.bf16.mxu0 %v2649_v59  ;;  %v12795_v18 = vpop.f32.mrb[174].mxu0 }
 0x244   : > { %15877 = vst [vmem:[#allocation29_spill] sm:$0xff] %v12795_v18  ;;  %v2296_v54 = vadd.f32 %v2295_v45, %v12596_v29  ;;  %v2297_v27 = vpop.f32.mrb[175].mxu1  ;;  %3031 = vmatmul.mubr.bf16.gmra.mrb[232].mxu0 %v2648_v50  ;;  %v12798_v21 = vpop.f32.mrb[175].mxu0  ;;  %v2544_v59 = vmax.f32 %v2292_v6, 0.0 }
 0x245   : > { %15878 = vst [vmem:[#allocation30_spill] sm:$0xff] %v12798_v21  ;;  %v2298_v3 = vadd.f32 %v2297_v27, %v12599_v16  ;;  %v2545_v18 = vmax.f32 %v2294_v14, 0.0 }
 0x246   : > { %v2546_v57 = vmax.f32 %v2296_v54, 0.0 }
 0x247   : > { %v2547_v36 = vmax.f32 %v2298_v3, 0.0 }
 0x248   : > { %v2650_v45 = vpack.c.bf16 %v2546_v57, %v2544_v59 }
 0x249   : > { %v2301_v50 = vpop.f32.mrb[176].mxu1  ;;  %v2651_v23 = vpack.c.bf16 %v2547_v36, %v2545_v18  ;;  %v12807_v21 = vpop.f32.mrb[176].mxu0 }
 0x24a   : > { %15879 = vst [vmem:[#allocation31_spill] sm:$0xff] %v12807_v21  ;;  %v2302_v9 = vadd.f32 %v2301_v50, %v12596_v29  ;;  %v2303_v48 = vpop.f32.mrb[177].mxu1  ;;  %v12810_v42 = vpop.f32.mrb[177].mxu0 }
 0x24b   : > { %15880 = vst [vmem:[#allocation32_spill] sm:$0xff] %v12810_v42  ;;  %v2304_v27 = vadd.f32 %v2303_v48, %v12599_v16  ;;  %v2305_v33 = vpop.f32.mrb[178].mxu1  ;;  %3040 = vmatprep.mubr.bf16.mxu0 %v2651_v23  ;;  %v12813_v6 = vpop.f32.mrb[178].mxu0 }
 0x24c   : > { %15881 = vst [vmem:[#allocation33_spill] sm:$0xff] %v12813_v6  ;;  %v2306_v14 = vadd.f32 %v2305_v33, %v12596_v29  ;;  %v2307_v54 = vpop.f32.mrb[179].mxu1  ;;  %3041 = vmatmul.mubr.bf16.gmra.mrb[236].mxu0 %v2650_v45  ;;  %v12816_v0 = vpop.f32.mrb[179].mxu0  ;;  %v2548_v3 = vmax.f32 %v2302_v9, 0.0  ;;  %v11258_v33 = vld [vmem:[%s15838_s3 + $0x320] ss:$8 sps:$4 sm:$0xff]  }
 0x24d   : > { %15882 = vst [vmem:[#allocation34_spill] sm:$0xff] %v12816_v0  ;;  %v2308_v18 = vadd.f32 %v2307_v54, %v12599_v16  ;;  %v2549_v59 = vmax.f32 %v2304_v27, 0.0  ;;  %v11260_v9 = vld [vmem:[%s15838_s3 + $0x324] ss:$8 sps:$4 sm:$0xff]  }
 0x24e   : > { %v2550_v2 = vmax.f32 %v2306_v14, 0.0  ;;  %4404 = vmatprep.subr.bf16.mxu0 %v11260_v9 }
 0x24f   : > { %v2551_v57 = vmax.f32 %v2308_v18, 0.0  ;;  %4405 = vmatpush1.bf16.msra.mxu0 %v11258_v33 }
 0x250   : > { %v2652_v36 = vpack.c.bf16 %v2550_v2, %v2548_v3 }
 0x251   : > { %v2311_v50 = vpop.f32.mrb[180].mxu1  ;;  %v2653_v21 = vpack.c.bf16 %v2551_v57, %v2549_v59  ;;  %v12819_v48 = vpop.f32.mrb[180].mxu0 }
 0x252   : > { %15883 = vst [vmem:[#allocation35_spill] sm:$0xff] %v12819_v48  ;;  %v2312_v23 = vadd.f32 %v2311_v50, %v12596_v29  ;;  %v2313_v6 = vpop.f32.mrb[181].mxu1  ;;  %v12822_v42 = vpop.f32.mrb[181].mxu0 }
 0x253   : > { %15884 = vst [vmem:[#allocation36_spill] sm:$0xff] %v12822_v42  ;;  %v2314_v45 = vadd.f32 %v2313_v6, %v12599_v16  ;;  %v2315_v27 = vpop.f32.mrb[182].mxu1  ;;  %3050 = vmatprep.mubr.bf16.mxu0 %v2653_v21  ;;  %v12831_v14 = vpop.f32.mrb[182].mxu0 }
 0x254   : > { %15885 = vst [vmem:[#allocation37_spill] sm:$0xff] %v12831_v14  ;;  %v2316_v54 = vadd.f32 %v2315_v27, %v12596_v29  ;;  %v2317_v18 = vpop.f32.mrb[183].mxu1  ;;  %3051 = vmatmul.mubr.bf16.gmra.mrb[240].mxu0 %v2652_v36  ;;  %v12834_v3 = vpop.f32.mrb[183].mxu0  ;;  %v2552_v59 = vmax.f32 %v2312_v23, 0.0 }
 0x255   : > { %15886 = vst [vmem:[#allocation38_spill] sm:$0xff] %v12834_v3  ;;  %v2318_v2 = vadd.f32 %v2317_v18, %v12599_v16  ;;  %v2553_v50 = vmax.f32 %v2314_v45, 0.0 }
 0x256   : > { %v2554_v57 = vmax.f32 %v2316_v54, 0.0 }
 0x257   : > { %v2555_v48 = vmax.f32 %v2318_v2, 0.0 }
 0x258   : > { %v2654_v42 = vpack.c.bf16 %v2554_v57, %v2552_v59 }
 0x259   : > { %v2321_v6 = vpop.f32.mrb[184].mxu1  ;;  %v2655_v0 = vpack.c.bf16 %v2555_v48, %v2553_v50  ;;  %v12837_v21 = vpop.f32.mrb[184].mxu0 }
 0x25a   : > { %15887 = vst [vmem:[#allocation39_spill] sm:$0xff] %v12837_v21  ;;  %v2322_v14 = vadd.f32 %v2321_v6, %v12596_v29  ;;  %v2323_v27 = vpop.f32.mrb[185].mxu1  ;;  %v12840_v56 = vpop.f32.mrb[185].mxu0 }
 0x25b   : > { %15888 = vst [vmem:[#allocation40_spill] sm:$0xff] %v12840_v56  ;;  %v2324_v36 = vadd.f32 %v2323_v27, %v12599_v16  ;;  %v2325_v9 = vpop.f32.mrb[186].mxu1  ;;  %3060 = vmatprep.mubr.bf16.mxu0 %v2655_v0  ;;  %v12843_v18 = vpop.f32.mrb[186].mxu0 }
 0x25c   : > { %15889 = vst [vmem:[#allocation41_spill] sm:$0xff] %v12843_v18  ;;  %v2326_v23 = vadd.f32 %v2325_v9, %v12596_v29  ;;  %v2327_v33 = vpop.f32.mrb[187].mxu1  ;;  %3061 = vmatmul.mubr.bf16.gmra.mrb[244].mxu0 %v2654_v42  ;;  %v12846_v45 = vpop.f32.mrb[187].mxu0  ;;  %v2556_v54 = vmax.f32 %v2322_v14, 0.0  ;;  %v11261_v42 = vld [vmem:[%s15838_s3 + $0x330] ss:$8 sps:$4 sm:$0xff]  }
 0x25d   : > { %15890 = vst [vmem:[#allocation42_spill] sm:$0xff] %v12846_v45  ;;  %v2328_v48 = vadd.f32 %v2327_v33, %v12599_v16  ;;  %v2557_v59 = vmax.f32 %v2324_v36, 0.0  ;;  %v11263_v14 = vld [vmem:[%s15838_s3 + $0x334] ss:$8 sps:$4 sm:$0xff]  }
 0x25e   : > { %v2558_v2 = vmax.f32 %v2326_v23, 0.0  ;;  %4406 = vmatprep.subr.bf16.mxu0 %v11263_v14 }
 0x25f   : > { %v2559_v57 = vmax.f32 %v2328_v48, 0.0  ;;  %4407 = vmatpush1.bf16.msra.mxu0 %v11261_v42 }
 0x260   : > { %v2656_v50 = vpack.c.bf16 %v2558_v2, %v2556_v54 }
 0x261   : > { %v2331_v6 = vpop.f32.mrb[188].mxu1  ;;  %v2657_v21 = vpack.c.bf16 %v2559_v57, %v2557_v59  ;;  %v12849_v27 = vpop.f32.mrb[188].mxu0 }
 0x262   : > { %15891 = vst [vmem:[#allocation43_spill] sm:$0xff] %v12849_v27  ;;  %v2332_v0 = vadd.f32 %v2331_v6, %v12596_v29  ;;  %v2333_v18 = vpop.f32.mrb[189].mxu1  ;;  %v12852_v56 = vpop.f32.mrb[189].mxu0 }
 0x263   : > { %15892 = vst [vmem:[#allocation44_spill] sm:$0xff] %v12852_v56  ;;  %v2334_v36 = vadd.f32 %v2333_v18, %v12599_v16  ;;  %v2335_v9 = vpop.f32.mrb[190].mxu1  ;;  %3070 = vmatprep.mubr.bf16.mxu0 %v2657_v21  ;;  %v12861_v23 = vpop.f32.mrb[190].mxu0 }
 0x264   : > { %15893 = vst [vmem:[#allocation45_spill] sm:$0xff] %v12861_v23  ;;  %v2336_v33 = vadd.f32 %v2335_v9, %v12596_v29  ;;  %v2337_v48 = vpop.f32.mrb[191].mxu1  ;;  %3071 = vmatmul.mubr.bf16.gmra.mrb[248].mxu0 %v2656_v50  ;;  %v12864_v54 = vpop.f32.mrb[191].mxu0  ;;  %v2560_v59 = vmax.f32 %v2332_v0, 0.0 }
 0x265   : > { %15894 = vst [vmem:[#allocation46_spill] sm:$0xff] %v12864_v54  ;;  %v2338_v2 = vadd.f32 %v2337_v48, %v12599_v16  ;;  %v2561_v6 = vmax.f32 %v2334_v36, 0.0 }
 0x266   : > { %v2562_v57 = vmax.f32 %v2336_v33, 0.0 }
 0x267   : > { %v2563_v27 = vmax.f32 %v2338_v2, 0.0 }
 0x268   : > { %v2658_v56 = vpack.c.bf16 %v2562_v57, %v2560_v59 }
 0x269   : > { %v2341_v18 = vpop.f32.mrb[192].mxu1  ;;  %v2659_v45 = vpack.c.bf16 %v2563_v27, %v2561_v6 }
 0x26a   : > { %v2342_v21 = vadd.f32 %v2341_v18, %v12596_v29  ;;  %v2343_v23 = vpop.f32.mrb[193].mxu1 }
 0x26b   : > { %v2344_v9 = vadd.f32 %v2343_v23, %v12599_v16  ;;  %v2345_v3 = vpop.f32.mrb[194].mxu1  ;;  %3080 = vmatprep.mubr.bf16.mxu0 %v2659_v45  ;;  %v11264_v45 = vld [vmem:[%s15838_s3 + $0x340] ss:$8 sps:$4 sm:$0xff]  }
 0x26c   : > { %v2346_v50 = vadd.f32 %v2345_v3, %v12596_v29  ;;  %v2347_v14 = vpop.f32.mrb[195].mxu1  ;;  %3081 = vmatmul.mubr.bf16.gmra.mrb[252].mxu0 %v2658_v56  ;;  %v2564_v0 = vmax.f32 %v2342_v21, 0.0  ;;  %v11266_v56 = vld [vmem:[%s15838_s3 + $0x344] ss:$8 sps:$4 sm:$0xff]  }
 0x26d   : > { %v2348_v42 = vadd.f32 %v2347_v14, %v12599_v16  ;;  %v2565_v36 = vmax.f32 %v2344_v9, 0.0  ;;  %4408 = vmatprep.subr.bf16.mxu0 %v11266_v56 }
 0x26e   : > { %v2566_v33 = vmax.f32 %v2346_v50, 0.0  ;;  %4409 = vmatpush1.bf16.msra.mxu0 %v11264_v45 }
 0x26f   : > { %v2567_v48 = vmax.f32 %v2348_v42, 0.0 }
 0x270   : > { %v2660_v2 = vpack.c.bf16 %v2566_v33, %v2564_v0 }
 0x271   : > { %v2351_v59 = vpop.f32.mrb[196].mxu1  ;;  %v2661_v27 = vpack.c.bf16 %v2567_v48, %v2565_v36 }
 0x272   : > { %v2352_v57 = vadd.f32 %v2351_v59, %v12596_v29  ;;  %v2353_v6 = vpop.f32.mrb[197].mxu1 }
 0x273   : > { %v2354_v3 = vadd.f32 %v2353_v6, %v12599_v16  ;;  %v2355_v23 = vpop.f32.mrb[198].mxu1  ;;  %3090 = vmatprep.mubr.bf16.mxu0 %v2661_v27 }
 0x274   : > { %v2356_v18 = vadd.f32 %v2355_v23, %v12596_v29  ;;  %v2357_v21 = vpop.f32.mrb[199].mxu1  ;;  %3091 = vmatmul.mubr.bf16.gmra.mrb[0].mxu0 %v2660_v2  ;;  %v2568_v50 = vmax.f32 %v2352_v57, 0.0 }
 0x275   : > { %v2358_v9 = vadd.f32 %v2357_v21, %v12599_v16  ;;  %v2569_v42 = vmax.f32 %v2354_v3, 0.0 }
 0x276   : > { %v2570_v14 = vmax.f32 %v2356_v18, 0.0 }
 0x277   : > { %v2571_v0 = vmax.f32 %v2358_v9, 0.0 }
 0x278   : > { %v2662_v33 = vpack.c.bf16 %v2570_v14, %v2568_v50 }
 0x279   : > { %v2361_v36 = vpop.f32.mrb[200].mxu1  ;;  %v2663_v48 = vpack.c.bf16 %v2571_v0, %v2569_v42  ;;  %v11267_v0 = vld [vmem:[%s15838_s3 + $0x350] ss:$8 sps:$4 sm:$0xff]  }
 0x27a   : > { %v2362_v59 = vadd.f32 %v2361_v36, %v12596_v29  ;;  %v2363_v6 = vpop.f32.mrb[201].mxu1 }
 0x27b   : > { %v2364_v27 = vadd.f32 %v2363_v6, %v12599_v16  ;;  %v2365_v54 = vpop.f32.mrb[202].mxu1  ;;  %3100 = vmatprep.mubr.bf16.mxu0 %v2663_v48 }
 0x27c   : > { %v2366_v2 = vadd.f32 %v2365_v54, %v12596_v29  ;;  %v2367_v56 = vpop.f32.mrb[203].mxu1  ;;  %3101 = vmatmul.mubr.bf16.gmra.mrb[4].mxu0 %v2662_v33  ;;  %v2572_v57 = vmax.f32 %v2362_v59, 0.0  ;;  %v11269_v54 = vld [vmem:[%s15838_s3 + $0x354] ss:$8 sps:$4 sm:$0xff]  }
 0x27d   : > { %v2368_v45 = vadd.f32 %v2367_v56, %v12599_v16  ;;  %v2573_v3 = vmax.f32 %v2364_v27, 0.0  ;;  %4410 = vmatprep.subr.bf16.mxu0 %v11269_v54 }
 0x27e   : > { %v2574_v23 = vmax.f32 %v2366_v2, 0.0  ;;  %4411 = vmatpush1.bf16.msra.mxu0 %v11267_v0 }
 0x27f   : > { %v2575_v18 = vmax.f32 %v2368_v45, 0.0 }
 0x280   : > { %v2664_v21 = vpack.c.bf16 %v2574_v23, %v2572_v57 }
 0x281   : > { %v2371_v9 = vpop.f32.mrb[204].mxu1  ;;  %v2665_v50 = vpack.c.bf16 %v2575_v18, %v2573_v3 }
 0x282   : > { %v2372_v14 = vadd.f32 %v2371_v9, %v12596_v29  ;;  %v2373_v42 = vpop.f32.mrb[205].mxu1 }
 0x283   : > { %v2374_v33 = vadd.f32 %v2373_v42, %v12599_v16  ;;  %v2375_v36 = vpop.f32.mrb[206].mxu1  ;;  %3110 = vmatprep.mubr.bf16.mxu0 %v2665_v50 }
 0x284   : > { %v2376_v48 = vadd.f32 %v2375_v36, %v12596_v29  ;;  %v2377_v59 = vpop.f32.mrb[207].mxu1  ;;  %3111 = vmatmul.mubr.bf16.gmra.mrb[8].mxu0 %v2664_v21  ;;  %v2576_v27 = vmax.f32 %v2372_v14, 0.0 }
 0x285   : > { %v2378_v6 = vadd.f32 %v2377_v59, %v12599_v16  ;;  %v2577_v56 = vmax.f32 %v2374_v33, 0.0 }
 0x286   : > { %v2578_v2 = vmax.f32 %v2376_v48, 0.0 }
 0x287   : > { %v2579_v45 = vmax.f32 %v2378_v6, 0.0 }
 0x288   : > { %v2666_v57 = vpack.c.bf16 %v2578_v2, %v2576_v27 }
 0x289   : > { %v2381_v23 = vpop.f32.mrb[208].mxu1  ;;  %v2667_v3 = vpack.c.bf16 %v2579_v45, %v2577_v56  ;;  %v11270_v45 = vld [vmem:[%s15838_s3 + $0x360] ss:$8 sps:$4 sm:$0xff]  }
 0x28a   : > { %v2382_v18 = vadd.f32 %v2381_v23, %v12596_v29  ;;  %v2383_v9 = vpop.f32.mrb[209].mxu1 }
 0x28b   : > { %v2384_v50 = vadd.f32 %v2383_v9, %v12599_v16  ;;  %v2385_v42 = vpop.f32.mrb[210].mxu1  ;;  %3120 = vmatprep.mubr.bf16.mxu0 %v2667_v3 }
 0x28c   : > { %v2386_v21 = vadd.f32 %v2385_v42, %v12596_v29  ;;  %v2387_v54 = vpop.f32.mrb[211].mxu1  ;;  %3121 = vmatmul.mubr.bf16.gmra.mrb[12].mxu0 %v2666_v57  ;;  %v2580_v14 = vmax.f32 %v2382_v18, 0.0  ;;  %v11272_v57 = vld [vmem:[%s15838_s3 + $0x364] ss:$8 sps:$4 sm:$0xff]  }
 0x28d   : > { %v2388_v0 = vadd.f32 %v2387_v54, %v12599_v16  ;;  %v2581_v33 = vmax.f32 %v2384_v50, 0.0  ;;  %4412 = vmatprep.subr.bf16.mxu0 %v11272_v57 }
 0x28e   : > { %v2582_v36 = vmax.f32 %v2386_v21, 0.0  ;;  %4413 = vmatpush1.bf16.msra.mxu0 %v11270_v45 }
 0x28f   : > { %v2583_v48 = vmax.f32 %v2388_v0, 0.0 }
 0x290   : > { %v2668_v59 = vpack.c.bf16 %v2582_v36, %v2580_v14 }
 0x291   : > { %v2391_v6 = vpop.f32.mrb[212].mxu1  ;;  %v2669_v27 = vpack.c.bf16 %v2583_v48, %v2581_v33 }
 0x292   : > { %v2392_v2 = vadd.f32 %v2391_v6, %v12596_v29  ;;  %v2393_v56 = vpop.f32.mrb[213].mxu1 }
 0x293   : > { %v2394_v23 = vadd.f32 %v2393_v56, %v12599_v16  ;;  %v2395_v3 = vpop.f32.mrb[214].mxu1  ;;  %3130 = vmatprep.mubr.bf16.mxu0 %v2669_v27 }
 0x294   : > { %v2396_v18 = vadd.f32 %v2395_v3, %v12596_v29  ;;  %v2397_v9 = vpop.f32.mrb[215].mxu1  ;;  %3131 = vmatmul.mubr.bf16.gmra.mrb[16].mxu0 %v2668_v59  ;;  %v2584_v42 = vmax.f32 %v2392_v2, 0.0 }
 0x295   : > { %v2398_v50 = vadd.f32 %v2397_v9, %v12599_v16  ;;  %v2585_v54 = vmax.f32 %v2394_v23, 0.0 }
 0x296   : > { %v2586_v21 = vmax.f32 %v2396_v18, 0.0 }
 0x297   : > { %v2587_v0 = vmax.f32 %v2398_v50, 0.0 }
 0x298   : > { %v2670_v14 = vpack.c.bf16 %v2586_v21, %v2584_v42 }
 0x299   : > { %v2401_v36 = vpop.f32.mrb[216].mxu1  ;;  %v2671_v33 = vpack.c.bf16 %v2587_v0, %v2585_v54  ;;  %v11273_v0 = vld [vmem:[%s15838_s3 + $0x370] ss:$8 sps:$4 sm:$0xff]  }
 0x29a   : > { %v2402_v48 = vadd.f32 %v2401_v36, %v12596_v29  ;;  %v2403_v6 = vpop.f32.mrb[217].mxu1 }
 0x29b   : > { %v2404_v27 = vadd.f32 %v2403_v6, %v12599_v16  ;;  %v2405_v56 = vpop.f32.mrb[218].mxu1  ;;  %3140 = vmatprep.mubr.bf16.mxu0 %v2671_v33 }
 0x29c   : > { %v2406_v59 = vadd.f32 %v2405_v56, %v12596_v29  ;;  %v2407_v57 = vpop.f32.mrb[219].mxu1  ;;  %3141 = vmatmul.mubr.bf16.gmra.mrb[20].mxu0 %v2670_v14  ;;  %v2588_v2 = vmax.f32 %v2402_v48, 0.0  ;;  %v11275_v14 = vld [vmem:[%s15838_s3 + $0x374] ss:$8 sps:$4 sm:$0xff]  }
 0x29d   : > { %v2408_v45 = vadd.f32 %v2407_v57, %v12599_v16  ;;  %v2589_v23 = vmax.f32 %v2404_v27, 0.0  ;;  %4414 = vmatprep.subr.bf16.mxu0 %v11275_v14 }
 0x29e   : > { %v2590_v3 = vmax.f32 %v2406_v59, 0.0  ;;  %4415 = vmatpush1.bf16.msra.mxu0 %v11273_v0 }
 0x29f   : > { %v2591_v18 = vmax.f32 %v2408_v45, 0.0 }
 0x2a0   : > { %v2672_v9 = vpack.c.bf16 %v2590_v3, %v2588_v2 }
 0x2a1   : > { %v2411_v50 = vpop.f32.mrb[220].mxu1  ;;  %v2673_v42 = vpack.c.bf16 %v2591_v18, %v2589_v23 }
 0x2a2   : > { %v2412_v21 = vadd.f32 %v2411_v50, %v12596_v29  ;;  %v2413_v54 = vpop.f32.mrb[221].mxu1 }
 0x2a3   : > { %v2414_v36 = vadd.f32 %v2413_v54, %v12599_v16  ;;  %v2415_v33 = vpop.f32.mrb[222].mxu1  ;;  %3150 = vmatprep.mubr.bf16.mxu0 %v2673_v42 }
 0x2a4   : > { %v2416_v48 = vadd.f32 %v2415_v33, %v12596_v29  ;;  %v2417_v6 = vpop.f32.mrb[223].mxu1  ;;  %3151 = vmatmul.mubr.bf16.gmra.mrb[24].mxu0 %v2672_v9  ;;  %v2592_v56 = vmax.f32 %v2412_v21, 0.0 }
 0x2a5   : > { %v2418_v27 = vadd.f32 %v2417_v6, %v12599_v16  ;;  %v2593_v57 = vmax.f32 %v2414_v36, 0.0 }
 0x2a6   : > { %v2594_v59 = vmax.f32 %v2416_v48, 0.0 }
 0x2a7   : > { %v2595_v45 = vmax.f32 %v2418_v27, 0.0 }
 0x2a8   : > { %v2674_v2 = vpack.c.bf16 %v2594_v59, %v2592_v56 }
 0x2a9   : > { %v2421_v3 = vpop.f32.mrb[224].mxu1  ;;  %v2675_v23 = vpack.c.bf16 %v2595_v45, %v2593_v57  ;;  %v11276_v45 = vld [vmem:[%s15838_s3 + $0x380] ss:$8 sps:$4 sm:$0xff]  }
 0x2aa   : > { %v2422_v18 = vadd.f32 %v2421_v3, %v12596_v29  ;;  %v2423_v50 = vpop.f32.mrb[225].mxu1 }
 0x2ab   : > { %v2424_v42 = vadd.f32 %v2423_v50, %v12599_v16  ;;  %v2425_v54 = vpop.f32.mrb[226].mxu1  ;;  %3160 = vmatprep.mubr.bf16.mxu0 %v2675_v23 }
 0x2ac   : > { %v2426_v9 = vadd.f32 %v2425_v54, %v12596_v29  ;;  %v2427_v14 = vpop.f32.mrb[227].mxu1  ;;  %3161 = vmatmul.mubr.bf16.gmra.mrb[28].mxu0 %v2674_v2  ;;  %v2596_v21 = vmax.f32 %v2422_v18, 0.0  ;;  %v11278_v2 = vld [vmem:[%s15838_s3 + $0x384] ss:$8 sps:$4 sm:$0xff]  }
 0x2ad   : > { %v2428_v0 = vadd.f32 %v2427_v14, %v12599_v16  ;;  %v2597_v36 = vmax.f32 %v2424_v42, 0.0  ;;  %4416 = vmatprep.subr.bf16.mxu0 %v11278_v2 }
 0x2ae   : > { %v2598_v33 = vmax.f32 %v2426_v9, 0.0  ;;  %4417 = vmatpush1.bf16.msra.mxu0 %v11276_v45 }
 0x2af   : > { %v2599_v48 = vmax.f32 %v2428_v0, 0.0 }
 0x2b0   : > { %v2676_v6 = vpack.c.bf16 %v2598_v33, %v2596_v21 }
 0x2b1   : > { %v2431_v27 = vpop.f32.mrb[228].mxu1  ;;  %v2677_v56 = vpack.c.bf16 %v2599_v48, %v2597_v36 }
 0x2b2   : > { %v2432_v59 = vadd.f32 %v2431_v27, %v12596_v29  ;;  %v2433_v57 = vpop.f32.mrb[229].mxu1 }
 0x2b3   : > { %v2434_v3 = vadd.f32 %v2433_v57, %v12599_v16  ;;  %v2435_v23 = vpop.f32.mrb[230].mxu1  ;;  %3170 = vmatprep.mubr.bf16.mxu0 %v2677_v56 }
 0x2b4   : > { %v2436_v18 = vadd.f32 %v2435_v23, %v12596_v29  ;;  %v2437_v50 = vpop.f32.mrb[231].mxu1  ;;  %3171 = vmatmul.mubr.bf16.gmra.mrb[32].mxu0 %v2676_v6  ;;  %v2600_v54 = vmax.f32 %v2432_v59, 0.0 }
 0x2b5   : > { %v2438_v42 = vadd.f32 %v2437_v50, %v12599_v16  ;;  %v2601_v14 = vmax.f32 %v2434_v3, 0.0 }
 0x2b6   : > { %v2602_v9 = vmax.f32 %v2436_v18, 0.0 }
 0x2b7   : > { %v2603_v0 = vmax.f32 %v2438_v42, 0.0 }
 0x2b8   : > { %v2678_v21 = vpack.c.bf16 %v2602_v9, %v2600_v54  ;;  %v9993_v9 = vld [vmem:[%s15839_s4 + $0x1] ss:$8 sm:$0x3] }
 0x2b9   : > { %v2441_v33 = vpop.f32.mrb[232].mxu1  ;;  %v2679_v36 = vpack.c.bf16 %v2603_v0, %v2601_v14 }
 0x2ba   : > { %v2442_v48 = vadd.f32 %v2441_v33, %v12596_v29  ;;  %v2443_v27 = vpop.f32.mrb[233].mxu1  ;;  %v11281_v33 = vld [vmem:[%s15838_s3 + $0x394] ss:$8 sps:$4 sm:$0xff]  }
 0x2bb   : > { %v2444_v56 = vadd.f32 %v2443_v27, %v12599_v16  ;;  %v2445_v57 = vpop.f32.mrb[234].mxu1  ;;  %3180 = vmatprep.mubr.bf16.mxu0 %v2679_v36  ;;  %4418 = vmatprep.subr.bf16.mxu0 %v11281_v33 }
 0x2bc   : > { %v2446_v6 = vadd.f32 %v2445_v57, %v12596_v29  ;;  %v2447_v2 = vpop.f32.mrb[235].mxu1  ;;  %3181 = vmatmul.mubr.bf16.gmra.mrb[36].mxu0 %v2678_v21  ;;  %v2604_v59 = vmax.f32 %v2442_v48, 0.0  ;;  %v11279_v21 = vld [vmem:[%s15838_s3 + $0x390] ss:$8 sps:$4 sm:$0xff]   ;;  %v12954_v57 = vrot.slane %v9993_v9, %v11998_v12 }
 0x2bd   : > { %v2448_v45 = vadd.f32 %v2447_v2, %v12599_v16  ;;  %v2605_v3 = vmax.f32 %v2444_v56, 0.0  ;;  %v12958_v2 = vrot.slane %v9993_v9, %v12004_v15  ;;  %4419 = vmatpush1.bf16.msra.mxu0 %v11279_v21 }
 0x2be   : > { %v2606_v23 = vmax.f32 %v2446_v6, 0.0 }
 0x2bf   : > { %v2607_v18 = vmax.f32 %v2448_v45, 0.0 }
 0x2c0   : > { %v2680_v50 = vpack.c.bf16 %v2606_v23, %v2604_v59 }
 0x2c1   : > { %v2451_v42 = vpop.f32.mrb[236].mxu1  ;;  %v2681_v54 = vpack.c.bf16 %v2607_v18, %v2605_v3 }
 0x2c2   : > { %v2452_v14 = vadd.f32 %v2451_v42, %v12596_v29  ;;  %v2453_v0 = vpop.f32.mrb[237].mxu1 }
 0x2c3   : > { %v2454_v36 = vadd.f32 %v2453_v0, %v12599_v16  ;;  %v2455_v48 = vpop.f32.mrb[238].mxu1  ;;  %3190 = vmatprep.mubr.bf16.mxu0 %v2681_v54 }
 0x2c4   : > { %v2456_v27 = vadd.f32 %v2455_v48, %v12596_v29  ;;  %v2457_v56 = vpop.f32.mrb[239].mxu1  ;;  %3191 = vmatmul.mubr.bf16.gmra.mrb[40].mxu0 %v2680_v50  ;;  %v2608_v45 = vmax.f32 %v2452_v14, 0.0 }
 0x2c5   : > { %v2458_v6 = vadd.f32 %v2457_v56, %v12599_v16  ;;  %v2609_v23 = vmax.f32 %v2454_v36, 0.0 }
 0x2c6   : > { %v2610_v59 = vmax.f32 %v2456_v27, 0.0 }
 0x2c7   : > { %v2611_v3 = vmax.f32 %v2458_v6, 0.0  ;;  %v2932_v18 = vpop.f32.mrb[192].mxu0 }
 0x2c8   : > { %v2682_v42 = vpack.c.bf16 %v2610_v59, %v2608_v45  ;;  %v2933_v54 = vadd.f32 %v2932_v18, %v12954_v57  ;;  %v2934_v0 = vpop.f32.mrb[193].mxu0 }
 0x2c9   : > { %v2935_v50 = vadd.f32 %v2934_v0, %v12958_v2  ;;  %v2461_v48 = vpop.f32.mrb[240].mxu1  ;;  %v2936_v60 = vpop.f32.mrb[194].mxu0  ;;  %v2683_v33 = vpack.c.bf16 %v2611_v3, %v2609_v23 }
 0x2ca   : > { %v2462_v56 = vadd.f32 %v2461_v48, %v12596_v29  ;;  %v2937_v9 = vadd.f32 %v2936_v60, %v12954_v57  ;;  %v2463_v30 = vpop.f32.mrb[241].mxu1  ;;  %v2938_v21 = vpop.f32.mrb[195].mxu0  ;;  %v3251_v6 = vmax.f32 %v2933_v54, 0.0 }
 0x2cb   : > { %v2464_v14 = vadd.f32 %v2463_v30, %v12599_v16  ;;  %v2939_v36 = vadd.f32 %v2938_v21, %v12958_v2  ;;  %v2465_v27 = vpop.f32.mrb[242].mxu1  ;;  %3200 = vmatprep.mubr.bf16.mxu0 %v2683_v33  ;;  %v3252_v0 = vmax.f32 %v2935_v50, 0.0 }
 0x2cc   : > { %v3253_v45 = vmax.f32 %v2937_v9, 0.0  ;;  %v2466_v59 = vadd.f32 %v2465_v27, %v12596_v29  ;;  %v2467_v18 = vpop.f32.mrb[243].mxu1  ;;  %3201 = vmatmul.mubr.bf16.gmra.mrb[44].mxu0 %v2682_v42  ;;  %v2612_v48 = vmax.f32 %v2462_v56, 0.0 }
 0x2cd   : > { %v3254_v23 = vmax.f32 %v2939_v36, 0.0  ;;  %v2468_v3 = vadd.f32 %v2467_v18, %v12599_v16  ;;  %v2613_v4 = vmax.f32 %v2464_v14, 0.0 }
 0x2ce   : > { %v3379_v60 = vpack.c.bf16 %v3253_v45, %v3251_v6  ;;  %v2614_v37 = vmax.f32 %v2466_v59, 0.0 }
 0x2cf   : > { %v2615_v39 = vmax.f32 %v2468_v3, 0.0  ;;  %v2942_v30 = vpop.f32.mrb[196].mxu0  ;;  %v3380_v51 = vpack.c.bf16 %v3254_v23, %v3252_v0 }
 0x2d0   : > { %v2684_v21 = vpack.c.bf16 %v2614_v37, %v2612_v48  ;;  %v2943_v33 = vadd.f32 %v2942_v30, %v12954_v57  ;;  %v2944_v54 = vpop.f32.mrb[197].mxu0  ;;  %v11282_v37 = vld [vmem:[%s15838_s3 + $0x3a0] ss:$8 sps:$4 sm:$0xff]  }
 0x2d1   : > { %v2945_v9 = vadd.f32 %v2944_v54, %v12958_v2  ;;  %v2471_v27 = vpop.f32.mrb[244].mxu1  ;;  %v2946_v7 = vpop.f32.mrb[198].mxu0  ;;  %3681 = vmatprep.mubr.bf16.mxu1 %v3380_v51  ;;  %v2685_v42 = vpack.c.bf16 %v2615_v39, %v2613_v4  ;;  %v11284_v51 = vld [vmem:[%s15838_s3 + $0x3a4] ss:$8 sps:$4 sm:$0xff]  }
 0x2d2   : > { %v2472_v50 = vadd.f32 %v2471_v27, %v12596_v29  ;;  %v2947_v56 = vadd.f32 %v2946_v7, %v12954_v57  ;;  %v2473_v36 = vpop.f32.mrb[245].mxu1  ;;  %v2948_v6 = vpop.f32.mrb[199].mxu0  ;;  %3682 = vmatmul.mubr.bf16.vlgmr.msra.gmra.mrb[128].mxu1 %v3379_v60  ;;  %v3255_v39 = vmax.f32 %v2943_v33, 0.0  ;;  %4420 = vmatprep.subr.bf16.mxu0 %v11284_v51 }
 0x2d3   : > { %v2474_v14 = vadd.f32 %v2473_v36, %v12599_v16  ;;  %v2949_v45 = vadd.f32 %v2948_v6, %v12958_v2  ;;  %v2475_v59 = vpop.f32.mrb[246].mxu1  ;;  %3210 = vmatprep.mubr.bf16.mxu0 %v2685_v42  ;;  %v3256_v0 = vmax.f32 %v2945_v9, 0.0  ;;  %4421 = vmatpush1.bf16.msra.mxu0 %v11282_v37 }
 0x2d4   : > { %v3257_v4 = vmax.f32 %v2947_v56, 0.0  ;;  %v2476_v7 = vadd.f32 %v2475_v59, %v12596_v29  ;;  %v2477_v18 = vpop.f32.mrb[247].mxu1  ;;  %3211 = vmatmul.mubr.bf16.gmra.mrb[48].mxu0 %v2684_v21  ;;  %v2616_v48 = vmax.f32 %v2472_v50, 0.0 }
 0x2d5   : > { %v3258_v23 = vmax.f32 %v2949_v45, 0.0  ;;  %v2478_v3 = vadd.f32 %v2477_v18, %v12599_v16  ;;  %v2617_v54 = vmax.f32 %v2474_v14, 0.0 }
 0x2d6   : > { %v3381_v60 = vpack.c.bf16 %v3257_v4, %v3255_v39  ;;  %v2618_v30 = vmax.f32 %v2476_v7, 0.0 }
 0x2d7   : > { %v2619_v27 = vmax.f32 %v2478_v3, 0.0  ;;  %v2952_v42 = vpop.f32.mrb[200].mxu0  ;;  %v3382_v36 = vpack.c.bf16 %v3258_v23, %v3256_v0 }
 0x2d8   : > { %v2686_v6 = vpack.c.bf16 %v2618_v30, %v2616_v48  ;;  %v2953_v33 = vadd.f32 %v2952_v42, %v12954_v57  ;;  %v2954_v56 = vpop.f32.mrb[201].mxu0 }
 0x2d9   : > { %v2955_v59 = vadd.f32 %v2954_v56, %v12958_v2  ;;  %v2481_v21 = vpop.f32.mrb[248].mxu1  ;;  %v2956_v9 = vpop.f32.mrb[202].mxu0  ;;  %3691 = vmatprep.mubr.bf16.mxu1 %v3382_v36  ;;  %v2687_v45 = vpack.c.bf16 %v2619_v27, %v2617_v54 }
 0x2da   : > { %v2482_v51 = vadd.f32 %v2481_v21, %v12596_v29  ;;  %v2957_v50 = vadd.f32 %v2956_v9, %v12954_v57  ;;  %v2483_v39 = vpop.f32.mrb[249].mxu1  ;;  %v2958_v37 = vpop.f32.mrb[203].mxu0  ;;  %3692 = vmatmul.mubr.bf16.gmra.mrb[132].mxu1 %v3381_v60  ;;  %v3259_v18 = vmax.f32 %v2953_v33, 0.0 }
 0x2db   : > { %v2484_v14 = vadd.f32 %v2483_v39, %v12599_v16  ;;  %v2959_v4 = vadd.f32 %v2958_v37, %v12958_v2  ;;  %v2485_v7 = vpop.f32.mrb[250].mxu1  ;;  %3220 = vmatprep.mubr.bf16.mxu0 %v2687_v45  ;;  %v3260_v48 = vmax.f32 %v2955_v59, 0.0 }
 0x2dc   : > { %v3261_v0 = vmax.f32 %v2957_v50, 0.0  ;;  %v2486_v23 = vadd.f32 %v2485_v7, %v12596_v29  ;;  %v2487_v3 = vpop.f32.mrb[251].mxu1  ;;  %3221 = vmatmul.mubr.bf16.gmra.mrb[52].mxu0 %v2686_v6  ;;  %v2620_v27 = vmax.f32 %v2482_v51, 0.0 }
 0x2dd   : > { %v3262_v30 = vmax.f32 %v2959_v4, 0.0  ;;  %v2488_v54 = vadd.f32 %v2487_v3, %v12599_v16  ;;  %v2621_v60 = vmax.f32 %v2484_v14, 0.0  ;;  %v11285_v14 = vld [vmem:[%s15838_s3 + $0x3b0] ss:$8 sps:$4 sm:$0xff]  }
 0x2de   : > { %v3383_v42 = vpack.c.bf16 %v3261_v0, %v3259_v18  ;;  %v2622_v36 = vmax.f32 %v2486_v23, 0.0 }
 0x2df   : > { %v2623_v56 = vmax.f32 %v2488_v54, 0.0  ;;  %v2962_v21 = vpop.f32.mrb[204].mxu0  ;;  %v3384_v9 = vpack.c.bf16 %v3262_v30, %v3260_v48  ;;  %v11287_v48 = vld [vmem:[%s15838_s3 + $0x3b4] ss:$8 sps:$4 sm:$0xff]  }
 0x2e0   : > { %v2688_v39 = vpack.c.bf16 %v2622_v36, %v2620_v27  ;;  %v2963_v45 = vadd.f32 %v2962_v21, %v12954_v57  ;;  %v2964_v33 = vpop.f32.mrb[205].mxu0  ;;  %4422 = vmatprep.subr.bf16.mxu0 %v11287_v48 }
 0x2e1   : > { %v2965_v50 = vadd.f32 %v2964_v33, %v12958_v2  ;;  %v2491_v37 = vpop.f32.mrb[252].mxu1  ;;  %v2966_v7 = vpop.f32.mrb[206].mxu0  ;;  %3701 = vmatprep.mubr.bf16.mxu1 %v3384_v9  ;;  %v2689_v6 = vpack.c.bf16 %v2623_v56, %v2621_v60  ;;  %4423 = vmatpush1.bf16.msra.mxu0 %v11285_v14 }
 0x2e2   : > { %v2492_v59 = vadd.f32 %v2491_v37, %v12596_v29  ;;  %v2967_v51 = vadd.f32 %v2966_v7, %v12954_v57  ;;  %v2493_v4 = vpop.f32.mrb[253].mxu1  ;;  %v2968_v18 = vpop.f32.mrb[207].mxu0  ;;  %3702 = vmatmul.mubr.bf16.gmra.mrb[136].mxu1 %v3383_v42  ;;  %v3263_v30 = vmax.f32 %v2963_v45, 0.0 }
 0x2e3   : > { %v2494_v0 = vadd.f32 %v2493_v4, %v12599_v16  ;;  %v2969_v23 = vadd.f32 %v2968_v18, %v12958_v2  ;;  %v2495_v3 = vpop.f32.mrb[254].mxu1  ;;  %3230 = vmatprep.mubr.bf16.mxu0 %v2689_v6  ;;  %v3264_v42 = vmax.f32 %v2965_v50, 0.0 }
 0x2e4   : > { %v3265_v54 = vmax.f32 %v2967_v51, 0.0  ;;  %v2496_v27 = vadd.f32 %v2495_v3, %v12596_v29  ;;  %v2497_v36 = vpop.f32.mrb[255].mxu1  ;;  %3231 = vmatmul.mubr.bf16.gmra.mrb[56].mxu0 %v2688_v39  ;;  %v2624_v21 = vmax.f32 %v2492_v59, 0.0 }
 0x2e5   : > { %v3266_v60 = vmax.f32 %v2969_v23, 0.0  ;;  %v2498_v56 = vadd.f32 %v2497_v36, %v12599_v16  ;;  %v2625_v37 = vmax.f32 %v2494_v0, 0.0 }
 0x2e6   : > { %v3385_v9 = vpack.c.bf16 %v3265_v54, %v3263_v30  ;;  %v2626_v33 = vmax.f32 %v2496_v27, 0.0 }
 0x2e7   : > { %v2627_v7 = vmax.f32 %v2498_v56, 0.0  ;;  %v2972_v6 = vpop.f32.mrb[208].mxu0  ;;  %v3386_v4 = vpack.c.bf16 %v3266_v60, %v3264_v42 }
 0x2e8   : > { %v2690_v18 = vpack.c.bf16 %v2626_v33, %v2624_v21  ;;  %v2973_v45 = vadd.f32 %v2972_v6, %v12954_v57  ;;  %v2974_v51 = vpop.f32.mrb[209].mxu0  ;;  %v11288_v33 = vld [vmem:[%s15838_s3 + $0x3c0] ss:$8 sps:$4 sm:$0xff]  }
 0x2e9   : > { %v2975_v29 = vadd.f32 %v2974_v51, %v12958_v2  ;;  %v2976_v39 = vpop.f32.mrb[210].mxu0  ;;  %3711 = vmatprep.mubr.bf16.mxu1 %v3386_v4  ;;  %v2691_v50 = vpack.c.bf16 %v2627_v7, %v2625_v37  ;;  %v11290_v37 = vld [vmem:[%s15838_s3 + $0x3c4] ss:$8 sps:$4 sm:$0xff]  }
 0x2ea   : > { %v2977_v16 = vadd.f32 %v2976_v39, %v12954_v57  ;;  %v2978_v23 = vpop.f32.mrb[211].mxu0  ;;  %3712 = vmatmul.mubr.bf16.gmra.mrb[140].mxu1 %v3385_v9  ;;  %v3267_v14 = vmax.f32 %v2973_v45, 0.0  ;;  %4424 = vmatprep.subr.bf16.mxu0 %v11290_v37 }
 0x2eb   : > { %v2979_v59 = vadd.f32 %v2978_v23, %v12958_v2  ;;  %3240 = vmatprep.mubr.bf16.mxu0 %v2691_v50  ;;  %v3268_v3 = vmax.f32 %v2975_v29, 0.0  ;;  %4425 = vmatpush1.bf16.msra.mxu0 %v11288_v33 }
 0x2ec   : > { %v3269_v0 = vmax.f32 %v2977_v16, 0.0  ;;  %3241 = vmatmul.mubr.bf16.gmra.mrb[60].mxu0 %v2690_v18 }
 0x2ed   : > { %v3270_v48 = vmax.f32 %v2979_v59, 0.0 }
 0x2ee   : > { %v3387_v30 = vpack.c.bf16 %v3269_v0, %v3267_v14 }
 0x2ef   : > { %v2982_v54 = vpop.f32.mrb[212].mxu0  ;;  %v3388_v27 = vpack.c.bf16 %v3270_v48, %v3268_v3 }
 0x2f0   : > { %v2983_v36 = vadd.f32 %v2982_v54, %v12954_v57  ;;  %v2984_v42 = vpop.f32.mrb[213].mxu0 }
 0x2f1   : > { %v2985_v60 = vadd.f32 %v2984_v42, %v12958_v2  ;;  %v2986_v56 = vpop.f32.mrb[214].mxu0  ;;  %3721 = vmatprep.mubr.bf16.mxu1 %v3388_v27 }
 0x2f2   : > { %v2987_v21 = vadd.f32 %v2986_v56, %v12954_v57  ;;  %v2988_v9 = vpop.f32.mrb[215].mxu0  ;;  %3722 = vmatmul.mubr.bf16.gmra.mrb[144].mxu1 %v3387_v30  ;;  %v3271_v6 = vmax.f32 %v2983_v36, 0.0 }
 0x2f3   : > { %v2989_v7 = vadd.f32 %v2988_v9, %v12958_v2  ;;  %v3272_v18 = vmax.f32 %v2985_v60, 0.0 }
 0x2f4   : > { %v3273_v4 = vmax.f32 %v2987_v21, 0.0 }
 0x2f5   : > { %v3274_v45 = vmax.f32 %v2989_v7, 0.0 }
 0x2f6   : > { %v3389_v51 = vpack.c.bf16 %v3273_v4, %v3271_v6  ;;  %v11291_v6 = vld [vmem:[%s15838_s3 + $0x3d0] ss:$8 sps:$4 sm:$0xff]   ;;  %v11293_v4 = vld [vmem:[%s15838_s3 + $0x3d4] ss:$8 sps:$4 sm:$0xff]  }
 0x2f7   : > { %v2992_v29 = vpop.f32.mrb[216].mxu0  ;;  %v3390_v39 = vpack.c.bf16 %v3274_v45, %v3272_v18  ;;  %4426 = vmatprep.subr.bf16.mxu0 %v11293_v4 }
 0x2f8   : > { %v2993_v50 = vadd.f32 %v2992_v29, %v12954_v57  ;;  %v2994_v16 = vpop.f32.mrb[217].mxu0  ;;  %4427 = vmatpush1.bf16.msra.mxu0 %v11291_v6 }
 0x2f9   : > { %v2995_v23 = vadd.f32 %v2994_v16, %v12958_v2  ;;  %v2996_v59 = vpop.f32.mrb[218].mxu0  ;;  %3731 = vmatprep.mubr.bf16.mxu1 %v3390_v39 }
 0x2fa   : > { %v2997_v14 = vadd.f32 %v2996_v59, %v12954_v57  ;;  %v2998_v0 = vpop.f32.mrb[219].mxu0  ;;  %3732 = vmatmul.mubr.bf16.gmra.mrb[148].mxu1 %v3389_v51  ;;  %v3275_v48 = vmax.f32 %v2993_v50, 0.0 }
 0x2fb   : > { %v2999_v3 = vadd.f32 %v2998_v0, %v12958_v2  ;;  %v3276_v54 = vmax.f32 %v2995_v23, 0.0 }
 0x2fc   : > { %v3277_v30 = vmax.f32 %v2997_v14, 0.0 }
 0x2fd   : > { %v3278_v27 = vmax.f32 %v2999_v3, 0.0 }
 0x2fe   : > { %v3391_v36 = vpack.c.bf16 %v3277_v30, %v3275_v48 }
 0x2ff   : > { %v3002_v42 = vpop.f32.mrb[220].mxu0  ;;  %v3392_v60 = vpack.c.bf16 %v3278_v27, %v3276_v54 }
 0x300   : > { %v3003_v56 = vadd.f32 %v3002_v42, %v12954_v57  ;;  %v3004_v21 = vpop.f32.mrb[221].mxu0 }
 0x301   : > { %v3005_v9 = vadd.f32 %v3004_v21, %v12958_v2  ;;  %v3006_v33 = vpop.f32.mrb[222].mxu0  ;;  %3741 = vmatprep.mubr.bf16.mxu1 %v3392_v60  ;;  %v11294_v21 = vld [vmem:[%s15838_s3 + $0x400] ss:$8 sps:$4 sm:$0xff]  }
 0x302   : > { %v3007_v37 = vadd.f32 %v3006_v33, %v12954_v57  ;;  %v3008_v7 = vpop.f32.mrb[223].mxu0  ;;  %3742 = vmatmul.mubr.bf16.gmra.mrb[152].mxu1 %v3391_v36  ;;  %v3279_v45 = vmax.f32 %v3003_v56, 0.0 }
 0x303   : > { %v3009_v18 = vadd.f32 %v3008_v7, %v12958_v2  ;;  %v3280_v29 = vmax.f32 %v3005_v9, 0.0  ;;  %v11296_v9 = vld [vmem:[%s15838_s3 + $0x404] ss:$8 sps:$4 sm:$0xff]  }
 0x304   : > { %v3281_v51 = vmax.f32 %v3007_v37, 0.0  ;;  %5138 = vmatprep.subr.bf16.mxu1 %v11296_v9 }
 0x305   : > { %v3282_v39 = vmax.f32 %v3009_v18, 0.0  ;;  %5139 = vmatpush1.bf16.msra.mxu1 %v11294_v21 }
 0x306   : > { %v3393_v50 = vpack.c.bf16 %v3281_v51, %v3279_v45 }
 0x307   : > { %v3012_v16 = vpop.f32.mrb[224].mxu0  ;;  %v3394_v23 = vpack.c.bf16 %v3282_v39, %v3280_v29  ;;  %v11297_v29 = vld [vmem:[%s15838_s3 + $0x3e0] ss:$8 sps:$4 sm:$0xff]   ;;  %v11299_v39 = vld [vmem:[%s15838_s3 + $0x3e4] ss:$8 sps:$4 sm:$0xff]  }
 0x308   : > { %v3013_v59 = vadd.f32 %v3012_v16, %v12954_v57  ;;  %v3014_v14 = vpop.f32.mrb[225].mxu0  ;;  %4428 = vmatprep.subr.bf16.mxu0 %v11299_v39 }
 0x309   : > { %v3015_v0 = vadd.f32 %v3014_v14, %v12958_v2  ;;  %v3016_v3 = vpop.f32.mrb[226].mxu0  ;;  %3751 = vmatprep.mubr.bf16.mxu1 %v3394_v23  ;;  %4429 = vmatpush1.bf16.msra.mxu0 %v11297_v29 }
 0x30a   : > { %v3017_v48 = vadd.f32 %v3016_v3, %v12954_v57  ;;  %v3018_v30 = vpop.f32.mrb[227].mxu0  ;;  %3752 = vmatmul.mubr.bf16.gmra.mrb[156].mxu1 %v3393_v50  ;;  %v3283_v27 = vmax.f32 %v3013_v59, 0.0 }
 0x30b   : > { %v3019_v54 = vadd.f32 %v3018_v30, %v12958_v2  ;;  %v3284_v42 = vmax.f32 %v3015_v0, 0.0 }
 0x30c   : > { %v3285_v36 = vmax.f32 %v3017_v48, 0.0 }
 0x30d   : > { %v3286_v60 = vmax.f32 %v3019_v54, 0.0 }
 0x30e   : > { %v3395_v56 = vpack.c.bf16 %v3285_v36, %v3283_v27 }
 0x30f   : > { %v3022_v33 = vpop.f32.mrb[228].mxu0  ;;  %v3396_v37 = vpack.c.bf16 %v3286_v60, %v3284_v42 }
 0x310   : > { %v3023_v7 = vadd.f32 %v3022_v33, %v12954_v57  ;;  %v3024_v6 = vpop.f32.mrb[229].mxu0 }
 0x311   : > { %v3025_v4 = vadd.f32 %v3024_v6, %v12958_v2  ;;  %v3026_v18 = vpop.f32.mrb[230].mxu0  ;;  %3761 = vmatprep.mubr.bf16.mxu1 %v3396_v37  ;;  %v11300_v6 = vld [vmem:[%s15838_s3 + $0x410] ss:$8 sps:$4 sm:$0xff]  }
 0x312   : > { %v3027_v45 = vadd.f32 %v3026_v18, %v12954_v57  ;;  %v3028_v51 = vpop.f32.mrb[231].mxu0  ;;  %3762 = vmatmul.mubr.bf16.gmra.mrb[160].mxu1 %v3395_v56  ;;  %v3287_v16 = vmax.f32 %v3023_v7, 0.0 }
 0x313   : > { %v3029_v50 = vadd.f32 %v3028_v51, %v12958_v2  ;;  %v3288_v59 = vmax.f32 %v3025_v4, 0.0  ;;  %v11302_v4 = vld [vmem:[%s15838_s3 + $0x414] ss:$8 sps:$4 sm:$0xff]  }
 0x314   : > { %v3289_v23 = vmax.f32 %v3027_v45, 0.0  ;;  %5140 = vmatprep.subr.bf16.mxu1 %v11302_v4 }
 0x315   : > { %v3290_v14 = vmax.f32 %v3029_v50, 0.0  ;;  %5141 = vmatpush1.bf16.msra.mxu1 %v11300_v6 }
 0x316   : > { %v3397_v0 = vpack.c.bf16 %v3289_v23, %v3287_v16 }
 0x317   : > { %v3032_v3 = vpop.f32.mrb[232].mxu0  ;;  %v3398_v48 = vpack.c.bf16 %v3290_v14, %v3288_v59  ;;  %v11303_v59 = vld [vmem:[%s15838_s3 + $0x3f0] ss:$8 sps:$4 sm:$0xff]   ;;  %v11305_v14 = vld [vmem:[%s15838_s3 + $0x3f4] ss:$8 sps:$4 sm:$0xff]  }
 0x318   : > { %v3033_v30 = vadd.f32 %v3032_v3, %v12954_v57  ;;  %v3034_v54 = vpop.f32.mrb[233].mxu0  ;;  %4430 = vmatprep.subr.bf16.mxu0 %v11305_v14 }
 0x319   : > { %v3035_v27 = vadd.f32 %v3034_v54, %v12958_v2  ;;  %v3036_v36 = vpop.f32.mrb[234].mxu0  ;;  %3771 = vmatprep.mubr.bf16.mxu1 %v3398_v48  ;;  %4431 = vmatpush1.bf16.msra.mxu0 %v11303_v59  ;;  %v11308_v59 = vld [vmem:[%s15838_s3 + $0x424] ss:$8 sps:$4 sm:$0xff]  }
 0x31a   : > { %v3037_v42 = vadd.f32 %v3036_v36, %v12954_v57  ;;  %v3038_v60 = vpop.f32.mrb[235].mxu0  ;;  %3772 = vmatmul.mubr.bf16.gmra.mrb[164].mxu1 %v3397_v0  ;;  %v3291_v21 = vmax.f32 %v3033_v30, 0.0  ;;  %5142 = vmatprep.subr.bf16.mxu1 %v11308_v59 }
 0x31b   : > { %v3039_v56 = vadd.f32 %v3038_v60, %v12958_v2  ;;  %v3292_v33 = vmax.f32 %v3035_v27, 0.0 }
 0x31c   : > { %v3293_v9 = vmax.f32 %v3037_v42, 0.0 }
 0x31d   : > { %v3294_v37 = vmax.f32 %v3039_v56, 0.0 }
 0x31e   : > { %v3399_v7 = vpack.c.bf16 %v3293_v9, %v3291_v21 }
 0x31f   : > { %v3042_v18 = vpop.f32.mrb[236].mxu0  ;;  %v3400_v45 = vpack.c.bf16 %v3294_v37, %v3292_v33 }
 0x320   : > { %v3043_v51 = vadd.f32 %v3042_v18, %v12954_v57  ;;  %v3044_v29 = vpop.f32.mrb[237].mxu0 }
 0x321   : > { %v3045_v39 = vadd.f32 %v3044_v29, %v12958_v2  ;;  %v3046_v50 = vpop.f32.mrb[238].mxu0  ;;  %3781 = vmatprep.mubr.bf16.mxu1 %v3400_v45 }
 0x322   : > { %v3047_v16 = vadd.f32 %v3046_v50, %v12954_v57  ;;  %v3048_v23 = vpop.f32.mrb[239].mxu0  ;;  %3782 = vmatmul.mubr.bf16.gmra.mrb[168].mxu1 %v3399_v7  ;;  %v3295_v3 = vmax.f32 %v3043_v51, 0.0 }
 0x323   : > { %v3049_v0 = vadd.f32 %v3048_v23, %v12958_v2  ;;  %v3296_v30 = vmax.f32 %v3045_v39, 0.0  ;;  %v11306_v23 = vld [vmem:[%s15838_s3 + $0x420] ss:$8 sps:$4 sm:$0xff]  }
 0x324   : > { %v3297_v48 = vmax.f32 %v3047_v16, 0.0  ;;  %5143 = vmatpush1.bf16.msra.mxu1 %v11306_v23 }
 0x325   : > { %v3298_v54 = vmax.f32 %v3049_v0, 0.0 }
 0x326   : > { %v3401_v27 = vpack.c.bf16 %v3297_v48, %v3295_v3 }
 0x327   : > { %v3052_v36 = vpop.f32.mrb[240].mxu0  ;;  %v3402_v42 = vpack.c.bf16 %v3298_v54, %v3296_v30 }
 0x328   : > { %v3053_v60 = vadd.f32 %v3052_v36, %v12954_v57  ;;  %v3054_v56 = vpop.f32.mrb[241].mxu0 }
 0x329   : > { %v3055_v21 = vadd.f32 %v3054_v56, %v12958_v2  ;;  %v3056_v9 = vpop.f32.mrb[242].mxu0  ;;  %3791 = vmatprep.mubr.bf16.mxu1 %v3402_v42 }
 0x32a   : > { %v3057_v33 = vadd.f32 %v3056_v9, %v12954_v57  ;;  %v3058_v37 = vpop.f32.mrb[243].mxu0  ;;  %3792 = vmatmul.mubr.bf16.gmra.mrb[172].mxu1 %v3401_v27  ;;  %v3299_v6 = vmax.f32 %v3053_v60, 0.0 }
 0x32b   : > { %v3059_v7 = vadd.f32 %v3058_v37, %v12958_v2  ;;  %v3300_v18 = vmax.f32 %v3055_v21, 0.0 }
 0x32c   : > { %v3301_v4 = vmax.f32 %v3057_v33, 0.0 }
 0x32d   : > { %v3302_v45 = vmax.f32 %v3059_v7, 0.0 }
 0x32e   : > { %v3403_v51 = vpack.c.bf16 %v3301_v4, %v3299_v6 }
 0x32f   : > { %v3062_v29 = vpop.f32.mrb[244].mxu0  ;;  %v3404_v39 = vpack.c.bf16 %v3302_v45, %v3300_v18 }
 0x330   : > { %v3063_v50 = vadd.f32 %v3062_v29, %v12954_v57  ;;  %v3064_v16 = vpop.f32.mrb[245].mxu0 }
 0x331   : > { %v3065_v14 = vadd.f32 %v3064_v16, %v12958_v2  ;;  %v3066_v0 = vpop.f32.mrb[246].mxu0  ;;  %3801 = vmatprep.mubr.bf16.mxu1 %v3404_v39 }
 0x332   : > { %v3067_v3 = vadd.f32 %v3066_v0, %v12954_v57  ;;  %v3068_v48 = vpop.f32.mrb[247].mxu0  ;;  %3802 = vmatmul.mubr.bf16.gmra.mrb[176].mxu1 %v3403_v51  ;;  %v3303_v54 = vmax.f32 %v3063_v50, 0.0  ;;  %v11309_v0 = vld [vmem:[%s15838_s3 + $0x430] ss:$8 sps:$4 sm:$0xff]  }
 0x333   : > { %v3069_v30 = vadd.f32 %v3068_v48, %v12958_v2  ;;  %v3304_v36 = vmax.f32 %v3065_v14, 0.0 }
 0x334   : > { %v3305_v27 = vmax.f32 %v3067_v3, 0.0  ;;  %v11311_v3 = vld [vmem:[%s15838_s3 + $0x434] ss:$8 sps:$4 sm:$0xff]  }
 0x335   : > { %v3306_v42 = vmax.f32 %v3069_v30, 0.0  ;;  %5144 = vmatprep.subr.bf16.mxu1 %v11311_v3 }
 0x336   : > { %v3405_v60 = vpack.c.bf16 %v3305_v27, %v3303_v54  ;;  %5145 = vmatpush1.bf16.msra.mxu1 %v11309_v0 }
 0x337   : > { %v3072_v56 = vpop.f32.mrb[248].mxu0  ;;  %v3406_v21 = vpack.c.bf16 %v3306_v42, %v3304_v36 }
 0x338   : > { %v3073_v9 = vadd.f32 %v3072_v56, %v12954_v57  ;;  %v3074_v33 = vpop.f32.mrb[249].mxu0 }
 0x339   : > { %v3075_v37 = vadd.f32 %v3074_v33, %v12958_v2  ;;  %v3076_v7 = vpop.f32.mrb[250].mxu0  ;;  %3811 = vmatprep.mubr.bf16.mxu1 %v3406_v21 }
 0x33a   : > { %v3077_v6 = vadd.f32 %v3076_v7, %v12954_v57  ;;  %v3078_v4 = vpop.f32.mrb[251].mxu0  ;;  %3812 = vmatmul.mubr.bf16.gmra.mrb[180].mxu1 %v3405_v60  ;;  %v3307_v45 = vmax.f32 %v3073_v9, 0.0 }
 0x33b   : > { %v3079_v18 = vadd.f32 %v3078_v4, %v12958_v2  ;;  %v3308_v29 = vmax.f32 %v3075_v37, 0.0 }
 0x33c   : > { %v3309_v51 = vmax.f32 %v3077_v6, 0.0 }
 0x33d   : > { %v3310_v39 = vmax.f32 %v3079_v18, 0.0 }
 0x33e   : > { %v3407_v50 = vpack.c.bf16 %v3309_v51, %v3307_v45 }
 0x33f   : > { %v3082_v16 = vpop.f32.mrb[252].mxu0  ;;  %v3408_v23 = vpack.c.bf16 %v3310_v39, %v3308_v29 }
 0x340   : > { %v3083_v59 = vadd.f32 %v3082_v16, %v12954_v57  ;;  %v3084_v14 = vpop.f32.mrb[253].mxu0 }
 0x341   : > { %v3085_v48 = vadd.f32 %v3084_v14, %v12958_v2  ;;  %v3086_v30 = vpop.f32.mrb[254].mxu0  ;;  %3821 = vmatprep.mubr.bf16.mxu1 %v3408_v23 }
 0x342   : > { %v3087_v54 = vadd.f32 %v3086_v30, %v12954_v57  ;;  %v3088_v27 = vpop.f32.mrb[255].mxu0  ;;  %3822 = vmatmul.mubr.bf16.gmra.mrb[184].mxu1 %v3407_v50  ;;  %v3311_v42 = vmax.f32 %v3083_v59, 0.0  ;;  %v11312_v30 = vld [vmem:[%s15838_s3 + $0x440] ss:$8 sps:$4 sm:$0xff]  }
 0x343   : > { %v3089_v36 = vadd.f32 %v3088_v27, %v12958_v2  ;;  %v3312_v56 = vmax.f32 %v3085_v48, 0.0 }
 0x344   : > { %v3313_v60 = vmax.f32 %v3087_v54, 0.0  ;;  %v11314_v54 = vld [vmem:[%s15838_s3 + $0x444] ss:$8 sps:$4 sm:$0xff]  }
 0x345   : > { %v3314_v21 = vmax.f32 %v3089_v36, 0.0  ;;  %5146 = vmatprep.subr.bf16.mxu1 %v11314_v54 }
 0x346   : > { %v3409_v9 = vpack.c.bf16 %v3313_v60, %v3311_v42  ;;  %5147 = vmatpush1.bf16.msra.mxu1 %v11312_v30 }
 0x347   : > { %v3092_v33 = vpop.f32.mrb[0].mxu0  ;;  %v3410_v37 = vpack.c.bf16 %v3314_v21, %v3312_v56 }
 0x348   : > { %v3093_v7 = vadd.f32 %v3092_v33, %v12954_v57  ;;  %v3094_v6 = vpop.f32.mrb[1].mxu0 }
 0x349   : > { %v3095_v4 = vadd.f32 %v3094_v6, %v12958_v2  ;;  %v3096_v18 = vpop.f32.mrb[2].mxu0  ;;  %3831 = vmatprep.mubr.bf16.mxu1 %v3410_v37 }
 0x34a   : > { %v3097_v45 = vadd.f32 %v3096_v18, %v12954_v57  ;;  %v3098_v51 = vpop.f32.mrb[3].mxu0  ;;  %3832 = vmatmul.mubr.bf16.gmra.mrb[188].mxu1 %v3409_v9  ;;  %v3315_v39 = vmax.f32 %v3093_v7, 0.0 }
 0x34b   : > { %v3099_v29 = vadd.f32 %v3098_v51, %v12958_v2  ;;  %v3316_v16 = vmax.f32 %v3095_v4, 0.0 }
 0x34c   : > { %v3317_v50 = vmax.f32 %v3097_v45, 0.0 }
 0x34d   : > { %v3318_v23 = vmax.f32 %v3099_v29, 0.0 }
 0x34e   : > { %v3411_v59 = vpack.c.bf16 %v3317_v50, %v3315_v39 }
 0x34f   : > { %v3102_v14 = vpop.f32.mrb[4].mxu0  ;;  %v3412_v0 = vpack.c.bf16 %v3318_v23, %v3316_v16 }
 0x350   : > { %v3103_v3 = vadd.f32 %v3102_v14, %v12954_v57  ;;  %v3104_v48 = vpop.f32.mrb[5].mxu0 }
 0x351   : > { %v3105_v27 = vadd.f32 %v3104_v48, %v12958_v2  ;;  %v3106_v36 = vpop.f32.mrb[6].mxu0  ;;  %3841 = vmatprep.mubr.bf16.mxu1 %v3412_v0 }
 0x352   : > { %v3107_v42 = vadd.f32 %v3106_v36, %v12954_v57  ;;  %v3108_v60 = vpop.f32.mrb[7].mxu0  ;;  %3842 = vmatmul.mubr.bf16.gmra.mrb[192].mxu1 %v3411_v59  ;;  %v3319_v21 = vmax.f32 %v3103_v3, 0.0  ;;  %v11315_v36 = vld [vmem:[%s15838_s3 + $0x450] ss:$8 sps:$4 sm:$0xff]  }
 0x353   : > { %v3109_v56 = vadd.f32 %v3108_v60, %v12958_v2  ;;  %v3320_v33 = vmax.f32 %v3105_v27, 0.0 }
 0x354   : > { %v3321_v9 = vmax.f32 %v3107_v42, 0.0  ;;  %v11317_v42 = vld [vmem:[%s15838_s3 + $0x454] ss:$8 sps:$4 sm:$0xff]  }
 0x355   : > { %v3322_v37 = vmax.f32 %v3109_v56, 0.0  ;;  %5148 = vmatprep.subr.bf16.mxu1 %v11317_v42 }
 0x356   : > { %v3413_v7 = vpack.c.bf16 %v3321_v9, %v3319_v21  ;;  %5149 = vmatpush1.bf16.msra.mxu1 %v11315_v36 }
 0x357   : > { %v3112_v6 = vpop.f32.mrb[8].mxu0  ;;  %v3414_v4 = vpack.c.bf16 %v3322_v37, %v3320_v33 }
 0x358   : > { %v3113_v18 = vadd.f32 %v3112_v6, %v12954_v57  ;;  %v3114_v45 = vpop.f32.mrb[9].mxu0 }
 0x359   : > { %v3115_v51 = vadd.f32 %v3114_v45, %v12958_v2  ;;  %v3116_v29 = vpop.f32.mrb[10].mxu0  ;;  %3851 = vmatprep.mubr.bf16.mxu1 %v3414_v4 }
 0x35a   : > { %v3117_v39 = vadd.f32 %v3116_v29, %v12954_v57  ;;  %v3118_v50 = vpop.f32.mrb[11].mxu0  ;;  %3852 = vmatmul.mubr.bf16.gmra.mrb[196].mxu1 %v3413_v7  ;;  %v3323_v23 = vmax.f32 %v3113_v18, 0.0 }
 0x35b   : > { %v3119_v16 = vadd.f32 %v3118_v50, %v12958_v2  ;;  %v3324_v14 = vmax.f32 %v3115_v51, 0.0 }
 0x35c   : > { %v3325_v59 = vmax.f32 %v3117_v39, 0.0 }
 0x35d   : > { %v3326_v0 = vmax.f32 %v3119_v16, 0.0 }
 0x35e   : > { %v3415_v3 = vpack.c.bf16 %v3325_v59, %v3323_v23 }
 0x35f   : > { %v3122_v48 = vpop.f32.mrb[12].mxu0  ;;  %v3416_v30 = vpack.c.bf16 %v3326_v0, %v3324_v14 }
 0x360   : > { %v3123_v54 = vadd.f32 %v3122_v48, %v12954_v57  ;;  %v3124_v27 = vpop.f32.mrb[13].mxu0 }
 0x361   : > { %v3125_v60 = vadd.f32 %v3124_v27, %v12958_v2  ;;  %v3126_v56 = vpop.f32.mrb[14].mxu0  ;;  %3861 = vmatprep.mubr.bf16.mxu1 %v3416_v30 }
 0x362   : > { %v3127_v21 = vadd.f32 %v3126_v56, %v12954_v57  ;;  %v3128_v9 = vpop.f32.mrb[15].mxu0  ;;  %3862 = vmatmul.mubr.bf16.gmra.mrb[200].mxu1 %v3415_v3  ;;  %v3327_v37 = vmax.f32 %v3123_v54, 0.0  ;;  %v11318_v56 = vld [vmem:[%s15838_s3 + $0x460] ss:$8 sps:$4 sm:$0xff]  }
 0x363   : > { %v3129_v33 = vadd.f32 %v3128_v9, %v12958_v2  ;;  %v3328_v6 = vmax.f32 %v3125_v60, 0.0 }
 0x364   : > { %v3329_v7 = vmax.f32 %v3127_v21, 0.0  ;;  %v11320_v21 = vld [vmem:[%s15838_s3 + $0x464] ss:$8 sps:$4 sm:$0xff]  }
 0x365   : > { %v3330_v4 = vmax.f32 %v3129_v33, 0.0  ;;  %5150 = vmatprep.subr.bf16.mxu1 %v11320_v21 }
 0x366   : > { %v3417_v18 = vpack.c.bf16 %v3329_v7, %v3327_v37  ;;  %5151 = vmatpush1.bf16.msra.mxu1 %v11318_v56 }
 0x367   : > { %v3132_v45 = vpop.f32.mrb[16].mxu0  ;;  %v3418_v51 = vpack.c.bf16 %v3330_v4, %v3328_v6 }
 0x368   : > { %v3133_v29 = vadd.f32 %v3132_v45, %v12954_v57  ;;  %v3134_v39 = vpop.f32.mrb[17].mxu0 }
 0x369   : > { %v3135_v50 = vadd.f32 %v3134_v39, %v12958_v2  ;;  %v3136_v16 = vpop.f32.mrb[18].mxu0  ;;  %3871 = vmatprep.mubr.bf16.mxu1 %v3418_v51 }
 0x36a   : > { %v3137_v23 = vadd.f32 %v3136_v16, %v12954_v57  ;;  %v3138_v59 = vpop.f32.mrb[19].mxu0  ;;  %3872 = vmatmul.mubr.bf16.gmra.mrb[204].mxu1 %v3417_v18  ;;  %v3331_v0 = vmax.f32 %v3133_v29, 0.0 }
 0x36b   : > { %v3139_v14 = vadd.f32 %v3138_v59, %v12958_v2  ;;  %v3332_v48 = vmax.f32 %v3135_v50, 0.0 }
 0x36c   : > { %v3333_v3 = vmax.f32 %v3137_v23, 0.0 }
 0x36d   : > { %v3334_v30 = vmax.f32 %v3139_v14, 0.0 }
 0x36e   : > { %v3419_v54 = vpack.c.bf16 %v3333_v3, %v3331_v0 }
 0x36f   : > { %v3142_v27 = vpop.f32.mrb[20].mxu0  ;;  %v3420_v36 = vpack.c.bf16 %v3334_v30, %v3332_v48 }
 0x370   : > { %v3143_v42 = vadd.f32 %v3142_v27, %v12954_v57  ;;  %v3144_v60 = vpop.f32.mrb[21].mxu0 }
 0x371   : > { %v3145_v9 = vadd.f32 %v3144_v60, %v12958_v2  ;;  %v3146_v33 = vpop.f32.mrb[22].mxu0  ;;  %3881 = vmatprep.mubr.bf16.mxu1 %v3420_v36 }
 0x372   : > { %v3147_v37 = vadd.f32 %v3146_v33, %v12954_v57  ;;  %v3148_v7 = vpop.f32.mrb[23].mxu0  ;;  %3882 = vmatmul.mubr.bf16.gmra.mrb[208].mxu1 %v3419_v54  ;;  %v3335_v4 = vmax.f32 %v3143_v42, 0.0  ;;  %v11321_v33 = vld [vmem:[%s15838_s3 + $0x470] ss:$8 sps:$4 sm:$0xff]  }
 0x373   : > { %v3149_v6 = vadd.f32 %v3148_v7, %v12958_v2  ;;  %v3336_v45 = vmax.f32 %v3145_v9, 0.0 }
 0x374   : > { %v3337_v18 = vmax.f32 %v3147_v37, 0.0  ;;  %v11323_v37 = vld [vmem:[%s15838_s3 + $0x474] ss:$8 sps:$4 sm:$0xff]  }
 0x375   : > { %v3338_v51 = vmax.f32 %v3149_v6, 0.0  ;;  %5152 = vmatprep.subr.bf16.mxu1 %v11323_v37 }
 0x376   : > { %v3421_v29 = vpack.c.bf16 %v3337_v18, %v3335_v4  ;;  %5153 = vmatpush1.bf16.msra.mxu1 %v11321_v33 }
 0x377   : > { %v3152_v39 = vpop.f32.mrb[24].mxu0  ;;  %v3422_v50 = vpack.c.bf16 %v3338_v51, %v3336_v45 }
 0x378   : > { %v3153_v16 = vadd.f32 %v3152_v39, %v12954_v57  ;;  %v3154_v23 = vpop.f32.mrb[25].mxu0 }
 0x379   : > { %v3155_v59 = vadd.f32 %v3154_v23, %v12958_v2  ;;  %v3156_v14 = vpop.f32.mrb[26].mxu0  ;;  %3891 = vmatprep.mubr.bf16.mxu1 %v3422_v50 }
 0x37a   : > { %v3157_v0 = vadd.f32 %v3156_v14, %v12954_v57  ;;  %v3158_v3 = vpop.f32.mrb[27].mxu0  ;;  %3892 = vmatmul.mubr.bf16.gmra.mrb[212].mxu1 %v3421_v29  ;;  %v3339_v30 = vmax.f32 %v3153_v16, 0.0 }
 0x37b   : > { %v3159_v48 = vadd.f32 %v3158_v3, %v12958_v2  ;;  %v3340_v27 = vmax.f32 %v3155_v59, 0.0 }
 0x37c   : > { %v3341_v54 = vmax.f32 %v3157_v0, 0.0 }
 0x37d   : > { %v3342_v36 = vmax.f32 %v3159_v48, 0.0 }
 0x37e   : > { %v3423_v42 = vpack.c.bf16 %v3341_v54, %v3339_v30 }
 0x37f   : > { %v3162_v60 = vpop.f32.mrb[28].mxu0  ;;  %v3424_v56 = vpack.c.bf16 %v3342_v36, %v3340_v27 }
 0x380   : > { %v3163_v21 = vadd.f32 %v3162_v60, %v12954_v57  ;;  %v3164_v9 = vpop.f32.mrb[29].mxu0 }
 0x381   : > { %v3165_v7 = vadd.f32 %v3164_v9, %v12958_v2  ;;  %v3166_v6 = vpop.f32.mrb[30].mxu0  ;;  %3901 = vmatprep.mubr.bf16.mxu1 %v3424_v56 }
 0x382   : > { %v3167_v4 = vadd.f32 %v3166_v6, %v12954_v57  ;;  %v3168_v18 = vpop.f32.mrb[31].mxu0  ;;  %3902 = vmatmul.mubr.bf16.gmra.mrb[216].mxu1 %v3423_v42  ;;  %v3343_v51 = vmax.f32 %v3163_v21, 0.0  ;;  %v11324_v6 = vld [vmem:[%s15838_s3 + $0x480] ss:$8 sps:$4 sm:$0xff]  }
 0x383   : > { %v3169_v45 = vadd.f32 %v3168_v18, %v12958_v2  ;;  %v3344_v39 = vmax.f32 %v3165_v7, 0.0 }
 0x384   : > { %v3345_v29 = vmax.f32 %v3167_v4, 0.0  ;;  %v11326_v4 = vld [vmem:[%s15838_s3 + $0x484] ss:$8 sps:$4 sm:$0xff]  }
 0x385   : > { %v3346_v50 = vmax.f32 %v3169_v45, 0.0  ;;  %5154 = vmatprep.subr.bf16.mxu1 %v11326_v4  ;;  %v10058_v4 = vld [vmem:[%s15839_s4 + $0x2] ss:$8 sm:$0x3] }
 0x386   : > { %v3425_v16 = vpack.c.bf16 %v3345_v29, %v3343_v51  ;;  %5155 = vmatpush1.bf16.msra.mxu1 %v11324_v6 }
 0x387   : > { %v3172_v23 = vpop.f32.mrb[32].mxu0  ;;  %v3426_v59 = vpack.c.bf16 %v3346_v50, %v3344_v39 }
 0x388   : > { %v3173_v14 = vadd.f32 %v3172_v23, %v12954_v57  ;;  %v3174_v0 = vpop.f32.mrb[33].mxu0 }
 0x389   : > { %v3175_v3 = vadd.f32 %v3174_v0, %v12958_v2  ;;  %v3176_v48 = vpop.f32.mrb[34].mxu0  ;;  %3911 = vmatprep.mubr.bf16.mxu1 %v3426_v59 }
 0x38a   : > { %v3177_v30 = vadd.f32 %v3176_v48, %v12954_v57  ;;  %v3178_v54 = vpop.f32.mrb[35].mxu0  ;;  %3912 = vmatmul.mubr.bf16.gmra.mrb[220].mxu1 %v3425_v16  ;;  %v3347_v36 = vmax.f32 %v3173_v14, 0.0 }
 0x38b   : > { %v3179_v27 = vadd.f32 %v3178_v54, %v12958_v2  ;;  %v3348_v60 = vmax.f32 %v3175_v3, 0.0 }
 0x38c   : > { %v3349_v42 = vmax.f32 %v3177_v30, 0.0 }
 0x38d   : > { %v3350_v56 = vmax.f32 %v3179_v27, 0.0 }
 0x38e   : > { %v3427_v21 = vpack.c.bf16 %v3349_v42, %v3347_v36 }
 0x38f   : > { %v3182_v9 = vpop.f32.mrb[36].mxu0  ;;  %v3428_v33 = vpack.c.bf16 %v3350_v56, %v3348_v60 }
 0x390   : > { %v3183_v37 = vadd.f32 %v3182_v9, %v12954_v57  ;;  %v3184_v7 = vpop.f32.mrb[37].mxu0 }
 0x391   : > { %v3185_v18 = vadd.f32 %v3184_v7, %v12958_v2  ;;  %v3186_v45 = vpop.f32.mrb[38].mxu0  ;;  %3921 = vmatprep.mubr.bf16.mxu1 %v3428_v33 }
 0x392   : > { %v3187_v51 = vadd.f32 %v3186_v45, %v12954_v57  ;;  %v3188_v29 = vpop.f32.mrb[39].mxu0  ;;  %3922 = vmatmul.mubr.bf16.gmra.mrb[224].mxu1 %v3427_v21  ;;  %v3351_v50 = vmax.f32 %v3183_v37, 0.0 }
 0x393   : > { %v3189_v39 = vadd.f32 %v3188_v29, %v12958_v2  ;;  %v3352_v23 = vmax.f32 %v3185_v18, 0.0  ;;  %v11329_v29 = vld [vmem:[%s15838_s3 + $0x494] ss:$8 sps:$4 sm:$0xff]  }
 0x394   : > { %v3353_v16 = vmax.f32 %v3187_v51, 0.0  ;;  %v11327_v51 = vld [vmem:[%s15838_s3 + $0x490] ss:$8 sps:$4 sm:$0xff]   ;;  %5156 = vmatprep.subr.bf16.mxu1 %v11329_v29 }
 0x395   : > { %v3354_v59 = vmax.f32 %v3189_v39, 0.0  ;;  %5157 = vmatpush1.bf16.msra.mxu1 %v11327_v51 }
 0x396   : > { %v3429_v14 = vpack.c.bf16 %v3353_v16, %v3351_v50 }
 0x397   : > { %v3192_v0 = vpop.f32.mrb[40].mxu0  ;;  %v3430_v3 = vpack.c.bf16 %v3354_v59, %v3352_v23  ;;  %v13187_v59 = vrot.slane %v10058_v4, %v11998_v12 }
 0x398   : > { %v3193_v48 = vadd.f32 %v3192_v0, %v12954_v57  ;;  %v3194_v30 = vpop.f32.mrb[41].mxu0  ;;  %v13191_v0 = vrot.slane %v10058_v4, %v12004_v15 }
 0x399   : > { %v3195_v54 = vadd.f32 %v3194_v30, %v12958_v2  ;;  %v3196_v27 = vpop.f32.mrb[42].mxu0  ;;  %3931 = vmatprep.mubr.bf16.mxu1 %v3430_v3 }
 0x39a   : > { %v3197_v36 = vadd.f32 %v3196_v27, %v12954_v57  ;;  %v3198_v42 = vpop.f32.mrb[43].mxu0  ;;  %3932 = vmatmul.mubr.bf16.gmra.mrb[228].mxu1 %v3429_v14  ;;  %v3355_v56 = vmax.f32 %v3193_v48, 0.0 }
 0x39b   : > { %v3199_v60 = vadd.f32 %v3198_v42, %v12958_v2  ;;  %v3356_v9 = vmax.f32 %v3195_v54, 0.0 }
 0x39c   : > { %v3357_v21 = vmax.f32 %v3197_v36, 0.0 }
 0x39d   : > { %v3358_v33 = vmax.f32 %v3199_v60, 0.0 }
 0x39e   : > { %v3431_v37 = vpack.c.bf16 %v3357_v21, %v3355_v56 }
 0x39f   : > { %v3202_v7 = vpop.f32.mrb[44].mxu0  ;;  %v3432_v6 = vpack.c.bf16 %v3358_v33, %v3356_v9 }
 0x3a0   : > { %v3203_v18 = vadd.f32 %v3202_v7, %v12954_v57  ;;  %v3204_v45 = vpop.f32.mrb[45].mxu0 }
 0x3a1   : > { %v3205_v39 = vadd.f32 %v3204_v45, %v12958_v2  ;;  %v3206_v50 = vpop.f32.mrb[46].mxu0  ;;  %3941 = vmatprep.mubr.bf16.mxu1 %v3432_v6 }
 0x3a2   : > { %v3207_v16 = vadd.f32 %v3206_v50, %v12954_v57  ;;  %v3208_v23 = vpop.f32.mrb[47].mxu0  ;;  %3942 = vmatmul.mubr.bf16.gmra.mrb[232].mxu1 %v3431_v37  ;;  %v3359_v3 = vmax.f32 %v3203_v18, 0.0 }
 0x3a3   : > { %v3209_v14 = vadd.f32 %v3208_v23, %v12958_v2  ;;  %v3360_v30 = vmax.f32 %v3205_v39, 0.0 }
 0x3a4   : > { %v3361_v48 = vmax.f32 %v3207_v16, 0.0 }
 0x3a5   : > { %v3362_v54 = vmax.f32 %v3209_v14, 0.0  ;;  %v3683_v27 = vpop.f32.mrb[128].mxu1 }
 0x3a6   : > { %v3433_v36 = vpack.c.bf16 %v3361_v48, %v3359_v3  ;;  %v3684_v42 = vadd.f32 %v3683_v27, %v13187_v59  ;;  %v3685_v60 = vpop.f32.mrb[129].mxu1 }
 0x3a7   : > { %v3686_v56 = vadd.f32 %v3685_v60, %v13191_v0  ;;  %v3212_v21 = vpop.f32.mrb[48].mxu0  ;;  %v3687_v9 = vpop.f32.mrb[130].mxu1  ;;  %v3434_v33 = vpack.c.bf16 %v3362_v54, %v3360_v30 }
 0x3a8   : > { %v3213_v37 = vadd.f32 %v3212_v21, %v12954_v57  ;;  %v3688_v7 = vadd.f32 %v3687_v9, %v13187_v59  ;;  %v3214_v6 = vpop.f32.mrb[49].mxu0  ;;  %v3689_v4 = vpop.f32.mrb[131].mxu1  ;;  %v4002_v29 = vmax.f32 %v3684_v42, 0.0 }
 0x3a9   : > { %v3215_v18 = vadd.f32 %v3214_v6, %v12958_v2  ;;  %v3690_v45 = vadd.f32 %v3689_v4, %v13191_v0  ;;  %v3216_v51 = vpop.f32.mrb[50].mxu0  ;;  %3951 = vmatprep.mubr.bf16.mxu1 %v3434_v33  ;;  %v4003_v23 = vmax.f32 %v3686_v56, 0.0 }
 0x3aa   : > { %v4004_v39 = vmax.f32 %v3688_v7, 0.0  ;;  %v3217_v50 = vadd.f32 %v3216_v51, %v12954_v57  ;;  %v3218_v16 = vpop.f32.mrb[51].mxu0  ;;  %3952 = vmatmul.mubr.bf16.gmra.mrb[236].mxu1 %v3433_v36  ;;  %v3363_v48 = vmax.f32 %v3213_v37, 0.0 }
 0x3ab   : > { %v4005_v14 = vmax.f32 %v3690_v45, 0.0  ;;  %v3219_v3 = vadd.f32 %v3218_v16, %v12958_v2  ;;  %v3364_v27 = vmax.f32 %v3215_v18, 0.0  ;;  %v11330_v18 = vld [vmem:[%s15838_s3 + $0x4a0] ss:$8 sps:$4 sm:$0xff]  }
 0x3ac   : > { %v4130_v30 = vpack.c.bf16 %v4004_v39, %v4002_v29  ;;  %v3365_v54 = vmax.f32 %v3217_v50, 0.0 }
 0x3ad   : > { %v3366_v60 = vmax.f32 %v3219_v3, 0.0  ;;  %v3693_v21 = vpop.f32.mrb[132].mxu1  ;;  %v4131_v9 = vpack.c.bf16 %v4005_v14, %v4003_v23  ;;  %v11332_v23 = vld [vmem:[%s15838_s3 + $0x4a4] ss:$8 sps:$4 sm:$0xff]  }
 0x3ae   : > { %v3435_v6 = vpack.c.bf16 %v3365_v54, %v3363_v48  ;;  %v3694_v33 = vadd.f32 %v3693_v21, %v13187_v59  ;;  %v3695_v42 = vpop.f32.mrb[133].mxu1  ;;  %5158 = vmatprep.subr.bf16.mxu1 %v11332_v23 }
 0x3af   : > { %v3696_v7 = vadd.f32 %v3695_v42, %v13191_v0  ;;  %v3222_v4 = vpop.f32.mrb[52].mxu0  ;;  %v3697_v51 = vpop.f32.mrb[134].mxu1  ;;  %4432 = vmatprep.mubr.bf16.mxu0 %v4131_v9  ;;  %v3436_v36 = vpack.c.bf16 %v3366_v60, %v3364_v27  ;;  %5159 = vmatpush1.bf16.msra.mxu1 %v11330_v18 }
 0x3b0   : > { %v3223_v56 = vadd.f32 %v3222_v4, %v12954_v57  ;;  %v3698_v37 = vadd.f32 %v3697_v51, %v13187_v59  ;;  %v3224_v45 = vpop.f32.mrb[53].mxu0  ;;  %v3699_v29 = vpop.f32.mrb[135].mxu1  ;;  %4433 = vmatmul.mubr.bf16.vlgmr.msra.gmra.mrb[64].mxu0 %v4130_v30  ;;  %v4006_v14 = vmax.f32 %v3694_v33, 0.0 }
 0x3b1   : > { %v3225_v39 = vadd.f32 %v3224_v45, %v12958_v2  ;;  %v3700_v50 = vadd.f32 %v3699_v29, %v13191_v0  ;;  %v3226_v16 = vpop.f32.mrb[54].mxu0  ;;  %3961 = vmatprep.mubr.bf16.mxu1 %v3436_v36  ;;  %v4007_v30 = vmax.f32 %v3696_v7, 0.0 }
 0x3b2   : > { %v4008_v3 = vmax.f32 %v3698_v37, 0.0  ;;  %v3227_v48 = vadd.f32 %v3226_v16, %v12954_v57  ;;  %v3228_v54 = vpop.f32.mrb[55].mxu0  ;;  %3962 = vmatmul.mubr.bf16.gmra.mrb[240].mxu1 %v3435_v6  ;;  %v3367_v21 = vmax.f32 %v3223_v56, 0.0 }
 0x3b3   : > { %v4009_v27 = vmax.f32 %v3700_v50, 0.0  ;;  %v3229_v60 = vadd.f32 %v3228_v54, %v12958_v2  ;;  %v3368_v4 = vmax.f32 %v3225_v39, 0.0 }
 0x3b4   : > { %v4132_v9 = vpack.c.bf16 %v4008_v3, %v4006_v14  ;;  %v3369_v42 = vmax.f32 %v3227_v48, 0.0 }
 0x3b5   : > { %v3370_v51 = vmax.f32 %v3229_v60, 0.0  ;;  %v3703_v36 = vpop.f32.mrb[136].mxu1  ;;  %v4133_v45 = vpack.c.bf16 %v4009_v27, %v4007_v30 }
 0x3b6   : > { %v3437_v29 = vpack.c.bf16 %v3369_v42, %v3367_v21  ;;  %v3704_v33 = vadd.f32 %v3703_v36, %v13187_v59  ;;  %v3705_v37 = vpop.f32.mrb[137].mxu1 }
 0x3b7   : > { %v3706_v16 = vadd.f32 %v3705_v37, %v13191_v0  ;;  %v3232_v6 = vpop.f32.mrb[56].mxu0  ;;  %v3707_v7 = vpop.f32.mrb[138].mxu1  ;;  %4442 = vmatprep.mubr.bf16.mxu0 %v4133_v45  ;;  %v3438_v50 = vpack.c.bf16 %v3370_v51, %v3368_v4 }
 0x3b8   : > { %v3233_v23 = vadd.f32 %v3232_v6, %v12954_v57  ;;  %v3708_v56 = vadd.f32 %v3707_v7, %v13187_v59  ;;  %v3234_v14 = vpop.f32.mrb[57].mxu0  ;;  %v3709_v18 = vpop.f32.mrb[139].mxu1  ;;  %4443 = vmatmul.mubr.bf16.gmra.mrb[68].mxu0 %v4132_v9  ;;  %v4010_v54 = vmax.f32 %v3704_v33, 0.0 }
 0x3b9   : > { %v3235_v39 = vadd.f32 %v3234_v14, %v12958_v2  ;;  %v3710_v3 = vadd.f32 %v3709_v18, %v13191_v0  ;;  %v3236_v48 = vpop.f32.mrb[58].mxu0  ;;  %3971 = vmatprep.mubr.bf16.mxu1 %v3438_v50  ;;  %v4011_v21 = vmax.f32 %v3706_v16, 0.0 }
 0x3ba   : > { %v4012_v30 = vmax.f32 %v3708_v56, 0.0  ;;  %v3237_v27 = vadd.f32 %v3236_v48, %v12954_v57  ;;  %v3238_v60 = vpop.f32.mrb[59].mxu0  ;;  %3972 = vmatmul.mubr.bf16.gmra.mrb[244].mxu1 %v3437_v29  ;;  %v3371_v51 = vmax.f32 %v3233_v23, 0.0 }
 0x3bb   : > { %v4013_v42 = vmax.f32 %v3710_v3, 0.0  ;;  %v3239_v4 = vadd.f32 %v3238_v60, %v12958_v2  ;;  %v3372_v9 = vmax.f32 %v3235_v39, 0.0  ;;  %v11333_v39 = vld [vmem:[%s15838_s3 + $0x4b0] ss:$8 sps:$4 sm:$0xff]  }
 0x3bc   : > { %v4134_v36 = vpack.c.bf16 %v4012_v30, %v4010_v54  ;;  %v3373_v45 = vmax.f32 %v3237_v27, 0.0 }
 0x3bd   : > { %v3374_v37 = vmax.f32 %v3239_v4, 0.0  ;;  %v3713_v6 = vpop.f32.mrb[140].mxu1  ;;  %v4135_v7 = vpack.c.bf16 %v4013_v42, %v4011_v21  ;;  %v11335_v21 = vld [vmem:[%s15838_s3 + $0x4b4] ss:$8 sps:$4 sm:$0xff]  }
 0x3be   : > { %v3439_v14 = vpack.c.bf16 %v3373_v45, %v3371_v51  ;;  %v3714_v50 = vadd.f32 %v3713_v6, %v13187_v59  ;;  %v3715_v33 = vpop.f32.mrb[141].mxu1  ;;  %5160 = vmatprep.subr.bf16.mxu1 %v11335_v21 }
 0x3bf   : > { %v3716_v56 = vadd.f32 %v3715_v33, %v13191_v0  ;;  %v3242_v18 = vpop.f32.mrb[60].mxu0  ;;  %v3717_v48 = vpop.f32.mrb[142].mxu1  ;;  %4452 = vmatprep.mubr.bf16.mxu0 %v4135_v7  ;;  %v3440_v29 = vpack.c.bf16 %v3374_v37, %v3372_v9  ;;  %5161 = vmatpush1.bf16.msra.mxu1 %v11333_v39 }
 0x3c0   : > { %v3243_v16 = vadd.f32 %v3242_v18, %v12954_v57  ;;  %v3718_v23 = vadd.f32 %v3717_v48, %v13187_v59  ;;  %v3244_v3 = vpop.f32.mrb[61].mxu0  ;;  %v3719_v54 = vpop.f32.mrb[143].mxu1  ;;  %4453 = vmatmul.mubr.bf16.gmra.mrb[72].mxu0 %v4134_v36  ;;  %v4014_v42 = vmax.f32 %v3714_v50, 0.0 }
 0x3c1   : > { %v3245_v30 = vadd.f32 %v3244_v3, %v12958_v2  ;;  %v3720_v27 = vadd.f32 %v3719_v54, %v13191_v0  ;;  %v3246_v60 = vpop.f32.mrb[62].mxu0  ;;  %3981 = vmatprep.mubr.bf16.mxu1 %v3440_v29  ;;  %v4015_v36 = vmax.f32 %v3716_v56, 0.0 }
 0x3c2   : > { %v4016_v4 = vmax.f32 %v3718_v23, 0.0  ;;  %v3247_v51 = vadd.f32 %v3246_v60, %v12954_v57  ;;  %v3248_v45 = vpop.f32.mrb[63].mxu0  ;;  %3982 = vmatmul.mubr.bf16.gmra.mrb[248].mxu1 %v3439_v14  ;;  %v3375_v6 = vmax.f32 %v3243_v16, 0.0 }
 0x3c3   : > { %v4017_v9 = vmax.f32 %v3720_v27, 0.0  ;;  %v3249_v37 = vadd.f32 %v3248_v45, %v12958_v2  ;;  %v3376_v18 = vmax.f32 %v3245_v30, 0.0 }
 0x3c4   : > { %v4136_v7 = vpack.c.bf16 %v4016_v4, %v4014_v42  ;;  %v3377_v33 = vmax.f32 %v3247_v51, 0.0 }
 0x3c5   : > { %v3378_v48 = vmax.f32 %v3249_v37, 0.0  ;;  %v3723_v29 = vpop.f32.mrb[144].mxu1  ;;  %v4137_v3 = vpack.c.bf16 %v4017_v9, %v4015_v36 }
 0x3c6   : > { %v3441_v54 = vpack.c.bf16 %v3377_v33, %v3375_v6  ;;  %v3724_v50 = vadd.f32 %v3723_v29, %v13187_v59  ;;  %v3725_v23 = vpop.f32.mrb[145].mxu1  ;;  %v11336_v33 = vld [vmem:[%s15838_s3 + $0x4c0] ss:$8 sps:$4 sm:$0xff]  }
 0x3c7   : > { %v3726_v57 = vadd.f32 %v3725_v23, %v13191_v0  ;;  %v3727_v14 = vpop.f32.mrb[146].mxu1  ;;  %4462 = vmatprep.mubr.bf16.mxu0 %v4137_v3  ;;  %v3442_v56 = vpack.c.bf16 %v3378_v48, %v3376_v18  ;;  %v11338_v18 = vld [vmem:[%s15838_s3 + $0x4c4] ss:$8 sps:$4 sm:$0xff]  }
 0x3c8   : > { %v3728_v2 = vadd.f32 %v3727_v14, %v13187_v59  ;;  %v3729_v27 = vpop.f32.mrb[147].mxu1  ;;  %4463 = vmatmul.mubr.bf16.gmra.mrb[76].mxu0 %v4136_v7  ;;  %v4018_v39 = vmax.f32 %v3724_v50, 0.0  ;;  %5162 = vmatprep.subr.bf16.mxu1 %v11338_v18 }
 0x3c9   : > { %v3730_v16 = vadd.f32 %v3729_v27, %v13191_v0  ;;  %3991 = vmatprep.mubr.bf16.mxu1 %v3442_v56  ;;  %v4019_v60 = vmax.f32 %v3726_v57, 0.0  ;;  %5163 = vmatpush1.bf16.msra.mxu1 %v11336_v33 }
 0x3ca   : > { %v4020_v30 = vmax.f32 %v3728_v2, 0.0  ;;  %3992 = vmatmul.mubr.bf16.gmra.mrb[252].mxu1 %v3441_v54 }
 0x3cb   : > { %v4021_v21 = vmax.f32 %v3730_v16, 0.0 }
 0x3cc   : > { %v4138_v42 = vpack.c.bf16 %v4020_v30, %v4018_v39 }
 0x3cd   : > { %v3733_v4 = vpop.f32.mrb[148].mxu1  ;;  %v4139_v51 = vpack.c.bf16 %v4021_v21, %v4019_v60 }
 0x3ce   : > { %v3734_v45 = vadd.f32 %v3733_v4, %v13187_v59  ;;  %v3735_v36 = vpop.f32.mrb[149].mxu1 }
 0x3cf   : > { %v3736_v9 = vadd.f32 %v3735_v36, %v13191_v0  ;;  %v3737_v37 = vpop.f32.mrb[150].mxu1  ;;  %4472 = vmatprep.mubr.bf16.mxu0 %v4139_v51 }
 0x3d0   : > { %v3738_v6 = vadd.f32 %v3737_v37, %v13187_v59  ;;  %v3739_v7 = vpop.f32.mrb[151].mxu1  ;;  %4473 = vmatmul.mubr.bf16.gmra.mrb[80].mxu0 %v4138_v42  ;;  %v4022_v29 = vmax.f32 %v3734_v45, 0.0 }
 0x3d1   : > { %v3740_v48 = vadd.f32 %v3739_v7, %v13191_v0  ;;  %v4023_v54 = vmax.f32 %v3736_v9, 0.0 }
 0x3d2   : > { %v4024_v3 = vmax.f32 %v3738_v6, 0.0 }
 0x3d3   : > { %v4025_v50 = vmax.f32 %v3740_v48, 0.0 }
 0x3d4   : > { %v4140_v23 = vpack.c.bf16 %v4024_v3, %v4022_v29  ;;  %v11339_v29 = vld [vmem:[%s15838_s3 + $0x4d0] ss:$8 sps:$4 sm:$0xff]   ;;  %v11341_v3 = vld [vmem:[%s15838_s3 + $0x4d4] ss:$8 sps:$4 sm:$0xff]  }
 0x3d5   : > { %v3743_v57 = vpop.f32.mrb[152].mxu1  ;;  %v4141_v14 = vpack.c.bf16 %v4025_v50, %v4023_v54  ;;  %5164 = vmatprep.subr.bf16.mxu1 %v11341_v3 }
 0x3d6   : > { %v3744_v56 = vadd.f32 %v3743_v57, %v13187_v59  ;;  %v3745_v2 = vpop.f32.mrb[153].mxu1  ;;  %5165 = vmatpush1.bf16.msra.mxu1 %v11339_v29 }
 0x3d7   : > { %v3746_v27 = vadd.f32 %v3745_v2, %v13191_v0  ;;  %v3747_v16 = vpop.f32.mrb[154].mxu1  ;;  %4482 = vmatprep.mubr.bf16.mxu0 %v4141_v14 }
 0x3d8   : > { %v3748_v39 = vadd.f32 %v3747_v16, %v13187_v59  ;;  %v3749_v30 = vpop.f32.mrb[155].mxu1  ;;  %4483 = vmatmul.mubr.bf16.gmra.mrb[84].mxu0 %v4140_v23  ;;  %v4026_v21 = vmax.f32 %v3744_v56, 0.0 }
 0x3d9   : > { %v3750_v60 = vadd.f32 %v3749_v30, %v13191_v0  ;;  %v4027_v4 = vmax.f32 %v3746_v27, 0.0 }
 0x3da   : > { %v4028_v42 = vmax.f32 %v3748_v39, 0.0 }
 0x3db   : > { %v4029_v51 = vmax.f32 %v3750_v60, 0.0 }
 0x3dc   : > { %v4142_v45 = vpack.c.bf16 %v4028_v42, %v4026_v21 }
 0x3dd   : > { %v3753_v36 = vpop.f32.mrb[156].mxu1  ;;  %v4143_v9 = vpack.c.bf16 %v4029_v51, %v4027_v4 }
 0x3de   : > { %v3754_v37 = vadd.f32 %v3753_v36, %v13187_v59  ;;  %v3755_v6 = vpop.f32.mrb[157].mxu1 }
 0x3df   : > { %v3756_v7 = vadd.f32 %v3755_v6, %v13191_v0  ;;  %v3757_v33 = vpop.f32.mrb[158].mxu1  ;;  %4492 = vmatprep.mubr.bf16.mxu0 %v4143_v9  ;;  %v11342_v6 = vld [vmem:[%s15838_s3 + $0x500] ss:$8 sps:$4 sm:$0xff]  }
 0x3e0   : > { %v3758_v18 = vadd.f32 %v3757_v33, %v13187_v59  ;;  %v3759_v48 = vpop.f32.mrb[159].mxu1  ;;  %4493 = vmatmul.mubr.bf16.gmra.mrb[88].mxu0 %v4142_v45  ;;  %v4030_v50 = vmax.f32 %v3754_v37, 0.0 }
 0x3e1   : > { %v3760_v54 = vadd.f32 %v3759_v48, %v13191_v0  ;;  %v4031_v57 = vmax.f32 %v3756_v7, 0.0  ;;  %v11344_v7 = vld [vmem:[%s15838_s3 + $0x504] ss:$8 sps:$4 sm:$0xff]  }
 0x3e2   : > { %v4032_v23 = vmax.f32 %v3758_v18, 0.0  ;;  %6030 = vmatprep.subr.bf16.mxu0 %v11344_v7 }
 0x3e3   : > { %v4033_v14 = vmax.f32 %v3760_v54, 0.0  ;;  %6031 = vmatpush1.bf16.msra.mxu0 %v11342_v6 }
 0x3e4   : > { %v4144_v56 = vpack.c.bf16 %v4032_v23, %v4030_v50 }
 0x3e5   : > { %v3763_v2 = vpop.f32.mrb[160].mxu1  ;;  %v4145_v27 = vpack.c.bf16 %v4033_v14, %v4031_v57  ;;  %v11345_v57 = vld [vmem:[%s15838_s3 + $0x4e0] ss:$8 sps:$4 sm:$0xff]   ;;  %v11347_v14 = vld [vmem:[%s15838_s3 + $0x4e4] ss:$8 sps:$4 sm:$0xff]  }
 0x3e6   : > { %v3764_v16 = vadd.f32 %v3763_v2, %v13187_v59  ;;  %v3765_v39 = vpop.f32.mrb[161].mxu1  ;;  %5166 = vmatprep.subr.bf16.mxu1 %v11347_v14 }
 0x3e7   : > { %v3766_v30 = vadd.f32 %v3765_v39, %v13191_v0  ;;  %v3767_v60 = vpop.f32.mrb[162].mxu1  ;;  %4502 = vmatprep.mubr.bf16.mxu0 %v4145_v27  ;;  %5167 = vmatpush1.bf16.msra.mxu1 %v11345_v57 }
 0x3e8   : > { %v3768_v21 = vadd.f32 %v3767_v60, %v13187_v59  ;;  %v3769_v42 = vpop.f32.mrb[163].mxu1  ;;  %4503 = vmatmul.mubr.bf16.gmra.mrb[92].mxu0 %v4144_v56  ;;  %v4034_v51 = vmax.f32 %v3764_v16, 0.0 }
 0x3e9   : > { %v3770_v4 = vadd.f32 %v3769_v42, %v13191_v0  ;;  %v4035_v36 = vmax.f32 %v3766_v30, 0.0 }
 0x3ea   : > { %v4036_v45 = vmax.f32 %v3768_v21, 0.0 }
 0x3eb   : > { %v4037_v9 = vmax.f32 %v3770_v4, 0.0 }
 0x3ec   : > { %v4146_v37 = vpack.c.bf16 %v4036_v45, %v4034_v51 }
 0x3ed   : > { %v3773_v33 = vpop.f32.mrb[164].mxu1  ;;  %v4147_v18 = vpack.c.bf16 %v4037_v9, %v4035_v36 }
 0x3ee   : > { %v3774_v48 = vadd.f32 %v3773_v33, %v13187_v59  ;;  %v3775_v29 = vpop.f32.mrb[165].mxu1 }
 0x3ef   : > { %v3776_v3 = vadd.f32 %v3775_v29, %v13191_v0  ;;  %v3777_v54 = vpop.f32.mrb[166].mxu1  ;;  %4512 = vmatprep.mubr.bf16.mxu0 %v4147_v18  ;;  %v11348_v29 = vld [vmem:[%s15838_s3 + $0x510] ss:$8 sps:$4 sm:$0xff]  }
 0x3f0   : > { %v3778_v50 = vadd.f32 %v3777_v54, %v13187_v59  ;;  %v3779_v23 = vpop.f32.mrb[167].mxu1  ;;  %4513 = vmatmul.mubr.bf16.gmra.mrb[96].mxu0 %v4146_v37  ;;  %v4038_v2 = vmax.f32 %v3774_v48, 0.0 }
 0x3f1   : > { %v3780_v56 = vadd.f32 %v3779_v23, %v13191_v0  ;;  %v4039_v16 = vmax.f32 %v3776_v3, 0.0  ;;  %v11350_v3 = vld [vmem:[%s15838_s3 + $0x514] ss:$8 sps:$4 sm:$0xff]  }
 0x3f2   : > { %v4040_v27 = vmax.f32 %v3778_v50, 0.0  ;;  %6032 = vmatprep.subr.bf16.mxu0 %v11350_v3 }
 0x3f3   : > { %v4041_v39 = vmax.f32 %v3780_v56, 0.0  ;;  %6033 = vmatpush1.bf16.msra.mxu0 %v11348_v29 }
 0x3f4   : > { %v4148_v30 = vpack.c.bf16 %v4040_v27, %v4038_v2 }
 0x3f5   : > { %v3783_v60 = vpop.f32.mrb[168].mxu1  ;;  %v4149_v21 = vpack.c.bf16 %v4041_v39, %v4039_v16  ;;  %v11351_v16 = vld [vmem:[%s15838_s3 + $0x4f0] ss:$8 sps:$4 sm:$0xff]   ;;  %v11353_v39 = vld [vmem:[%s15838_s3 + $0x4f4] ss:$8 sps:$4 sm:$0xff]  }
 0x3f6   : > { %v3784_v42 = vadd.f32 %v3783_v60, %v13187_v59  ;;  %v3785_v4 = vpop.f32.mrb[169].mxu1  ;;  %5168 = vmatprep.subr.bf16.mxu1 %v11353_v39 }
 0x3f7   : > { %v3786_v51 = vadd.f32 %v3785_v4, %v13191_v0  ;;  %v3787_v45 = vpop.f32.mrb[170].mxu1  ;;  %4522 = vmatprep.mubr.bf16.mxu0 %v4149_v21  ;;  %5169 = vmatpush1.bf16.msra.mxu1 %v11351_v16  ;;  %v11356_v16 = vld [vmem:[%s15838_s3 + $0x524] ss:$8 sps:$4 sm:$0xff]  }
 0x3f8   : > { %v3788_v36 = vadd.f32 %v3787_v45, %v13187_v59  ;;  %v3789_v9 = vpop.f32.mrb[171].mxu1  ;;  %4523 = vmatmul.mubr.bf16.gmra.mrb[100].mxu0 %v4148_v30  ;;  %v4042_v6 = vmax.f32 %v3784_v42, 0.0  ;;  %6034 = vmatprep.subr.bf16.mxu0 %v11356_v16 }
 0x3f9   : > { %v3790_v37 = vadd.f32 %v3789_v9, %v13191_v0  ;;  %v4043_v33 = vmax.f32 %v3786_v51, 0.0 }
 0x3fa   : > { %v4044_v7 = vmax.f32 %v3788_v36, 0.0 }
 0x3fb   : > { %v4045_v18 = vmax.f32 %v3790_v37, 0.0 }
 0x3fc   : > { %v4150_v48 = vpack.c.bf16 %v4044_v7, %v4042_v6 }
 0x3fd   : > { %v3793_v54 = vpop.f32.mrb[172].mxu1  ;;  %v4151_v50 = vpack.c.bf16 %v4045_v18, %v4043_v33 }
 0x3fe   : > { %v3794_v23 = vadd.f32 %v3793_v54, %v13187_v59  ;;  %v3795_v57 = vpop.f32.mrb[173].mxu1 }
 0x3ff   : > { %v3796_v14 = vadd.f32 %v3795_v57, %v13191_v0  ;;  %v3797_v56 = vpop.f32.mrb[174].mxu1  ;;  %4532 = vmatprep.mubr.bf16.mxu0 %v4151_v50 }
 0x400   : > { %v3798_v2 = vadd.f32 %v3797_v56, %v13187_v59  ;;  %v3799_v27 = vpop.f32.mrb[175].mxu1  ;;  %4533 = vmatmul.mubr.bf16.gmra.mrb[104].mxu0 %v4150_v48  ;;  %v4046_v60 = vmax.f32 %v3794_v23, 0.0 }
 0x401   : > { %v3800_v30 = vadd.f32 %v3799_v27, %v13191_v0  ;;  %v4047_v42 = vmax.f32 %v3796_v14, 0.0  ;;  %v11354_v27 = vld [vmem:[%s15838_s3 + $0x520] ss:$8 sps:$4 sm:$0xff]  }
 0x402   : > { %v4048_v21 = vmax.f32 %v3798_v2, 0.0  ;;  %6035 = vmatpush1.bf16.msra.mxu0 %v11354_v27 }
 0x403   : > { %v4049_v4 = vmax.f32 %v3800_v30, 0.0 }
 0x404   : > { %v4152_v51 = vpack.c.bf16 %v4048_v21, %v4046_v60 }
 0x405   : > { %v3803_v45 = vpop.f32.mrb[176].mxu1  ;;  %v4153_v36 = vpack.c.bf16 %v4049_v4, %v4047_v42 }
 0x406   : > { %v3804_v9 = vadd.f32 %v3803_v45, %v13187_v59  ;;  %v3805_v37 = vpop.f32.mrb[177].mxu1 }
 0x407   : > { %v3806_v6 = vadd.f32 %v3805_v37, %v13191_v0  ;;  %v3807_v7 = vpop.f32.mrb[178].mxu1  ;;  %4542 = vmatprep.mubr.bf16.mxu0 %v4153_v36 }
 0x408   : > { %v3808_v33 = vadd.f32 %v3807_v7, %v13187_v59  ;;  %v3809_v18 = vpop.f32.mrb[179].mxu1  ;;  %4543 = vmatmul.mubr.bf16.gmra.mrb[108].mxu0 %v4152_v51  ;;  %v4050_v29 = vmax.f32 %v3804_v9, 0.0 }
 0x409   : > { %v3810_v48 = vadd.f32 %v3809_v18, %v13191_v0  ;;  %v4051_v54 = vmax.f32 %v3806_v6, 0.0 }
 0x40a   : > { %v4052_v3 = vmax.f32 %v3808_v33, 0.0 }
 0x40b   : > { %v4053_v50 = vmax.f32 %v3810_v48, 0.0 }
 0x40c   : > { %v4154_v23 = vpack.c.bf16 %v4052_v3, %v4050_v29 }
 0x40d   : > { %v3813_v57 = vpop.f32.mrb[180].mxu1  ;;  %v4155_v14 = vpack.c.bf16 %v4053_v50, %v4051_v54 }
 0x40e   : > { %v3814_v56 = vadd.f32 %v3813_v57, %v13187_v59  ;;  %v3815_v2 = vpop.f32.mrb[181].mxu1 }
 0x40f   : > { %v3816_v39 = vadd.f32 %v3815_v2, %v13191_v0  ;;  %v3817_v30 = vpop.f32.mrb[182].mxu1  ;;  %4552 = vmatprep.mubr.bf16.mxu0 %v4155_v14 }
 0x410   : > { %v3818_v60 = vadd.f32 %v3817_v30, %v13187_v59  ;;  %v3819_v21 = vpop.f32.mrb[183].mxu1  ;;  %4553 = vmatmul.mubr.bf16.gmra.mrb[112].mxu0 %v4154_v23  ;;  %v4054_v4 = vmax.f32 %v3814_v56, 0.0  ;;  %v11357_v30 = vld [vmem:[%s15838_s3 + $0x530] ss:$8 sps:$4 sm:$0xff]  }
 0x411   : > { %v3820_v42 = vadd.f32 %v3819_v21, %v13191_v0  ;;  %v4055_v45 = vmax.f32 %v3816_v39, 0.0 }
 0x412   : > { %v4056_v51 = vmax.f32 %v3818_v60, 0.0  ;;  %v11359_v60 = vld [vmem:[%s15838_s3 + $0x534] ss:$8 sps:$4 sm:$0xff]  }
 0x413   : > { %v4057_v36 = vmax.f32 %v3820_v42, 0.0  ;;  %6036 = vmatprep.subr.bf16.mxu0 %v11359_v60 }
 0x414   : > { %v4156_v9 = vpack.c.bf16 %v4056_v51, %v4054_v4  ;;  %6037 = vmatpush1.bf16.msra.mxu0 %v11357_v30 }
 0x415   : > { %v3823_v37 = vpop.f32.mrb[184].mxu1  ;;  %v4157_v6 = vpack.c.bf16 %v4057_v36, %v4055_v45 }
 0x416   : > { %v3824_v7 = vadd.f32 %v3823_v37, %v13187_v59  ;;  %v3825_v33 = vpop.f32.mrb[185].mxu1 }
 0x417   : > { %v3826_v18 = vadd.f32 %v3825_v33, %v13191_v0  ;;  %v3827_v48 = vpop.f32.mrb[186].mxu1  ;;  %4562 = vmatprep.mubr.bf16.mxu0 %v4157_v6 }
 0x418   : > { %v3828_v29 = vadd.f32 %v3827_v48, %v13187_v59  ;;  %v3829_v3 = vpop.f32.mrb[187].mxu1  ;;  %4563 = vmatmul.mubr.bf16.gmra.mrb[116].mxu0 %v4156_v9  ;;  %v4058_v50 = vmax.f32 %v3824_v7, 0.0 }
 0x419   : > { %v3830_v54 = vadd.f32 %v3829_v3, %v13191_v0  ;;  %v4059_v57 = vmax.f32 %v3826_v18, 0.0 }
 0x41a   : > { %v4060_v23 = vmax.f32 %v3828_v29, 0.0 }
 0x41b   : > { %v4061_v14 = vmax.f32 %v3830_v54, 0.0 }
 0x41c   : > { %v4158_v56 = vpack.c.bf16 %v4060_v23, %v4058_v50 }
 0x41d   : > { %v3833_v2 = vpop.f32.mrb[188].mxu1  ;;  %v4159_v27 = vpack.c.bf16 %v4061_v14, %v4059_v57 }
 0x41e   : > { %v3834_v16 = vadd.f32 %v3833_v2, %v13187_v59  ;;  %v3835_v39 = vpop.f32.mrb[189].mxu1 }
 0x41f   : > { %v3836_v21 = vadd.f32 %v3835_v39, %v13191_v0  ;;  %v3837_v42 = vpop.f32.mrb[190].mxu1  ;;  %4572 = vmatprep.mubr.bf16.mxu0 %v4159_v27 }
 0x420   : > { %v3838_v4 = vadd.f32 %v3837_v42, %v13187_v59  ;;  %v3839_v51 = vpop.f32.mrb[191].mxu1  ;;  %4573 = vmatmul.mubr.bf16.gmra.mrb[120].mxu0 %v4158_v56  ;;  %v4062_v36 = vmax.f32 %v3834_v16, 0.0  ;;  %v11360_v42 = vld [vmem:[%s15838_s3 + $0x540] ss:$8 sps:$4 sm:$0xff]  }
 0x421   : > { %v3840_v45 = vadd.f32 %v3839_v51, %v13191_v0  ;;  %v4063_v37 = vmax.f32 %v3836_v21, 0.0 }
 0x422   : > { %v4064_v9 = vmax.f32 %v3838_v4, 0.0  ;;  %v11362_v4 = vld [vmem:[%s15838_s3 + $0x544] ss:$8 sps:$4 sm:$0xff]  }
 0x423   : > { %v4065_v6 = vmax.f32 %v3840_v45, 0.0  ;;  %6038 = vmatprep.subr.bf16.mxu0 %v11362_v4 }
 0x424   : > { %v4160_v7 = vpack.c.bf16 %v4064_v9, %v4062_v36  ;;  %6039 = vmatpush1.bf16.msra.mxu0 %v11360_v42 }
 0x425   : > { %v3843_v33 = vpop.f32.mrb[192].mxu1  ;;  %v4161_v18 = vpack.c.bf16 %v4065_v6, %v4063_v37 }
 0x426   : > { %v3844_v48 = vadd.f32 %v3843_v33, %v13187_v59  ;;  %v3845_v29 = vpop.f32.mrb[193].mxu1 }
 0x427   : > { %v3846_v3 = vadd.f32 %v3845_v29, %v13191_v0  ;;  %v3847_v54 = vpop.f32.mrb[194].mxu1  ;;  %4582 = vmatprep.mubr.bf16.mxu0 %v4161_v18 }
 0x428   : > { %v3848_v50 = vadd.f32 %v3847_v54, %v13187_v59  ;;  %v3849_v23 = vpop.f32.mrb[195].mxu1  ;;  %4583 = vmatmul.mubr.bf16.gmra.mrb[124].mxu0 %v4160_v7  ;;  %v4066_v14 = vmax.f32 %v3844_v48, 0.0 }
 0x429   : > { %v3850_v57 = vadd.f32 %v3849_v23, %v13191_v0  ;;  %v4067_v2 = vmax.f32 %v3846_v3, 0.0 }
 0x42a   : > { %v4068_v56 = vmax.f32 %v3848_v50, 0.0 }
 0x42b   : > { %v4069_v27 = vmax.f32 %v3850_v57, 0.0 }
 0x42c   : > { %v4162_v16 = vpack.c.bf16 %v4068_v56, %v4066_v14 }
 0x42d   : > { %v3853_v39 = vpop.f32.mrb[196].mxu1  ;;  %v4163_v30 = vpack.c.bf16 %v4069_v27, %v4067_v2 }
 0x42e   : > { %v3854_v60 = vadd.f32 %v3853_v39, %v13187_v59  ;;  %v3855_v21 = vpop.f32.mrb[197].mxu1 }
 0x42f   : > { %v3856_v51 = vadd.f32 %v3855_v21, %v13191_v0  ;;  %v3857_v45 = vpop.f32.mrb[198].mxu1  ;;  %4592 = vmatprep.mubr.bf16.mxu0 %v4163_v30 }
 0x430   : > { %v3858_v36 = vadd.f32 %v3857_v45, %v13187_v59  ;;  %v3859_v9 = vpop.f32.mrb[199].mxu1  ;;  %4593 = vmatmul.mubr.bf16.gmra.mrb[128].mxu0 %v4162_v16  ;;  %v4070_v6 = vmax.f32 %v3854_v60, 0.0  ;;  %v11363_v45 = vld [vmem:[%s15838_s3 + $0x550] ss:$8 sps:$4 sm:$0xff]  }
 0x431   : > { %v3860_v37 = vadd.f32 %v3859_v9, %v13191_v0  ;;  %v4071_v33 = vmax.f32 %v3856_v51, 0.0 }
 0x432   : > { %v4072_v7 = vmax.f32 %v3858_v36, 0.0  ;;  %v11365_v36 = vld [vmem:[%s15838_s3 + $0x554] ss:$8 sps:$4 sm:$0xff]  }
 0x433   : > { %v4073_v18 = vmax.f32 %v3860_v37, 0.0  ;;  %6040 = vmatprep.subr.bf16.mxu0 %v11365_v36 }
 0x434   : > { %v4164_v48 = vpack.c.bf16 %v4072_v7, %v4070_v6  ;;  %6041 = vmatpush1.bf16.msra.mxu0 %v11363_v45 }
 0x435   : > { %v3863_v29 = vpop.f32.mrb[200].mxu1  ;;  %v4165_v3 = vpack.c.bf16 %v4073_v18, %v4071_v33 }
 0x436   : > { %v3864_v54 = vadd.f32 %v3863_v29, %v13187_v59  ;;  %v3865_v50 = vpop.f32.mrb[201].mxu1 }
 0x437   : > { %v3866_v23 = vadd.f32 %v3865_v50, %v13191_v0  ;;  %v3867_v57 = vpop.f32.mrb[202].mxu1  ;;  %4602 = vmatprep.mubr.bf16.mxu0 %v4165_v3 }
 0x438   : > { %v3868_v14 = vadd.f32 %v3867_v57, %v13187_v59  ;;  %v3869_v56 = vpop.f32.mrb[203].mxu1  ;;  %4603 = vmatmul.mubr.bf16.gmra.mrb[132].mxu0 %v4164_v48  ;;  %v4074_v27 = vmax.f32 %v3864_v54, 0.0 }
 0x439   : > { %v3870_v2 = vadd.f32 %v3869_v56, %v13191_v0  ;;  %v4075_v39 = vmax.f32 %v3866_v23, 0.0 }
 0x43a   : > { %v4076_v16 = vmax.f32 %v3868_v14, 0.0 }
 0x43b   : > { %v4077_v30 = vmax.f32 %v3870_v2, 0.0 }
 0x43c   : > { %v4166_v60 = vpack.c.bf16 %v4076_v16, %v4074_v27 }
 0x43d   : > { %v3873_v21 = vpop.f32.mrb[204].mxu1  ;;  %v4167_v42 = vpack.c.bf16 %v4077_v30, %v4075_v39 }
 0x43e   : > { %v3874_v4 = vadd.f32 %v3873_v21, %v13187_v59  ;;  %v3875_v51 = vpop.f32.mrb[205].mxu1 }
 0x43f   : > { %v3876_v9 = vadd.f32 %v3875_v51, %v13191_v0  ;;  %v3877_v37 = vpop.f32.mrb[206].mxu1  ;;  %4612 = vmatprep.mubr.bf16.mxu0 %v4167_v42 }
 0x440   : > { %v3878_v6 = vadd.f32 %v3877_v37, %v13187_v59  ;;  %v3879_v7 = vpop.f32.mrb[207].mxu1  ;;  %4613 = vmatmul.mubr.bf16.gmra.mrb[136].mxu0 %v4166_v60  ;;  %v4078_v18 = vmax.f32 %v3874_v4, 0.0  ;;  %v11366_v37 = vld [vmem:[%s15838_s3 + $0x560] ss:$8 sps:$4 sm:$0xff]  }
 0x441   : > { %v3880_v33 = vadd.f32 %v3879_v7, %v13191_v0  ;;  %v4079_v29 = vmax.f32 %v3876_v9, 0.0 }
 0x442   : > { %v4080_v48 = vmax.f32 %v3878_v6, 0.0  ;;  %v11368_v6 = vld [vmem:[%s15838_s3 + $0x564] ss:$8 sps:$4 sm:$0xff]  }
 0x443   : > { %v4081_v3 = vmax.f32 %v3880_v33, 0.0  ;;  %6042 = vmatprep.subr.bf16.mxu0 %v11368_v6 }
 0x444   : > { %v4168_v54 = vpack.c.bf16 %v4080_v48, %v4078_v18  ;;  %6043 = vmatpush1.bf16.msra.mxu0 %v11366_v37 }
 0x445   : > { %v3883_v50 = vpop.f32.mrb[208].mxu1  ;;  %v4169_v23 = vpack.c.bf16 %v4081_v3, %v4079_v29 }
 0x446   : > { %v3884_v57 = vadd.f32 %v3883_v50, %v13187_v59  ;;  %v3885_v14 = vpop.f32.mrb[209].mxu1 }
 0x447   : > { %v3886_v56 = vadd.f32 %v3885_v14, %v13191_v0  ;;  %v3887_v2 = vpop.f32.mrb[210].mxu1  ;;  %4622 = vmatprep.mubr.bf16.mxu0 %v4169_v23 }
 0x448   : > { %v3888_v27 = vadd.f32 %v3887_v2, %v13187_v59  ;;  %v3889_v16 = vpop.f32.mrb[211].mxu1  ;;  %4623 = vmatmul.mubr.bf16.gmra.mrb[140].mxu0 %v4168_v54  ;;  %v4082_v30 = vmax.f32 %v3884_v57, 0.0 }
 0x449   : > { %v3890_v39 = vadd.f32 %v3889_v16, %v13191_v0  ;;  %v4083_v21 = vmax.f32 %v3886_v56, 0.0 }
 0x44a   : > { %v4084_v60 = vmax.f32 %v3888_v27, 0.0 }
 0x44b   : > { %v4085_v42 = vmax.f32 %v3890_v39, 0.0 }
 0x44c   : > { %v4170_v4 = vpack.c.bf16 %v4084_v60, %v4082_v30 }
 0x44d   : > { %v3893_v51 = vpop.f32.mrb[212].mxu1  ;;  %v4171_v45 = vpack.c.bf16 %v4085_v42, %v4083_v21 }
 0x44e   : > { %v3894_v36 = vadd.f32 %v3893_v51, %v13187_v59  ;;  %v3895_v9 = vpop.f32.mrb[213].mxu1 }
 0x44f   : > { %v3896_v7 = vadd.f32 %v3895_v9, %v13191_v0  ;;  %v3897_v33 = vpop.f32.mrb[214].mxu1  ;;  %4632 = vmatprep.mubr.bf16.mxu0 %v4171_v45 }
 0x450   : > { %v3898_v18 = vadd.f32 %v3897_v33, %v13187_v59  ;;  %v3899_v48 = vpop.f32.mrb[215].mxu1  ;;  %4633 = vmatmul.mubr.bf16.gmra.mrb[144].mxu0 %v4170_v4  ;;  %v4086_v3 = vmax.f32 %v3894_v36, 0.0  ;;  %v11369_v33 = vld [vmem:[%s15838_s3 + $0x570] ss:$8 sps:$4 sm:$0xff]  }
 0x451   : > { %v3900_v29 = vadd.f32 %v3899_v48, %v13191_v0  ;;  %v4087_v50 = vmax.f32 %v3896_v7, 0.0 }
 0x452   : > { %v4088_v54 = vmax.f32 %v3898_v18, 0.0  ;;  %v11371_v18 = vld [vmem:[%s15838_s3 + $0x574] ss:$8 sps:$4 sm:$0xff]  }
 0x453   : > { %v4089_v23 = vmax.f32 %v3900_v29, 0.0  ;;  %6044 = vmatprep.subr.bf16.mxu0 %v11371_v18 }
 0x454   : > { %v4172_v57 = vpack.c.bf16 %v4088_v54, %v4086_v3  ;;  %6045 = vmatpush1.bf16.msra.mxu0 %v11369_v33 }
 0x455   : > { %v3903_v14 = vpop.f32.mrb[216].mxu1  ;;  %v4173_v56 = vpack.c.bf16 %v4089_v23, %v4087_v50 }
 0x456   : > { %v3904_v2 = vadd.f32 %v3903_v14, %v13187_v59  ;;  %v3905_v27 = vpop.f32.mrb[217].mxu1 }
 0x457   : > { %v3906_v16 = vadd.f32 %v3905_v27, %v13191_v0  ;;  %v3907_v39 = vpop.f32.mrb[218].mxu1  ;;  %4642 = vmatprep.mubr.bf16.mxu0 %v4173_v56 }
 0x458   : > { %v3908_v30 = vadd.f32 %v3907_v39, %v13187_v59  ;;  %v3909_v60 = vpop.f32.mrb[219].mxu1  ;;  %4643 = vmatmul.mubr.bf16.gmra.mrb[148].mxu0 %v4172_v57  ;;  %v4090_v42 = vmax.f32 %v3904_v2, 0.0 }
 0x459   : > { %v3910_v21 = vadd.f32 %v3909_v60, %v13191_v0  ;;  %v4091_v51 = vmax.f32 %v3906_v16, 0.0 }
 0x45a   : > { %v4092_v4 = vmax.f32 %v3908_v30, 0.0 }
 0x45b   : > { %v4093_v45 = vmax.f32 %v3910_v21, 0.0 }
 0x45c   : > { %v4174_v36 = vpack.c.bf16 %v4092_v4, %v4090_v42 }
 0x45d   : > { %v3913_v9 = vpop.f32.mrb[220].mxu1  ;;  %v4175_v37 = vpack.c.bf16 %v4093_v45, %v4091_v51 }
 0x45e   : > { %v3914_v6 = vadd.f32 %v3913_v9, %v13187_v59  ;;  %v3915_v7 = vpop.f32.mrb[221].mxu1 }
 0x45f   : > { %v3916_v48 = vadd.f32 %v3915_v7, %v13191_v0  ;;  %v3917_v29 = vpop.f32.mrb[222].mxu1  ;;  %4652 = vmatprep.mubr.bf16.mxu0 %v4175_v37 }
 0x460   : > { %v3918_v3 = vadd.f32 %v3917_v29, %v13187_v59  ;;  %v3919_v54 = vpop.f32.mrb[223].mxu1  ;;  %4653 = vmatmul.mubr.bf16.gmra.mrb[152].mxu0 %v4174_v36  ;;  %v4094_v23 = vmax.f32 %v3914_v6, 0.0  ;;  %v11372_v29 = vld [vmem:[%s15838_s3 + $0x580] ss:$8 sps:$4 sm:$0xff]  }
 0x461   : > { %v3920_v50 = vadd.f32 %v3919_v54, %v13191_v0  ;;  %v4095_v14 = vmax.f32 %v3916_v48, 0.0 }
 0x462   : > { %v4096_v57 = vmax.f32 %v3918_v3, 0.0  ;;  %v11374_v3 = vld [vmem:[%s15838_s3 + $0x584] ss:$8 sps:$4 sm:$0xff]  }
 0x463   : > { %v4097_v56 = vmax.f32 %v3920_v50, 0.0  ;;  %6046 = vmatprep.subr.bf16.mxu0 %v11374_v3  ;;  %v10123_v3 = vld [vmem:[%s15839_s4 + $0x3] ss:$8 sm:$0x3] }
 0x464   : > { %v4176_v2 = vpack.c.bf16 %v4096_v57, %v4094_v23  ;;  %6047 = vmatpush1.bf16.msra.mxu0 %v11372_v29 }
 0x465   : > { %v3923_v27 = vpop.f32.mrb[224].mxu1  ;;  %v4177_v16 = vpack.c.bf16 %v4097_v56, %v4095_v14 }
 0x466   : > { %v3924_v39 = vadd.f32 %v3923_v27, %v13187_v59  ;;  %v3925_v30 = vpop.f32.mrb[225].mxu1 }
 0x467   : > { %v3926_v60 = vadd.f32 %v3925_v30, %v13191_v0  ;;  %v3927_v21 = vpop.f32.mrb[226].mxu1  ;;  %4662 = vmatprep.mubr.bf16.mxu0 %v4177_v16 }
 0x468   : > { %v3928_v42 = vadd.f32 %v3927_v21, %v13187_v59  ;;  %v3929_v4 = vpop.f32.mrb[227].mxu1  ;;  %4663 = vmatmul.mubr.bf16.gmra.mrb[156].mxu0 %v4176_v2  ;;  %v4098_v45 = vmax.f32 %v3924_v39, 0.0 }
 0x469   : > { %v3930_v51 = vadd.f32 %v3929_v4, %v13191_v0  ;;  %v4099_v9 = vmax.f32 %v3926_v60, 0.0 }
 0x46a   : > { %v4100_v36 = vmax.f32 %v3928_v42, 0.0 }
 0x46b   : > { %v4101_v37 = vmax.f32 %v3930_v51, 0.0 }
 0x46c   : > { %v4178_v6 = vpack.c.bf16 %v4100_v36, %v4098_v45 }
 0x46d   : > { %v3933_v7 = vpop.f32.mrb[228].mxu1  ;;  %v4179_v33 = vpack.c.bf16 %v4101_v37, %v4099_v9 }
 0x46e   : > { %v3934_v18 = vadd.f32 %v3933_v7, %v13187_v59  ;;  %v3935_v48 = vpop.f32.mrb[229].mxu1 }
 0x46f   : > { %v3936_v54 = vadd.f32 %v3935_v48, %v13191_v0  ;;  %v3937_v50 = vpop.f32.mrb[230].mxu1  ;;  %4672 = vmatprep.mubr.bf16.mxu0 %v4179_v33 }
 0x470   : > { %v3938_v23 = vadd.f32 %v3937_v50, %v13187_v59  ;;  %v3939_v57 = vpop.f32.mrb[231].mxu1  ;;  %4673 = vmatmul.mubr.bf16.gmra.mrb[160].mxu0 %v4178_v6  ;;  %v4102_v56 = vmax.f32 %v3934_v18, 0.0 }
 0x471   : > { %v3940_v14 = vadd.f32 %v3939_v57, %v13191_v0  ;;  %v4103_v27 = vmax.f32 %v3936_v54, 0.0  ;;  %v11377_v57 = vld [vmem:[%s15838_s3 + $0x594] ss:$8 sps:$4 sm:$0xff]  }
 0x472   : > { %v4104_v2 = vmax.f32 %v3938_v23, 0.0  ;;  %v11375_v23 = vld [vmem:[%s15838_s3 + $0x590] ss:$8 sps:$4 sm:$0xff]   ;;  %6048 = vmatprep.subr.bf16.mxu0 %v11377_v57 }
 0x473   : > { %v4105_v16 = vmax.f32 %v3940_v14, 0.0  ;;  %6049 = vmatpush1.bf16.msra.mxu0 %v11375_v23 }
 0x474   : > { %v4180_v39 = vpack.c.bf16 %v4104_v2, %v4102_v56 }
 0x475   : > { %v3943_v30 = vpop.f32.mrb[232].mxu1  ;;  %v4181_v60 = vpack.c.bf16 %v4105_v16, %v4103_v27  ;;  %v13420_v16 = vrot.slane %v10123_v3, %v11998_v12 }
 0x476   : > { %v3944_v21 = vadd.f32 %v3943_v30, %v13187_v59  ;;  %v3945_v42 = vpop.f32.mrb[233].mxu1  ;;  %v13424_v30 = vrot.slane %v10123_v3, %v12004_v15 }
 0x477   : > { %v3946_v4 = vadd.f32 %v3945_v42, %v13191_v0  ;;  %v3947_v51 = vpop.f32.mrb[234].mxu1  ;;  %4682 = vmatprep.mubr.bf16.mxu0 %v4181_v60 }
 0x478   : > { %v3948_v45 = vadd.f32 %v3947_v51, %v13187_v59  ;;  %v3949_v36 = vpop.f32.mrb[235].mxu1  ;;  %4683 = vmatmul.mubr.bf16.gmra.mrb[164].mxu0 %v4180_v39  ;;  %v4106_v37 = vmax.f32 %v3944_v21, 0.0 }
 0x479   : > { %v3950_v9 = vadd.f32 %v3949_v36, %v13191_v0  ;;  %v4107_v7 = vmax.f32 %v3946_v4, 0.0 }
 0x47a   : > { %v4108_v6 = vmax.f32 %v3948_v45, 0.0 }
 0x47b   : > { %v4109_v33 = vmax.f32 %v3950_v9, 0.0 }
 0x47c   : > { %v4182_v18 = vpack.c.bf16 %v4108_v6, %v4106_v37 }
 0x47d   : > { %v3953_v48 = vpop.f32.mrb[236].mxu1  ;;  %v4183_v29 = vpack.c.bf16 %v4109_v33, %v4107_v7 }
 0x47e   : > { %v3954_v54 = vadd.f32 %v3953_v48, %v13187_v59  ;;  %v3955_v50 = vpop.f32.mrb[237].mxu1 }
 0x47f   : > { %v3956_v14 = vadd.f32 %v3955_v50, %v13191_v0  ;;  %v3957_v56 = vpop.f32.mrb[238].mxu1  ;;  %4692 = vmatprep.mubr.bf16.mxu0 %v4183_v29 }
 0x480   : > { %v3958_v2 = vadd.f32 %v3957_v56, %v13187_v59  ;;  %v3959_v27 = vpop.f32.mrb[239].mxu1  ;;  %4693 = vmatmul.mubr.bf16.gmra.mrb[168].mxu0 %v4182_v18  ;;  %v4110_v60 = vmax.f32 %v3954_v54, 0.0 }
 0x481   : > { %v3960_v39 = vadd.f32 %v3959_v27, %v13191_v0  ;;  %v4111_v42 = vmax.f32 %v3956_v14, 0.0 }
 0x482   : > { %v4112_v21 = vmax.f32 %v3958_v2, 0.0 }
 0x483   : > { %v4113_v4 = vmax.f32 %v3960_v39, 0.0  ;;  %v4434_v51 = vpop.f32.mrb[64].mxu0 }
 0x484   : > { %v4184_v45 = vpack.c.bf16 %v4112_v21, %v4110_v60  ;;  %v4435_v36 = vadd.f32 %v4434_v51, %v13420_v16  ;;  %v4436_v9 = vpop.f32.mrb[65].mxu0 }
 0x485   : > { %v4437_v37 = vadd.f32 %v4436_v9, %v13424_v30  ;;  %v3963_v6 = vpop.f32.mrb[240].mxu1  ;;  %v4438_v7 = vpop.f32.mrb[66].mxu0  ;;  %v4185_v33 = vpack.c.bf16 %v4113_v4, %v4111_v42 }
 0x486   : > { %v3964_v18 = vadd.f32 %v3963_v6, %v13187_v59  ;;  %v4439_v48 = vadd.f32 %v4438_v7, %v13420_v16  ;;  %v3965_v29 = vpop.f32.mrb[241].mxu1  ;;  %v4440_v3 = vpop.f32.mrb[67].mxu0  ;;  %v4753_v57 = vmax.f32 %v4435_v36, 0.0 }
 0x487   : > { %v3966_v54 = vadd.f32 %v3965_v29, %v13191_v0  ;;  %v4441_v50 = vadd.f32 %v4440_v3, %v13424_v30  ;;  %v3967_v23 = vpop.f32.mrb[242].mxu1  ;;  %4702 = vmatprep.mubr.bf16.mxu0 %v4185_v33  ;;  %v4754_v27 = vmax.f32 %v4437_v37, 0.0 }
 0x488   : > { %v4755_v14 = vmax.f32 %v4439_v48, 0.0  ;;  %v3968_v56 = vadd.f32 %v3967_v23, %v13187_v59  ;;  %v3969_v2 = vpop.f32.mrb[243].mxu1  ;;  %4703 = vmatmul.mubr.bf16.gmra.mrb[172].mxu0 %v4184_v45  ;;  %v4114_v21 = vmax.f32 %v3964_v18, 0.0 }
 0x489   : > { %v4756_v39 = vmax.f32 %v4441_v50, 0.0  ;;  %v3970_v60 = vadd.f32 %v3969_v2, %v13191_v0  ;;  %v4115_v51 = vmax.f32 %v3966_v54, 0.0  ;;  %v11378_v54 = vld [vmem:[%s15838_s3 + $0x5a0] ss:$8 sps:$4 sm:$0xff]  }
 0x48a   : > { %v4881_v42 = vpack.c.bf16 %v4755_v14, %v4753_v57  ;;  %v4116_v4 = vmax.f32 %v3968_v56, 0.0 }
 0x48b   : > { %v4117_v9 = vmax.f32 %v3970_v60, 0.0  ;;  %v4444_v6 = vpop.f32.mrb[68].mxu0  ;;  %v4882_v7 = vpack.c.bf16 %v4756_v39, %v4754_v27  ;;  %v11380_v27 = vld [vmem:[%s15838_s3 + $0x5a4] ss:$8 sps:$4 sm:$0xff]  }
 0x48c   : > { %v4186_v29 = vpack.c.bf16 %v4116_v4, %v4114_v21  ;;  %v4445_v33 = vadd.f32 %v4444_v6, %v13420_v16  ;;  %v4446_v36 = vpop.f32.mrb[69].mxu0  ;;  %6050 = vmatprep.subr.bf16.mxu0 %v11380_v27 }
 0x48d   : > { %v4447_v48 = vadd.f32 %v4446_v36, %v13424_v30  ;;  %v3973_v3 = vpop.f32.mrb[244].mxu1  ;;  %v4448_v23 = vpop.f32.mrb[70].mxu0  ;;  %5170 = vmatprep.mubr.bf16.mxu1 %v4882_v7  ;;  %v4187_v45 = vpack.c.bf16 %v4117_v9, %v4115_v51  ;;  %6051 = vmatpush1.bf16.msra.mxu0 %v11378_v54 }
 0x48e   : > { %v3974_v37 = vadd.f32 %v3973_v3, %v13187_v59  ;;  %v4449_v18 = vadd.f32 %v4448_v23, %v13420_v16  ;;  %v3975_v50 = vpop.f32.mrb[245].mxu1  ;;  %v4450_v57 = vpop.f32.mrb[71].mxu0  ;;  %5171 = vmatmul.mubr.bf16.vlgmr.msra.gmra.mrb[0].mxu1 %v4881_v42  ;;  %v4757_v39 = vmax.f32 %v4445_v33, 0.0 }
 0x48f   : > { %v3976_v14 = vadd.f32 %v3975_v50, %v13191_v0  ;;  %v4451_v56 = vadd.f32 %v4450_v57, %v13424_v30  ;;  %v3977_v2 = vpop.f32.mrb[246].mxu1  ;;  %4712 = vmatprep.mubr.bf16.mxu0 %v4187_v45  ;;  %v4758_v42 = vmax.f32 %v4447_v48, 0.0 }
 0x490   : > { %v4759_v60 = vmax.f32 %v4449_v18, 0.0  ;;  %v3978_v21 = vadd.f32 %v3977_v2, %v13187_v59  ;;  %v3979_v4 = vpop.f32.mrb[247].mxu1  ;;  %4713 = vmatmul.mubr.bf16.gmra.mrb[176].mxu0 %v4186_v29  ;;  %v4118_v6 = vmax.f32 %v3974_v37, 0.0 }
 0x491   : > { %v4760_v51 = vmax.f32 %v4451_v56, 0.0  ;;  %v3980_v9 = vadd.f32 %v3979_v4, %v13191_v0  ;;  %v4119_v3 = vmax.f32 %v3976_v14, 0.0 }
 0x492   : > { %v4120_v7 = vmax.f32 %v3978_v21, 0.0  ;;  %v4883_v36 = vpack.c.bf16 %v4759_v60, %v4757_v39 }
 0x493   : > { %v4121_v23 = vmax.f32 %v3980_v9, 0.0  ;;  %v4454_v45 = vpop.f32.mrb[72].mxu0  ;;  %v4884_v50 = vpack.c.bf16 %v4760_v51, %v4758_v42 }
 0x494   : > { %v4188_v57 = vpack.c.bf16 %v4120_v7, %v4118_v6  ;;  %v4455_v33 = vadd.f32 %v4454_v45, %v13420_v16  ;;  %v4456_v18 = vpop.f32.mrb[73].mxu0 }
 0x495   : > { %v4457_v2 = vadd.f32 %v4456_v18, %v13424_v30  ;;  %v3983_v29 = vpop.f32.mrb[248].mxu1  ;;  %v4458_v48 = vpop.f32.mrb[74].mxu0  ;;  %5180 = vmatprep.mubr.bf16.mxu1 %v4884_v50  ;;  %v4189_v56 = vpack.c.bf16 %v4121_v23, %v4119_v3 }
 0x496   : > { %v3984_v27 = vadd.f32 %v3983_v29, %v13187_v59  ;;  %v4459_v37 = vadd.f32 %v4458_v48, %v13420_v16  ;;  %v3985_v39 = vpop.f32.mrb[249].mxu1  ;;  %v4460_v54 = vpop.f32.mrb[75].mxu0  ;;  %5181 = vmatmul.mubr.bf16.gmra.mrb[4].mxu1 %v4883_v36  ;;  %v4761_v4 = vmax.f32 %v4455_v33, 0.0 }
 0x497   : > { %v3986_v14 = vadd.f32 %v3985_v39, %v13191_v0  ;;  %v4461_v60 = vadd.f32 %v4460_v54, %v13424_v30  ;;  %v3987_v21 = vpop.f32.mrb[250].mxu1  ;;  %4722 = vmatprep.mubr.bf16.mxu0 %v4189_v56  ;;  %v4762_v6 = vmax.f32 %v4457_v2, 0.0 }
 0x498   : > { %v4763_v42 = vmax.f32 %v4459_v37, 0.0  ;;  %v3988_v51 = vadd.f32 %v3987_v21, %v13187_v59  ;;  %v3989_v9 = vpop.f32.mrb[251].mxu1  ;;  %4723 = vmatmul.mubr.bf16.gmra.mrb[180].mxu0 %v4188_v57  ;;  %v4122_v23 = vmax.f32 %v3984_v27, 0.0 }
 0x499   : > { %v4764_v7 = vmax.f32 %v4461_v60, 0.0  ;;  %v3990_v3 = vadd.f32 %v3989_v9, %v13191_v0  ;;  %v4123_v36 = vmax.f32 %v3986_v14, 0.0  ;;  %v11381_v14 = vld [vmem:[%s15838_s3 + $0x5b0] ss:$8 sps:$4 sm:$0xff]  }
 0x49a   : > { %v4124_v45 = vmax.f32 %v3988_v51, 0.0  ;;  %v4885_v50 = vpack.c.bf16 %v4763_v42, %v4761_v4 }
 0x49b   : > { %v4125_v18 = vmax.f32 %v3990_v3, 0.0  ;;  %v4464_v29 = vpop.f32.mrb[76].mxu0  ;;  %v4886_v48 = vpack.c.bf16 %v4764_v7, %v4762_v6  ;;  %v11383_v6 = vld [vmem:[%s15838_s3 + $0x5b4] ss:$8 sps:$4 sm:$0xff]  }
 0x49c   : > { %v4190_v39 = vpack.c.bf16 %v4124_v45, %v4122_v23  ;;  %v4465_v56 = vadd.f32 %v4464_v29, %v13420_v16  ;;  %v4466_v33 = vpop.f32.mrb[77].mxu0  ;;  %6052 = vmatprep.subr.bf16.mxu0 %v11383_v6 }
 0x49d   : > { %v4467_v37 = vadd.f32 %v4466_v33, %v13424_v30  ;;  %v3993_v54 = vpop.f32.mrb[252].mxu1  ;;  %v4468_v21 = vpop.f32.mrb[78].mxu0  ;;  %5190 = vmatprep.mubr.bf16.mxu1 %v4886_v48  ;;  %v4191_v57 = vpack.c.bf16 %v4125_v18, %v4123_v36  ;;  %6053 = vmatpush1.bf16.msra.mxu0 %v11381_v14 }
 0x49e   : > { %v3994_v2 = vadd.f32 %v3993_v54, %v13187_v59  ;;  %v4469_v27 = vadd.f32 %v4468_v21, %v13420_v16  ;;  %v3995_v60 = vpop.f32.mrb[253].mxu1  ;;  %v4470_v4 = vpop.f32.mrb[79].mxu0  ;;  %5191 = vmatmul.mubr.bf16.gmra.mrb[8].mxu1 %v4885_v50  ;;  %v4765_v7 = vmax.f32 %v4465_v56, 0.0 }
 0x49f   : > { %v3996_v42 = vadd.f32 %v3995_v60, %v13191_v0  ;;  %v4471_v51 = vadd.f32 %v4470_v4, %v13424_v30  ;;  %v3997_v9 = vpop.f32.mrb[254].mxu1  ;;  %4732 = vmatprep.mubr.bf16.mxu0 %v4191_v57  ;;  %v4766_v50 = vmax.f32 %v4467_v37, 0.0 }
 0x4a0   : > { %v4767_v3 = vmax.f32 %v4469_v27, 0.0  ;;  %v3998_v23 = vadd.f32 %v3997_v9, %v13187_v59  ;;  %v3999_v45 = vpop.f32.mrb[255].mxu1  ;;  %4733 = vmatmul.mubr.bf16.gmra.mrb[184].mxu0 %v4190_v39  ;;  %v4126_v29 = vmax.f32 %v3994_v2, 0.0 }
 0x4a1   : > { %v4768_v36 = vmax.f32 %v4471_v51, 0.0  ;;  %v4000_v18 = vadd.f32 %v3999_v45, %v13191_v0  ;;  %v4127_v54 = vmax.f32 %v3996_v42, 0.0 }
 0x4a2   : > { %v4128_v48 = vmax.f32 %v3998_v23, 0.0  ;;  %v4887_v33 = vpack.c.bf16 %v4767_v3, %v4765_v7 }
 0x4a3   : > { %v4129_v21 = vmax.f32 %v4000_v18, 0.0  ;;  %v4474_v57 = vpop.f32.mrb[80].mxu0  ;;  %v4888_v60 = vpack.c.bf16 %v4768_v36, %v4766_v50 }
 0x4a4   : > { %v4192_v4 = vpack.c.bf16 %v4128_v48, %v4126_v29  ;;  %v4475_v56 = vadd.f32 %v4474_v57, %v13420_v16  ;;  %v4476_v27 = vpop.f32.mrb[81].mxu0 }
 0x4a5   : > { %v4477_v59 = vadd.f32 %v4476_v27, %v13424_v30  ;;  %v4478_v39 = vpop.f32.mrb[82].mxu0  ;;  %5200 = vmatprep.mubr.bf16.mxu1 %v4888_v60  ;;  %v4193_v37 = vpack.c.bf16 %v4129_v21, %v4127_v54  ;;  %v11386_v54 = vld [vmem:[%s15838_s3 + $0x5c4] ss:$8 sps:$4 sm:$0xff]  }
 0x4a6   : > { %v4479_v0 = vadd.f32 %v4478_v39, %v13420_v16  ;;  %v4480_v51 = vpop.f32.mrb[83].mxu0  ;;  %5201 = vmatmul.mubr.bf16.gmra.mrb[12].mxu1 %v4887_v33  ;;  %v4769_v14 = vmax.f32 %v4475_v56, 0.0  ;;  %v11384_v33 = vld [vmem:[%s15838_s3 + $0x5c0] ss:$8 sps:$4 sm:$0xff]   ;;  %6054 = vmatprep.subr.bf16.mxu0 %v11386_v54 }
 0x4a7   : > { %v4481_v2 = vadd.f32 %v4480_v51, %v13424_v30  ;;  %4742 = vmatprep.mubr.bf16.mxu0 %v4193_v37  ;;  %v4770_v9 = vmax.f32 %v4477_v59, 0.0  ;;  %6055 = vmatpush1.bf16.msra.mxu0 %v11384_v33 }
 0x4a8   : > { %v4771_v42 = vmax.f32 %v4479_v0, 0.0  ;;  %4743 = vmatmul.mubr.bf16.gmra.mrb[188].mxu0 %v4192_v4 }
 0x4a9   : > { %v4772_v6 = vmax.f32 %v4481_v2, 0.0 }
 0x4aa   : > { %v4889_v7 = vpack.c.bf16 %v4771_v42, %v4769_v14 }
 0x4ab   : > { %v4484_v3 = vpop.f32.mrb[84].mxu0  ;;  %v4890_v23 = vpack.c.bf16 %v4772_v6, %v4770_v9 }
 0x4ac   : > { %v4485_v45 = vadd.f32 %v4484_v3, %v13420_v16  ;;  %v4486_v50 = vpop.f32.mrb[85].mxu0 }
 0x4ad   : > { %v4487_v36 = vadd.f32 %v4486_v50, %v13424_v30  ;;  %v4488_v18 = vpop.f32.mrb[86].mxu0  ;;  %5210 = vmatprep.mubr.bf16.mxu1 %v4890_v23 }
 0x4ae   : > { %v4489_v29 = vadd.f32 %v4488_v18, %v13420_v16  ;;  %v4490_v48 = vpop.f32.mrb[87].mxu0  ;;  %5211 = vmatmul.mubr.bf16.gmra.mrb[16].mxu1 %v4889_v7  ;;  %v4773_v57 = vmax.f32 %v4485_v45, 0.0 }
 0x4af   : > { %v4491_v21 = vadd.f32 %v4490_v48, %v13424_v30  ;;  %v4774_v4 = vmax.f32 %v4487_v36, 0.0 }
 0x4b0   : > { %v4775_v60 = vmax.f32 %v4489_v29, 0.0 }
 0x4b1   : > { %v4776_v56 = vmax.f32 %v4491_v21, 0.0 }
 0x4b2   : > { %v4891_v27 = vpack.c.bf16 %v4775_v60, %v4773_v57  ;;  %v11387_v57 = vld [vmem:[%s15838_s3 + $0x5d0] ss:$8 sps:$4 sm:$0xff]   ;;  %v11389_v60 = vld [vmem:[%s15838_s3 + $0x5d4] ss:$8 sps:$4 sm:$0xff]  }
 0x4b3   : > { %v4494_v59 = vpop.f32.mrb[88].mxu0  ;;  %v4892_v39 = vpack.c.bf16 %v4776_v56, %v4774_v4  ;;  %6056 = vmatprep.subr.bf16.mxu0 %v11389_v60 }
 0x4b4   : > { %v4495_v37 = vadd.f32 %v4494_v59, %v13420_v16  ;;  %v4496_v0 = vpop.f32.mrb[89].mxu0  ;;  %6057 = vmatpush1.bf16.msra.mxu0 %v11387_v57 }
 0x4b5   : > { %v4497_v51 = vadd.f32 %v4496_v0, %v13424_v30  ;;  %v4498_v2 = vpop.f32.mrb[90].mxu0  ;;  %5220 = vmatprep.mubr.bf16.mxu1 %v4892_v39 }
 0x4b6   : > { %v4499_v14 = vadd.f32 %v4498_v2, %v13420_v16  ;;  %v4500_v42 = vpop.f32.mrb[91].mxu0  ;;  %5221 = vmatmul.mubr.bf16.gmra.mrb[20].mxu1 %v4891_v27  ;;  %v4777_v6 = vmax.f32 %v4495_v37, 0.0 }
 0x4b7   : > { %v4501_v9 = vadd.f32 %v4500_v42, %v13424_v30  ;;  %v4778_v3 = vmax.f32 %v4497_v51, 0.0 }
 0x4b8   : > { %v4779_v7 = vmax.f32 %v4499_v14, 0.0 }
 0x4b9   : > { %v4780_v23 = vmax.f32 %v4501_v9, 0.0 }
 0x4ba   : > { %v4893_v45 = vpack.c.bf16 %v4779_v7, %v4777_v6 }
 0x4bb   : > { %v4504_v50 = vpop.f32.mrb[92].mxu0  ;;  %v4894_v36 = vpack.c.bf16 %v4780_v23, %v4778_v3 }
 0x4bc   : > { %v4505_v18 = vadd.f32 %v4504_v50, %v13420_v16  ;;  %v4506_v29 = vpop.f32.mrb[93].mxu0 }
 0x4bd   : > { %v4507_v48 = vadd.f32 %v4506_v29, %v13424_v30  ;;  %v4508_v33 = vpop.f32.mrb[94].mxu0  ;;  %5230 = vmatprep.mubr.bf16.mxu1 %v4894_v36  ;;  %v11392_v29 = vld [vmem:[%s15838_s3 + $0x604] ss:$8 sps:$4 sm:$0xff]  }
 0x4be   : > { %v4509_v54 = vadd.f32 %v4508_v33, %v13420_v16  ;;  %v4510_v21 = vpop.f32.mrb[95].mxu0  ;;  %5231 = vmatmul.mubr.bf16.gmra.mrb[24].mxu1 %v4893_v45  ;;  %v4781_v56 = vmax.f32 %v4505_v18, 0.0  ;;  %v11390_v18 = vld [vmem:[%s15838_s3 + $0x600] ss:$8 sps:$4 sm:$0xff]   ;;  %6781 = vmatprep.subr.bf16.mxu1 %v11392_v29 }
 0x4bf   : > { %v4511_v4 = vadd.f32 %v4510_v21, %v13424_v30  ;;  %v4782_v59 = vmax.f32 %v4507_v48, 0.0  ;;  %6782 = vmatpush1.bf16.msra.mxu1 %v11390_v18 }
 0x4c0   : > { %v4783_v27 = vmax.f32 %v4509_v54, 0.0 }
 0x4c1   : > { %v4784_v39 = vmax.f32 %v4511_v4, 0.0 }
 0x4c2   : > { %v4895_v37 = vpack.c.bf16 %v4783_v27, %v4781_v56 }
 0x4c3   : > { %v4514_v0 = vpop.f32.mrb[96].mxu0  ;;  %v4896_v51 = vpack.c.bf16 %v4784_v39, %v4782_v59  ;;  %v11393_v59 = vld [vmem:[%s15838_s3 + $0x5e0] ss:$8 sps:$4 sm:$0xff]   ;;  %v11395_v39 = vld [vmem:[%s15838_s3 + $0x5e4] ss:$8 sps:$4 sm:$0xff]  }
 0x4c4   : > { %v4515_v2 = vadd.f32 %v4514_v0, %v13420_v16  ;;  %v4516_v14 = vpop.f32.mrb[97].mxu0  ;;  %6058 = vmatprep.subr.bf16.mxu0 %v11395_v39 }
 0x4c5   : > { %v4517_v42 = vadd.f32 %v4516_v14, %v13424_v30  ;;  %v4518_v9 = vpop.f32.mrb[98].mxu0  ;;  %5240 = vmatprep.mubr.bf16.mxu1 %v4896_v51  ;;  %6059 = vmatpush1.bf16.msra.mxu0 %v11393_v59 }
 0x4c6   : > { %v4519_v6 = vadd.f32 %v4518_v9, %v13420_v16  ;;  %v4520_v7 = vpop.f32.mrb[99].mxu0  ;;  %5241 = vmatmul.mubr.bf16.gmra.mrb[28].mxu1 %v4895_v37  ;;  %v4785_v23 = vmax.f32 %v4515_v2, 0.0 }
 0x4c7   : > { %v4521_v3 = vadd.f32 %v4520_v7, %v13424_v30  ;;  %v4786_v50 = vmax.f32 %v4517_v42, 0.0 }
 0x4c8   : > { %v4787_v45 = vmax.f32 %v4519_v6, 0.0 }
 0x4c9   : > { %v4788_v36 = vmax.f32 %v4521_v3, 0.0 }
 0x4ca   : > { %v4897_v48 = vpack.c.bf16 %v4787_v45, %v4785_v23 }
 0x4cb   : > { %v4524_v33 = vpop.f32.mrb[100].mxu0  ;;  %v4898_v54 = vpack.c.bf16 %v4788_v36, %v4786_v50 }
 0x4cc   : > { %v4525_v21 = vadd.f32 %v4524_v33, %v13420_v16  ;;  %v4526_v57 = vpop.f32.mrb[101].mxu0 }
 0x4cd   : > { %v4527_v60 = vadd.f32 %v4526_v57, %v13424_v30  ;;  %v4528_v4 = vpop.f32.mrb[102].mxu0  ;;  %5250 = vmatprep.mubr.bf16.mxu1 %v4898_v54  ;;  %v11398_v57 = vld [vmem:[%s15838_s3 + $0x614] ss:$8 sps:$4 sm:$0xff]  }
 0x4ce   : > { %v4529_v56 = vadd.f32 %v4528_v4, %v13420_v16  ;;  %v4530_v27 = vpop.f32.mrb[103].mxu0  ;;  %5251 = vmatmul.mubr.bf16.gmra.mrb[32].mxu1 %v4897_v48  ;;  %v4789_v0 = vmax.f32 %v4525_v21, 0.0  ;;  %v11396_v21 = vld [vmem:[%s15838_s3 + $0x610] ss:$8 sps:$4 sm:$0xff]   ;;  %6783 = vmatprep.subr.bf16.mxu1 %v11398_v57 }
 0x4cf   : > { %v4531_v37 = vadd.f32 %v4530_v27, %v13424_v30  ;;  %v4790_v2 = vmax.f32 %v4527_v60, 0.0  ;;  %6784 = vmatpush1.bf16.msra.mxu1 %v11396_v21 }
 0x4d0   : > { %v4791_v51 = vmax.f32 %v4529_v56, 0.0 }
 0x4d1   : > { %v4792_v14 = vmax.f32 %v4531_v37, 0.0 }
 0x4d2   : > { %v4899_v42 = vpack.c.bf16 %v4791_v51, %v4789_v0 }
 0x4d3   : > { %v4534_v9 = vpop.f32.mrb[104].mxu0  ;;  %v4900_v6 = vpack.c.bf16 %v4792_v14, %v4790_v2  ;;  %v11399_v2 = vld [vmem:[%s15838_s3 + $0x5f0] ss:$8 sps:$4 sm:$0xff]   ;;  %v11401_v14 = vld [vmem:[%s15838_s3 + $0x5f4] ss:$8 sps:$4 sm:$0xff]  }
 0x4d4   : > { %v4535_v7 = vadd.f32 %v4534_v9, %v13420_v16  ;;  %v4536_v3 = vpop.f32.mrb[105].mxu0  ;;  %6060 = vmatprep.subr.bf16.mxu0 %v11401_v14 }
 0x4d5   : > { %v4537_v23 = vadd.f32 %v4536_v3, %v13424_v30  ;;  %v4538_v45 = vpop.f32.mrb[106].mxu0  ;;  %5260 = vmatprep.mubr.bf16.mxu1 %v4900_v6  ;;  %6061 = vmatpush1.bf16.msra.mxu0 %v11399_v2  ;;  %v11404_v2 = vld [vmem:[%s15838_s3 + $0x624] ss:$8 sps:$4 sm:$0xff]  }
 0x4d6   : > { %v4539_v50 = vadd.f32 %v4538_v45, %v13420_v16  ;;  %v4540_v36 = vpop.f32.mrb[107].mxu0  ;;  %5261 = vmatmul.mubr.bf16.gmra.mrb[36].mxu1 %v4899_v42  ;;  %v4793_v29 = vmax.f32 %v4535_v7, 0.0  ;;  %6785 = vmatprep.subr.bf16.mxu1 %v11404_v2 }
 0x4d7   : > { %v4541_v18 = vadd.f32 %v4540_v36, %v13424_v30  ;;  %v4794_v33 = vmax.f32 %v4537_v23, 0.0 }
 0x4d8   : > { %v4795_v48 = vmax.f32 %v4539_v50, 0.0 }
 0x4d9   : > { %v4796_v54 = vmax.f32 %v4541_v18, 0.0 }
 0x4da   : > { %v4901_v60 = vpack.c.bf16 %v4795_v48, %v4793_v29 }
 0x4db   : > { %v4544_v4 = vpop.f32.mrb[108].mxu0  ;;  %v4902_v56 = vpack.c.bf16 %v4796_v54, %v4794_v33 }
 0x4dc   : > { %v4545_v27 = vadd.f32 %v4544_v4, %v13420_v16  ;;  %v4546_v59 = vpop.f32.mrb[109].mxu0 }
 0x4dd   : > { %v4547_v39 = vadd.f32 %v4546_v59, %v13424_v30  ;;  %v4548_v37 = vpop.f32.mrb[110].mxu0  ;;  %5270 = vmatprep.mubr.bf16.mxu1 %v4902_v56 }
 0x4de   : > { %v4549_v0 = vadd.f32 %v4548_v37, %v13420_v16  ;;  %v4550_v51 = vpop.f32.mrb[111].mxu0  ;;  %5271 = vmatmul.mubr.bf16.gmra.mrb[40].mxu1 %v4901_v60  ;;  %v4797_v9 = vmax.f32 %v4545_v27, 0.0 }
 0x4df   : > { %v4551_v42 = vadd.f32 %v4550_v51, %v13424_v30  ;;  %v4798_v7 = vmax.f32 %v4547_v39, 0.0  ;;  %v11402_v51 = vld [vmem:[%s15838_s3 + $0x620] ss:$8 sps:$4 sm:$0xff]  }
 0x4e0   : > { %v4799_v6 = vmax.f32 %v4549_v0, 0.0  ;;  %6786 = vmatpush1.bf16.msra.mxu1 %v11402_v51 }
 0x4e1   : > { %v4800_v3 = vmax.f32 %v4551_v42, 0.0 }
 0x4e2   : > { %v4903_v23 = vpack.c.bf16 %v4799_v6, %v4797_v9 }
 0x4e3   : > { %v4554_v45 = vpop.f32.mrb[112].mxu0  ;;  %v4904_v50 = vpack.c.bf16 %v4800_v3, %v4798_v7 }
 0x4e4   : > { %v4555_v36 = vadd.f32 %v4554_v45, %v13420_v16  ;;  %v4556_v18 = vpop.f32.mrb[113].mxu0 }
 0x4e5   : > { %v4557_v29 = vadd.f32 %v4556_v18, %v13424_v30  ;;  %v4558_v48 = vpop.f32.mrb[114].mxu0  ;;  %5280 = vmatprep.mubr.bf16.mxu1 %v4904_v50 }
 0x4e6   : > { %v4559_v33 = vadd.f32 %v4558_v48, %v13420_v16  ;;  %v4560_v54 = vpop.f32.mrb[115].mxu0  ;;  %5281 = vmatmul.mubr.bf16.gmra.mrb[44].mxu1 %v4903_v23  ;;  %v4801_v57 = vmax.f32 %v4555_v36, 0.0 }
 0x4e7   : > { %v4561_v21 = vadd.f32 %v4560_v54, %v13424_v30  ;;  %v4802_v4 = vmax.f32 %v4557_v29, 0.0 }
 0x4e8   : > { %v4803_v60 = vmax.f32 %v4559_v33, 0.0 }
 0x4e9   : > { %v4804_v56 = vmax.f32 %v4561_v21, 0.0 }
 0x4ea   : > { %v4905_v27 = vpack.c.bf16 %v4803_v60, %v4801_v57 }
 0x4eb   : > { %v4564_v59 = vpop.f32.mrb[116].mxu0  ;;  %v4906_v39 = vpack.c.bf16 %v4804_v56, %v4802_v4 }
 0x4ec   : > { %v4565_v37 = vadd.f32 %v4564_v59, %v13420_v16  ;;  %v4566_v0 = vpop.f32.mrb[117].mxu0 }
 0x4ed   : > { %v4567_v14 = vadd.f32 %v4566_v0, %v13424_v30  ;;  %v4568_v42 = vpop.f32.mrb[118].mxu0  ;;  %5290 = vmatprep.mubr.bf16.mxu1 %v4906_v39 }
 0x4ee   : > { %v4569_v9 = vadd.f32 %v4568_v42, %v13420_v16  ;;  %v4570_v6 = vpop.f32.mrb[119].mxu0  ;;  %5291 = vmatmul.mubr.bf16.gmra.mrb[48].mxu1 %v4905_v27  ;;  %v4805_v3 = vmax.f32 %v4565_v37, 0.0  ;;  %v11405_v42 = vld [vmem:[%s15838_s3 + $0x630] ss:$8 sps:$4 sm:$0xff]  }
 0x4ef   : > { %v4571_v7 = vadd.f32 %v4570_v6, %v13424_v30  ;;  %v4806_v45 = vmax.f32 %v4567_v14, 0.0 }
 0x4f0   : > { %v4807_v23 = vmax.f32 %v4569_v9, 0.0  ;;  %v11407_v9 = vld [vmem:[%s15838_s3 + $0x634] ss:$8 sps:$4 sm:$0xff]  }
 0x4f1   : > { %v4808_v50 = vmax.f32 %v4571_v7, 0.0  ;;  %6787 = vmatprep.subr.bf16.mxu1 %v11407_v9 }
 0x4f2   : > { %v4907_v36 = vpack.c.bf16 %v4807_v23, %v4805_v3  ;;  %6788 = vmatpush1.bf16.msra.mxu1 %v11405_v42 }
 0x4f3   : > { %v4574_v18 = vpop.f32.mrb[120].mxu0  ;;  %v4908_v29 = vpack.c.bf16 %v4808_v50, %v4806_v45 }
 0x4f4   : > { %v4575_v48 = vadd.f32 %v4574_v18, %v13420_v16  ;;  %v4576_v33 = vpop.f32.mrb[121].mxu0 }
 0x4f5   : > { %v4577_v54 = vadd.f32 %v4576_v33, %v13424_v30  ;;  %v4578_v21 = vpop.f32.mrb[122].mxu0  ;;  %5300 = vmatprep.mubr.bf16.mxu1 %v4908_v29 }
 0x4f6   : > { %v4579_v57 = vadd.f32 %v4578_v21, %v13420_v16  ;;  %v4580_v60 = vpop.f32.mrb[123].mxu0  ;;  %5301 = vmatmul.mubr.bf16.gmra.mrb[52].mxu1 %v4907_v36  ;;  %v4809_v56 = vmax.f32 %v4575_v48, 0.0 }
 0x4f7   : > { %v4581_v4 = vadd.f32 %v4580_v60, %v13424_v30  ;;  %v4810_v59 = vmax.f32 %v4577_v54, 0.0 }
 0x4f8   : > { %v4811_v27 = vmax.f32 %v4579_v57, 0.0 }
 0x4f9   : > { %v4812_v39 = vmax.f32 %v4581_v4, 0.0 }
 0x4fa   : > { %v4909_v37 = vpack.c.bf16 %v4811_v27, %v4809_v56 }
 0x4fb   : > { %v4584_v0 = vpop.f32.mrb[124].mxu0  ;;  %v4910_v51 = vpack.c.bf16 %v4812_v39, %v4810_v59 }
 0x4fc   : > { %v4585_v2 = vadd.f32 %v4584_v0, %v13420_v16  ;;  %v4586_v14 = vpop.f32.mrb[125].mxu0 }
 0x4fd   : > { %v4587_v6 = vadd.f32 %v4586_v14, %v13424_v30  ;;  %v4588_v7 = vpop.f32.mrb[126].mxu0  ;;  %5310 = vmatprep.mubr.bf16.mxu1 %v4910_v51 }
 0x4fe   : > { %v4589_v3 = vadd.f32 %v4588_v7, %v13420_v16  ;;  %v4590_v23 = vpop.f32.mrb[127].mxu0  ;;  %5311 = vmatmul.mubr.bf16.gmra.mrb[56].mxu1 %v4909_v37  ;;  %v4813_v50 = vmax.f32 %v4585_v2, 0.0  ;;  %v11408_v7 = vld [vmem:[%s15838_s3 + $0x640] ss:$8 sps:$4 sm:$0xff]  }
 0x4ff   : > { %v4591_v45 = vadd.f32 %v4590_v23, %v13424_v30  ;;  %v4814_v18 = vmax.f32 %v4587_v6, 0.0 }
 0x500   : > { %v4815_v36 = vmax.f32 %v4589_v3, 0.0  ;;  %v11410_v3 = vld [vmem:[%s15838_s3 + $0x644] ss:$8 sps:$4 sm:$0xff]  }
 0x501   : > { %v4816_v29 = vmax.f32 %v4591_v45, 0.0  ;;  %6789 = vmatprep.subr.bf16.mxu1 %v11410_v3 }
 0x502   : > { %v4911_v48 = vpack.c.bf16 %v4815_v36, %v4813_v50  ;;  %6790 = vmatpush1.bf16.msra.mxu1 %v11408_v7 }
 0x503   : > { %v4594_v33 = vpop.f32.mrb[128].mxu0  ;;  %v4912_v54 = vpack.c.bf16 %v4816_v29, %v4814_v18 }
 0x504   : > { %v4595_v21 = vadd.f32 %v4594_v33, %v13420_v16  ;;  %v4596_v57 = vpop.f32.mrb[129].mxu0 }
 0x505   : > { %v4597_v60 = vadd.f32 %v4596_v57, %v13424_v30  ;;  %v4598_v4 = vpop.f32.mrb[130].mxu0  ;;  %5320 = vmatprep.mubr.bf16.mxu1 %v4912_v54 }
 0x506   : > { %v4599_v56 = vadd.f32 %v4598_v4, %v13420_v16  ;;  %v4600_v27 = vpop.f32.mrb[131].mxu0  ;;  %5321 = vmatmul.mubr.bf16.gmra.mrb[60].mxu1 %v4911_v48  ;;  %v4817_v39 = vmax.f32 %v4595_v21, 0.0 }
 0x507   : > { %v4601_v59 = vadd.f32 %v4600_v27, %v13424_v30  ;;  %v4818_v0 = vmax.f32 %v4597_v60, 0.0 }
 0x508   : > { %v4819_v37 = vmax.f32 %v4599_v56, 0.0 }
 0x509   : > { %v4820_v51 = vmax.f32 %v4601_v59, 0.0 }
 0x50a   : > { %v4913_v2 = vpack.c.bf16 %v4819_v37, %v4817_v39 }
 0x50b   : > { %v4604_v14 = vpop.f32.mrb[132].mxu0  ;;  %v4914_v42 = vpack.c.bf16 %v4820_v51, %v4818_v0 }
 0x50c   : > { %v4605_v9 = vadd.f32 %v4604_v14, %v13420_v16  ;;  %v4606_v6 = vpop.f32.mrb[133].mxu0 }
 0x50d   : > { %v4607_v23 = vadd.f32 %v4606_v6, %v13424_v30  ;;  %v4608_v45 = vpop.f32.mrb[134].mxu0  ;;  %5330 = vmatprep.mubr.bf16.mxu1 %v4914_v42 }
 0x50e   : > { %v4609_v50 = vadd.f32 %v4608_v45, %v13420_v16  ;;  %v4610_v36 = vpop.f32.mrb[135].mxu0  ;;  %5331 = vmatmul.mubr.bf16.gmra.mrb[64].mxu1 %v4913_v2  ;;  %v4821_v29 = vmax.f32 %v4605_v9, 0.0  ;;  %v11411_v45 = vld [vmem:[%s15838_s3 + $0x650] ss:$8 sps:$4 sm:$0xff]  }
 0x50f   : > { %v4611_v18 = vadd.f32 %v4610_v36, %v13424_v30  ;;  %v4822_v33 = vmax.f32 %v4607_v23, 0.0 }
 0x510   : > { %v4823_v48 = vmax.f32 %v4609_v50, 0.0  ;;  %v11413_v50 = vld [vmem:[%s15838_s3 + $0x654] ss:$8 sps:$4 sm:$0xff]  }
 0x511   : > { %v4824_v54 = vmax.f32 %v4611_v18, 0.0  ;;  %6791 = vmatprep.subr.bf16.mxu1 %v11413_v50 }
 0x512   : > { %v4915_v21 = vpack.c.bf16 %v4823_v48, %v4821_v29  ;;  %6792 = vmatpush1.bf16.msra.mxu1 %v11411_v45 }
 0x513   : > { %v4614_v57 = vpop.f32.mrb[136].mxu0  ;;  %v4916_v60 = vpack.c.bf16 %v4824_v54, %v4822_v33 }
 0x514   : > { %v4615_v4 = vadd.f32 %v4614_v57, %v13420_v16  ;;  %v4616_v56 = vpop.f32.mrb[137].mxu0 }
 0x515   : > { %v4617_v27 = vadd.f32 %v4616_v56, %v13424_v30  ;;  %v4618_v59 = vpop.f32.mrb[138].mxu0  ;;  %5340 = vmatprep.mubr.bf16.mxu1 %v4916_v60 }
 0x516   : > { %v4619_v39 = vadd.f32 %v4618_v59, %v13420_v16  ;;  %v4620_v37 = vpop.f32.mrb[139].mxu0  ;;  %5341 = vmatmul.mubr.bf16.gmra.mrb[68].mxu1 %v4915_v21  ;;  %v4825_v51 = vmax.f32 %v4615_v4, 0.0 }
 0x517   : > { %v4621_v0 = vadd.f32 %v4620_v37, %v13424_v30  ;;  %v4826_v14 = vmax.f32 %v4617_v27, 0.0 }
 0x518   : > { %v4827_v2 = vmax.f32 %v4619_v39, 0.0 }
 0x519   : > { %v4828_v42 = vmax.f32 %v4621_v0, 0.0 }
 0x51a   : > { %v4917_v9 = vpack.c.bf16 %v4827_v2, %v4825_v51 }
 0x51b   : > { %v4624_v6 = vpop.f32.mrb[140].mxu0  ;;  %v4918_v7 = vpack.c.bf16 %v4828_v42, %v4826_v14 }
 0x51c   : > { %v4625_v3 = vadd.f32 %v4624_v6, %v13420_v16  ;;  %v4626_v23 = vpop.f32.mrb[141].mxu0 }
 0x51d   : > { %v4627_v36 = vadd.f32 %v4626_v23, %v13424_v30  ;;  %v4628_v18 = vpop.f32.mrb[142].mxu0  ;;  %5350 = vmatprep.mubr.bf16.mxu1 %v4918_v7 }
 0x51e   : > { %v4629_v29 = vadd.f32 %v4628_v18, %v13420_v16  ;;  %v4630_v48 = vpop.f32.mrb[143].mxu0  ;;  %5351 = vmatmul.mubr.bf16.gmra.mrb[72].mxu1 %v4917_v9  ;;  %v4829_v54 = vmax.f32 %v4625_v3, 0.0  ;;  %v11414_v18 = vld [vmem:[%s15838_s3 + $0x660] ss:$8 sps:$4 sm:$0xff]  }
 0x51f   : > { %v4631_v33 = vadd.f32 %v4630_v48, %v13424_v30  ;;  %v4830_v57 = vmax.f32 %v4627_v36, 0.0 }
 0x520   : > { %v4831_v21 = vmax.f32 %v4629_v29, 0.0  ;;  %v11416_v29 = vld [vmem:[%s15838_s3 + $0x664] ss:$8 sps:$4 sm:$0xff]  }
 0x521   : > { %v4832_v60 = vmax.f32 %v4631_v33, 0.0  ;;  %6793 = vmatprep.subr.bf16.mxu1 %v11416_v29 }
 0x522   : > { %v4919_v4 = vpack.c.bf16 %v4831_v21, %v4829_v54  ;;  %6794 = vmatpush1.bf16.msra.mxu1 %v11414_v18 }
 0x523   : > { %v4634_v56 = vpop.f32.mrb[144].mxu0  ;;  %v4920_v27 = vpack.c.bf16 %v4832_v60, %v4830_v57 }
 0x524   : > { %v4635_v59 = vadd.f32 %v4634_v56, %v13420_v16  ;;  %v4636_v39 = vpop.f32.mrb[145].mxu0 }
 0x525   : > { %v4637_v37 = vadd.f32 %v4636_v39, %v13424_v30  ;;  %v4638_v0 = vpop.f32.mrb[146].mxu0  ;;  %5360 = vmatprep.mubr.bf16.mxu1 %v4920_v27 }
 0x526   : > { %v4639_v51 = vadd.f32 %v4638_v0, %v13420_v16  ;;  %v4640_v2 = vpop.f32.mrb[147].mxu0  ;;  %5361 = vmatmul.mubr.bf16.gmra.mrb[76].mxu1 %v4919_v4  ;;  %v4833_v42 = vmax.f32 %v4635_v59, 0.0 }
 0x527   : > { %v4641_v14 = vadd.f32 %v4640_v2, %v13424_v30  ;;  %v4834_v6 = vmax.f32 %v4637_v37, 0.0 }
 0x528   : > { %v4835_v9 = vmax.f32 %v4639_v51, 0.0 }
 0x529   : > { %v4836_v7 = vmax.f32 %v4641_v14, 0.0 }
 0x52a   : > { %v4921_v3 = vpack.c.bf16 %v4835_v9, %v4833_v42 }
 0x52b   : > { %v4644_v23 = vpop.f32.mrb[148].mxu0  ;;  %v4922_v45 = vpack.c.bf16 %v4836_v7, %v4834_v6 }
 0x52c   : > { %v4645_v50 = vadd.f32 %v4644_v23, %v13420_v16  ;;  %v4646_v36 = vpop.f32.mrb[149].mxu0 }
 0x52d   : > { %v4647_v48 = vadd.f32 %v4646_v36, %v13424_v30  ;;  %v4648_v33 = vpop.f32.mrb[150].mxu0  ;;  %5370 = vmatprep.mubr.bf16.mxu1 %v4922_v45 }
 0x52e   : > { %v4649_v54 = vadd.f32 %v4648_v33, %v13420_v16  ;;  %v4650_v21 = vpop.f32.mrb[151].mxu0  ;;  %5371 = vmatmul.mubr.bf16.gmra.mrb[80].mxu1 %v4921_v3  ;;  %v4837_v60 = vmax.f32 %v4645_v50, 0.0  ;;  %v11417_v33 = vld [vmem:[%s15838_s3 + $0x670] ss:$8 sps:$4 sm:$0xff]  }
 0x52f   : > { %v4651_v57 = vadd.f32 %v4650_v21, %v13424_v30  ;;  %v4838_v56 = vmax.f32 %v4647_v48, 0.0 }
 0x530   : > { %v4839_v4 = vmax.f32 %v4649_v54, 0.0  ;;  %v11419_v54 = vld [vmem:[%s15838_s3 + $0x674] ss:$8 sps:$4 sm:$0xff]  }
 0x531   : > { %v4840_v27 = vmax.f32 %v4651_v57, 0.0  ;;  %6795 = vmatprep.subr.bf16.mxu1 %v11419_v54 }
 0x532   : > { %v4923_v59 = vpack.c.bf16 %v4839_v4, %v4837_v60  ;;  %6796 = vmatpush1.bf16.msra.mxu1 %v11417_v33 }
 0x533   : > { %v4654_v39 = vpop.f32.mrb[152].mxu0  ;;  %v4924_v37 = vpack.c.bf16 %v4840_v27, %v4838_v56 }
 0x534   : > { %v4655_v0 = vadd.f32 %v4654_v39, %v13420_v16  ;;  %v4656_v51 = vpop.f32.mrb[153].mxu0 }
 0x535   : > { %v4657_v2 = vadd.f32 %v4656_v51, %v13424_v30  ;;  %v4658_v14 = vpop.f32.mrb[154].mxu0  ;;  %5380 = vmatprep.mubr.bf16.mxu1 %v4924_v37 }
 0x536   : > { %v4659_v42 = vadd.f32 %v4658_v14, %v13420_v16  ;;  %v4660_v9 = vpop.f32.mrb[155].mxu0  ;;  %5381 = vmatmul.mubr.bf16.gmra.mrb[84].mxu1 %v4923_v59  ;;  %v4841_v7 = vmax.f32 %v4655_v0, 0.0 }
 0x537   : > { %v4661_v6 = vadd.f32 %v4660_v9, %v13424_v30  ;;  %v4842_v23 = vmax.f32 %v4657_v2, 0.0 }
 0x538   : > { %v4843_v3 = vmax.f32 %v4659_v42, 0.0 }
 0x539   : > { %v4844_v45 = vmax.f32 %v4661_v6, 0.0 }
 0x53a   : > { %v4925_v50 = vpack.c.bf16 %v4843_v3, %v4841_v7 }
 0x53b   : > { %v4664_v36 = vpop.f32.mrb[156].mxu0  ;;  %v4926_v18 = vpack.c.bf16 %v4844_v45, %v4842_v23 }
 0x53c   : > { %v4665_v29 = vadd.f32 %v4664_v36, %v13420_v16  ;;  %v4666_v48 = vpop.f32.mrb[157].mxu0 }
 0x53d   : > { %v4667_v21 = vadd.f32 %v4666_v48, %v13424_v30  ;;  %v4668_v57 = vpop.f32.mrb[158].mxu0  ;;  %5390 = vmatprep.mubr.bf16.mxu1 %v4926_v18 }
 0x53e   : > { %v4669_v60 = vadd.f32 %v4668_v57, %v13420_v16  ;;  %v4670_v4 = vpop.f32.mrb[159].mxu0  ;;  %5391 = vmatmul.mubr.bf16.gmra.mrb[88].mxu1 %v4925_v50  ;;  %v4845_v27 = vmax.f32 %v4665_v29, 0.0  ;;  %v11420_v57 = vld [vmem:[%s15838_s3 + $0x680] ss:$8 sps:$4 sm:$0xff]  }
 0x53f   : > { %v4671_v56 = vadd.f32 %v4670_v4, %v13424_v30  ;;  %v4846_v39 = vmax.f32 %v4667_v21, 0.0 }
 0x540   : > { %v4847_v59 = vmax.f32 %v4669_v60, 0.0  ;;  %v11422_v60 = vld [vmem:[%s15838_s3 + $0x684] ss:$8 sps:$4 sm:$0xff]  }
 0x541   : > { %v4848_v37 = vmax.f32 %v4671_v56, 0.0  ;;  %6797 = vmatprep.subr.bf16.mxu1 %v11422_v60  ;;  %v10220_v60 = vld [vmem:[%s15839_s4 + $0x4] ss:$8 sm:$0x3] }
 0x542   : > { %v4927_v0 = vpack.c.bf16 %v4847_v59, %v4845_v27  ;;  %6798 = vmatpush1.bf16.msra.mxu1 %v11420_v57 }
 0x543   : > { %v4674_v51 = vpop.f32.mrb[160].mxu0  ;;  %v4928_v2 = vpack.c.bf16 %v4848_v37, %v4846_v39 }
 0x544   : > { %v4675_v14 = vadd.f32 %v4674_v51, %v13420_v16  ;;  %v4676_v42 = vpop.f32.mrb[161].mxu0 }
 0x545   : > { %v4677_v9 = vadd.f32 %v4676_v42, %v13424_v30  ;;  %v4678_v6 = vpop.f32.mrb[162].mxu0  ;;  %5400 = vmatprep.mubr.bf16.mxu1 %v4928_v2 }
 0x546   : > { %v4679_v7 = vadd.f32 %v4678_v6, %v13420_v16  ;;  %v4680_v3 = vpop.f32.mrb[163].mxu0  ;;  %5401 = vmatmul.mubr.bf16.gmra.mrb[92].mxu1 %v4927_v0  ;;  %v4849_v45 = vmax.f32 %v4675_v14, 0.0 }
 0x547   : > { %v4681_v23 = vadd.f32 %v4680_v3, %v13424_v30  ;;  %v4850_v36 = vmax.f32 %v4677_v9, 0.0 }
 0x548   : > { %v4851_v50 = vmax.f32 %v4679_v7, 0.0 }
 0x549   : > { %v4852_v18 = vmax.f32 %v4681_v23, 0.0 }
 0x54a   : > { %v4929_v29 = vpack.c.bf16 %v4851_v50, %v4849_v45 }
 0x54b   : > { %v4684_v48 = vpop.f32.mrb[164].mxu0  ;;  %v4930_v33 = vpack.c.bf16 %v4852_v18, %v4850_v36 }
 0x54c   : > { %v4685_v54 = vadd.f32 %v4684_v48, %v13420_v16  ;;  %v4686_v21 = vpop.f32.mrb[165].mxu0 }
 0x54d   : > { %v4687_v4 = vadd.f32 %v4686_v21, %v13424_v30  ;;  %v4688_v56 = vpop.f32.mrb[166].mxu0  ;;  %5410 = vmatprep.mubr.bf16.mxu1 %v4930_v33 }
 0x54e   : > { %v4689_v27 = vadd.f32 %v4688_v56, %v13420_v16  ;;  %v4690_v59 = vpop.f32.mrb[167].mxu0  ;;  %5411 = vmatmul.mubr.bf16.gmra.mrb[96].mxu1 %v4929_v29  ;;  %v4853_v37 = vmax.f32 %v4685_v54, 0.0 }
 0x54f   : > { %v4691_v39 = vadd.f32 %v4690_v59, %v13424_v30  ;;  %v4854_v51 = vmax.f32 %v4687_v4, 0.0  ;;  %v11425_v59 = vld [vmem:[%s15838_s3 + $0x694] ss:$8 sps:$4 sm:$0xff]  }
 0x550   : > { %v4855_v0 = vmax.f32 %v4689_v27, 0.0  ;;  %v11423_v27 = vld [vmem:[%s15838_s3 + $0x690] ss:$8 sps:$4 sm:$0xff]   ;;  %6799 = vmatprep.subr.bf16.mxu1 %v11425_v59 }
 0x551   : > { %v4856_v2 = vmax.f32 %v4691_v39, 0.0  ;;  %6800 = vmatpush1.bf16.msra.mxu1 %v11423_v27 }
 0x552   : > { %v4931_v14 = vpack.c.bf16 %v4855_v0, %v4853_v37 }
 0x553   : > { %v4694_v42 = vpop.f32.mrb[168].mxu0  ;;  %v4932_v9 = vpack.c.bf16 %v4856_v2, %v4854_v51  ;;  %v13653_v2 = vrot.slane %v10220_v60, %v11998_v12 }
 0x554   : > { %v4695_v6 = vadd.f32 %v4694_v42, %v13420_v16  ;;  %v4696_v7 = vpop.f32.mrb[169].mxu0  ;;  %v13657_v42 = vrot.slane %v10220_v60, %v12004_v15 }
 0x555   : > { %v4697_v3 = vadd.f32 %v4696_v7, %v13424_v30  ;;  %v4698_v23 = vpop.f32.mrb[170].mxu0  ;;  %5420 = vmatprep.mubr.bf16.mxu1 %v4932_v9 }
 0x556   : > { %v4699_v45 = vadd.f32 %v4698_v23, %v13420_v16  ;;  %v4700_v50 = vpop.f32.mrb[171].mxu0  ;;  %5421 = vmatmul.mubr.bf16.gmra.mrb[100].mxu1 %v4931_v14  ;;  %v4857_v18 = vmax.f32 %v4695_v6, 0.0 }
 0x557   : > { %v4701_v36 = vadd.f32 %v4700_v50, %v13424_v30  ;;  %v4858_v48 = vmax.f32 %v4697_v3, 0.0 }
 0x558   : > { %v4859_v29 = vmax.f32 %v4699_v45, 0.0 }
 0x559   : > { %v4860_v33 = vmax.f32 %v4701_v36, 0.0 }
 0x55a   : > { %v4933_v54 = vpack.c.bf16 %v4859_v29, %v4857_v18 }
 0x55b   : > { %v4704_v21 = vpop.f32.mrb[172].mxu0  ;;  %v4934_v57 = vpack.c.bf16 %v4860_v33, %v4858_v48 }
 0x55c   : > { %v4705_v4 = vadd.f32 %v4704_v21, %v13420_v16  ;;  %v4706_v56 = vpop.f32.mrb[173].mxu0 }
 0x55d   : > { %v4707_v39 = vadd.f32 %v4706_v56, %v13424_v30  ;;  %v4708_v37 = vpop.f32.mrb[174].mxu0  ;;  %5430 = vmatprep.mubr.bf16.mxu1 %v4934_v57 }
 0x55e   : > { %v4709_v0 = vadd.f32 %v4708_v37, %v13420_v16  ;;  %v4710_v51 = vpop.f32.mrb[175].mxu0  ;;  %5431 = vmatmul.mubr.bf16.gmra.mrb[104].mxu1 %v4933_v54  ;;  %v4861_v9 = vmax.f32 %v4705_v4, 0.0 }
 0x55f   : > { %v4711_v14 = vadd.f32 %v4710_v51, %v13424_v30  ;;  %v4862_v7 = vmax.f32 %v4707_v39, 0.0 }
 0x560   : > { %v4863_v6 = vmax.f32 %v4709_v0, 0.0 }
 0x561   : > { %v4864_v3 = vmax.f32 %v4711_v14, 0.0  ;;  %v5172_v23 = vpop.f32.mrb[0].mxu1 }
 0x562   : > { %v5504_v45 = vadd.f32 %v13653_v2, %v5172_v23  ;;  %v5174_v50 = vpop.f32.mrb[1].mxu1  ;;  %v4935_v36 = vpack.c.bf16 %v4863_v6, %v4861_v9 }
 0x563   : > { %v5505_v18 = vadd.f32 %v13657_v42, %v5174_v50  ;;  %v4714_v29 = vpop.f32.mrb[176].mxu0  ;;  %v5176_v48 = vpop.f32.mrb[2].mxu1  ;;  %v4936_v33 = vpack.c.bf16 %v4864_v3, %v4862_v7 }
 0x564   : > { %v4715_v54 = vadd.f32 %v4714_v29, %v13420_v16  ;;  %v5506_v21 = vadd.f32 %v13653_v2, %v5176_v48  ;;  %v4716_v57 = vpop.f32.mrb[177].mxu0  ;;  %v5178_v60 = vpop.f32.mrb[3].mxu1  ;;  %v5632_v59 = vmax.f32 %v5504_v45, 0.0 }
 0x565   : > { %v4717_v4 = vadd.f32 %v4716_v57, %v13424_v30  ;;  %v5507_v56 = vadd.f32 %v13657_v42, %v5178_v60  ;;  %v4718_v27 = vpop.f32.mrb[178].mxu0  ;;  %5440 = vmatprep.mubr.bf16.mxu1 %v4936_v33  ;;  %v5633_v51 = vmax.f32 %v5505_v18, 0.0 }
 0x566   : > { %v5634_v39 = vmax.f32 %v5506_v21, 0.0  ;;  %v4719_v37 = vadd.f32 %v4718_v27, %v13420_v16  ;;  %v4720_v0 = vpop.f32.mrb[179].mxu0  ;;  %5441 = vmatmul.mubr.bf16.gmra.mrb[108].mxu1 %v4935_v36  ;;  %v4865_v6 = vmax.f32 %v4715_v54, 0.0 }
 0x567   : > { %v5635_v14 = vmax.f32 %v5507_v56, 0.0  ;;  %v4721_v9 = vadd.f32 %v4720_v0, %v13424_v30  ;;  %v4866_v23 = vmax.f32 %v4717_v4, 0.0  ;;  %v11426_v4 = vld [vmem:[%s15838_s3 + $0x6a0] ss:$8 sps:$4 sm:$0xff]  }
 0x568   : > { %v5760_v7 = vpack.c.bf16 %v5634_v39, %v5632_v59  ;;  %v4867_v3 = vmax.f32 %v4719_v37, 0.0 }
 0x569   : > { %v4868_v50 = vmax.f32 %v4721_v9, 0.0  ;;  %v5182_v29 = vpop.f32.mrb[4].mxu1  ;;  %v5761_v48 = vpack.c.bf16 %v5635_v14, %v5633_v51  ;;  %v11428_v51 = vld [vmem:[%s15838_s3 + $0x6a4] ss:$8 sps:$4 sm:$0xff]  }
 0x56a   : > { %v5508_v57 = vadd.f32 %v13653_v2, %v5182_v29  ;;  %v5184_v33 = vpop.f32.mrb[5].mxu1  ;;  %v4937_v45 = vpack.c.bf16 %v4867_v3, %v4865_v6  ;;  %6801 = vmatprep.subr.bf16.mxu1 %v11428_v51 }
 0x56b   : > { %v5509_v21 = vadd.f32 %v13657_v42, %v5184_v33  ;;  %v4724_v60 = vpop.f32.mrb[180].mxu0  ;;  %v5186_v27 = vpop.f32.mrb[6].mxu1  ;;  %6062 = vmatprep.mubr.bf16.mxu0 %v5761_v48  ;;  %v4938_v36 = vpack.c.bf16 %v4868_v50, %v4866_v23  ;;  %6802 = vmatpush1.bf16.msra.mxu1 %v11426_v4 }
 0x56c   : > { %v4725_v18 = vadd.f32 %v4724_v60, %v13420_v16  ;;  %v5510_v54 = vadd.f32 %v13653_v2, %v5186_v27  ;;  %v4726_v56 = vpop.f32.mrb[181].mxu0  ;;  %v5188_v59 = vpop.f32.mrb[7].mxu1  ;;  %6063 = vmatmul.mubr.bf16.vlgmr.msra.gmra.mrb[192].mxu0 %v5760_v7  ;;  %v5636_v14 = vmax.f32 %v5508_v57, 0.0 }
 0x56d   : > { %v4727_v39 = vadd.f32 %v4726_v56, %v13424_v30  ;;  %v5511_v37 = vadd.f32 %v13657_v42, %v5188_v59  ;;  %v4728_v0 = vpop.f32.mrb[182].mxu0  ;;  %5450 = vmatprep.mubr.bf16.mxu1 %v4938_v36  ;;  %v5637_v7 = vmax.f32 %v5509_v21, 0.0 }
 0x56e   : > { %v5638_v9 = vmax.f32 %v5510_v54, 0.0  ;;  %v4729_v6 = vadd.f32 %v4728_v0, %v13420_v16  ;;  %v4730_v3 = vpop.f32.mrb[183].mxu0  ;;  %5451 = vmatmul.mubr.bf16.gmra.mrb[112].mxu1 %v4937_v45  ;;  %v4869_v29 = vmax.f32 %v4725_v18, 0.0 }
 0x56f   : > { %v5639_v23 = vmax.f32 %v5511_v37, 0.0  ;;  %v4731_v50 = vadd.f32 %v4730_v3, %v13424_v30  ;;  %v4870_v60 = vmax.f32 %v4727_v39, 0.0 }
 0x570   : > { %v5762_v48 = vpack.c.bf16 %v5638_v9, %v5636_v14  ;;  %v4871_v33 = vmax.f32 %v4729_v6, 0.0 }
 0x571   : > { %v4872_v27 = vmax.f32 %v4731_v50, 0.0  ;;  %v5192_v36 = vpop.f32.mrb[8].mxu1  ;;  %v5763_v56 = vpack.c.bf16 %v5639_v23, %v5637_v7 }
 0x572   : > { %v5512_v57 = vadd.f32 %v13653_v2, %v5192_v36  ;;  %v5194_v54 = vpop.f32.mrb[9].mxu1  ;;  %v4939_v59 = vpack.c.bf16 %v4871_v33, %v4869_v29 }
 0x573   : > { %v5513_v0 = vadd.f32 %v13657_v42, %v5194_v54  ;;  %v4734_v45 = vpop.f32.mrb[184].mxu0  ;;  %v5196_v21 = vpop.f32.mrb[10].mxu1  ;;  %6072 = vmatprep.mubr.bf16.mxu0 %v5763_v56  ;;  %v4940_v37 = vpack.c.bf16 %v4872_v27, %v4870_v60 }
 0x574   : > { %v4735_v51 = vadd.f32 %v4734_v45, %v13420_v16  ;;  %v5514_v18 = vadd.f32 %v13653_v2, %v5196_v21  ;;  %v4736_v14 = vpop.f32.mrb[185].mxu0  ;;  %v5198_v4 = vpop.f32.mrb[11].mxu1  ;;  %6073 = vmatmul.mubr.bf16.gmra.mrb[196].mxu0 %v5762_v48  ;;  %v5640_v3 = vmax.f32 %v5512_v57, 0.0 }
 0x575   : > { %v4737_v39 = vadd.f32 %v4736_v14, %v13424_v30  ;;  %v5515_v9 = vadd.f32 %v13657_v42, %v5198_v4  ;;  %v4738_v6 = vpop.f32.mrb[186].mxu0  ;;  %5460 = vmatprep.mubr.bf16.mxu1 %v4940_v37  ;;  %v5641_v29 = vmax.f32 %v5513_v0, 0.0 }
 0x576   : > { %v5642_v7 = vmax.f32 %v5514_v18, 0.0  ;;  %v4739_v23 = vadd.f32 %v4738_v6, %v13420_v16  ;;  %v4740_v50 = vpop.f32.mrb[187].mxu0  ;;  %5461 = vmatmul.mubr.bf16.gmra.mrb[116].mxu1 %v4939_v59  ;;  %v4873_v27 = vmax.f32 %v4735_v51, 0.0 }
 0x577   : > { %v5643_v33 = vmax.f32 %v5515_v9, 0.0  ;;  %v4741_v60 = vadd.f32 %v4740_v50, %v13424_v30  ;;  %v4874_v48 = vmax.f32 %v4737_v39, 0.0  ;;  %v11429_v39 = vld [vmem:[%s15838_s3 + $0x6b0] ss:$8 sps:$4 sm:$0xff]  }
 0x578   : > { %v5764_v36 = vpack.c.bf16 %v5642_v7, %v5640_v3  ;;  %v4875_v56 = vmax.f32 %v4739_v23, 0.0 }
 0x579   : > { %v4876_v54 = vmax.f32 %v4741_v60, 0.0  ;;  %v5202_v45 = vpop.f32.mrb[12].mxu1  ;;  %v5765_v21 = vpack.c.bf16 %v5643_v33, %v5641_v29  ;;  %v11431_v29 = vld [vmem:[%s15838_s3 + $0x6b4] ss:$8 sps:$4 sm:$0xff]  }
 0x57a   : > { %v5516_v14 = vadd.f32 %v13653_v2, %v5202_v45  ;;  %v5204_v37 = vpop.f32.mrb[13].mxu1  ;;  %v4941_v57 = vpack.c.bf16 %v4875_v56, %v4873_v27  ;;  %6803 = vmatprep.subr.bf16.mxu1 %v11431_v29 }
 0x57b   : > { %v5517_v18 = vadd.f32 %v13657_v42, %v5204_v37  ;;  %v4744_v4 = vpop.f32.mrb[188].mxu0  ;;  %v5206_v6 = vpop.f32.mrb[14].mxu1  ;;  %6082 = vmatprep.mubr.bf16.mxu0 %v5765_v21  ;;  %v4942_v59 = vpack.c.bf16 %v4876_v54, %v4874_v48  ;;  %6804 = vmatpush1.bf16.msra.mxu1 %v11429_v39 }
 0x57c   : > { %v4745_v0 = vadd.f32 %v4744_v4, %v13420_v16  ;;  %v5518_v51 = vadd.f32 %v13653_v2, %v5206_v6  ;;  %v4746_v9 = vpop.f32.mrb[189].mxu0  ;;  %v5208_v3 = vpop.f32.mrb[15].mxu1  ;;  %6083 = vmatmul.mubr.bf16.gmra.mrb[200].mxu0 %v5764_v36  ;;  %v5644_v33 = vmax.f32 %v5516_v14, 0.0 }
 0x57d   : > { %v4747_v7 = vadd.f32 %v4746_v9, %v13424_v30  ;;  %v5519_v23 = vadd.f32 %v13657_v42, %v5208_v3  ;;  %v4748_v50 = vpop.f32.mrb[190].mxu0  ;;  %5470 = vmatprep.mubr.bf16.mxu1 %v4942_v59  ;;  %v5645_v36 = vmax.f32 %v5517_v18, 0.0 }
 0x57e   : > { %v5646_v60 = vmax.f32 %v5518_v51, 0.0  ;;  %v4749_v27 = vadd.f32 %v4748_v50, %v13420_v16  ;;  %v4750_v56 = vpop.f32.mrb[191].mxu0  ;;  %5471 = vmatmul.mubr.bf16.gmra.mrb[120].mxu1 %v4941_v57  ;;  %v4877_v45 = vmax.f32 %v4745_v0, 0.0 }
 0x57f   : > { %v5647_v48 = vmax.f32 %v5519_v23, 0.0  ;;  %v4751_v54 = vadd.f32 %v4750_v56, %v13424_v30  ;;  %v4878_v4 = vmax.f32 %v4747_v7, 0.0 }
 0x580   : > { %v5766_v21 = vpack.c.bf16 %v5646_v60, %v5644_v33  ;;  %v4879_v37 = vmax.f32 %v4749_v27, 0.0 }
 0x581   : > { %v4880_v6 = vmax.f32 %v4751_v54, 0.0  ;;  %v5212_v59 = vpop.f32.mrb[16].mxu1  ;;  %v5767_v9 = vpack.c.bf16 %v5647_v48, %v5645_v36 }
 0x582   : > { %v5520_v14 = vadd.f32 %v13653_v2, %v5212_v59  ;;  %v5214_v51 = vpop.f32.mrb[17].mxu1  ;;  %v4943_v3 = vpack.c.bf16 %v4879_v37, %v4877_v45  ;;  %v11432_v37 = vld [vmem:[%s15838_s3 + $0x6c0] ss:$8 sps:$4 sm:$0xff]  }
 0x583   : > { %v5521_v16 = vadd.f32 %v13657_v42, %v5214_v51  ;;  %v5216_v57 = vpop.f32.mrb[18].mxu1  ;;  %6092 = vmatprep.mubr.bf16.mxu0 %v5767_v9  ;;  %v4944_v18 = vpack.c.bf16 %v4880_v6, %v4878_v4  ;;  %v11434_v4 = vld [vmem:[%s15838_s3 + $0x6c4] ss:$8 sps:$4 sm:$0xff]  }
 0x584   : > { %v5522_v30 = vadd.f32 %v13653_v2, %v5216_v57  ;;  %v5218_v23 = vpop.f32.mrb[19].mxu1  ;;  %6093 = vmatmul.mubr.bf16.gmra.mrb[204].mxu0 %v5766_v21  ;;  %v5648_v39 = vmax.f32 %v5520_v14, 0.0  ;;  %6805 = vmatprep.subr.bf16.mxu1 %v11434_v4 }
 0x585   : > { %v5523_v0 = vadd.f32 %v13657_v42, %v5218_v23  ;;  %5480 = vmatprep.mubr.bf16.mxu1 %v4944_v18  ;;  %v5649_v50 = vmax.f32 %v5521_v16, 0.0  ;;  %6806 = vmatpush1.bf16.msra.mxu1 %v11432_v37 }
 0x586   : > { %v5650_v7 = vmax.f32 %v5522_v30, 0.0  ;;  %5481 = vmatmul.mubr.bf16.gmra.mrb[124].mxu1 %v4943_v3 }
 0x587   : > { %v5651_v29 = vmax.f32 %v5523_v0, 0.0 }
 0x588   : > { %v5768_v33 = vpack.c.bf16 %v5650_v7, %v5648_v39 }
 0x589   : > { %v5222_v60 = vpop.f32.mrb[20].mxu1  ;;  %v5769_v27 = vpack.c.bf16 %v5651_v29, %v5649_v50 }
 0x58a   : > { %v5524_v56 = vadd.f32 %v13653_v2, %v5222_v60  ;;  %v5224_v36 = vpop.f32.mrb[21].mxu1 }
 0x58b   : > { %v5525_v48 = vadd.f32 %v13657_v42, %v5224_v36  ;;  %v5226_v54 = vpop.f32.mrb[22].mxu1  ;;  %6102 = vmatprep.mubr.bf16.mxu0 %v5769_v27 }
 0x58c   : > { %v5526_v45 = vadd.f32 %v13653_v2, %v5226_v54  ;;  %v5228_v21 = vpop.f32.mrb[23].mxu1  ;;  %6103 = vmatmul.mubr.bf16.gmra.mrb[208].mxu0 %v5768_v33  ;;  %v5652_v59 = vmax.f32 %v5524_v56, 0.0 }
 0x58d   : > { %v5527_v6 = vadd.f32 %v13657_v42, %v5228_v21  ;;  %v5653_v14 = vmax.f32 %v5525_v48, 0.0 }
 0x58e   : > { %v5654_v9 = vmax.f32 %v5526_v45, 0.0 }
 0x58f   : > { %v5655_v51 = vmax.f32 %v5527_v6, 0.0 }
 0x590   : > { %v5770_v3 = vpack.c.bf16 %v5654_v9, %v5652_v59  ;;  %v11435_v59 = vld [vmem:[%s15838_s3 + $0x6d0] ss:$8 sps:$4 sm:$0xff]   ;;  %v11437_v9 = vld [vmem:[%s15838_s3 + $0x6d4] ss:$8 sps:$4 sm:$0xff]  }
 0x591   : > { %v5232_v16 = vpop.f32.mrb[24].mxu1  ;;  %v5771_v57 = vpack.c.bf16 %v5655_v51, %v5653_v14  ;;  %6807 = vmatprep.subr.bf16.mxu1 %v11437_v9 }
 0x592   : > { %v5528_v18 = vadd.f32 %v13653_v2, %v5232_v16  ;;  %v5234_v30 = vpop.f32.mrb[25].mxu1  ;;  %6808 = vmatpush1.bf16.msra.mxu1 %v11435_v59 }
 0x593   : > { %v5529_v23 = vadd.f32 %v13657_v42, %v5234_v30  ;;  %v5236_v0 = vpop.f32.mrb[26].mxu1  ;;  %6112 = vmatprep.mubr.bf16.mxu0 %v5771_v57 }
 0x594   : > { %v5530_v39 = vadd.f32 %v13653_v2, %v5236_v0  ;;  %v5238_v7 = vpop.f32.mrb[27].mxu1  ;;  %6113 = vmatmul.mubr.bf16.gmra.mrb[212].mxu0 %v5770_v3  ;;  %v5656_v29 = vmax.f32 %v5528_v18, 0.0 }
 0x595   : > { %v5531_v50 = vadd.f32 %v13657_v42, %v5238_v7  ;;  %v5657_v60 = vmax.f32 %v5529_v23, 0.0 }
 0x596   : > { %v5658_v33 = vmax.f32 %v5530_v39, 0.0 }
 0x597   : > { %v5659_v27 = vmax.f32 %v5531_v50, 0.0 }
 0x598   : > { %v5772_v56 = vpack.c.bf16 %v5658_v33, %v5656_v29 }
 0x599   : > { %v5242_v36 = vpop.f32.mrb[28].mxu1  ;;  %v5773_v48 = vpack.c.bf16 %v5659_v27, %v5657_v60 }
 0x59a   : > { %v5532_v54 = vadd.f32 %v13653_v2, %v5242_v36  ;;  %v5244_v45 = vpop.f32.mrb[29].mxu1 }
 0x59b   : > { %v5533_v21 = vadd.f32 %v13657_v42, %v5244_v45  ;;  %v5246_v37 = vpop.f32.mrb[30].mxu1  ;;  %6122 = vmatprep.mubr.bf16.mxu0 %v5773_v48  ;;  %v11438_v45 = vld [vmem:[%s15840_s5] ss:$12 sps:$4 sm:$0xff]  }
 0x59c   : > { %v5534_v4 = vadd.f32 %v13653_v2, %v5246_v37  ;;  %v5248_v6 = vpop.f32.mrb[31].mxu1  ;;  %6123 = vmatmul.mubr.bf16.gmra.mrb[216].mxu0 %v5772_v56  ;;  %v5660_v51 = vmax.f32 %v5532_v54, 0.0 }
 0x59d   : > { %v5535_v14 = vadd.f32 %v13657_v42, %v5248_v6  ;;  %v5661_v16 = vmax.f32 %v5533_v21, 0.0  ;;  %v11440_v21 = vld [vmem:[%s15840_s5 + $0x4] ss:$12 sps:$4 sm:$0xff]  }
 0x59e   : > { %v5662_v3 = vmax.f32 %v5534_v4, 0.0  ;;  %7663 = vmatprep.subr.bf16.mxu0 %v11440_v21 }
 0x59f   : > { %v5663_v57 = vmax.f32 %v5535_v14, 0.0  ;;  %7664 = vmatpush1.bf16.msra.mxu0 %v11438_v45 }
 0x5a0   : > { %v5774_v18 = vpack.c.bf16 %v5662_v3, %v5660_v51 }
 0x5a1   : > { %v5252_v30 = vpop.f32.mrb[32].mxu1  ;;  %v5775_v23 = vpack.c.bf16 %v5663_v57, %v5661_v16  ;;  %v11441_v16 = vld [vmem:[%s15838_s3 + $0x6e0] ss:$8 sps:$4 sm:$0xff]   ;;  %v11443_v57 = vld [vmem:[%s15838_s3 + $0x6e4] ss:$8 sps:$4 sm:$0xff]  }
 0x5a2   : > { %v5536_v0 = vadd.f32 %v13653_v2, %v5252_v30  ;;  %v5254_v39 = vpop.f32.mrb[33].mxu1  ;;  %6809 = vmatprep.subr.bf16.mxu1 %v11443_v57 }
 0x5a3   : > { %v5537_v7 = vadd.f32 %v13657_v42, %v5254_v39  ;;  %v5256_v50 = vpop.f32.mrb[34].mxu1  ;;  %6132 = vmatprep.mubr.bf16.mxu0 %v5775_v23  ;;  %6810 = vmatpush1.bf16.msra.mxu1 %v11441_v16 }
 0x5a4   : > { %v5538_v29 = vadd.f32 %v13653_v2, %v5256_v50  ;;  %v5258_v33 = vpop.f32.mrb[35].mxu1  ;;  %6133 = vmatmul.mubr.bf16.gmra.mrb[220].mxu0 %v5774_v18  ;;  %v5664_v27 = vmax.f32 %v5536_v0, 0.0 }
 0x5a5   : > { %v5539_v60 = vadd.f32 %v13657_v42, %v5258_v33  ;;  %v5665_v36 = vmax.f32 %v5537_v7, 0.0 }
 0x5a6   : > { %v5666_v56 = vmax.f32 %v5538_v29, 0.0 }
 0x5a7   : > { %v5667_v48 = vmax.f32 %v5539_v60, 0.0 }
 0x5a8   : > { %v5776_v54 = vpack.c.bf16 %v5666_v56, %v5664_v27 }
 0x5a9   : > { %v5262_v37 = vpop.f32.mrb[36].mxu1  ;;  %v5777_v4 = vpack.c.bf16 %v5667_v48, %v5665_v36 }
 0x5aa   : > { %v5540_v6 = vadd.f32 %v13653_v2, %v5262_v37  ;;  %v5264_v59 = vpop.f32.mrb[37].mxu1 }
 0x5ab   : > { %v5541_v9 = vadd.f32 %v13657_v42, %v5264_v59  ;;  %v5266_v14 = vpop.f32.mrb[38].mxu1  ;;  %6142 = vmatprep.mubr.bf16.mxu0 %v5777_v4  ;;  %v11444_v59 = vld [vmem:[%s15840_s5 + $0x18] ss:$12 sps:$4 sm:$0xff]  }
 0x5ac   : > { %v5542_v51 = vadd.f32 %v13653_v2, %v5266_v14  ;;  %v5268_v3 = vpop.f32.mrb[39].mxu1  ;;  %6143 = vmatmul.mubr.bf16.gmra.mrb[224].mxu0 %v5776_v54  ;;  %v5668_v30 = vmax.f32 %v5540_v6, 0.0 }
 0x5ad   : > { %v5543_v18 = vadd.f32 %v13657_v42, %v5268_v3  ;;  %v5669_v0 = vmax.f32 %v5541_v9, 0.0  ;;  %v11446_v9 = vld [vmem:[%s15840_s5 + $0x1c] ss:$12 sps:$4 sm:$0xff]  }
 0x5ae   : > { %v5670_v23 = vmax.f32 %v5542_v51, 0.0  ;;  %7665 = vmatprep.subr.bf16.mxu0 %v11446_v9 }
 0x5af   : > { %v5671_v39 = vmax.f32 %v5543_v18, 0.0  ;;  %7666 = vmatpush1.bf16.msra.mxu0 %v11444_v59 }
 0x5b0   : > { %v5778_v7 = vpack.c.bf16 %v5670_v23, %v5668_v30 }
 0x5b1   : > { %v5272_v50 = vpop.f32.mrb[40].mxu1  ;;  %v5779_v29 = vpack.c.bf16 %v5671_v39, %v5669_v0  ;;  %v11447_v0 = vld [vmem:[%s15838_s3 + $0x6f0] ss:$8 sps:$4 sm:$0xff]   ;;  %v11449_v39 = vld [vmem:[%s15838_s3 + $0x6f4] ss:$8 sps:$4 sm:$0xff]  }
 0x5b2   : > { %v5544_v33 = vadd.f32 %v13653_v2, %v5272_v50  ;;  %v5274_v60 = vpop.f32.mrb[41].mxu1  ;;  %6811 = vmatprep.subr.bf16.mxu1 %v11449_v39  ;;  %v11452_v39 = vld [vmem:[%s15840_s5 + $0x34] ss:$12 sps:$4 sm:$0xff]  }
 0x5b3   : > { %v5545_v27 = vadd.f32 %v13657_v42, %v5274_v60  ;;  %v5276_v56 = vpop.f32.mrb[42].mxu1  ;;  %6152 = vmatprep.mubr.bf16.mxu0 %v5779_v29  ;;  %6812 = vmatpush1.bf16.msra.mxu1 %v11447_v0  ;;  %v11450_v0 = vld [vmem:[%s15840_s5 + $0x30] ss:$12 sps:$4 sm:$0xff]  }
 0x5b4   : > { %v5546_v36 = vadd.f32 %v13653_v2, %v5276_v56  ;;  %v5278_v48 = vpop.f32.mrb[43].mxu1  ;;  %6153 = vmatmul.mubr.bf16.gmra.mrb[228].mxu0 %v5778_v7  ;;  %v5672_v45 = vmax.f32 %v5544_v33, 0.0  ;;  %v15895_v56 = vmov 0   ;;  %7667 = vmatprep.subr.bf16.mxu0 %v11452_v39 }
 0x5b5   : > { %v5547_v54 = vadd.f32 %v13657_v42, %v5278_v48  ;;  %v5673_v37 = vmax.f32 %v5545_v27, 0.0  ;;  %8016 = vmatprep.subr.bf16.mxu1 %v15895_v56  ;;  %7668 = vmatpush1.bf16.msra.mxu0 %v11450_v0 }
 0x5b6   : > { %v5674_v21 = vmax.f32 %v5546_v36, 0.0 }
 0x5b7   : > { %v5675_v4 = vmax.f32 %v5547_v54, 0.0 }
 0x5b8   : > { %v5780_v6 = vpack.c.bf16 %v5674_v21, %v5672_v45 }
 0x5b9   : > { %v5282_v14 = vpop.f32.mrb[44].mxu1  ;;  %v5781_v51 = vpack.c.bf16 %v5675_v4, %v5673_v37 }
 0x5ba   : > { %v5548_v3 = vadd.f32 %v13653_v2, %v5282_v14  ;;  %v5284_v16 = vpop.f32.mrb[45].mxu1 }
 0x5bb   : > { %v5549_v57 = vadd.f32 %v13657_v42, %v5284_v16  ;;  %v5286_v18 = vpop.f32.mrb[46].mxu1  ;;  %6162 = vmatprep.mubr.bf16.mxu0 %v5781_v51 }
 0x5bc   : > { %v5550_v30 = vadd.f32 %v13653_v2, %v5286_v18  ;;  %v5288_v23 = vpop.f32.mrb[47].mxu1  ;;  %6163 = vmatmul.mubr.bf16.gmra.mrb[232].mxu0 %v5780_v6  ;;  %v5676_v50 = vmax.f32 %v5548_v3, 0.0 }
 0x5bd   : > { %v5551_v7 = vadd.f32 %v13657_v42, %v5288_v23  ;;  %v5677_v33 = vmax.f32 %v5549_v57, 0.0 }
 0x5be   : > { %v5678_v29 = vmax.f32 %v5550_v30, 0.0 }
 0x5bf   : > { %v5679_v60 = vmax.f32 %v5551_v7, 0.0 }
 0x5c0   : > { %v5782_v27 = vpack.c.bf16 %v5678_v29, %v5676_v50 }
 0x5c1   : > { %v5292_v36 = vpop.f32.mrb[48].mxu1  ;;  %v5783_v48 = vpack.c.bf16 %v5679_v60, %v5677_v33 }
 0x5c2   : > { %v5552_v54 = vadd.f32 %v13653_v2, %v5292_v36  ;;  %v5294_v45 = vpop.f32.mrb[49].mxu1 }
 0x5c3   : > { %v5553_v21 = vadd.f32 %v13657_v42, %v5294_v45  ;;  %v5296_v37 = vpop.f32.mrb[50].mxu1  ;;  %6172 = vmatprep.mubr.bf16.mxu0 %v5783_v48 }
 0x5c4   : > { %v5554_v4 = vadd.f32 %v13653_v2, %v5296_v37  ;;  %v5298_v6 = vpop.f32.mrb[51].mxu1  ;;  %6173 = vmatmul.mubr.bf16.gmra.mrb[236].mxu0 %v5782_v27  ;;  %v5680_v9 = vmax.f32 %v5552_v54, 0.0 }
 0x5c5   : > { %v5555_v59 = vadd.f32 %v13657_v42, %v5298_v6  ;;  %v5681_v51 = vmax.f32 %v5553_v21, 0.0 }
 0x5c6   : > { %v5682_v14 = vmax.f32 %v5554_v4, 0.0 }
 0x5c7   : > { %v5683_v3 = vmax.f32 %v5555_v59, 0.0 }
 0x5c8   : > { %v5784_v16 = vpack.c.bf16 %v5682_v14, %v5680_v9 }
 0x5c9   : > { %v5302_v57 = vpop.f32.mrb[52].mxu1  ;;  %v5785_v18 = vpack.c.bf16 %v5683_v3, %v5681_v51 }
 0x5ca   : > { %v5556_v30 = vadd.f32 %v13653_v2, %v5302_v57  ;;  %v5304_v23 = vpop.f32.mrb[53].mxu1 }
 0x5cb   : > { %v5557_v7 = vadd.f32 %v13657_v42, %v5304_v23  ;;  %v5306_v50 = vpop.f32.mrb[54].mxu1  ;;  %6182 = vmatprep.mubr.bf16.mxu0 %v5785_v18 }
 0x5cc   : > { %v5558_v29 = vadd.f32 %v13653_v2, %v5306_v50  ;;  %v5308_v33 = vpop.f32.mrb[55].mxu1  ;;  %6183 = vmatmul.mubr.bf16.gmra.mrb[240].mxu0 %v5784_v16  ;;  %v5684_v27 = vmax.f32 %v5556_v30, 0.0 }
 0x5cd   : > { %v5559_v60 = vadd.f32 %v13657_v42, %v5308_v33  ;;  %v5685_v48 = vmax.f32 %v5557_v7, 0.0  ;;  %v11455_v33 = vld [vmem:[%s15840_s5 + $0x4c] ss:$12 sps:$4 sm:$0xff]  }
 0x5ce   : > { %v5686_v36 = vmax.f32 %v5558_v29, 0.0  ;;  %v11453_v29 = vld [vmem:[%s15840_s5 + $0x48] ss:$12 sps:$4 sm:$0xff]   ;;  %7669 = vmatprep.subr.bf16.mxu0 %v11455_v33 }
 0x5cf   : > { %v5687_v54 = vmax.f32 %v5559_v60, 0.0  ;;  %7670 = vmatpush1.bf16.msra.mxu0 %v11453_v29 }
 0x5d0   : > { %v5786_v45 = vpack.c.bf16 %v5686_v36, %v5684_v27 }
 0x5d1   : > { %v5312_v21 = vpop.f32.mrb[56].mxu1  ;;  %v5787_v37 = vpack.c.bf16 %v5687_v54, %v5685_v48 }
 0x5d2   : > { %v5560_v4 = vadd.f32 %v13653_v2, %v5312_v21  ;;  %v5314_v6 = vpop.f32.mrb[57].mxu1 }
 0x5d3   : > { %v5561_v59 = vadd.f32 %v13657_v42, %v5314_v6  ;;  %v5316_v9 = vpop.f32.mrb[58].mxu1  ;;  %6192 = vmatprep.mubr.bf16.mxu0 %v5787_v37 }
 0x5d4   : > { %v5562_v14 = vadd.f32 %v13653_v2, %v5316_v9  ;;  %v5318_v51 = vpop.f32.mrb[59].mxu1  ;;  %6193 = vmatmul.mubr.bf16.gmra.mrb[244].mxu0 %v5786_v45  ;;  %v5688_v16 = vmax.f32 %v5560_v4, 0.0 }
 0x5d5   : > { %v5563_v3 = vadd.f32 %v13657_v42, %v5318_v51  ;;  %v5689_v18 = vmax.f32 %v5561_v59, 0.0 }
 0x5d6   : > { %v5690_v57 = vmax.f32 %v5562_v14, 0.0 }
 0x5d7   : > { %v5691_v30 = vmax.f32 %v5563_v3, 0.0 }
 0x5d8   : > { %v5788_v23 = vpack.c.bf16 %v5690_v57, %v5688_v16 }
 0x5d9   : > { %v5322_v0 = vpop.f32.mrb[60].mxu1  ;;  %v5789_v39 = vpack.c.bf16 %v5691_v30, %v5689_v18 }
 0x5da   : > { %v5564_v7 = vadd.f32 %v13653_v2, %v5322_v0  ;;  %v5324_v50 = vpop.f32.mrb[61].mxu1 }
 0x5db   : > { %v5565_v60 = vadd.f32 %v13657_v42, %v5324_v50  ;;  %v5326_v27 = vpop.f32.mrb[62].mxu1  ;;  %6202 = vmatprep.mubr.bf16.mxu0 %v5789_v39 }
 0x5dc   : > { %v5566_v36 = vadd.f32 %v13653_v2, %v5326_v27  ;;  %v5328_v48 = vpop.f32.mrb[63].mxu1  ;;  %6203 = vmatmul.mubr.bf16.gmra.mrb[248].mxu0 %v5788_v23  ;;  %v5692_v45 = vmax.f32 %v5564_v7, 0.0 }
 0x5dd   : > { %v5567_v54 = vadd.f32 %v13657_v42, %v5328_v48  ;;  %v5693_v37 = vmax.f32 %v5565_v60, 0.0  ;;  %v11458_v48 = vld [vmem:[%s15840_s5 + $0x64] ss:$12 sps:$4 sm:$0xff]  }
 0x5de   : > { %v5694_v21 = vmax.f32 %v5566_v36, 0.0  ;;  %v11456_v36 = vld [vmem:[%s15840_s5 + $0x60] ss:$12 sps:$4 sm:$0xff]   ;;  %7671 = vmatprep.subr.bf16.mxu0 %v11458_v48 }
 0x5df   : > { %v5695_v4 = vmax.f32 %v5567_v54, 0.0  ;;  %7672 = vmatpush1.bf16.msra.mxu0 %v11456_v36 }
 0x5e0   : > { %v5790_v6 = vpack.c.bf16 %v5694_v21, %v5692_v45 }
 0x5e1   : > { %v5332_v59 = vpop.f32.mrb[64].mxu1  ;;  %v5791_v9 = vpack.c.bf16 %v5695_v4, %v5693_v37 }
 0x5e2   : > { %v5568_v14 = vadd.f32 %v13653_v2, %v5332_v59  ;;  %v5334_v51 = vpop.f32.mrb[65].mxu1 }
 0x5e3   : > { %v5569_v3 = vadd.f32 %v13657_v42, %v5334_v51  ;;  %v5336_v16 = vpop.f32.mrb[66].mxu1  ;;  %6212 = vmatprep.mubr.bf16.mxu0 %v5791_v9 }
 0x5e4   : > { %v5570_v57 = vadd.f32 %v13653_v2, %v5336_v16  ;;  %v5338_v18 = vpop.f32.mrb[67].mxu1  ;;  %6213 = vmatmul.mubr.bf16.gmra.mrb[252].mxu0 %v5790_v6  ;;  %v5696_v23 = vmax.f32 %v5568_v14, 0.0 }
 0x5e5   : > { %v5571_v30 = vadd.f32 %v13657_v42, %v5338_v18  ;;  %v5697_v39 = vmax.f32 %v5569_v3, 0.0 }
 0x5e6   : > { %v5698_v0 = vmax.f32 %v5570_v57, 0.0 }
 0x5e7   : > { %v5699_v7 = vmax.f32 %v5571_v30, 0.0 }
 0x5e8   : > { %v5792_v50 = vpack.c.bf16 %v5698_v0, %v5696_v23 }
 0x5e9   : > { %v5342_v29 = vpop.f32.mrb[68].mxu1  ;;  %v5793_v33 = vpack.c.bf16 %v5699_v7, %v5697_v39 }
 0x5ea   : > { %v5572_v60 = vadd.f32 %v13653_v2, %v5342_v29  ;;  %v5344_v27 = vpop.f32.mrb[69].mxu1 }
 0x5eb   : > { %v5573_v54 = vadd.f32 %v13657_v42, %v5344_v27  ;;  %v5346_v45 = vpop.f32.mrb[70].mxu1  ;;  %6222 = vmatprep.mubr.bf16.mxu0 %v5793_v33 }
 0x5ec   : > { %v5574_v21 = vadd.f32 %v13653_v2, %v5346_v45  ;;  %v5348_v37 = vpop.f32.mrb[71].mxu1  ;;  %6223 = vmatmul.mubr.bf16.gmra.mrb[0].mxu0 %v5792_v50  ;;  %v5700_v6 = vmax.f32 %v5572_v60, 0.0 }
 0x5ed   : > { %v5575_v4 = vadd.f32 %v13657_v42, %v5348_v37  ;;  %v5701_v9 = vmax.f32 %v5573_v54, 0.0  ;;  %v11461_v37 = vld [vmem:[%s15840_s5 + $0x7c] ss:$12 sps:$4 sm:$0xff]  }
 0x5ee   : > { %v5702_v59 = vmax.f32 %v5574_v21, 0.0  ;;  %v11459_v21 = vld [vmem:[%s15840_s5 + $0x78] ss:$12 sps:$4 sm:$0xff]   ;;  %7673 = vmatprep.subr.bf16.mxu0 %v11461_v37 }
 0x5ef   : > { %v5703_v14 = vmax.f32 %v5575_v4, 0.0  ;;  %7674 = vmatpush1.bf16.msra.mxu0 %v11459_v21 }
 0x5f0   : > { %v5794_v51 = vpack.c.bf16 %v5702_v59, %v5700_v6 }
 0x5f1   : > { %v5352_v3 = vpop.f32.mrb[72].mxu1  ;;  %v5795_v16 = vpack.c.bf16 %v5703_v14, %v5701_v9 }
 0x5f2   : > { %v5576_v57 = vadd.f32 %v13653_v2, %v5352_v3  ;;  %v5354_v18 = vpop.f32.mrb[73].mxu1 }
 0x5f3   : > { %v5577_v30 = vadd.f32 %v13657_v42, %v5354_v18  ;;  %v5356_v23 = vpop.f32.mrb[74].mxu1  ;;  %6232 = vmatprep.mubr.bf16.mxu0 %v5795_v16 }
 0x5f4   : > { %v5578_v0 = vadd.f32 %v13653_v2, %v5356_v23  ;;  %v5358_v39 = vpop.f32.mrb[75].mxu1  ;;  %6233 = vmatmul.mubr.bf16.gmra.mrb[4].mxu0 %v5794_v51  ;;  %v5704_v50 = vmax.f32 %v5576_v57, 0.0 }
 0x5f5   : > { %v5579_v7 = vadd.f32 %v13657_v42, %v5358_v39  ;;  %v5705_v33 = vmax.f32 %v5577_v30, 0.0 }
 0x5f6   : > { %v5706_v29 = vmax.f32 %v5578_v0, 0.0 }
 0x5f7   : > { %v5707_v60 = vmax.f32 %v5579_v7, 0.0 }
 0x5f8   : > { %v5796_v27 = vpack.c.bf16 %v5706_v29, %v5704_v50 }
 0x5f9   : > { %v5362_v36 = vpop.f32.mrb[76].mxu1  ;;  %v5797_v48 = vpack.c.bf16 %v5707_v60, %v5705_v33 }
 0x5fa   : > { %v5580_v54 = vadd.f32 %v13653_v2, %v5362_v36  ;;  %v5364_v45 = vpop.f32.mrb[77].mxu1 }
 0x5fb   : > { %v5581_v4 = vadd.f32 %v13657_v42, %v5364_v45  ;;  %v5366_v6 = vpop.f32.mrb[78].mxu1  ;;  %6242 = vmatprep.mubr.bf16.mxu0 %v5797_v48 }
 0x5fc   : > { %v5582_v59 = vadd.f32 %v13653_v2, %v5366_v6  ;;  %v5368_v9 = vpop.f32.mrb[79].mxu1  ;;  %6243 = vmatmul.mubr.bf16.gmra.mrb[8].mxu0 %v5796_v27  ;;  %v5708_v51 = vmax.f32 %v5580_v54, 0.0 }
 0x5fd   : > { %v5583_v14 = vadd.f32 %v13657_v42, %v5368_v9  ;;  %v5709_v16 = vmax.f32 %v5581_v4, 0.0  ;;  %v11464_v9 = vld [vmem:[%s15840_s5 + $0x94] ss:$12 sps:$4 sm:$0xff]  }
 0x5fe   : > { %v5710_v3 = vmax.f32 %v5582_v59, 0.0  ;;  %v11462_v59 = vld [vmem:[%s15840_s5 + $0x90] ss:$12 sps:$4 sm:$0xff]   ;;  %7675 = vmatprep.subr.bf16.mxu0 %v11464_v9 }
 0x5ff   : > { %v5711_v57 = vmax.f32 %v5583_v14, 0.0  ;;  %7676 = vmatpush1.bf16.msra.mxu0 %v11462_v59 }
 0x600   : > { %v5798_v18 = vpack.c.bf16 %v5710_v3, %v5708_v51 }
 0x601   : > { %v5372_v30 = vpop.f32.mrb[80].mxu1  ;;  %v5799_v23 = vpack.c.bf16 %v5711_v57, %v5709_v16 }
 0x602   : > { %v5584_v0 = vadd.f32 %v13653_v2, %v5372_v30  ;;  %v5374_v39 = vpop.f32.mrb[81].mxu1 }
 0x603   : > { %v5585_v7 = vadd.f32 %v13657_v42, %v5374_v39  ;;  %v5376_v50 = vpop.f32.mrb[82].mxu1  ;;  %6252 = vmatprep.mubr.bf16.mxu0 %v5799_v23 }
 0x604   : > { %v5586_v29 = vadd.f32 %v13653_v2, %v5376_v50  ;;  %v5378_v33 = vpop.f32.mrb[83].mxu1  ;;  %6253 = vmatmul.mubr.bf16.gmra.mrb[12].mxu0 %v5798_v18  ;;  %v5712_v27 = vmax.f32 %v5584_v0, 0.0 }
 0x605   : > { %v5587_v60 = vadd.f32 %v13657_v42, %v5378_v33  ;;  %v5713_v48 = vmax.f32 %v5585_v7, 0.0 }
 0x606   : > { %v5714_v36 = vmax.f32 %v5586_v29, 0.0 }
 0x607   : > { %v5715_v54 = vmax.f32 %v5587_v60, 0.0 }
 0x608   : > { %v5800_v45 = vpack.c.bf16 %v5714_v36, %v5712_v27 }
 0x609   : > { %v5382_v21 = vpop.f32.mrb[84].mxu1  ;;  %v5801_v37 = vpack.c.bf16 %v5715_v54, %v5713_v48 }
 0x60a   : > { %v5588_v4 = vadd.f32 %v13653_v2, %v5382_v21  ;;  %v5384_v6 = vpop.f32.mrb[85].mxu1 }
 0x60b   : > { %v5589_v14 = vadd.f32 %v13657_v42, %v5384_v6  ;;  %v5386_v51 = vpop.f32.mrb[86].mxu1  ;;  %6262 = vmatprep.mubr.bf16.mxu0 %v5801_v37 }
 0x60c   : > { %v5590_v3 = vadd.f32 %v13653_v2, %v5386_v51  ;;  %v5388_v16 = vpop.f32.mrb[87].mxu1  ;;  %6263 = vmatmul.mubr.bf16.gmra.mrb[16].mxu0 %v5800_v45  ;;  %v5716_v18 = vmax.f32 %v5588_v4, 0.0 }
 0x60d   : > { %v5591_v57 = vadd.f32 %v13657_v42, %v5388_v16  ;;  %v5717_v23 = vmax.f32 %v5589_v14, 0.0  ;;  %v11467_v16 = vld [vmem:[%s15840_s5 + $0xac] ss:$12 sps:$4 sm:$0xff]  }
 0x60e   : > { %v5718_v30 = vmax.f32 %v5590_v3, 0.0  ;;  %v11465_v3 = vld [vmem:[%s15840_s5 + $0xa8] ss:$12 sps:$4 sm:$0xff]   ;;  %7677 = vmatprep.subr.bf16.mxu0 %v11467_v16 }
 0x60f   : > { %v5719_v0 = vmax.f32 %v5591_v57, 0.0  ;;  %7678 = vmatpush1.bf16.msra.mxu0 %v11465_v3 }
 0x610   : > { %v5802_v39 = vpack.c.bf16 %v5718_v30, %v5716_v18 }
 0x611   : > { %v5392_v7 = vpop.f32.mrb[88].mxu1  ;;  %v5803_v50 = vpack.c.bf16 %v5719_v0, %v5717_v23 }
 0x612   : > { %v5592_v29 = vadd.f32 %v13653_v2, %v5392_v7  ;;  %v5394_v33 = vpop.f32.mrb[89].mxu1 }
 0x613   : > { %v5593_v60 = vadd.f32 %v13657_v42, %v5394_v33  ;;  %v5396_v27 = vpop.f32.mrb[90].mxu1  ;;  %6272 = vmatprep.mubr.bf16.mxu0 %v5803_v50 }
 0x614   : > { %v5594_v36 = vadd.f32 %v13653_v2, %v5396_v27  ;;  %v5398_v48 = vpop.f32.mrb[91].mxu1  ;;  %6273 = vmatmul.mubr.bf16.gmra.mrb[20].mxu0 %v5802_v39  ;;  %v5720_v45 = vmax.f32 %v5592_v29, 0.0 }
 0x615   : > { %v5595_v54 = vadd.f32 %v13657_v42, %v5398_v48  ;;  %v5721_v37 = vmax.f32 %v5593_v60, 0.0 }
 0x616   : > { %v5722_v21 = vmax.f32 %v5594_v36, 0.0 }
 0x617   : > { %v5723_v4 = vmax.f32 %v5595_v54, 0.0 }
 0x618   : > { %v5804_v6 = vpack.c.bf16 %v5722_v21, %v5720_v45 }
 0x619   : > { %v5402_v59 = vpop.f32.mrb[92].mxu1  ;;  %v5805_v9 = vpack.c.bf16 %v5723_v4, %v5721_v37 }
 0x61a   : > { %v5596_v14 = vadd.f32 %v13653_v2, %v5402_v59  ;;  %v5404_v51 = vpop.f32.mrb[93].mxu1 }
 0x61b   : > { %v5597_v57 = vadd.f32 %v13657_v42, %v5404_v51  ;;  %v5406_v18 = vpop.f32.mrb[94].mxu1  ;;  %6282 = vmatprep.mubr.bf16.mxu0 %v5805_v9 }
 0x61c   : > { %v5598_v30 = vadd.f32 %v13653_v2, %v5406_v18  ;;  %v5408_v23 = vpop.f32.mrb[95].mxu1  ;;  %6283 = vmatmul.mubr.bf16.gmra.mrb[24].mxu0 %v5804_v6  ;;  %v5724_v39 = vmax.f32 %v5596_v14, 0.0 }
 0x61d   : > { %v5599_v0 = vadd.f32 %v13657_v42, %v5408_v23  ;;  %v5725_v50 = vmax.f32 %v5597_v57, 0.0  ;;  %v11470_v23 = vld [vmem:[%s15840_s5 + $0xc4] ss:$12 sps:$4 sm:$0xff]  }
 0x61e   : > { %v5726_v7 = vmax.f32 %v5598_v30, 0.0  ;;  %v11468_v30 = vld [vmem:[%s15840_s5 + $0xc0] ss:$12 sps:$4 sm:$0xff]   ;;  %7679 = vmatprep.subr.bf16.mxu0 %v11470_v23 }
 0x61f   : > { %v5727_v29 = vmax.f32 %v5599_v0, 0.0  ;;  %7680 = vmatpush1.bf16.msra.mxu0 %v11468_v30 }
 0x620   : > { %v5806_v33 = vpack.c.bf16 %v5726_v7, %v5724_v39 }
 0x621   : > { %v5412_v60 = vpop.f32.mrb[96].mxu1  ;;  %v5807_v27 = vpack.c.bf16 %v5727_v29, %v5725_v50 }
 0x622   : > { %v5600_v36 = vadd.f32 %v13653_v2, %v5412_v60  ;;  %v5414_v48 = vpop.f32.mrb[97].mxu1 }
 0x623   : > { %v5601_v54 = vadd.f32 %v13657_v42, %v5414_v48  ;;  %v5416_v45 = vpop.f32.mrb[98].mxu1  ;;  %6292 = vmatprep.mubr.bf16.mxu0 %v5807_v27 }
 0x624   : > { %v5602_v21 = vadd.f32 %v13653_v2, %v5416_v45  ;;  %v5418_v37 = vpop.f32.mrb[99].mxu1  ;;  %6293 = vmatmul.mubr.bf16.gmra.mrb[28].mxu0 %v5806_v33  ;;  %v5728_v6 = vmax.f32 %v5600_v36, 0.0 }
 0x625   : > { %v5603_v4 = vadd.f32 %v13657_v42, %v5418_v37  ;;  %v5729_v9 = vmax.f32 %v5601_v54, 0.0 }
 0x626   : > { %v5730_v59 = vmax.f32 %v5602_v21, 0.0 }
 0x627   : > { %v5731_v14 = vmax.f32 %v5603_v4, 0.0 }
 0x628   : > { %v5808_v51 = vpack.c.bf16 %v5730_v59, %v5728_v6 }
 0x629   : > { %v5422_v3 = vpop.f32.mrb[100].mxu1  ;;  %v5809_v16 = vpack.c.bf16 %v5731_v14, %v5729_v9 }
 0x62a   : > { %v5604_v57 = vadd.f32 %v13653_v2, %v5422_v3  ;;  %v5424_v18 = vpop.f32.mrb[101].mxu1 }
 0x62b   : > { %v5605_v0 = vadd.f32 %v13657_v42, %v5424_v18  ;;  %v5426_v39 = vpop.f32.mrb[102].mxu1  ;;  %6302 = vmatprep.mubr.bf16.mxu0 %v5809_v16 }
 0x62c   : > { %v5606_v7 = vadd.f32 %v13653_v2, %v5426_v39  ;;  %v5428_v50 = vpop.f32.mrb[103].mxu1  ;;  %6303 = vmatmul.mubr.bf16.gmra.mrb[32].mxu0 %v5808_v51  ;;  %v5732_v33 = vmax.f32 %v5604_v57, 0.0 }
 0x62d   : > { %v5607_v29 = vadd.f32 %v13657_v42, %v5428_v50  ;;  %v5733_v27 = vmax.f32 %v5605_v0, 0.0  ;;  %v10253_v0 = vld [vmem:[%s15839_s4 + $0x5] ss:$8 sm:$0x3] }
 0x62e   : > { %v5734_v60 = vmax.f32 %v5606_v7, 0.0  ;;  %v11471_v50 = vld [vmem:[%s15840_s5 + $0xd8] ss:$12 sps:$4 sm:$0xff]  }
 0x62f   : > { %v5735_v36 = vmax.f32 %v5607_v29, 0.0  ;;  %v11473_v29 = vld [vmem:[%s15840_s5 + $0xdc] ss:$12 sps:$4 sm:$0xff]  }
 0x630   : > { %v5810_v48 = vpack.c.bf16 %v5734_v60, %v5732_v33  ;;  %7681 = vmatprep.subr.bf16.mxu0 %v11473_v29 }
 0x631   : > { %v5432_v54 = vpop.f32.mrb[104].mxu1  ;;  %v5811_v45 = vpack.c.bf16 %v5735_v36, %v5733_v27  ;;  %7682 = vmatpush1.bf16.msra.mxu0 %v11471_v50 }
 0x632   : > { %v5608_v21 = vadd.f32 %v13653_v2, %v5432_v54  ;;  %v5434_v37 = vpop.f32.mrb[105].mxu1 }
 0x633   : > { %v5609_v4 = vadd.f32 %v13657_v42, %v5434_v37  ;;  %v5436_v6 = vpop.f32.mrb[106].mxu1  ;;  %6312 = vmatprep.mubr.bf16.mxu0 %v5811_v45  ;;  %v13891_v45 = vrot.slane %v10253_v0, %v12004_v15 }
 0x634   : > { %v5610_v59 = vadd.f32 %v13653_v2, %v5436_v6  ;;  %v5438_v9 = vpop.f32.mrb[107].mxu1  ;;  %6313 = vmatmul.mubr.bf16.gmra.mrb[36].mxu0 %v5810_v48  ;;  %v5736_v51 = vmax.f32 %v5608_v21, 0.0  ;;  %v13887_v48 = vrot.slane %v10253_v0, %v11998_v12 }
 0x635   : > { %v5611_v14 = vadd.f32 %v13657_v42, %v5438_v9  ;;  %v5737_v16 = vmax.f32 %v5609_v4, 0.0 }
 0x636   : > { %v5738_v3 = vmax.f32 %v5610_v59, 0.0 }
 0x637   : > { %v5739_v57 = vmax.f32 %v5611_v14, 0.0 }
 0x638   : > { %v5812_v18 = vpack.c.bf16 %v5738_v3, %v5736_v51 }
 0x639   : > { %v5442_v30 = vpop.f32.mrb[108].mxu1  ;;  %v5813_v23 = vpack.c.bf16 %v5739_v57, %v5737_v16 }
 0x63a   : > { %v5612_v39 = vadd.f32 %v13653_v2, %v5442_v30  ;;  %v5444_v7 = vpop.f32.mrb[109].mxu1 }
 0x63b   : > { %v5613_v33 = vadd.f32 %v13657_v42, %v5444_v7  ;;  %v5446_v60 = vpop.f32.mrb[110].mxu1  ;;  %6322 = vmatprep.mubr.bf16.mxu0 %v5813_v23 }
 0x63c   : > { %v5614_v27 = vadd.f32 %v13653_v2, %v5446_v60  ;;  %v5448_v36 = vpop.f32.mrb[111].mxu1  ;;  %6323 = vmatmul.mubr.bf16.gmra.mrb[40].mxu0 %v5812_v18  ;;  %v5740_v21 = vmax.f32 %v5612_v39, 0.0 }
 0x63d   : > { %v5615_v54 = vadd.f32 %v13657_v42, %v5448_v36  ;;  %v5741_v4 = vmax.f32 %v5613_v33, 0.0 }
 0x63e   : > { %v5742_v37 = vmax.f32 %v5614_v27, 0.0 }
 0x63f   : > { %v5743_v6 = vmax.f32 %v5615_v54, 0.0  ;;  %v6064_v59 = vpop.f32.mrb[192].mxu0 }
 0x640   : > { %v5814_v9 = vpack.c.bf16 %v5742_v37, %v5740_v21  ;;  %v6065_v14 = vadd.f32 %v6064_v59, %v13887_v48  ;;  %v6066_v51 = vpop.f32.mrb[193].mxu0 }
 0x641   : > { %v6067_v3 = vadd.f32 %v6066_v51, %v13891_v45  ;;  %v5452_v16 = vpop.f32.mrb[112].mxu1  ;;  %v6068_v57 = vpop.f32.mrb[194].mxu0  ;;  %v5815_v18 = vpack.c.bf16 %v5743_v6, %v5741_v4 }
 0x642   : > { %v5616_v30 = vadd.f32 %v13653_v2, %v5452_v16  ;;  %v6069_v23 = vadd.f32 %v6068_v57, %v13887_v48  ;;  %v5454_v0 = vpop.f32.mrb[113].mxu1  ;;  %v6070_v7 = vpop.f32.mrb[195].mxu0  ;;  %v6383_v33 = vmax.f32 %v6065_v14, 0.0 }
 0x643   : > { %v5617_v39 = vadd.f32 %v13657_v42, %v5454_v0  ;;  %v6071_v50 = vadd.f32 %v6070_v7, %v13891_v45  ;;  %v5456_v29 = vpop.f32.mrb[114].mxu1  ;;  %6332 = vmatprep.mubr.bf16.mxu0 %v5815_v18  ;;  %v6384_v54 = vmax.f32 %v6067_v3, 0.0 }
 0x644   : > { %v6385_v60 = vmax.f32 %v6069_v23, 0.0  ;;  %v5618_v27 = vadd.f32 %v13653_v2, %v5456_v29  ;;  %v5458_v36 = vpop.f32.mrb[115].mxu1  ;;  %6333 = vmatmul.mubr.bf16.gmra.mrb[44].mxu0 %v5814_v9  ;;  %v5744_v4 = vmax.f32 %v5616_v30, 0.0 }
 0x645   : > { %v6386_v21 = vmax.f32 %v6071_v50, 0.0  ;;  %v5619_v37 = vadd.f32 %v13657_v42, %v5458_v36  ;;  %v5745_v51 = vmax.f32 %v5617_v39, 0.0  ;;  %v11474_v39 = vld [vmem:[%s15840_s5 + $0xf0] ss:$12 sps:$4 sm:$0xff]  }
 0x646   : > { %v6511_v6 = vpack.c.bf16 %v6385_v60, %v6383_v33  ;;  %v5746_v59 = vmax.f32 %v5618_v27, 0.0 }
 0x647   : > { %v5747_v16 = vmax.f32 %v5619_v37, 0.0  ;;  %v6074_v57 = vpop.f32.mrb[196].mxu0  ;;  %v6512_v0 = vpack.c.bf16 %v6386_v21, %v6384_v54  ;;  %v11476_v54 = vld [vmem:[%s15840_s5 + $0xf4] ss:$12 sps:$4 sm:$0xff]  }
 0x648   : > { %v5816_v7 = vpack.c.bf16 %v5746_v59, %v5744_v4  ;;  %v6075_v18 = vadd.f32 %v6074_v57, %v13887_v48  ;;  %v6076_v14 = vpop.f32.mrb[197].mxu0  ;;  %7683 = vmatprep.subr.bf16.mxu0 %v11476_v54 }
 0x649   : > { %v6077_v23 = vadd.f32 %v6076_v14, %v13891_v45  ;;  %v5462_v29 = vpop.f32.mrb[116].mxu1  ;;  %v6078_v63 = vpop.f32.mrb[198].mxu0  ;;  %6813 = vmatprep.mubr.bf16.mxu1 %v6512_v0  ;;  %v5817_v9 = vpack.c.bf16 %v5747_v16, %v5745_v51  ;;  %7684 = vmatpush1.bf16.msra.mxu0 %v11474_v39 }
 0x64a   : > { %v5620_v3 = vadd.f32 %v13653_v2, %v5462_v29  ;;  %v6079_v30 = vadd.f32 %v6078_v63, %v13887_v48  ;;  %v5464_v50 = vpop.f32.mrb[117].mxu1  ;;  %v6080_v33 = vpop.f32.mrb[199].mxu0  ;;  %6814 = vmatmul.mubr.bf16.vlgmr.msra.gmra.mrb[128].mxu1 %v6511_v6  ;;  %v6387_v21 = vmax.f32 %v6075_v18, 0.0 }
 0x64b   : > { %v5621_v60 = vadd.f32 %v13657_v42, %v5464_v50  ;;  %v6081_v27 = vadd.f32 %v6080_v33, %v13891_v45  ;;  %v5466_v36 = vpop.f32.mrb[118].mxu1  ;;  %6342 = vmatprep.mubr.bf16.mxu0 %v5817_v9  ;;  %v6388_v6 = vmax.f32 %v6077_v23, 0.0 }
 0x64c   : > { %v6389_v37 = vmax.f32 %v6079_v30, 0.0  ;;  %v5622_v63 = vadd.f32 %v13653_v2, %v5466_v36  ;;  %v5468_v4 = vpop.f32.mrb[119].mxu1  ;;  %6343 = vmatmul.mubr.bf16.gmra.mrb[48].mxu0 %v5816_v7  ;;  %v5748_v16 = vmax.f32 %v5620_v3, 0.0 }
 0x64d   : > { %v6390_v59 = vmax.f32 %v6081_v27, 0.0  ;;  %v5623_v51 = vadd.f32 %v13657_v42, %v5468_v4  ;;  %v5749_v14 = vmax.f32 %v5621_v60, 0.0 }
 0x64e   : > { %v6513_v57 = vpack.c.bf16 %v6389_v37, %v6387_v21  ;;  %v5750_v0 = vmax.f32 %v5622_v63, 0.0 }
 0x64f   : > { %v5751_v29 = vmax.f32 %v5623_v51, 0.0  ;;  %v6084_v9 = vpop.f32.mrb[200].mxu0  ;;  %v6514_v50 = vpack.c.bf16 %v6390_v59, %v6388_v6 }
 0x650   : > { %v5818_v33 = vpack.c.bf16 %v5750_v0, %v5748_v16  ;;  %v6085_v18 = vadd.f32 %v6084_v9, %v13887_v48  ;;  %v6086_v30 = vpop.f32.mrb[201].mxu0 }
 0x651   : > { %v6087_v36 = vadd.f32 %v6086_v30, %v13891_v45  ;;  %v5472_v7 = vpop.f32.mrb[120].mxu1  ;;  %v6088_v23 = vpop.f32.mrb[202].mxu0  ;;  %6823 = vmatprep.mubr.bf16.mxu1 %v6514_v50  ;;  %v5819_v27 = vpack.c.bf16 %v5751_v29, %v5749_v14 }
 0x652   : > { %v5624_v54 = vadd.f32 %v13653_v2, %v5472_v7  ;;  %v6089_v3 = vadd.f32 %v6088_v23, %v13887_v48  ;;  %v5474_v21 = vpop.f32.mrb[121].mxu1  ;;  %v6090_v39 = vpop.f32.mrb[203].mxu0  ;;  %6824 = vmatmul.mubr.bf16.gmra.mrb[132].mxu1 %v6513_v57  ;;  %v6391_v4 = vmax.f32 %v6085_v18, 0.0 }
 0x653   : > { %v5625_v60 = vadd.f32 %v13657_v42, %v5474_v21  ;;  %v6091_v37 = vadd.f32 %v6090_v39, %v13891_v45  ;;  %v5476_v63 = vpop.f32.mrb[122].mxu1  ;;  %6352 = vmatprep.mubr.bf16.mxu0 %v5819_v27  ;;  %v6392_v16 = vmax.f32 %v6087_v36, 0.0 }
 0x654   : > { %v6393_v6 = vmax.f32 %v6089_v3, 0.0  ;;  %v5626_v59 = vadd.f32 %v13653_v2, %v5476_v63  ;;  %v5478_v51 = vpop.f32.mrb[123].mxu1  ;;  %6353 = vmatmul.mubr.bf16.gmra.mrb[52].mxu0 %v5818_v33  ;;  %v5752_v29 = vmax.f32 %v5624_v54, 0.0 }
 0x655   : > { %v6394_v0 = vmax.f32 %v6091_v37, 0.0  ;;  %v5627_v14 = vadd.f32 %v13657_v42, %v5478_v51  ;;  %v5753_v57 = vmax.f32 %v5625_v60, 0.0  ;;  %v11477_v60 = vld [vmem:[%s15840_s5 + $0x108] ss:$12 sps:$4 sm:$0xff]  }
 0x656   : > { %v6515_v9 = vpack.c.bf16 %v6393_v6, %v6391_v4  ;;  %v5754_v50 = vmax.f32 %v5626_v59, 0.0 }
 0x657   : > { %v5755_v30 = vmax.f32 %v5627_v14, 0.0  ;;  %v6094_v7 = vpop.f32.mrb[204].mxu0  ;;  %v6516_v23 = vpack.c.bf16 %v6394_v0, %v6392_v16  ;;  %v11479_v16 = vld [vmem:[%s15840_s5 + $0x10c] ss:$12 sps:$4 sm:$0xff]  }
 0x658   : > { %v5820_v21 = vpack.c.bf16 %v5754_v50, %v5752_v29  ;;  %v6095_v27 = vadd.f32 %v6094_v7, %v13887_v48  ;;  %v6096_v18 = vpop.f32.mrb[205].mxu0  ;;  %7685 = vmatprep.subr.bf16.mxu0 %v11479_v16 }
 0x659   : > { %v6097_v3 = vadd.f32 %v6096_v18, %v13891_v45  ;;  %v5482_v39 = vpop.f32.mrb[124].mxu1  ;;  %v6098_v63 = vpop.f32.mrb[206].mxu0  ;;  %6833 = vmatprep.mubr.bf16.mxu1 %v6516_v23  ;;  %v5821_v33 = vpack.c.bf16 %v5755_v30, %v5753_v57  ;;  %7686 = vmatpush1.bf16.msra.mxu0 %v11477_v60 }
 0x65a   : > { %v5628_v36 = vadd.f32 %v13653_v2, %v5482_v39  ;;  %v6099_v54 = vadd.f32 %v6098_v63, %v13887_v48  ;;  %v5484_v37 = vpop.f32.mrb[125].mxu1  ;;  %v6100_v4 = vpop.f32.mrb[207].mxu0  ;;  %6834 = vmatmul.mubr.bf16.gmra.mrb[136].mxu1 %v6515_v9  ;;  %v6395_v0 = vmax.f32 %v6095_v27, 0.0 }
 0x65b   : > { %v5629_v6 = vadd.f32 %v13657_v42, %v5484_v37  ;;  %v6101_v59 = vadd.f32 %v6100_v4, %v13891_v45  ;;  %v5486_v51 = vpop.f32.mrb[126].mxu1  ;;  %6362 = vmatprep.mubr.bf16.mxu0 %v5821_v33  ;;  %v6396_v9 = vmax.f32 %v6097_v3, 0.0 }
 0x65c   : > { %v6397_v14 = vmax.f32 %v6099_v54, 0.0  ;;  %v5630_v29 = vadd.f32 %v13653_v2, %v5486_v51  ;;  %v5488_v50 = vpop.f32.mrb[127].mxu1  ;;  %6363 = vmatmul.mubr.bf16.gmra.mrb[56].mxu0 %v5820_v21  ;;  %v5756_v7 = vmax.f32 %v5628_v36, 0.0 }
 0x65d   : > { %v6398_v57 = vmax.f32 %v6101_v59, 0.0  ;;  %v5631_v30 = vadd.f32 %v13657_v42, %v5488_v50  ;;  %v5757_v39 = vmax.f32 %v5629_v6, 0.0 }
 0x65e   : > { %v6517_v23 = vpack.c.bf16 %v6397_v14, %v6395_v0  ;;  %v5758_v18 = vmax.f32 %v5630_v29, 0.0 }
 0x65f   : > { %v5759_v63 = vmax.f32 %v5631_v30, 0.0  ;;  %v6104_v33 = vpop.f32.mrb[208].mxu0  ;;  %v6518_v37 = vpack.c.bf16 %v6398_v57, %v6396_v9 }
 0x660   : > { %v5822_v4 = vpack.c.bf16 %v5758_v18, %v5756_v7  ;;  %v6105_v27 = vadd.f32 %v6104_v33, %v13887_v48  ;;  %v6106_v54 = vpop.f32.mrb[209].mxu0  ;;  %v11480_v18 = vld [vmem:[%s15840_s5 + $0x120] ss:$12 sps:$4 sm:$0xff]  }
 0x661   : > { %v6107_v2 = vadd.f32 %v6106_v54, %v13891_v45  ;;  %v6108_v21 = vpop.f32.mrb[210].mxu0  ;;  %6843 = vmatprep.mubr.bf16.mxu1 %v6518_v37  ;;  %v5823_v3 = vpack.c.bf16 %v5759_v63, %v5757_v39  ;;  %v11482_v39 = vld [vmem:[%s15840_s5 + $0x124] ss:$12 sps:$4 sm:$0xff]  }
 0x662   : > { %v6109_v42 = vadd.f32 %v6108_v21, %v13887_v48  ;;  %v6110_v59 = vpop.f32.mrb[211].mxu0  ;;  %6844 = vmatmul.mubr.bf16.gmra.mrb[140].mxu1 %v6517_v23  ;;  %v6399_v60 = vmax.f32 %v6105_v27, 0.0  ;;  %7687 = vmatprep.subr.bf16.mxu0 %v11482_v39 }
 0x663   : > { %v6111_v36 = vadd.f32 %v6110_v59, %v13891_v45  ;;  %6372 = vmatprep.mubr.bf16.mxu0 %v5823_v3  ;;  %v6400_v51 = vmax.f32 %v6107_v2, 0.0  ;;  %7688 = vmatpush1.bf16.msra.mxu0 %v11480_v18 }
 0x664   : > { %v6401_v6 = vmax.f32 %v6109_v42, 0.0  ;;  %6373 = vmatmul.mubr.bf16.gmra.mrb[60].mxu0 %v5822_v4 }
 0x665   : > { %v6402_v16 = vmax.f32 %v6111_v36, 0.0 }
 0x666   : > { %v6519_v0 = vpack.c.bf16 %v6401_v6, %v6399_v60 }
 0x667   : > { %v6114_v14 = vpop.f32.mrb[212].mxu0  ;;  %v6520_v29 = vpack.c.bf16 %v6402_v16, %v6400_v51 }
 0x668   : > { %v6115_v50 = vadd.f32 %v6114_v14, %v13887_v48  ;;  %v6116_v9 = vpop.f32.mrb[213].mxu0 }
 0x669   : > { %v6117_v57 = vadd.f32 %v6116_v9, %v13891_v45  ;;  %v6118_v30 = vpop.f32.mrb[214].mxu0  ;;  %6853 = vmatprep.mubr.bf16.mxu1 %v6520_v29 }
 0x66a   : > { %v6119_v7 = vadd.f32 %v6118_v30, %v13887_v48  ;;  %v6120_v23 = vpop.f32.mrb[215].mxu0  ;;  %6854 = vmatmul.mubr.bf16.gmra.mrb[144].mxu1 %v6519_v0  ;;  %v6403_v33 = vmax.f32 %v6115_v50, 0.0 }
 0x66b   : > { %v6121_v63 = vadd.f32 %v6120_v23, %v13891_v45  ;;  %v6404_v4 = vmax.f32 %v6117_v57, 0.0 }
 0x66c   : > { %v6405_v37 = vmax.f32 %v6119_v7, 0.0 }
 0x66d   : > { %v6406_v27 = vmax.f32 %v6121_v63, 0.0 }
 0x66e   : > { %v6521_v54 = vpack.c.bf16 %v6405_v37, %v6403_v33  ;;  %v11483_v33 = vld [vmem:[%s15840_s5 + $0x138] ss:$12 sps:$4 sm:$0xff]   ;;  %v11485_v37 = vld [vmem:[%s15840_s5 + $0x13c] ss:$12 sps:$4 sm:$0xff]  }
 0x66f   : > { %v6124_v2 = vpop.f32.mrb[216].mxu0  ;;  %v6522_v21 = vpack.c.bf16 %v6406_v27, %v6404_v4  ;;  %7689 = vmatprep.subr.bf16.mxu0 %v11485_v37  ;;  %v11489_v37 = vld [vmem:[%s15840_s5 + $0x8] ss:$12 sps:$4 sm:$0xff]  }
 0x670   : > { %v6125_v3 = vadd.f32 %v6124_v2, %v13887_v48  ;;  %v6126_v42 = vpop.f32.mrb[217].mxu0  ;;  %7690 = vmatpush1.bf16.msra.mxu0 %v11483_v33  ;;  %8017 = vmatpush1.bf16.msra.mxu1 %v11489_v37 }
 0x671   : > { %v6127_v59 = vadd.f32 %v6126_v42, %v13891_v45  ;;  %v6128_v36 = vpop.f32.mrb[218].mxu0  ;;  %6863 = vmatprep.mubr.bf16.mxu1 %v6522_v21  ;;  %8018 = vmatprep.subr.bf16.mxu1 %v15895_v56 }
 0x672   : > { %v6129_v60 = vadd.f32 %v6128_v36, %v13887_v48  ;;  %v6130_v6 = vpop.f32.mrb[219].mxu0  ;;  %6864 = vmatmul.mubr.bf16.gmra.mrb[148].mxu1 %v6521_v54  ;;  %v6407_v16 = vmax.f32 %v6125_v3, 0.0 }
 0x673   : > { %v6131_v51 = vadd.f32 %v6130_v6, %v13891_v45  ;;  %v6408_v14 = vmax.f32 %v6127_v59, 0.0 }
 0x674   : > { %v6409_v0 = vmax.f32 %v6129_v60, 0.0 }
 0x675   : > { %v6410_v29 = vmax.f32 %v6131_v51, 0.0 }
 0x676   : > { %v6523_v50 = vpack.c.bf16 %v6409_v0, %v6407_v16 }
 0x677   : > { %v6134_v9 = vpop.f32.mrb[220].mxu0  ;;  %v6524_v57 = vpack.c.bf16 %v6410_v29, %v6408_v14 }
 0x678   : > { %v6135_v30 = vadd.f32 %v6134_v9, %v13887_v48  ;;  %v6136_v7 = vpop.f32.mrb[221].mxu0 }
 0x679   : > { %v6137_v23 = vadd.f32 %v6136_v7, %v13891_v45  ;;  %v6138_v18 = vpop.f32.mrb[222].mxu0  ;;  %6873 = vmatprep.mubr.bf16.mxu1 %v6524_v57 }
 0x67a   : > { %v6139_v39 = vadd.f32 %v6138_v18, %v13887_v48  ;;  %v6140_v63 = vpop.f32.mrb[223].mxu0  ;;  %6874 = vmatmul.mubr.bf16.gmra.mrb[152].mxu1 %v6523_v50  ;;  %v6411_v27 = vmax.f32 %v6135_v30, 0.0 }
 0x67b   : > { %v6141_v4 = vadd.f32 %v6140_v63, %v13891_v45  ;;  %v6412_v2 = vmax.f32 %v6137_v23, 0.0 }
 0x67c   : > { %v6413_v54 = vmax.f32 %v6139_v39, 0.0 }
 0x67d   : > { %v6414_v21 = vmax.f32 %v6141_v4, 0.0 }
 0x67e   : > { %v6525_v3 = vpack.c.bf16 %v6413_v54, %v6411_v27  ;;  %v11486_v54 = vld [vmem:[%s15840_s5 + $0x150] ss:$12 sps:$4 sm:$0xff]  }
 0x67f   : > { %v6144_v42 = vpop.f32.mrb[224].mxu0  ;;  %v6526_v59 = vpack.c.bf16 %v6414_v21, %v6412_v2  ;;  %v11488_v2 = vld [vmem:[%s15840_s5 + $0x154] ss:$12 sps:$4 sm:$0xff]  }
 0x680   : > { %v6145_v36 = vadd.f32 %v6144_v42, %v13887_v48  ;;  %v6146_v60 = vpop.f32.mrb[225].mxu0  ;;  %7691 = vmatprep.subr.bf16.mxu0 %v11488_v2 }
 0x681   : > { %v6147_v6 = vadd.f32 %v6146_v60, %v13891_v45  ;;  %v6148_v51 = vpop.f32.mrb[226].mxu0  ;;  %6883 = vmatprep.mubr.bf16.mxu1 %v6526_v59  ;;  %7692 = vmatpush1.bf16.msra.mxu0 %v11486_v54  ;;  %v11490_v60 = vld [vmem:[%s15840_s5 + $0x20] ss:$12 sps:$4 sm:$0xff]  }
 0x682   : > { %v6149_v16 = vadd.f32 %v6148_v51, %v13887_v48  ;;  %v6150_v0 = vpop.f32.mrb[227].mxu0  ;;  %6884 = vmatmul.mubr.bf16.gmra.mrb[156].mxu1 %v6525_v3  ;;  %v6415_v29 = vmax.f32 %v6145_v36, 0.0 }
 0x683   : > { %v6151_v14 = vadd.f32 %v6150_v0, %v13891_v45  ;;  %v6416_v9 = vmax.f32 %v6147_v6, 0.0  ;;  %8019 = vmatpush1.bf16.msra.mxu1 %v11490_v60  ;;  %v11492_v60 = vld [vmem:[%s15840_s5 + $0x168] ss:$12 sps:$4 sm:$0xff]  }
 0x684   : > { %v6417_v50 = vmax.f32 %v6149_v16, 0.0  ;;  %8020 = vmatprep.subr.bf16.mxu1 %v15895_v56 }
 0x685   : > { %v6418_v57 = vmax.f32 %v6151_v14, 0.0 }
 0x686   : > { %v6527_v30 = vpack.c.bf16 %v6417_v50, %v6415_v29 }
 0x687   : > { %v6154_v7 = vpop.f32.mrb[228].mxu0  ;;  %v6528_v23 = vpack.c.bf16 %v6418_v57, %v6416_v9  ;;  %v11491_v9 = vld [vmem:[%s15840_s5 + $0x38] ss:$12 sps:$4 sm:$0xff]  }
 0x688   : > { %v6155_v18 = vadd.f32 %v6154_v7, %v13887_v48  ;;  %v6156_v39 = vpop.f32.mrb[229].mxu0  ;;  %8021 = vmatpush1.bf16.msra.mxu1 %v11491_v9 }
 0x689   : > { %v6157_v63 = vadd.f32 %v6156_v39, %v13891_v45  ;;  %v6158_v33 = vpop.f32.mrb[230].mxu0  ;;  %6893 = vmatprep.mubr.bf16.mxu1 %v6528_v23  ;;  %8022 = vmatprep.subr.bf16.mxu1 %v15895_v56 }
 0x68a   : > { %v6159_v4 = vadd.f32 %v6158_v33, %v13887_v48  ;;  %v6160_v27 = vpop.f32.mrb[231].mxu0  ;;  %6894 = vmatmul.mubr.bf16.gmra.mrb[160].mxu1 %v6527_v30  ;;  %v6419_v3 = vmax.f32 %v6155_v18, 0.0  ;;  %v11495_v33 = vld [vmem:[%s15840_s5 + $0x50] ss:$12 sps:$4 sm:$0xff]  }
 0x68b   : > { %v6161_v21 = vadd.f32 %v6160_v27, %v13891_v45  ;;  %v6420_v59 = vmax.f32 %v6157_v63, 0.0 }
 0x68c   : > { %v6421_v42 = vmax.f32 %v6159_v4, 0.0  ;;  %8023 = vmatpush1.bf16.msra.mxu1 %v11495_v33 }
 0x68d   : > { %v6422_v36 = vmax.f32 %v6161_v21, 0.0  ;;  %8024 = vmatprep.subr.bf16.mxu1 %v15895_v56 }
 0x68e   : > { %v6529_v6 = vpack.c.bf16 %v6421_v42, %v6419_v3  ;;  %v11496_v42 = vld [vmem:[%s15840_s5 + $0x68] ss:$12 sps:$4 sm:$0xff]  }
 0x68f   : > { %v6164_v51 = vpop.f32.mrb[232].mxu0  ;;  %v6530_v16 = vpack.c.bf16 %v6422_v36, %v6420_v59 }
 0x690   : > { %v6165_v0 = vadd.f32 %v6164_v51, %v13887_v48  ;;  %v6166_v14 = vpop.f32.mrb[233].mxu0  ;;  %8025 = vmatpush1.bf16.msra.mxu1 %v11496_v42 }
 0x691   : > { %v6167_v29 = vadd.f32 %v6166_v14, %v13891_v45  ;;  %v6168_v50 = vpop.f32.mrb[234].mxu0  ;;  %6903 = vmatprep.mubr.bf16.mxu1 %v6530_v16  ;;  %8026 = vmatprep.subr.bf16.mxu1 %v15895_v56 }
 0x692   : > { %v6169_v57 = vadd.f32 %v6168_v50, %v13887_v48  ;;  %v6170_v30 = vpop.f32.mrb[235].mxu0  ;;  %6904 = vmatmul.mubr.bf16.gmra.mrb[164].mxu1 %v6529_v6  ;;  %v6423_v23 = vmax.f32 %v6165_v0, 0.0  ;;  %v11494_v6 = vld [vmem:[%s15840_s5 + $0x16c] ss:$12 sps:$4 sm:$0xff]  }
 0x693   : > { %v6171_v7 = vadd.f32 %v6170_v30, %v13891_v45  ;;  %v6424_v39 = vmax.f32 %v6167_v29, 0.0  ;;  %7693 = vmatprep.subr.bf16.mxu0 %v11494_v6  ;;  %v11497_v50 = vld [vmem:[%s15840_s5 + $0x80] ss:$12 sps:$4 sm:$0xff]  }
 0x694   : > { %v6425_v18 = vmax.f32 %v6169_v57, 0.0  ;;  %7694 = vmatpush1.bf16.msra.mxu0 %v11492_v60  ;;  %8027 = vmatpush1.bf16.msra.mxu1 %v11497_v50 }
 0x695   : > { %v6426_v63 = vmax.f32 %v6171_v7, 0.0  ;;  %8497 = vmatprep.subr.bf16.mxu0 %v15895_v56  ;;  %8028 = vmatprep.subr.bf16.mxu1 %v15895_v56 }
 0x696   : > { %v6531_v37 = vpack.c.bf16 %v6425_v18, %v6423_v23 }
 0x697   : > { %v6174_v4 = vpop.f32.mrb[236].mxu0  ;;  %v6532_v27 = vpack.c.bf16 %v6426_v63, %v6424_v39  ;;  %v11498_v63 = vld [vmem:[%s15840_s5 + $0x98] ss:$12 sps:$4 sm:$0xff]  }
 0x698   : > { %v6175_v54 = vadd.f32 %v6174_v4, %v13887_v48  ;;  %v6176_v2 = vpop.f32.mrb[237].mxu0  ;;  %8029 = vmatpush1.bf16.msra.mxu1 %v11498_v63 }
 0x699   : > { %v6177_v21 = vadd.f32 %v6176_v2, %v13891_v45  ;;  %v6178_v3 = vpop.f32.mrb[238].mxu0  ;;  %6913 = vmatprep.mubr.bf16.mxu1 %v6532_v27  ;;  %8030 = vmatprep.subr.bf16.mxu1 %v15895_v56 }
 0x69a   : > { %v6179_v59 = vadd.f32 %v6178_v3, %v13887_v48  ;;  %v6180_v36 = vpop.f32.mrb[239].mxu0  ;;  %6914 = vmatmul.mubr.bf16.gmra.mrb[168].mxu1 %v6531_v37  ;;  %v6427_v16 = vmax.f32 %v6175_v54, 0.0  ;;  %v11499_v3 = vld [vmem:[%s15840_s5 + $0xb0] ss:$12 sps:$4 sm:$0xff]  }
 0x69b   : > { %v6181_v51 = vadd.f32 %v6180_v36, %v13891_v45  ;;  %v6428_v14 = vmax.f32 %v6177_v21, 0.0 }
 0x69c   : > { %v6429_v0 = vmax.f32 %v6179_v59, 0.0  ;;  %8031 = vmatpush1.bf16.msra.mxu1 %v11499_v3 }
 0x69d   : > { %v6430_v29 = vmax.f32 %v6181_v51, 0.0  ;;  %8032 = vmatprep.subr.bf16.mxu1 %v15895_v56 }
 0x69e   : > { %v6533_v9 = vpack.c.bf16 %v6429_v0, %v6427_v16  ;;  %v11501_v0 = vld [vmem:[%s15840_s5 + $0xc8] ss:$12 sps:$4 sm:$0xff]  }
 0x69f   : > { %v6184_v57 = vpop.f32.mrb[240].mxu0  ;;  %v6534_v30 = vpack.c.bf16 %v6430_v29, %v6428_v14 }
 0x6a0   : > { %v6185_v7 = vadd.f32 %v6184_v57, %v13887_v48  ;;  %v6186_v23 = vpop.f32.mrb[241].mxu0  ;;  %8033 = vmatpush1.bf16.msra.mxu1 %v11501_v0 }
 0x6a1   : > { %v6187_v18 = vadd.f32 %v6186_v23, %v13891_v45  ;;  %v6188_v39 = vpop.f32.mrb[242].mxu0  ;;  %6923 = vmatprep.mubr.bf16.mxu1 %v6534_v30  ;;  %8034 = vmatprep.subr.bf16.mxu1 %v15895_v56  ;;  %v11502_v23 = vld [vmem:[%s15840_s5 + $0xe0] ss:$12 sps:$4 sm:$0xff]  }
 0x6a2   : > { %v6189_v33 = vadd.f32 %v6188_v39, %v13887_v48  ;;  %v6190_v37 = vpop.f32.mrb[243].mxu0  ;;  %6924 = vmatmul.mubr.bf16.gmra.mrb[172].mxu1 %v6533_v9  ;;  %v6431_v27 = vmax.f32 %v6185_v7, 0.0 }
 0x6a3   : > { %v6191_v4 = vadd.f32 %v6190_v37, %v13891_v45  ;;  %v6432_v2 = vmax.f32 %v6187_v18, 0.0 }
 0x6a4   : > { %v6433_v54 = vmax.f32 %v6189_v33, 0.0  ;;  %8035 = vmatpush1.bf16.msra.mxu1 %v11502_v23 }
 0x6a5   : > { %v6434_v21 = vmax.f32 %v6191_v4, 0.0  ;;  %8036 = vmatprep.subr.bf16.mxu1 %v15895_v56 }
 0x6a6   : > { %v6535_v42 = vpack.c.bf16 %v6433_v54, %v6431_v27  ;;  %v11503_v54 = vld [vmem:[%s15840_s5 + $0xf8] ss:$12 sps:$4 sm:$0xff]  }
 0x6a7   : > { %v6194_v59 = vpop.f32.mrb[244].mxu0  ;;  %v6536_v36 = vpack.c.bf16 %v6434_v21, %v6432_v2 }
 0x6a8   : > { %v6195_v60 = vadd.f32 %v6194_v59, %v13887_v48  ;;  %v6196_v6 = vpop.f32.mrb[245].mxu0  ;;  %8037 = vmatpush1.bf16.msra.mxu1 %v11503_v54 }
 0x6a9   : > { %v6197_v51 = vadd.f32 %v6196_v6, %v13891_v45  ;;  %v6198_v16 = vpop.f32.mrb[246].mxu0  ;;  %6933 = vmatprep.mubr.bf16.mxu1 %v6536_v36  ;;  %8038 = vmatprep.subr.bf16.mxu1 %v15895_v56  ;;  %v11504_v6 = vld [vmem:[%s15840_s5 + $0x110] ss:$12 sps:$4 sm:$0xff]  }
 0x6aa   : > { %v6199_v14 = vadd.f32 %v6198_v16, %v13887_v48  ;;  %v6200_v29 = vpop.f32.mrb[247].mxu0  ;;  %6934 = vmatmul.mubr.bf16.gmra.mrb[176].mxu1 %v6535_v42  ;;  %v6435_v9 = vmax.f32 %v6195_v60, 0.0 }
 0x6ab   : > { %v6201_v50 = vadd.f32 %v6200_v29, %v13891_v45  ;;  %v6436_v30 = vmax.f32 %v6197_v51, 0.0 }
 0x6ac   : > { %v6437_v57 = vmax.f32 %v6199_v14, 0.0  ;;  %8039 = vmatpush1.bf16.msra.mxu1 %v11504_v6 }
 0x6ad   : > { %v6438_v7 = vmax.f32 %v6201_v50, 0.0  ;;  %8040 = vmatprep.subr.bf16.mxu1 %v15895_v56 }
 0x6ae   : > { %v6537_v18 = vpack.c.bf16 %v6437_v57, %v6435_v9  ;;  %v11506_v57 = vld [vmem:[%s15840_s5 + $0x128] ss:$12 sps:$4 sm:$0xff]  }
 0x6af   : > { %v6204_v39 = vpop.f32.mrb[248].mxu0  ;;  %v6538_v63 = vpack.c.bf16 %v6438_v7, %v6436_v30 }
 0x6b0   : > { %v6205_v33 = vadd.f32 %v6204_v39, %v13887_v48  ;;  %v6206_v37 = vpop.f32.mrb[249].mxu0  ;;  %8041 = vmatpush1.bf16.msra.mxu1 %v11506_v57 }
 0x6b1   : > { %v6207_v4 = vadd.f32 %v6206_v37, %v13891_v45  ;;  %v6208_v27 = vpop.f32.mrb[250].mxu0  ;;  %6943 = vmatprep.mubr.bf16.mxu1 %v6538_v63  ;;  %8042 = vmatprep.subr.bf16.mxu1 %v15895_v56  ;;  %v11507_v37 = vld [vmem:[%s15840_s5 + $0x140] ss:$12 sps:$4 sm:$0xff]  }
 0x6b2   : > { %v6209_v2 = vadd.f32 %v6208_v27, %v13887_v48  ;;  %v6210_v21 = vpop.f32.mrb[251].mxu0  ;;  %6944 = vmatmul.mubr.bf16.gmra.mrb[180].mxu1 %v6537_v18  ;;  %v6439_v42 = vmax.f32 %v6205_v33, 0.0 }
 0x6b3   : > { %v6211_v3 = vadd.f32 %v6210_v21, %v13891_v45  ;;  %v6440_v36 = vmax.f32 %v6207_v4, 0.0 }
 0x6b4   : > { %v6441_v59 = vmax.f32 %v6209_v2, 0.0  ;;  %8043 = vmatpush1.bf16.msra.mxu1 %v11507_v37 }
 0x6b5   : > { %v6442_v60 = vmax.f32 %v6211_v3, 0.0  ;;  %8044 = vmatprep.subr.bf16.mxu1 %v15895_v56 }
 0x6b6   : > { %v6539_v51 = vpack.c.bf16 %v6441_v59, %v6439_v42  ;;  %v11508_v59 = vld [vmem:[%s15840_s5 + $0x158] ss:$12 sps:$4 sm:$0xff]  }
 0x6b7   : > { %v6214_v16 = vpop.f32.mrb[252].mxu0  ;;  %v6540_v0 = vpack.c.bf16 %v6442_v60, %v6440_v36 }
 0x6b8   : > { %v6215_v14 = vadd.f32 %v6214_v16, %v13887_v48  ;;  %v6216_v29 = vpop.f32.mrb[253].mxu0  ;;  %8045 = vmatpush1.bf16.msra.mxu1 %v11508_v59 }
 0x6b9   : > { %v6217_v50 = vadd.f32 %v6216_v29, %v13891_v45  ;;  %v6218_v9 = vpop.f32.mrb[254].mxu0  ;;  %6953 = vmatprep.mubr.bf16.mxu1 %v6540_v0  ;;  %8046 = vmatprep.subr.bf16.mxu1 %v15895_v56  ;;  %v11509_v29 = vld [vmem:[%s15840_s5 + $0x170] ss:$12 sps:$4 sm:$0xff]  }
 0x6ba   : > { %v6219_v30 = vadd.f32 %v6218_v9, %v13887_v48  ;;  %v6220_v7 = vpop.f32.mrb[255].mxu0  ;;  %6954 = vmatmul.mubr.bf16.gmra.mrb[184].mxu1 %v6539_v51  ;;  %v6443_v18 = vmax.f32 %v6215_v14, 0.0 }
 0x6bb   : > { %v6221_v23 = vadd.f32 %v6220_v7, %v13891_v45  ;;  %v6444_v63 = vmax.f32 %v6217_v50, 0.0 }
 0x6bc   : > { %v6445_v39 = vmax.f32 %v6219_v30, 0.0  ;;  %8047 = vmatpush1.bf16.msra.mxu1 %v11509_v29 }
 0x6bd   : > { %v6446_v33 = vmax.f32 %v6221_v23, 0.0 }
 0x6be   : > { %v6541_v4 = vpack.c.bf16 %v6445_v39, %v6443_v18 }
 0x6bf   : > { %v6224_v27 = vpop.f32.mrb[0].mxu0  ;;  %v6542_v54 = vpack.c.bf16 %v6446_v33, %v6444_v63 }
 0x6c0   : > { %v6225_v2 = vadd.f32 %v6224_v27, %v13887_v48  ;;  %v6226_v21 = vpop.f32.mrb[1].mxu0 }
 0x6c1   : > { %v6227_v3 = vadd.f32 %v6226_v21, %v13891_v45  ;;  %v6228_v42 = vpop.f32.mrb[2].mxu0  ;;  %6963 = vmatprep.mubr.bf16.mxu1 %v6542_v54 }
 0x6c2   : > { %v6229_v36 = vadd.f32 %v6228_v42, %v13887_v48  ;;  %v6230_v60 = vpop.f32.mrb[3].mxu0  ;;  %6964 = vmatmul.mubr.bf16.gmra.mrb[188].mxu1 %v6541_v4  ;;  %v6447_v51 = vmax.f32 %v6225_v2, 0.0 }
 0x6c3   : > { %v6231_v6 = vadd.f32 %v6230_v60, %v13891_v45  ;;  %v6448_v0 = vmax.f32 %v6227_v3, 0.0 }
 0x6c4   : > { %v6449_v16 = vmax.f32 %v6229_v36, 0.0 }
 0x6c5   : > { %v6450_v14 = vmax.f32 %v6231_v6, 0.0 }
 0x6c6   : > { %v6543_v50 = vpack.c.bf16 %v6449_v16, %v6447_v51 }
 0x6c7   : > { %v6234_v9 = vpop.f32.mrb[4].mxu0  ;;  %v6544_v57 = vpack.c.bf16 %v6450_v14, %v6448_v0 }
 0x6c8   : > { %v6235_v30 = vadd.f32 %v6234_v9, %v13887_v48  ;;  %v6236_v7 = vpop.f32.mrb[5].mxu0 }
 0x6c9   : > { %v6237_v23 = vadd.f32 %v6236_v7, %v13891_v45  ;;  %v6238_v18 = vpop.f32.mrb[6].mxu0  ;;  %6973 = vmatprep.mubr.bf16.mxu1 %v6544_v57 }
 0x6ca   : > { %v6239_v39 = vadd.f32 %v6238_v18, %v13887_v48  ;;  %v6240_v63 = vpop.f32.mrb[7].mxu0  ;;  %6974 = vmatmul.mubr.bf16.gmra.mrb[192].mxu1 %v6543_v50  ;;  %v6451_v37 = vmax.f32 %v6235_v30, 0.0 }
 0x6cb   : > { %v6241_v33 = vadd.f32 %v6240_v63, %v13891_v45  ;;  %v6452_v27 = vmax.f32 %v6237_v23, 0.0 }
 0x6cc   : > { %v6453_v4 = vmax.f32 %v6239_v39, 0.0 }
 0x6cd   : > { %v6454_v54 = vmax.f32 %v6241_v33, 0.0 }
 0x6ce   : > { %v6545_v2 = vpack.c.bf16 %v6453_v4, %v6451_v37 }
 0x6cf   : > { %v6244_v21 = vpop.f32.mrb[8].mxu0  ;;  %v6546_v3 = vpack.c.bf16 %v6454_v54, %v6452_v27 }
 0x6d0   : > { %v6245_v42 = vadd.f32 %v6244_v21, %v13887_v48  ;;  %v6246_v59 = vpop.f32.mrb[9].mxu0 }
 0x6d1   : > { %v6247_v36 = vadd.f32 %v6246_v59, %v13891_v45  ;;  %v6248_v60 = vpop.f32.mrb[10].mxu0  ;;  %6983 = vmatprep.mubr.bf16.mxu1 %v6546_v3 }
 0x6d2   : > { %v6249_v6 = vadd.f32 %v6248_v60, %v13887_v48  ;;  %v6250_v51 = vpop.f32.mrb[11].mxu0  ;;  %6984 = vmatmul.mubr.bf16.gmra.mrb[196].mxu1 %v6545_v2  ;;  %v6455_v0 = vmax.f32 %v6245_v42, 0.0 }
 0x6d3   : > { %v6251_v16 = vadd.f32 %v6250_v51, %v13891_v45  ;;  %v6456_v29 = vmax.f32 %v6247_v36, 0.0 }
 0x6d4   : > { %v6457_v14 = vmax.f32 %v6249_v6, 0.0 }
 0x6d5   : > { %v6458_v50 = vmax.f32 %v6251_v16, 0.0 }
 0x6d6   : > { %v6547_v9 = vpack.c.bf16 %v6457_v14, %v6455_v0 }
 0x6d7   : > { %v6254_v57 = vpop.f32.mrb[12].mxu0  ;;  %v6548_v30 = vpack.c.bf16 %v6458_v50, %v6456_v29 }
 0x6d8   : > { %v6255_v7 = vadd.f32 %v6254_v57, %v13887_v48  ;;  %v6256_v23 = vpop.f32.mrb[13].mxu0 }
 0x6d9   : > { %v6257_v18 = vadd.f32 %v6256_v23, %v13891_v45  ;;  %v6258_v39 = vpop.f32.mrb[14].mxu0  ;;  %6993 = vmatprep.mubr.bf16.mxu1 %v6548_v30 }
 0x6da   : > { %v6259_v63 = vadd.f32 %v6258_v39, %v13887_v48  ;;  %v6260_v33 = vpop.f32.mrb[15].mxu0  ;;  %6994 = vmatmul.mubr.bf16.gmra.mrb[200].mxu1 %v6547_v9  ;;  %v6459_v4 = vmax.f32 %v6255_v7, 0.0 }
 0x6db   : > { %v6261_v37 = vadd.f32 %v6260_v33, %v13891_v45  ;;  %v6460_v54 = vmax.f32 %v6257_v18, 0.0 }
 0x6dc   : > { %v6461_v27 = vmax.f32 %v6259_v63, 0.0 }
 0x6dd   : > { %v6462_v2 = vmax.f32 %v6261_v37, 0.0 }
 0x6de   : > { %v6549_v21 = vpack.c.bf16 %v6461_v27, %v6459_v4 }
 0x6df   : > { %v6264_v3 = vpop.f32.mrb[16].mxu0  ;;  %v6550_v42 = vpack.c.bf16 %v6462_v2, %v6460_v54 }
 0x6e0   : > { %v6265_v59 = vadd.f32 %v6264_v3, %v13887_v48  ;;  %v6266_v36 = vpop.f32.mrb[17].mxu0 }
 0x6e1   : > { %v6267_v60 = vadd.f32 %v6266_v36, %v13891_v45  ;;  %v6268_v6 = vpop.f32.mrb[18].mxu0  ;;  %7003 = vmatprep.mubr.bf16.mxu1 %v6550_v42 }
 0x6e2   : > { %v6269_v51 = vadd.f32 %v6268_v6, %v13887_v48  ;;  %v6270_v16 = vpop.f32.mrb[19].mxu0  ;;  %7004 = vmatmul.mubr.bf16.gmra.mrb[204].mxu1 %v6549_v21  ;;  %v6463_v14 = vmax.f32 %v6265_v59, 0.0 }
 0x6e3   : > { %v6271_v0 = vadd.f32 %v6270_v16, %v13891_v45  ;;  %v6464_v50 = vmax.f32 %v6267_v60, 0.0 }
 0x6e4   : > { %v6465_v29 = vmax.f32 %v6269_v51, 0.0 }
 0x6e5   : > { %v6466_v9 = vmax.f32 %v6271_v0, 0.0 }
 0x6e6   : > { %v6551_v57 = vpack.c.bf16 %v6465_v29, %v6463_v14 }
 0x6e7   : > { %v6274_v30 = vpop.f32.mrb[20].mxu0  ;;  %v6552_v7 = vpack.c.bf16 %v6466_v9, %v6464_v50 }
 0x6e8   : > { %v6275_v23 = vadd.f32 %v6274_v30, %v13887_v48  ;;  %v6276_v18 = vpop.f32.mrb[21].mxu0 }
 0x6e9   : > { %v6277_v39 = vadd.f32 %v6276_v18, %v13891_v45  ;;  %v6278_v63 = vpop.f32.mrb[22].mxu0  ;;  %7013 = vmatprep.mubr.bf16.mxu1 %v6552_v7 }
 0x6ea   : > { %v6279_v33 = vadd.f32 %v6278_v63, %v13887_v48  ;;  %v6280_v37 = vpop.f32.mrb[23].mxu0  ;;  %7014 = vmatmul.mubr.bf16.gmra.mrb[208].mxu1 %v6551_v57  ;;  %v6467_v27 = vmax.f32 %v6275_v23, 0.0 }
 0x6eb   : > { %v6281_v4 = vadd.f32 %v6280_v37, %v13891_v45  ;;  %v6468_v2 = vmax.f32 %v6277_v39, 0.0 }
 0x6ec   : > { %v6469_v54 = vmax.f32 %v6279_v33, 0.0 }
 0x6ed   : > { %v6470_v21 = vmax.f32 %v6281_v4, 0.0 }
 0x6ee   : > { %v6553_v3 = vpack.c.bf16 %v6469_v54, %v6467_v27 }
 0x6ef   : > { %v6284_v42 = vpop.f32.mrb[24].mxu0  ;;  %v6554_v59 = vpack.c.bf16 %v6470_v21, %v6468_v2 }
 0x6f0   : > { %v6285_v36 = vadd.f32 %v6284_v42, %v13887_v48  ;;  %v6286_v60 = vpop.f32.mrb[25].mxu0 }
 0x6f1   : > { %v6287_v6 = vadd.f32 %v6286_v60, %v13891_v45  ;;  %v6288_v51 = vpop.f32.mrb[26].mxu0  ;;  %7023 = vmatprep.mubr.bf16.mxu1 %v6554_v59 }
 0x6f2   : > { %v6289_v16 = vadd.f32 %v6288_v51, %v13887_v48  ;;  %v6290_v0 = vpop.f32.mrb[27].mxu0  ;;  %7024 = vmatmul.mubr.bf16.gmra.mrb[212].mxu1 %v6553_v3  ;;  %v6471_v29 = vmax.f32 %v6285_v36, 0.0 }
 0x6f3   : > { %v6291_v14 = vadd.f32 %v6290_v0, %v13891_v45  ;;  %v6472_v9 = vmax.f32 %v6287_v6, 0.0 }
 0x6f4   : > { %v6473_v50 = vmax.f32 %v6289_v16, 0.0 }
 0x6f5   : > { %v6474_v57 = vmax.f32 %v6291_v14, 0.0 }
 0x6f6   : > { %v6555_v30 = vpack.c.bf16 %v6473_v50, %v6471_v29 }
 0x6f7   : > { %v6294_v7 = vpop.f32.mrb[28].mxu0  ;;  %v6556_v23 = vpack.c.bf16 %v6474_v57, %v6472_v9 }
 0x6f8   : > { %v6295_v18 = vadd.f32 %v6294_v7, %v13887_v48  ;;  %v6296_v39 = vpop.f32.mrb[29].mxu0 }
 0x6f9   : > { %v6297_v63 = vadd.f32 %v6296_v39, %v13891_v45  ;;  %v6298_v33 = vpop.f32.mrb[30].mxu0  ;;  %7033 = vmatprep.mubr.bf16.mxu1 %v6556_v23 }
 0x6fa   : > { %v6299_v37 = vadd.f32 %v6298_v33, %v13887_v48  ;;  %v6300_v4 = vpop.f32.mrb[31].mxu0  ;;  %7034 = vmatmul.mubr.bf16.gmra.mrb[216].mxu1 %v6555_v30  ;;  %v6475_v54 = vmax.f32 %v6295_v18, 0.0 }
 0x6fb   : > { %v6301_v27 = vadd.f32 %v6300_v4, %v13891_v45  ;;  %v6476_v21 = vmax.f32 %v6297_v63, 0.0 }
 0x6fc   : > { %v6477_v2 = vmax.f32 %v6299_v37, 0.0 }
 0x6fd   : > { %v6478_v3 = vmax.f32 %v6301_v27, 0.0 }
 0x6fe   : > { %v6557_v42 = vpack.c.bf16 %v6477_v2, %v6475_v54 }
 0x6ff   : > { %v6304_v59 = vpop.f32.mrb[32].mxu0  ;;  %v6558_v36 = vpack.c.bf16 %v6478_v3, %v6476_v21 }
 0x700   : > { %v6305_v60 = vadd.f32 %v6304_v59, %v13887_v48  ;;  %v6306_v6 = vpop.f32.mrb[33].mxu0 }
 0x701   : > { %v6307_v51 = vadd.f32 %v6306_v6, %v13891_v45  ;;  %v6308_v16 = vpop.f32.mrb[34].mxu0  ;;  %7043 = vmatprep.mubr.bf16.mxu1 %v6558_v36 }
 0x702   : > { %v6309_v0 = vadd.f32 %v6308_v16, %v13887_v48  ;;  %v6310_v14 = vpop.f32.mrb[35].mxu0  ;;  %7044 = vmatmul.mubr.bf16.gmra.mrb[220].mxu1 %v6557_v42  ;;  %v6479_v50 = vmax.f32 %v6305_v60, 0.0 }
 0x703   : > { %v6311_v29 = vadd.f32 %v6310_v14, %v13891_v45  ;;  %v6480_v57 = vmax.f32 %v6307_v51, 0.0 }
 0x704   : > { %v6481_v9 = vmax.f32 %v6309_v0, 0.0 }
 0x705   : > { %v6482_v30 = vmax.f32 %v6311_v29, 0.0 }
 0x706   : > { %v6559_v7 = vpack.c.bf16 %v6481_v9, %v6479_v50 }
 0x707   : > { %v6314_v23 = vpop.f32.mrb[36].mxu0  ;;  %v6560_v18 = vpack.c.bf16 %v6482_v30, %v6480_v57 }
 0x708   : > { %v6315_v39 = vadd.f32 %v6314_v23, %v13887_v48  ;;  %v6316_v63 = vpop.f32.mrb[37].mxu0 }
 0x709   : > { %v6317_v33 = vadd.f32 %v6316_v63, %v13891_v45  ;;  %v6318_v37 = vpop.f32.mrb[38].mxu0  ;;  %7053 = vmatprep.mubr.bf16.mxu1 %v6560_v18  ;;  %v10318_v63 = vld [vmem:[%s15839_s4 + $0x6] ss:$8 sm:$0x3] }
 0x70a   : > { %v6319_v4 = vadd.f32 %v6318_v37, %v13887_v48  ;;  %v6320_v27 = vpop.f32.mrb[39].mxu0  ;;  %7054 = vmatmul.mubr.bf16.gmra.mrb[224].mxu1 %v6559_v7  ;;  %v6483_v2 = vmax.f32 %v6315_v39, 0.0 }
 0x70b   : > { %v6321_v54 = vadd.f32 %v6320_v27, %v13891_v45  ;;  %v6484_v3 = vmax.f32 %v6317_v33, 0.0 }
 0x70c   : > { %v6485_v21 = vmax.f32 %v6319_v4, 0.0 }
 0x70d   : > { %v6486_v42 = vmax.f32 %v6321_v54, 0.0 }
 0x70e   : > { %v6561_v59 = vpack.c.bf16 %v6485_v21, %v6483_v2  ;;  %v14124_v21 = vrot.slane %v10318_v63, %v11998_v12 }
 0x70f   : > { %v6324_v36 = vpop.f32.mrb[40].mxu0  ;;  %v6562_v60 = vpack.c.bf16 %v6486_v42, %v6484_v3  ;;  %v14128_v42 = vrot.slane %v10318_v63, %v12004_v15 }
 0x710   : > { %v6325_v6 = vadd.f32 %v6324_v36, %v13887_v48  ;;  %v6326_v51 = vpop.f32.mrb[41].mxu0 }
 0x711   : > { %v6327_v16 = vadd.f32 %v6326_v51, %v13891_v45  ;;  %v6328_v0 = vpop.f32.mrb[42].mxu0  ;;  %7063 = vmatprep.mubr.bf16.mxu1 %v6562_v60 }
 0x712   : > { %v6329_v14 = vadd.f32 %v6328_v0, %v13887_v48  ;;  %v6330_v29 = vpop.f32.mrb[43].mxu0  ;;  %7064 = vmatmul.mubr.bf16.gmra.mrb[228].mxu1 %v6561_v59  ;;  %v6487_v9 = vmax.f32 %v6325_v6, 0.0 }
 0x713   : > { %v6331_v50 = vadd.f32 %v6330_v29, %v13891_v45  ;;  %v6488_v30 = vmax.f32 %v6327_v16, 0.0 }
 0x714   : > { %v6489_v57 = vmax.f32 %v6329_v14, 0.0 }
 0x715   : > { %v6490_v7 = vmax.f32 %v6331_v50, 0.0 }
 0x716   : > { %v6563_v23 = vpack.c.bf16 %v6489_v57, %v6487_v9 }
 0x717   : > { %v6334_v18 = vpop.f32.mrb[44].mxu0  ;;  %v6564_v39 = vpack.c.bf16 %v6490_v7, %v6488_v30 }
 0x718   : > { %v6335_v33 = vadd.f32 %v6334_v18, %v13887_v48  ;;  %v6336_v37 = vpop.f32.mrb[45].mxu0 }
 0x719   : > { %v6337_v4 = vadd.f32 %v6336_v37, %v13891_v45  ;;  %v6338_v27 = vpop.f32.mrb[46].mxu0  ;;  %7073 = vmatprep.mubr.bf16.mxu1 %v6564_v39 }
 0x71a   : > { %v6339_v54 = vadd.f32 %v6338_v27, %v13887_v48  ;;  %v6340_v2 = vpop.f32.mrb[47].mxu0  ;;  %7074 = vmatmul.mubr.bf16.gmra.mrb[232].mxu1 %v6563_v23  ;;  %v6491_v59 = vmax.f32 %v6335_v33, 0.0 }
 0x71b   : > { %v6341_v3 = vadd.f32 %v6340_v2, %v13891_v45  ;;  %v6492_v60 = vmax.f32 %v6337_v4, 0.0 }
 0x71c   : > { %v6493_v36 = vmax.f32 %v6339_v54, 0.0 }
 0x71d   : > { %v6494_v6 = vmax.f32 %v6341_v3, 0.0  ;;  %v6815_v51 = vpop.f32.mrb[128].mxu1 }
 0x71e   : > { %v6565_v16 = vpack.c.bf16 %v6493_v36, %v6491_v59  ;;  %v6816_v0 = vadd.f32 %v6815_v51, %v14124_v21  ;;  %v6817_v14 = vpop.f32.mrb[129].mxu1 }
 0x71f   : > { %v6818_v29 = vadd.f32 %v6817_v14, %v14128_v42  ;;  %v6344_v50 = vpop.f32.mrb[48].mxu0  ;;  %v6819_v9 = vpop.f32.mrb[130].mxu1  ;;  %v6566_v57 = vpack.c.bf16 %v6494_v6, %v6492_v60 }
 0x720   : > { %v6345_v30 = vadd.f32 %v6344_v50, %v13887_v48  ;;  %v6820_v7 = vadd.f32 %v6819_v9, %v14124_v21  ;;  %v6346_v23 = vpop.f32.mrb[49].mxu0  ;;  %v6821_v18 = vpop.f32.mrb[131].mxu1  ;;  %v7134_v37 = vmax.f32 %v6816_v0, 0.0  ;;  %v11500_v0 = vld [vmem:[%s15842_s7] sm:$0xff]  }
 0x721   : > { %v6347_v39 = vadd.f32 %v6346_v23, %v13891_v45  ;;  %v6822_v63 = vadd.f32 %v6821_v18, %v14128_v42  ;;  %v6348_v33 = vpop.f32.mrb[50].mxu0  ;;  %7083 = vmatprep.mubr.bf16.mxu1 %v6566_v57  ;;  %v7135_v2 = vmax.f32 %v6818_v29, 0.0 }
 0x722   : > { %v7136_v4 = vmax.f32 %v6820_v7, 0.0  ;;  %v6349_v27 = vadd.f32 %v6348_v33, %v13887_v48  ;;  %v6350_v54 = vpop.f32.mrb[51].mxu0  ;;  %7084 = vmatmul.mubr.bf16.gmra.mrb[236].mxu1 %v6565_v16  ;;  %v6495_v36 = vmax.f32 %v6345_v30, 0.0 }
 0x723   : > { %v7137_v3 = vmax.f32 %v6822_v63, 0.0  ;;  %v6351_v59 = vadd.f32 %v6350_v54, %v13891_v45  ;;  %v6496_v51 = vmax.f32 %v6347_v39, 0.0 }
 0x724   : > { %v14138_v60 = vpack.c.bf16 %v7136_v4, %v7134_v37  ;;  %v6497_v6 = vmax.f32 %v6349_v27, 0.0 }
 0x725   : > { %v6498_v14 = vmax.f32 %v6351_v59, 0.0  ;;  %v6825_v50 = vpop.f32.mrb[132].mxu1  ;;  %v14140_v9 = vpack.c.bf16 %v7137_v3, %v7135_v2  ;;  %v11505_v2 = vld [vmem:[%s15842_s7 + $0x8] sm:$0xff]  }
 0x726   : > { %v6567_v57 = vpack.c.bf16 %v6497_v6, %v6495_v36  ;;  %v6826_v16 = vadd.f32 %v6825_v50, %v14124_v21  ;;  %v6827_v29 = vpop.f32.mrb[133].mxu1 }
 0x727   : > { %v6828_v7 = vadd.f32 %v6827_v29, %v14128_v42  ;;  %v6354_v23 = vpop.f32.mrb[52].mxu0  ;;  %v6829_v30 = vpop.f32.mrb[134].mxu1  ;;  %7695 = vmatprep.mubr.bf16.mxu0 %v14140_v9  ;;  %v6568_v18 = vpack.c.bf16 %v6498_v14, %v6496_v51 }
 0x728   : > { %v6355_v39 = vadd.f32 %v6354_v23, %v13887_v48  ;;  %v6830_v63 = vadd.f32 %v6829_v30, %v14124_v21  ;;  %v6356_v33 = vpop.f32.mrb[53].mxu0  ;;  %v6831_v37 = vpop.f32.mrb[135].mxu1  ;;  %7696 = vmatmul.mubr.bf16.vlgmr.msra.gmra.mrb[64].mxu0 %v14138_v60  ;;  %v7138_v3 = vmax.f32 %v6826_v16, 0.0 }
 0x729   : > { %v6357_v4 = vadd.f32 %v6356_v33, %v13891_v45  ;;  %v6832_v27 = vadd.f32 %v6831_v37, %v14128_v42  ;;  %8498 = vmatpush1.bf16.msra.mxu0 %v11500_v0  ;;  %v6358_v54 = vpop.f32.mrb[54].mxu0  ;;  %7093 = vmatprep.mubr.bf16.mxu1 %v6568_v18  ;;  %v7139_v51 = vmax.f32 %v6828_v7, 0.0 }
 0x72a   : > { %v7140_v59 = vmax.f32 %v6830_v63, 0.0  ;;  %v6359_v36 = vadd.f32 %v6358_v54, %v13887_v48  ;;  %v6360_v6 = vpop.f32.mrb[55].mxu0  ;;  %7094 = vmatmul.mubr.bf16.gmra.mrb[240].mxu1 %v6567_v57  ;;  %8499 = vmatprep.subr.bf16.mxu0 %v15895_v56  ;;  %v6499_v29 = vmax.f32 %v6355_v39, 0.0  ;;  %v11510_v57 = vld [vmem:[%s15842_s7 + $0x10] sm:$0xff]  }
 0x72b   : > { %v7141_v14 = vmax.f32 %v6832_v27, 0.0  ;;  %v6361_v50 = vadd.f32 %v6360_v6, %v13891_v45  ;;  %v6500_v30 = vmax.f32 %v6357_v4, 0.0 }
 0x72c   : > { %v14159_v0 = vpack.c.bf16 %v7140_v59, %v7138_v3  ;;  %v6501_v23 = vmax.f32 %v6359_v36, 0.0 }
 0x72d   : > { %v6502_v18 = vmax.f32 %v6361_v50, 0.0  ;;  %v6835_v33 = vpop.f32.mrb[136].mxu1  ;;  %v14161_v37 = vpack.c.bf16 %v7141_v14, %v7139_v51  ;;  %8500 = vmatpush1.bf16.msra.mxu0 %v11505_v2  ;;  %v11511_v50 = vld [vmem:[%s15842_s7 + $0x18] sm:$0xff]  }
 0x72e   : > { %v6569_v16 = vpack.c.bf16 %v6501_v23, %v6499_v29  ;;  %v6836_v7 = vadd.f32 %v6835_v33, %v14124_v21  ;;  %v6837_v63 = vpop.f32.mrb[137].mxu1  ;;  %8501 = vmatprep.subr.bf16.mxu0 %v15895_v56 }
 0x72f   : > { %v6838_v39 = vadd.f32 %v6837_v63, %v14128_v42  ;;  %v6364_v27 = vpop.f32.mrb[56].mxu0  ;;  %v6839_v54 = vpop.f32.mrb[138].mxu1  ;;  %7705 = vmatprep.mubr.bf16.mxu0 %v14161_v37  ;;  %v6570_v4 = vpack.c.bf16 %v6502_v18, %v6500_v30 }
 0x730   : > { %v6365_v3 = vadd.f32 %v6364_v27, %v13887_v48  ;;  %v6840_v2 = vadd.f32 %v6839_v54, %v14124_v21  ;;  %v6366_v59 = vpop.f32.mrb[57].mxu0  ;;  %v6841_v36 = vpop.f32.mrb[139].mxu1  ;;  %7706 = vmatmul.mubr.bf16.gmra.mrb[68].mxu0 %v14159_v0  ;;  %v7142_v29 = vmax.f32 %v6836_v7, 0.0 }
 0x731   : > { %v6367_v6 = vadd.f32 %v6366_v59, %v13891_v45  ;;  %v6842_v51 = vadd.f32 %v6841_v36, %v14128_v42  ;;  %v6368_v14 = vpop.f32.mrb[58].mxu0  ;;  %7103 = vmatprep.mubr.bf16.mxu1 %v6570_v4  ;;  %8502 = vmatpush1.bf16.msra.mxu0 %v11510_v57  ;;  %v7143_v33 = vmax.f32 %v6838_v39, 0.0 }
 0x732   : > { %v7144_v23 = vmax.f32 %v6840_v2, 0.0  ;;  %v6369_v30 = vadd.f32 %v6368_v14, %v13887_v48  ;;  %v6370_v18 = vpop.f32.mrb[59].mxu0  ;;  %7104 = vmatmul.mubr.bf16.gmra.mrb[244].mxu1 %v6569_v16  ;;  %8503 = vmatprep.subr.bf16.mxu0 %v15895_v56  ;;  %v6503_v54 = vmax.f32 %v6365_v3, 0.0  ;;  %v11512_v16 = vld [vmem:[%s15842_s7 + $0x20] sm:$0xff]  }
 0x733   : > { %v7145_v63 = vmax.f32 %v6842_v51, 0.0  ;;  %v6371_v27 = vadd.f32 %v6370_v18, %v13891_v45  ;;  %v6504_v4 = vmax.f32 %v6367_v6, 0.0 }
 0x734   : > { %v14181_v59 = vpack.c.bf16 %v7144_v23, %v7142_v29  ;;  %v6505_v57 = vmax.f32 %v6369_v30, 0.0 }
 0x735   : > { %v6506_v36 = vmax.f32 %v6371_v27, 0.0  ;;  %v6845_v62 = vpop.f32.mrb[140].mxu1  ;;  %v14183_v1 = vpack.c.bf16 %v7145_v63, %v7143_v33  ;;  %8504 = vmatpush1.bf16.msra.mxu0 %v11511_v50  ;;  %v11513_v63 = vld [vmem:[%s15842_s7 + $0x28] sm:$0xff]  }
 0x736   : > { %v6571_v7 = vpack.c.bf16 %v6505_v57, %v6503_v54  ;;  %v6846_v39 = vadd.f32 %v6845_v62, %v14124_v21  ;;  %v6847_v2 = vpop.f32.mrb[141].mxu1  ;;  %8505 = vmatprep.subr.bf16.mxu0 %v15895_v56 }
 0x737   : > { %v6848_v3 = vadd.f32 %v6847_v2, %v14128_v42  ;;  %v6374_v51 = vpop.f32.mrb[60].mxu0  ;;  %v6849_v14 = vpop.f32.mrb[142].mxu1  ;;  %7715 = vmatprep.mubr.bf16.mxu0 %v14183_v1  ;;  %v6572_v6 = vpack.c.bf16 %v6506_v36, %v6504_v4 }
 0x738   : > { %v6375_v29 = vadd.f32 %v6374_v51, %v13887_v48  ;;  %v6850_v50 = vadd.f32 %v6849_v14, %v14124_v21  ;;  %v6376_v23 = vpop.f32.mrb[61].mxu0  ;;  %v6851_v30 = vpop.f32.mrb[143].mxu1  ;;  %7716 = vmatmul.mubr.bf16.gmra.mrb[72].mxu0 %v14181_v59  ;;  %v7146_v27 = vmax.f32 %v6846_v39, 0.0 }
 0x739   : > { %v6377_v62 = vadd.f32 %v6376_v23, %v13891_v45  ;;  %v6852_v18 = vadd.f32 %v6851_v30, %v14128_v42  ;;  %v6378_v33 = vpop.f32.mrb[62].mxu0  ;;  %7113 = vmatprep.mubr.bf16.mxu1 %v6572_v6  ;;  %8506 = vmatpush1.bf16.msra.mxu0 %v11512_v16  ;;  %v7147_v36 = vmax.f32 %v6848_v3, 0.0 }
 0x73a   : > { %v7148_v54 = vmax.f32 %v6850_v50, 0.0  ;;  %v6379_v57 = vadd.f32 %v6378_v33, %v13887_v48  ;;  %v6380_v4 = vpop.f32.mrb[63].mxu0  ;;  %7114 = vmatmul.mubr.bf16.gmra.mrb[248].mxu1 %v6571_v7  ;;  %8507 = vmatprep.subr.bf16.mxu0 %v15895_v56  ;;  %v6507_v14 = vmax.f32 %v6375_v29, 0.0  ;;  %v11514_v48 = vld [vmem:[%s15842_s7 + $0x30] sm:$0xff]  }
 0x73b   : > { %v7149_v2 = vmax.f32 %v6852_v18, 0.0  ;;  %v6381_v51 = vadd.f32 %v6380_v4, %v13891_v45  ;;  %v6508_v6 = vmax.f32 %v6377_v62, 0.0 }
 0x73c   : > { %v14203_v23 = vpack.c.bf16 %v7148_v54, %v7146_v27  ;;  %v6509_v16 = vmax.f32 %v6379_v57, 0.0 }
 0x73d   : > { %v6510_v30 = vmax.f32 %v6381_v51, 0.0  ;;  %v6855_v49 = vpop.f32.mrb[144].mxu1  ;;  %v14205_v13 = vpack.c.bf16 %v7149_v2, %v7147_v36  ;;  %8508 = vmatpush1.bf16.msra.mxu0 %v11513_v63  ;;  %v11516_v51 = vld [vmem:[%s15842_s7 + $0x40] sm:$0xff]  }
 0x73e   : > { %v6573_v7 = vpack.c.bf16 %v6509_v16, %v6507_v14  ;;  %v6856_v39 = vadd.f32 %v6855_v49, %v14124_v21  ;;  %v6857_v3 = vpop.f32.mrb[145].mxu1  ;;  %8509 = vmatprep.subr.bf16.mxu0 %v15895_v56  ;;  %v11515_v49 = vld [vmem:[%s15842_s7 + $0x38] sm:$0xff]  }
 0x73f   : > { %v6858_v45 = vadd.f32 %v6857_v3, %v14128_v42  ;;  %v6859_v29 = vpop.f32.mrb[146].mxu1  ;;  %7725 = vmatprep.mubr.bf16.mxu0 %v14205_v13  ;;  %v6574_v50 = vpack.c.bf16 %v6510_v30, %v6508_v6 }
 0x740   : > { %v6860_v62 = vadd.f32 %v6859_v29, %v14124_v21  ;;  %v6861_v18 = vpop.f32.mrb[147].mxu1  ;;  %7726 = vmatmul.mubr.bf16.gmra.mrb[76].mxu0 %v14203_v23  ;;  %v7150_v63 = vmax.f32 %v6856_v39, 0.0  ;;  %v11517_v39 = vld [vmem:[%s15842_s7 + $0x48] sm:$0xff]  }
 0x741   : > { %v6862_v33 = vadd.f32 %v6861_v18, %v14128_v42  ;;  %7123 = vmatprep.mubr.bf16.mxu1 %v6574_v50  ;;  %8510 = vmatpush1.bf16.msra.mxu0 %v11514_v48  ;;  %v7151_v54 = vmax.f32 %v6858_v45, 0.0 }
 0x742   : > { %v7152_v27 = vmax.f32 %v6860_v62, 0.0  ;;  %7124 = vmatmul.mubr.bf16.gmra.mrb[252].mxu1 %v6573_v7  ;;  %8511 = vmatprep.subr.bf16.mxu0 %v15895_v56 }
 0x743   : > { %v7153_v57 = vmax.f32 %v6862_v33, 0.0  ;;  %8048 = vmatprep.mubr.bf16.mxu1 %v14140_v9 }
 0x744   : > { %v14222_v4 = vpack.c.bf16 %v7152_v27, %v7150_v63 }
 0x745   : > { %v6865_v36 = vpop.f32.mrb[148].mxu1  ;;  %v14224_v2 = vpack.c.bf16 %v7153_v57, %v7151_v54  ;;  %8512 = vmatpush1.bf16.msra.mxu0 %v11515_v49  ;;  %v11518_v49 = vld [vmem:[%s15842_s7 + $0x50] sm:$0xff]  }
 0x746   : > { %v6866_v14 = vadd.f32 %v6865_v36, %v14124_v21  ;;  %v6867_v16 = vpop.f32.mrb[149].mxu1  ;;  %8513 = vmatprep.subr.bf16.mxu0 %v15895_v56 }
 0x747   : > { %v6868_v6 = vadd.f32 %v6867_v16, %v14128_v42  ;;  %v6869_v30 = vpop.f32.mrb[150].mxu1  ;;  %7735 = vmatprep.mubr.bf16.mxu0 %v14224_v2 }
 0x748   : > { %v6870_v9 = vadd.f32 %v6869_v30, %v14124_v21  ;;  %v6871_v48 = vpop.f32.mrb[151].mxu1  ;;  %7736 = vmatmul.mubr.bf16.gmra.mrb[80].mxu0 %v14222_v4  ;;  %v7154_v3 = vmax.f32 %v6866_v14, 0.0 }
 0x749   : > { %v6872_v7 = vadd.f32 %v6871_v48, %v14128_v42  ;;  %8514 = vmatpush1.bf16.msra.mxu0 %v11516_v51  ;;  %v7155_v29 = vmax.f32 %v6868_v6, 0.0 }
 0x74a   : > { %v7156_v45 = vmax.f32 %v6870_v9, 0.0  ;;  %8049 = vmatmul.mubr.bf16.vlgmr.msra.gmra.mrb[0].mxu1 %v14138_v60  ;;  %8515 = vmatprep.subr.bf16.mxu0 %v15895_v56 }
 0x74b   : > { %v7157_v50 = vmax.f32 %v6872_v7, 0.0  ;;  %8056 = vmatprep.mubr.bf16.mxu1 %v14161_v37 }
 0x74c   : > { %v14242_v62 = vpack.c.bf16 %v7156_v45, %v7154_v3 }
 0x74d   : > { %v6875_v18 = vpop.f32.mrb[152].mxu1  ;;  %v14244_v33 = vpack.c.bf16 %v7157_v50, %v7155_v29  ;;  %8516 = vmatpush1.bf16.msra.mxu0 %v11517_v39 }
 0x74e   : > { %v6876_v63 = vadd.f32 %v6875_v18, %v14124_v21  ;;  %v6877_v27 = vpop.f32.mrb[153].mxu1  ;;  %8517 = vmatprep.subr.bf16.mxu0 %v15895_v56 }
 0x74f   : > { %v6878_v60 = vadd.f32 %v6877_v27, %v14128_v42  ;;  %v6879_v54 = vpop.f32.mrb[154].mxu1  ;;  %7745 = vmatprep.mubr.bf16.mxu0 %v14244_v33 }
 0x750   : > { %v6880_v37 = vadd.f32 %v6879_v54, %v14124_v21  ;;  %v6881_v57 = vpop.f32.mrb[155].mxu1  ;;  %7746 = vmatmul.mubr.bf16.gmra.mrb[84].mxu0 %v14242_v62  ;;  %v7158_v51 = vmax.f32 %v6876_v63, 0.0 }
 0x751   : > { %v6882_v36 = vadd.f32 %v6881_v57, %v14128_v42  ;;  %8518 = vmatpush1.bf16.msra.mxu0 %v11518_v49  ;;  %v7159_v16 = vmax.f32 %v6878_v60, 0.0 }
 0x752   : > { %v7160_v14 = vmax.f32 %v6880_v37, 0.0  ;;  %8057 = vmatmul.mubr.bf16.gmra.mrb[4].mxu1 %v14159_v0  ;;  %8519 = vmatprep.subr.bf16.mxu0 %v15895_v56  ;;  %v11519_v37 = vld [vmem:[%s15842_s7 + $0x58] sm:$0xff]  }
 0x753   : > { %v7161_v6 = vmax.f32 %v6882_v36, 0.0  ;;  %8064 = vmatprep.mubr.bf16.mxu1 %v14183_v1 }
 0x754   : > { %v14259_v30 = vpack.c.bf16 %v7160_v14, %v7158_v51 }
 0x755   : > { %v6885_v9 = vpop.f32.mrb[156].mxu1  ;;  %v14261_v48 = vpack.c.bf16 %v7161_v6, %v7159_v16  ;;  %8520 = vmatpush1.bf16.msra.mxu0 %v11519_v37 }
 0x756   : > { %v6886_v7 = vadd.f32 %v6885_v9, %v14124_v21  ;;  %v6887_v39 = vpop.f32.mrb[157].mxu1  ;;  %8521 = vmatprep.subr.bf16.mxu0 %v15895_v56 }
 0x757   : > { %v6888_v3 = vadd.f32 %v6887_v39, %v14128_v42  ;;  %v6889_v45 = vpop.f32.mrb[158].mxu1  ;;  %7755 = vmatprep.mubr.bf16.mxu0 %v14261_v48 }
 0x758   : > { %v6890_v0 = vadd.f32 %v6889_v45, %v14124_v21  ;;  %v6891_v29 = vpop.f32.mrb[159].mxu1  ;;  %7756 = vmatmul.mubr.bf16.gmra.mrb[88].mxu0 %v14259_v30  ;;  %v7162_v50 = vmax.f32 %v6886_v7, 0.0 }
 0x759   : > { %v6892_v1 = vadd.f32 %v6891_v29, %v14128_v42  ;;  %v7163_v49 = vmax.f32 %v6888_v3, 0.0 }
 0x75a   : > { %v7164_v18 = vmax.f32 %v6890_v0, 0.0  ;;  %8065 = vmatmul.mubr.bf16.gmra.mrb[8].mxu1 %v14181_v59 }
 0x75b   : > { %v7165_v63 = vmax.f32 %v6892_v1, 0.0  ;;  %8072 = vmatprep.mubr.bf16.mxu1 %v14205_v13 }
 0x75c   : > { %v14271_v27 = vpack.c.bf16 %v7164_v18, %v7162_v50 }
 0x75d   : > { %v6895_v60 = vpop.f32.mrb[160].mxu1  ;;  %v14273_v54 = vpack.c.bf16 %v7165_v63, %v7163_v49 }
 0x75e   : > { %v6896_v57 = vadd.f32 %v6895_v60, %v14124_v21  ;;  %v6897_v36 = vpop.f32.mrb[161].mxu1 }
 0x75f   : > { %v6898_v51 = vadd.f32 %v6897_v36, %v14128_v42  ;;  %v6899_v14 = vpop.f32.mrb[162].mxu1  ;;  %7765 = vmatprep.mubr.bf16.mxu0 %v14273_v54 }
 0x760   : > { %v6900_v13 = vadd.f32 %v6899_v14, %v14124_v21  ;;  %v6901_v59 = vpop.f32.mrb[163].mxu1  ;;  %7766 = vmatmul.mubr.bf16.gmra.mrb[92].mxu0 %v14271_v27  ;;  %v7166_v6 = vmax.f32 %v6896_v57, 0.0 }
 0x761   : > { %v6902_v16 = vadd.f32 %v6901_v59, %v14128_v42  ;;  %v7167_v7 = vmax.f32 %v6898_v51, 0.0 }
 0x762   : > { %v7168_v9 = vmax.f32 %v6900_v13, 0.0  ;;  %8073 = vmatmul.mubr.bf16.gmra.mrb[12].mxu1 %v14203_v23  ;;  %v11520_v13 = vld [vmem:[%s15842_s7 + $0x60] sm:$0xff]  }
 0x763   : > { %v7169_v39 = vmax.f32 %v6902_v16, 0.0  ;;  %8080 = vmatprep.mubr.bf16.mxu1 %v14224_v2  ;;  %8522 = vmatpush1.bf16.msra.mxu0 %v11520_v13 }
 0x764   : > { %v14287_v3 = vpack.c.bf16 %v7168_v9, %v7166_v6  ;;  %8523 = vmatprep.subr.bf16.mxu0 %v15895_v56 }
 0x765   : > { %v6905_v45 = vpop.f32.mrb[164].mxu1  ;;  %v14289_v0 = vpack.c.bf16 %v7169_v39, %v7167_v7 }
 0x766   : > { %v6906_v29 = vadd.f32 %v6905_v45, %v14124_v21  ;;  %v6907_v1 = vpop.f32.mrb[165].mxu1 }
 0x767   : > { %v6908_v50 = vadd.f32 %v6907_v1, %v14128_v42  ;;  %v6909_v18 = vpop.f32.mrb[166].mxu1  ;;  %7775 = vmatprep.mubr.bf16.mxu0 %v14289_v0 }
 0x768   : > { %v6910_v49 = vadd.f32 %v6909_v18, %v14124_v21  ;;  %v6911_v23 = vpop.f32.mrb[167].mxu1  ;;  %7776 = vmatmul.mubr.bf16.gmra.mrb[96].mxu0 %v14287_v3  ;;  %v7170_v63 = vmax.f32 %v6906_v29, 0.0 }
 0x769   : > { %v6912_v2 = vadd.f32 %v6911_v23, %v14128_v42  ;;  %v7171_v37 = vmax.f32 %v6908_v50, 0.0 }
 0x76a   : > { %v7172_v60 = vmax.f32 %v6910_v49, 0.0  ;;  %8081 = vmatmul.mubr.bf16.gmra.mrb[16].mxu1 %v14222_v4 }
 0x76b   : > { %v7173_v57 = vmax.f32 %v6912_v2, 0.0  ;;  %8088 = vmatprep.mubr.bf16.mxu1 %v14244_v33 }
 0x76c   : > { %v14299_v36 = vpack.c.bf16 %v7172_v60, %v7170_v63 }
 0x76d   : > { %v6915_v51 = vpop.f32.mrb[168].mxu1  ;;  %v14301_v14 = vpack.c.bf16 %v7173_v57, %v7171_v37 }
 0x76e   : > { %v6916_v59 = vadd.f32 %v6915_v51, %v14124_v21  ;;  %v6917_v16 = vpop.f32.mrb[169].mxu1 }
 0x76f   : > { %v6918_v6 = vadd.f32 %v6917_v16, %v14128_v42  ;;  %v6919_v9 = vpop.f32.mrb[170].mxu1  ;;  %7785 = vmatprep.mubr.bf16.mxu0 %v14301_v14 }
 0x770   : > { %v6920_v4 = vadd.f32 %v6919_v9, %v14124_v21  ;;  %v6921_v33 = vpop.f32.mrb[171].mxu1  ;;  %7786 = vmatmul.mubr.bf16.gmra.mrb[100].mxu0 %v14299_v36  ;;  %v7174_v39 = vmax.f32 %v6916_v59, 0.0 }
 0x771   : > { %v6922_v7 = vadd.f32 %v6921_v33, %v14128_v42  ;;  %v7175_v29 = vmax.f32 %v6918_v6, 0.0 }
 0x772   : > { %v7176_v45 = vmax.f32 %v6920_v4, 0.0  ;;  %8089 = vmatmul.mubr.bf16.gmra.mrb[20].mxu1 %v14242_v62  ;;  %v11521_v4 = vld [vmem:[%s15842_s7 + $0x68] sm:$0xff]  }
 0x773   : > { %v7177_v1 = vmax.f32 %v6922_v7, 0.0  ;;  %8096 = vmatprep.mubr.bf16.mxu1 %v14261_v48  ;;  %8524 = vmatpush1.bf16.msra.mxu0 %v11521_v4 }
 0x774   : > { %v14315_v50 = vpack.c.bf16 %v7176_v45, %v7174_v39  ;;  %8525 = vmatprep.subr.bf16.mxu0 %v15895_v56 }
 0x775   : > { %v6925_v18 = vpop.f32.mrb[172].mxu1  ;;  %v14317_v49 = vpack.c.bf16 %v7177_v1, %v7175_v29 }
 0x776   : > { %v6926_v23 = vadd.f32 %v6925_v18, %v14124_v21  ;;  %v6927_v2 = vpop.f32.mrb[173].mxu1 }
 0x777   : > { %v6928_v63 = vadd.f32 %v6927_v2, %v14128_v42  ;;  %v6929_v60 = vpop.f32.mrb[174].mxu1  ;;  %7795 = vmatprep.mubr.bf16.mxu0 %v14317_v49 }
 0x778   : > { %v6930_v37 = vadd.f32 %v6929_v60, %v14124_v21  ;;  %v6931_v62 = vpop.f32.mrb[175].mxu1  ;;  %7796 = vmatmul.mubr.bf16.gmra.mrb[104].mxu0 %v14315_v50  ;;  %v7178_v57 = vmax.f32 %v6926_v23, 0.0 }
 0x779   : > { %v6932_v48 = vadd.f32 %v6931_v62, %v14128_v42  ;;  %v7179_v13 = vmax.f32 %v6928_v63, 0.0 }
 0x77a   : > { %v7180_v51 = vmax.f32 %v6930_v37, 0.0  ;;  %8097 = vmatmul.mubr.bf16.gmra.mrb[24].mxu1 %v14259_v30 }
 0x77b   : > { %v7181_v59 = vmax.f32 %v6932_v48, 0.0  ;;  %8104 = vmatprep.mubr.bf16.mxu1 %v14273_v54 }
 0x77c   : > { %v14327_v16 = vpack.c.bf16 %v7180_v51, %v7178_v57 }
 0x77d   : > { %v6935_v6 = vpop.f32.mrb[176].mxu1  ;;  %v14329_v9 = vpack.c.bf16 %v7181_v59, %v7179_v13 }
 0x77e   : > { %v6936_v33 = vadd.f32 %v6935_v6, %v14124_v21  ;;  %v6937_v7 = vpop.f32.mrb[177].mxu1 }
 0x77f   : > { %v6938_v39 = vadd.f32 %v6937_v7, %v14128_v42  ;;  %v6939_v45 = vpop.f32.mrb[178].mxu1  ;;  %7805 = vmatprep.mubr.bf16.mxu0 %v14329_v9 }
 0x780   : > { %v6940_v30 = vadd.f32 %v6939_v45, %v14124_v21  ;;  %v6941_v54 = vpop.f32.mrb[179].mxu1  ;;  %7806 = vmatmul.mubr.bf16.gmra.mrb[108].mxu0 %v14327_v16  ;;  %v7182_v1 = vmax.f32 %v6936_v33, 0.0 }
 0x781   : > { %v6942_v29 = vadd.f32 %v6941_v54, %v14128_v42  ;;  %v7183_v23 = vmax.f32 %v6938_v39, 0.0 }
 0x782   : > { %v7184_v18 = vmax.f32 %v6940_v30, 0.0  ;;  %8105 = vmatmul.mubr.bf16.gmra.mrb[28].mxu1 %v14271_v27  ;;  %v11522_v30 = vld [vmem:[%s15842_s7 + $0x70] sm:$0xff]  }
 0x783   : > { %v7185_v2 = vmax.f32 %v6942_v29, 0.0  ;;  %8112 = vmatprep.mubr.bf16.mxu1 %v14289_v0  ;;  %8526 = vmatpush1.bf16.msra.mxu0 %v11522_v30 }
 0x784   : > { %v14343_v63 = vpack.c.bf16 %v7184_v18, %v7182_v1  ;;  %8527 = vmatprep.subr.bf16.mxu0 %v15895_v56 }
 0x785   : > { %v6945_v60 = vpop.f32.mrb[180].mxu1  ;;  %v14345_v37 = vpack.c.bf16 %v7185_v2, %v7183_v23 }
 0x786   : > { %v6946_v62 = vadd.f32 %v6945_v60, %v14124_v21  ;;  %v6947_v48 = vpop.f32.mrb[181].mxu1 }
 0x787   : > { %v6948_v57 = vadd.f32 %v6947_v48, %v14128_v42  ;;  %v6949_v51 = vpop.f32.mrb[182].mxu1  ;;  %7815 = vmatprep.mubr.bf16.mxu0 %v14345_v37 }
 0x788   : > { %v6950_v13 = vadd.f32 %v6949_v51, %v14124_v21  ;;  %v6951_v27 = vpop.f32.mrb[183].mxu1  ;;  %7816 = vmatmul.mubr.bf16.gmra.mrb[112].mxu0 %v14343_v63  ;;  %v7186_v59 = vmax.f32 %v6946_v62, 0.0 }
 0x789   : > { %v6952_v0 = vadd.f32 %v6951_v27, %v14128_v42  ;;  %v7187_v4 = vmax.f32 %v6948_v57, 0.0 }
 0x78a   : > { %v7188_v6 = vmax.f32 %v6950_v13, 0.0  ;;  %8113 = vmatmul.mubr.bf16.gmra.mrb[32].mxu1 %v14287_v3 }
 0x78b   : > { %v7189_v33 = vmax.f32 %v6952_v0, 0.0  ;;  %8120 = vmatprep.mubr.bf16.mxu1 %v14301_v14 }
 0x78c   : > { %v14355_v7 = vpack.c.bf16 %v7188_v6, %v7186_v59 }
 0x78d   : > { %v6955_v39 = vpop.f32.mrb[184].mxu1  ;;  %v14357_v45 = vpack.c.bf16 %v7189_v33, %v7187_v4 }
 0x78e   : > { %v6956_v54 = vadd.f32 %v6955_v39, %v14124_v21  ;;  %v6957_v29 = vpop.f32.mrb[185].mxu1 }
 0x78f   : > { %v6958_v1 = vadd.f32 %v6957_v29, %v14128_v42  ;;  %v6959_v18 = vpop.f32.mrb[186].mxu1  ;;  %7825 = vmatprep.mubr.bf16.mxu0 %v14357_v45 }
 0x790   : > { %v6960_v3 = vadd.f32 %v6959_v18, %v14124_v21  ;;  %v6961_v14 = vpop.f32.mrb[187].mxu1  ;;  %7826 = vmatmul.mubr.bf16.gmra.mrb[116].mxu0 %v14355_v7  ;;  %v7190_v2 = vmax.f32 %v6956_v54, 0.0  ;;  %v11523_v18 = vld [vmem:[%s15842_s7 + $0x78] sm:$0xff]  }
 0x791   : > { %v6962_v23 = vadd.f32 %v6961_v14, %v14128_v42  ;;  %v7191_v62 = vmax.f32 %v6958_v1, 0.0  ;;  %8528 = vmatpush1.bf16.msra.mxu0 %v11523_v18 }
 0x792   : > { %v7192_v60 = vmax.f32 %v6960_v3, 0.0  ;;  %8121 = vmatmul.mubr.bf16.gmra.mrb[36].mxu1 %v14299_v36 }
 0x793   : > { %v7193_v48 = vmax.f32 %v6962_v23, 0.0  ;;  %8128 = vmatprep.mubr.bf16.mxu1 %v14317_v49 }
 0x794   : > { %v14371_v57 = vpack.c.bf16 %v7192_v60, %v7190_v2 }
 0x795   : > { %v6965_v51 = vpop.f32.mrb[188].mxu1  ;;  %v14373_v13 = vpack.c.bf16 %v7193_v48, %v7191_v62 }
 0x796   : > { %v6966_v27 = vadd.f32 %v6965_v51, %v14124_v21  ;;  %v6967_v0 = vpop.f32.mrb[189].mxu1 }
 0x797   : > { %v6968_v56 = vadd.f32 %v6967_v0, %v14128_v42  ;;  %v6969_v59 = vpop.f32.mrb[190].mxu1  ;;  %7835 = vmatprep.mubr.bf16.mxu0 %v14373_v13 }
 0x798   : > { %v6970_v6 = vadd.f32 %v6969_v59, %v14124_v21  ;;  %v6971_v36 = vpop.f32.mrb[191].mxu1  ;;  %7836 = vmatmul.mubr.bf16.gmra.mrb[120].mxu0 %v14371_v57  ;;  %v7194_v4 = vmax.f32 %v6966_v27, 0.0 }
 0x799   : > { %v6972_v49 = vadd.f32 %v6971_v36, %v14128_v42  ;;  %v7195_v39 = vmax.f32 %v6968_v56, 0.0 }
 0x79a   : > { %v7196_v33 = vmax.f32 %v6970_v6, 0.0  ;;  %8129 = vmatmul.mubr.bf16.gmra.mrb[40].mxu1 %v14315_v50 }
 0x79b   : > { %v7197_v30 = vmax.f32 %v6972_v49, 0.0  ;;  %8136 = vmatprep.mubr.bf16.mxu1 %v14329_v9 }
 0x79c   : > { %v14383_v54 = vpack.c.bf16 %v7196_v33, %v7194_v4 }
 0x79d   : > { %v6975_v29 = vpop.f32.mrb[192].mxu1  ;;  %v14385_v1 = vpack.c.bf16 %v7197_v30, %v7195_v39 }
 0x79e   : > { %v6976_v3 = vadd.f32 %v6975_v29, %v14124_v21  ;;  %v6977_v14 = vpop.f32.mrb[193].mxu1 }
 0x79f   : > { %v6978_v23 = vadd.f32 %v6977_v14, %v14128_v42  ;;  %v6979_v2 = vpop.f32.mrb[194].mxu1  ;;  %7845 = vmatprep.mubr.bf16.mxu0 %v14385_v1 }
 0x7a0   : > { %v6980_v50 = vadd.f32 %v6979_v2, %v14124_v21  ;;  %v6981_v9 = vpop.f32.mrb[195].mxu1  ;;  %7846 = vmatmul.mubr.bf16.gmra.mrb[124].mxu0 %v14383_v54  ;;  %v7198_v62 = vmax.f32 %v6976_v3, 0.0 }
 0x7a1   : > { %v6982_v60 = vadd.f32 %v6981_v9, %v14128_v42  ;;  %v7199_v51 = vmax.f32 %v6978_v23, 0.0 }
 0x7a2   : > { %v7200_v48 = vmax.f32 %v6980_v50, 0.0  ;;  %8137 = vmatmul.mubr.bf16.gmra.mrb[44].mxu1 %v14327_v16 }
 0x7a3   : > { %v7201_v27 = vmax.f32 %v6982_v60, 0.0  ;;  %8144 = vmatprep.mubr.bf16.mxu1 %v14345_v37 }
 0x7a4   : > { %v14398_v0 = vpack.c.bf16 %v7200_v48, %v7198_v62 }
 0x7a5   : > { %v14400_v56 = vpack.c.bf16 %v7201_v27, %v7199_v51  ;;  %v6985_v59 = vpop.f32.mrb[196].mxu1 }
 0x7a6   : > { %v6986_v6 = vadd.f32 %v6985_v59, %v14124_v21  ;;  %v6987_v36 = vpop.f32.mrb[197].mxu1 }
 0x7a7   : > { %v6988_v49 = vadd.f32 %v6987_v36, %v14128_v42  ;;  %v6989_v4 = vpop.f32.mrb[198].mxu1  ;;  %7855 = vmatprep.mubr.bf16.mxu0 %v14400_v56 }
 0x7a8   : > { %v6990_v33 = vadd.f32 %v6989_v4, %v14124_v21  ;;  %v6991_v16 = vpop.f32.mrb[199].mxu1  ;;  %7856 = vmatmul.mubr.bf16.gmra.mrb[128].mxu0 %v14398_v0  ;;  %v7202_v39 = vmax.f32 %v6986_v6, 0.0 }
 0x7a9   : > { %v6992_v37 = vadd.f32 %v6991_v16, %v14128_v42  ;;  %v7203_v29 = vmax.f32 %v6988_v49, 0.0 }
 0x7aa   : > { %v7204_v30 = vmax.f32 %v6990_v33, 0.0  ;;  %8145 = vmatmul.mubr.bf16.gmra.mrb[48].mxu1 %v14343_v63 }
 0x7ab   : > { %v7205_v18 = vmax.f32 %v6992_v37, 0.0  ;;  %8152 = vmatprep.mubr.bf16.mxu1 %v14357_v45 }
 0x7ac   : > { %v14410_v3 = vpack.c.bf16 %v7204_v30, %v7202_v39 }
 0x7ad   : > { %v14412_v14 = vpack.c.bf16 %v7205_v18, %v7203_v29  ;;  %v6995_v23 = vpop.f32.mrb[200].mxu1 }
 0x7ae   : > { %v6996_v2 = vadd.f32 %v6995_v23, %v14124_v21  ;;  %v6997_v50 = vpop.f32.mrb[201].mxu1 }
 0x7af   : > { %v6998_v9 = vadd.f32 %v6997_v50, %v14128_v42  ;;  %v6999_v60 = vpop.f32.mrb[202].mxu1  ;;  %7865 = vmatprep.mubr.bf16.mxu0 %v14412_v14 }
 0x7b0   : > { %v7000_v62 = vadd.f32 %v6999_v60, %v14124_v21  ;;  %v7001_v63 = vpop.f32.mrb[203].mxu1  ;;  %7866 = vmatmul.mubr.bf16.gmra.mrb[132].mxu0 %v14410_v3  ;;  %v7206_v48 = vmax.f32 %v6996_v2, 0.0 }
 0x7b1   : > { %v7002_v45 = vadd.f32 %v7001_v63, %v14128_v42  ;;  %v7207_v27 = vmax.f32 %v6998_v9, 0.0 }
 0x7b2   : > { %v7208_v51 = vmax.f32 %v7000_v62, 0.0  ;;  %8153 = vmatmul.mubr.bf16.gmra.mrb[52].mxu1 %v14355_v7 }
 0x7b3   : > { %v7209_v59 = vmax.f32 %v7002_v45, 0.0  ;;  %8160 = vmatprep.mubr.bf16.mxu1 %v14373_v13 }
 0x7b4   : > { %v14422_v6 = vpack.c.bf16 %v7208_v51, %v7206_v48 }
 0x7b5   : > { %v14424_v36 = vpack.c.bf16 %v7209_v59, %v7207_v27  ;;  %v7005_v49 = vpop.f32.mrb[204].mxu1 }
 0x7b6   : > { %v7006_v4 = vadd.f32 %v7005_v49, %v14124_v21  ;;  %v7007_v33 = vpop.f32.mrb[205].mxu1 }
 0x7b7   : > { %v7008_v16 = vadd.f32 %v7007_v33, %v14128_v42  ;;  %v7009_v37 = vpop.f32.mrb[206].mxu1  ;;  %7875 = vmatprep.mubr.bf16.mxu0 %v14424_v36 }
 0x7b8   : > { %v7010_v39 = vadd.f32 %v7009_v37, %v14124_v21  ;;  %v7011_v7 = vpop.f32.mrb[207].mxu1  ;;  %7876 = vmatmul.mubr.bf16.gmra.mrb[136].mxu0 %v14422_v6  ;;  %v7210_v30 = vmax.f32 %v7006_v4, 0.0 }
 0x7b9   : > { %v7012_v13 = vadd.f32 %v7011_v7, %v14128_v42  ;;  %v7211_v18 = vmax.f32 %v7008_v16, 0.0 }
 0x7ba   : > { %v7212_v29 = vmax.f32 %v7010_v39, 0.0  ;;  %8161 = vmatmul.mubr.bf16.gmra.mrb[56].mxu1 %v14371_v57 }
 0x7bb   : > { %v7213_v23 = vmax.f32 %v7012_v13, 0.0  ;;  %8168 = vmatprep.mubr.bf16.mxu1 %v14385_v1 }
 0x7bc   : > { %v14434_v2 = vpack.c.bf16 %v7212_v29, %v7210_v30 }
 0x7bd   : > { %v14436_v50 = vpack.c.bf16 %v7213_v23, %v7211_v18  ;;  %v7015_v9 = vpop.f32.mrb[208].mxu1 }
 0x7be   : > { %v7016_v60 = vadd.f32 %v7015_v9, %v14124_v21  ;;  %v7017_v62 = vpop.f32.mrb[209].mxu1 }
 0x7bf   : > { %v7018_v63 = vadd.f32 %v7017_v62, %v14128_v42  ;;  %v7019_v45 = vpop.f32.mrb[210].mxu1  ;;  %7885 = vmatprep.mubr.bf16.mxu0 %v14436_v50 }
 0x7c0   : > { %v7020_v48 = vadd.f32 %v7019_v45, %v14124_v21  ;;  %v7021_v57 = vpop.f32.mrb[211].mxu1  ;;  %7886 = vmatmul.mubr.bf16.gmra.mrb[140].mxu0 %v14434_v2  ;;  %v7214_v51 = vmax.f32 %v7016_v60, 0.0 }
 0x7c1   : > { %v7022_v1 = vadd.f32 %v7021_v57, %v14128_v42  ;;  %v7215_v59 = vmax.f32 %v7018_v63, 0.0 }
 0x7c2   : > { %v7216_v27 = vmax.f32 %v7020_v48, 0.0  ;;  %8169 = vmatmul.mubr.bf16.gmra.mrb[60].mxu1 %v14383_v54 }
 0x7c3   : > { %v7217_v49 = vmax.f32 %v7022_v1, 0.0  ;;  %8176 = vmatprep.mubr.bf16.mxu1 %v14400_v56 }
 0x7c4   : > { %v14446_v4 = vpack.c.bf16 %v7216_v27, %v7214_v51 }
 0x7c5   : > { %v14448_v33 = vpack.c.bf16 %v7217_v49, %v7215_v59  ;;  %v7025_v16 = vpop.f32.mrb[212].mxu1 }
 0x7c6   : > { %v7026_v37 = vadd.f32 %v7025_v16, %v14124_v21  ;;  %v7027_v39 = vpop.f32.mrb[213].mxu1 }
 0x7c7   : > { %v7028_v7 = vadd.f32 %v7027_v39, %v14128_v42  ;;  %v7029_v13 = vpop.f32.mrb[214].mxu1  ;;  %7895 = vmatprep.mubr.bf16.mxu0 %v14448_v33 }
 0x7c8   : > { %v7030_v30 = vadd.f32 %v7029_v13, %v14124_v21  ;;  %v7031_v54 = vpop.f32.mrb[215].mxu1  ;;  %7896 = vmatmul.mubr.bf16.gmra.mrb[144].mxu0 %v14446_v4  ;;  %v7218_v29 = vmax.f32 %v7026_v37, 0.0 }
 0x7c9   : > { %v7032_v56 = vadd.f32 %v7031_v54, %v14128_v42  ;;  %v7219_v23 = vmax.f32 %v7028_v7, 0.0 }
 0x7ca   : > { %v7220_v18 = vmax.f32 %v7030_v30, 0.0  ;;  %8177 = vmatmul.mubr.bf16.gmra.mrb[64].mxu1 %v14398_v0 }
 0x7cb   : > { %v7221_v9 = vmax.f32 %v7032_v56, 0.0  ;;  %8184 = vmatprep.mubr.bf16.mxu1 %v14412_v14 }
 0x7cc   : > { %v14458_v60 = vpack.c.bf16 %v7220_v18, %v7218_v29 }
 0x7cd   : > { %v14460_v62 = vpack.c.bf16 %v7221_v9, %v7219_v23  ;;  %v7035_v63 = vpop.f32.mrb[216].mxu1 }
 0x7ce   : > { %v7036_v45 = vadd.f32 %v7035_v63, %v14124_v21  ;;  %v7037_v48 = vpop.f32.mrb[217].mxu1 }
 0x7cf   : > { %v7038_v57 = vadd.f32 %v7037_v48, %v14128_v42  ;;  %v7039_v1 = vpop.f32.mrb[218].mxu1  ;;  %7905 = vmatprep.mubr.bf16.mxu0 %v14460_v62 }
 0x7d0   : > { %v7040_v51 = vadd.f32 %v7039_v1, %v14124_v21  ;;  %v7041_v0 = vpop.f32.mrb[219].mxu1  ;;  %7906 = vmatmul.mubr.bf16.gmra.mrb[148].mxu0 %v14458_v60  ;;  %v7222_v27 = vmax.f32 %v7036_v45, 0.0 }
 0x7d1   : > { %v7042_v14 = vadd.f32 %v7041_v0, %v14128_v42  ;;  %v7223_v49 = vmax.f32 %v7038_v57, 0.0 }
 0x7d2   : > { %v7224_v59 = vmax.f32 %v7040_v51, 0.0  ;;  %8185 = vmatmul.mubr.bf16.gmra.mrb[68].mxu1 %v14410_v3 }
 0x7d3   : > { %v7225_v16 = vmax.f32 %v7042_v14, 0.0  ;;  %8192 = vmatprep.mubr.bf16.mxu1 %v14424_v36 }
 0x7d4   : > { %v14470_v37 = vpack.c.bf16 %v7224_v59, %v7222_v27 }
 0x7d5   : > { %v14472_v39 = vpack.c.bf16 %v7225_v16, %v7223_v49  ;;  %v7045_v7 = vpop.f32.mrb[220].mxu1 }
 0x7d6   : > { %v7046_v13 = vadd.f32 %v7045_v7, %v14124_v21  ;;  %v7047_v30 = vpop.f32.mrb[221].mxu1 }
 0x7d7   : > { %v7048_v54 = vadd.f32 %v7047_v30, %v14128_v42  ;;  %v7049_v56 = vpop.f32.mrb[222].mxu1  ;;  %7915 = vmatprep.mubr.bf16.mxu0 %v14472_v39 }
 0x7d8   : > { %v7050_v29 = vadd.f32 %v7049_v56, %v14124_v21  ;;  %v7051_v3 = vpop.f32.mrb[223].mxu1  ;;  %7916 = vmatmul.mubr.bf16.gmra.mrb[152].mxu0 %v14470_v37  ;;  %v7226_v18 = vmax.f32 %v7046_v13, 0.0 }
 0x7d9   : > { %v7052_v36 = vadd.f32 %v7051_v3, %v14128_v42  ;;  %v7227_v9 = vmax.f32 %v7048_v54, 0.0 }
 0x7da   : > { %v7228_v23 = vmax.f32 %v7050_v29, 0.0  ;;  %8193 = vmatmul.mubr.bf16.gmra.mrb[72].mxu1 %v14422_v6 }
 0x7db   : > { %v7229_v63 = vmax.f32 %v7052_v36, 0.0  ;;  %8200 = vmatprep.mubr.bf16.mxu1 %v14436_v50 }
 0x7dc   : > { %v14482_v45 = vpack.c.bf16 %v7228_v23, %v7226_v18 }
 0x7dd   : > { %v14484_v48 = vpack.c.bf16 %v7229_v63, %v7227_v9  ;;  %v7055_v57 = vpop.f32.mrb[224].mxu1 }
 0x7de   : > { %v7056_v1 = vadd.f32 %v7055_v57, %v14124_v21  ;;  %v7057_v51 = vpop.f32.mrb[225].mxu1 }
 0x7df   : > { %v7058_v0 = vadd.f32 %v7057_v51, %v14128_v42  ;;  %v7059_v14 = vpop.f32.mrb[226].mxu1  ;;  %7925 = vmatprep.mubr.bf16.mxu0 %v14484_v48 }
 0x7e0   : > { %v7060_v27 = vadd.f32 %v7059_v14, %v14124_v21  ;;  %v7061_v6 = vpop.f32.mrb[227].mxu1  ;;  %7926 = vmatmul.mubr.bf16.gmra.mrb[156].mxu0 %v14482_v45  ;;  %v7230_v59 = vmax.f32 %v7056_v1, 0.0 }
 0x7e1   : > { %v7062_v50 = vadd.f32 %v7061_v6, %v14128_v42  ;;  %v7231_v16 = vmax.f32 %v7058_v0, 0.0 }
 0x7e2   : > { %v7232_v49 = vmax.f32 %v7060_v27, 0.0  ;;  %8201 = vmatmul.mubr.bf16.gmra.mrb[76].mxu1 %v14434_v2 }
 0x7e3   : > { %v7233_v7 = vmax.f32 %v7062_v50, 0.0  ;;  %8208 = vmatprep.mubr.bf16.mxu1 %v14448_v33 }
 0x7e4   : > { %v14494_v13 = vpack.c.bf16 %v7232_v49, %v7230_v59 }
 0x7e5   : > { %v14496_v30 = vpack.c.bf16 %v7233_v7, %v7231_v16  ;;  %v7065_v54 = vpop.f32.mrb[228].mxu1 }
 0x7e6   : > { %v7066_v56 = vadd.f32 %v7065_v54, %v14124_v21  ;;  %v7067_v29 = vpop.f32.mrb[229].mxu1 }
 0x7e7   : > { %v7068_v3 = vadd.f32 %v7067_v29, %v14128_v42  ;;  %v7069_v36 = vpop.f32.mrb[230].mxu1  ;;  %7935 = vmatprep.mubr.bf16.mxu0 %v14496_v30 }
 0x7e8   : > { %v7070_v18 = vadd.f32 %v7069_v36, %v14124_v21  ;;  %v7071_v2 = vpop.f32.mrb[231].mxu1  ;;  %7936 = vmatmul.mubr.bf16.gmra.mrb[160].mxu0 %v14494_v13  ;;  %v7234_v23 = vmax.f32 %v7066_v56, 0.0 }
 0x7e9   : > { %v7072_v33 = vadd.f32 %v7071_v2, %v14128_v42  ;;  %v7235_v63 = vmax.f32 %v7068_v3, 0.0 }
 0x7ea   : > { %v7236_v9 = vmax.f32 %v7070_v18, 0.0  ;;  %8209 = vmatmul.mubr.bf16.gmra.mrb[80].mxu1 %v14446_v4 }
 0x7eb   : > { %v7237_v57 = vmax.f32 %v7072_v33, 0.0  ;;  %8216 = vmatprep.mubr.bf16.mxu1 %v14460_v62 }
 0x7ec   : > { %v14506_v1 = vpack.c.bf16 %v7236_v9, %v7234_v23 }
 0x7ed   : > { %v14508_v51 = vpack.c.bf16 %v7237_v57, %v7235_v63  ;;  %v7075_v0 = vpop.f32.mrb[232].mxu1 }
 0x7ee   : > { %v7076_v14 = vadd.f32 %v7075_v0, %v14124_v21  ;;  %v7077_v27 = vpop.f32.mrb[233].mxu1 }
 0x7ef   : > { %v7078_v6 = vadd.f32 %v7077_v27, %v14128_v42  ;;  %v7079_v50 = vpop.f32.mrb[234].mxu1  ;;  %7945 = vmatprep.mubr.bf16.mxu0 %v14508_v51 }
 0x7f0   : > { %v7080_v59 = vadd.f32 %v7079_v50, %v14124_v21  ;;  %v7081_v4 = vpop.f32.mrb[235].mxu1  ;;  %7946 = vmatmul.mubr.bf16.gmra.mrb[164].mxu0 %v14506_v1  ;;  %v7238_v49 = vmax.f32 %v7076_v14, 0.0 }
 0x7f1   : > { %v7082_v62 = vadd.f32 %v7081_v4, %v14128_v42  ;;  %v7239_v7 = vmax.f32 %v7078_v6, 0.0 }
 0x7f2   : > { %v7240_v16 = vmax.f32 %v7080_v59, 0.0  ;;  %8217 = vmatmul.mubr.bf16.gmra.mrb[84].mxu1 %v14458_v60  ;;  %v7390_v60 = vld [vmem:[%s15841_s6] sm:$0x7] }
 0x7f3   : > { %v7241_v54 = vmax.f32 %v7082_v62, 0.0  ;;  %8224 = vmatprep.mubr.bf16.mxu1 %v14472_v39  ;;  %v14533_v0 = vrot.slane %v7390_v60, %v11998_v12  ;;  %v14537_v50 = vrot.slane %v7390_v60, %v12004_v15 }
 0x7f4   : > { %v14518_v56 = vpack.c.bf16 %v7240_v16, %v7238_v49 }
 0x7f5   : > { %v14520_v29 = vpack.c.bf16 %v7241_v54, %v7239_v7  ;;  %v7085_v3 = vpop.f32.mrb[236].mxu1 }
 0x7f6   : > { %v7086_v36 = vadd.f32 %v7085_v3, %v14124_v21  ;;  %v7087_v18 = vpop.f32.mrb[237].mxu1 }
 0x7f7   : > { %v7088_v2 = vadd.f32 %v7087_v18, %v14128_v42  ;;  %v7089_v33 = vpop.f32.mrb[238].mxu1  ;;  %7955 = vmatprep.mubr.bf16.mxu0 %v14520_v29 }
 0x7f8   : > { %v7090_v23 = vadd.f32 %v7089_v33, %v14124_v21  ;;  %v7091_v39 = vpop.f32.mrb[239].mxu1  ;;  %7956 = vmatmul.mubr.bf16.gmra.mrb[168].mxu0 %v14518_v56  ;;  %v7242_v63 = vmax.f32 %v7086_v36, 0.0 }
 0x7f9   : > { %v7092_v9 = vadd.f32 %v7091_v39, %v14128_v42  ;;  %v7243_v14 = vmax.f32 %v7088_v2, 0.0 }
 0x7fa   : > { %v7244_v57 = vmax.f32 %v7090_v23, 0.0  ;;  %8225 = vmatmul.mubr.bf16.gmra.mrb[88].mxu1 %v14470_v37 }
 0x7fb   : > { %v7245_v27 = vmax.f32 %v7092_v9, 0.0  ;;  %v7697_v6 = vpop.f32.mrb[64].mxu0  ;;  %8232 = vmatprep.mubr.bf16.mxu1 %v14484_v48 }
 0x7fc   : > { %v14539_v59 = vpack.c.bf16 %v7244_v57, %v7242_v63  ;;  %v7699_v4 = vpop.f32.mrb[65].mxu0  ;;  %v14544_v37 = vadd.f32 %v7697_v6, %v14533_v0 }
 0x7fd   : > { %v14541_v62 = vpack.c.bf16 %v7245_v27, %v7243_v14  ;;  %v7095_v49 = vpop.f32.mrb[240].mxu1  ;;  %v7701_v16 = vpop.f32.mrb[66].mxu0  ;;  %v14551_v15 = vadd.f32 %v7699_v4, %v14537_v50 }
 0x7fe   : > { %v7096_v12 = vadd.f32 %v7095_v49, %v14124_v21  ;;  %v14548_v7 = vadd.f32 %v7701_v16, %v14533_v0  ;;  %v7097_v54 = vpop.f32.mrb[241].mxu1  ;;  %v7703_v48 = vpop.f32.mrb[67].mxu0 }
 0x7ff   : > { %v7098_v3 = vadd.f32 %v7097_v54, %v14128_v42  ;;  %v14555_v36 = vadd.f32 %v7703_v48, %v14537_v50  ;;  %v7099_v18 = vpop.f32.mrb[242].mxu1  ;;  %7965 = vmatprep.mubr.bf16.mxu0 %v14541_v62 }
 0x800   : > { %v7100_v33 = vadd.f32 %v7099_v18, %v14124_v21  ;;  %v7101_v60 = vpop.f32.mrb[243].mxu1  ;;  %7966 = vmatmul.mubr.bf16.gmra.mrb[172].mxu0 %v14539_v59  ;;  %v7246_v9 = vmax.f32 %v7096_v12, 0.0 }
 0x801   : > { %v7102_v39 = vadd.f32 %v7101_v60, %v14128_v42  ;;  %v7247_v57 = vmax.f32 %v7098_v3, 0.0 }
 0x802   : > { %v7248_v63 = vmax.f32 %v7100_v33, 0.0  ;;  %8233 = vmatmul.mubr.bf16.gmra.mrb[92].mxu1 %v14482_v45 }
 0x803   : > { %v7249_v14 = vmax.f32 %v7102_v39, 0.0  ;;  %v7707_v27 = vpop.f32.mrb[68].mxu0  ;;  %8240 = vmatprep.mubr.bf16.mxu1 %v14496_v30 }
 0x804   : > { %v14567_v6 = vpack.c.bf16 %v7248_v63, %v7246_v9  ;;  %v7709_v4 = vpop.f32.mrb[69].mxu0  ;;  %v14572_v48 = vadd.f32 %v7707_v27, %v14533_v0 }
 0x805   : > { %v14569_v49 = vpack.c.bf16 %v7249_v14, %v7247_v57  ;;  %v7105_v16 = vpop.f32.mrb[244].mxu1  ;;  %v7711_v54 = vpop.f32.mrb[70].mxu0  ;;  %v14579_v33 = vadd.f32 %v7709_v4, %v14537_v50  ;;  %v11524_v14 = vld [vmem:[%s15844_s9] sm:$0xff]  }
 0x806   : > { %v7106_v12 = vadd.f32 %v7105_v16, %v14124_v21  ;;  %v14576_v18 = vadd.f32 %v7711_v54, %v14533_v0  ;;  %v7107_v45 = vpop.f32.mrb[245].mxu1  ;;  %v7713_v3 = vpop.f32.mrb[71].mxu0  ;;  %10885 = vmatprep.subr.bf16.mxu1 %v11524_v14 }
 0x807   : > { %v7108_v30 = vadd.f32 %v7107_v45, %v14128_v42  ;;  %v14583_v60 = vadd.f32 %v7713_v3, %v14537_v50  ;;  %v7109_v39 = vpop.f32.mrb[246].mxu1  ;;  %7975 = vmatprep.mubr.bf16.mxu0 %v14569_v49  ;;  %10886 = vmatpush3.bf16.msra.mxu1 %v11524_v14 }
 0x808   : > { %v7110_v63 = vadd.f32 %v7109_v39, %v14124_v21  ;;  %v7111_v57 = vpop.f32.mrb[247].mxu1  ;;  %7976 = vmatmul.mubr.bf16.gmra.mrb[176].mxu0 %v14567_v6  ;;  %v7250_v16 = vmax.f32 %v7106_v12, 0.0 }
 0x809   : > { %v7112_v4 = vadd.f32 %v7111_v57, %v14128_v42  ;;  %v7251_v45 = vmax.f32 %v7108_v30, 0.0 }
 0x80a   : > { %v7252_v54 = vmax.f32 %v7110_v63, 0.0  ;;  %8241 = vmatmul.mubr.bf16.gmra.mrb[96].mxu1 %v14494_v13 }
 0x80b   : > { %v7253_v3 = vmax.f32 %v7112_v4, 0.0  ;;  %v7717_v39 = vpop.f32.mrb[72].mxu0  ;;  %8248 = vmatprep.mubr.bf16.mxu1 %v14508_v51 }
 0x80c   : > { %v14598_v9 = vpack.c.bf16 %v7252_v54, %v7250_v16  ;;  %v7719_v2 = vpop.f32.mrb[73].mxu0  ;;  %v14603_v57 = vadd.f32 %v7717_v39, %v14533_v0 }
 0x80d   : > { %v14600_v23 = vpack.c.bf16 %v7253_v3, %v7251_v45  ;;  %v7115_v41 = vpop.f32.mrb[248].mxu1  ;;  %v7721_v27 = vpop.f32.mrb[74].mxu0  ;;  %v14610_v51 = vadd.f32 %v7719_v2, %v14537_v50 }
 0x80e   : > { %v7116_v12 = vadd.f32 %v7115_v41, %v14124_v21  ;;  %v14607_v13 = vadd.f32 %v7721_v27, %v14533_v0  ;;  %v7117_v30 = vpop.f32.mrb[249].mxu1  ;;  %v7723_v63 = vpop.f32.mrb[75].mxu0 }
 0x80f   : > { %v7118_v14 = vadd.f32 %v7117_v30, %v14128_v42  ;;  %v14614_v4 = vadd.f32 %v7723_v63, %v14537_v50  ;;  %v7119_v16 = vpop.f32.mrb[250].mxu1  ;;  %7985 = vmatprep.mubr.bf16.mxu0 %v14600_v23 }
 0x810   : > { %v7120_v41 = vadd.f32 %v7119_v16, %v14124_v21  ;;  %v7121_v27 = vpop.f32.mrb[251].mxu1  ;;  %7986 = vmatmul.mubr.bf16.gmra.mrb[180].mxu0 %v14598_v9  ;;  %v7254_v3 = vmax.f32 %v7116_v12, 0.0 }
 0x811   : > { %v7122_v45 = vadd.f32 %v7121_v27, %v14128_v42  ;;  %v7255_v30 = vmax.f32 %v7118_v14, 0.0 }
 0x812   : > { %v7256_v39 = vmax.f32 %v7120_v41, 0.0  ;;  %8249 = vmatmul.mubr.bf16.gmra.mrb[100].mxu1 %v14506_v1 }
 0x813   : > { %v7257_v63 = vmax.f32 %v7122_v45, 0.0  ;;  %v7727_v11 = vpop.f32.mrb[76].mxu0  ;;  %8256 = vmatprep.mubr.bf16.mxu1 %v14520_v29 }
 0x814   : > { %v14626_v54 = vpack.c.bf16 %v7256_v39, %v7254_v3  ;;  %v7729_v16 = vpop.f32.mrb[77].mxu0  ;;  %v14631_v2 = vadd.f32 %v7727_v11, %v14533_v0 }
 0x815   : > { %v14628_v58 = vpack.c.bf16 %v7257_v63, %v7255_v30  ;;  %v7125_v24 = vpop.f32.mrb[252].mxu1  ;;  %v7731_v25 = vpop.f32.mrb[78].mxu0  ;;  %v14638_v27 = vadd.f32 %v7729_v16, %v14537_v50 }
 0x816   : > { %v7126_v12 = vadd.f32 %v7125_v24, %v14124_v21  ;;  %v14635_v41 = vadd.f32 %v7731_v25, %v14533_v0  ;;  %v7127_v1 = vpop.f32.mrb[253].mxu1  ;;  %v7733_v14 = vpop.f32.mrb[79].mxu0 }
 0x817   : > { %v7128_v29 = vadd.f32 %v7127_v1, %v14128_v42  ;;  %v14642_v45 = vadd.f32 %v7733_v14, %v14537_v50  ;;  %v7129_v3 = vpop.f32.mrb[254].mxu1  ;;  %7995 = vmatprep.mubr.bf16.mxu0 %v14628_v58 }
 0x818   : > { %v7130_v24 = vadd.f32 %v7129_v3, %v14124_v21  ;;  %v7131_v25 = vpop.f32.mrb[255].mxu1  ;;  %7996 = vmatmul.mubr.bf16.gmra.mrb[184].mxu0 %v14626_v54  ;;  %v7258_v63 = vmax.f32 %v7126_v12, 0.0 }
 0x819   : > { %v7132_v30 = vadd.f32 %v7131_v25, %v14128_v42  ;;  %v7259_v1 = vmax.f32 %v7128_v29, 0.0 }
 0x81a   : > { %v7260_v16 = vmax.f32 %v7130_v24, 0.0  ;;  %8257 = vmatmul.mubr.bf16.gmra.mrb[104].mxu1 %v14518_v56 }
 0x81b   : > { %v7261_v14 = vmax.f32 %v7132_v30, 0.0  ;;  %v7737_v31 = vpop.f32.mrb[80].mxu0  ;;  %8264 = vmatprep.mubr.bf16.mxu1 %v14541_v62  ;;  %v15896_v30 = vpack.c.bf16 %v14555_v36, %v14551_v15 }
 0x81c   : > { %v14654_v11 = vpack.c.bf16 %v7260_v16, %v7258_v63  ;;  %v7739_v21 = vpop.f32.mrb[81].mxu0  ;;  %v14661_v39 = vadd.f32 %v7737_v31, %v14533_v0 }
 0x81d   : > { %v14656_v3 = vpack.c.bf16 %v7261_v14, %v7259_v1  ;;  %v7741_v44 = vpop.f32.mrb[82].mxu0  ;;  %v14658_v53 = vpop.f32.mrb[0].mxu1  ;;  %v14667_v29 = vadd.f32 %v7739_v21, %v14537_v50 }
 0x81e   : > { %v14664_v42 = vadd.f32 %v7741_v44, %v14533_v0  ;;  %v7743_v56 = vpop.f32.mrb[83].mxu0  ;;  %v8052_v12 = vpop.f32.mrb[1].mxu1 }
 0x81f   : > { %v14670_v62 = vadd.f32 %v7743_v56, %v14537_v50  ;;  %8005 = vmatprep.mubr.bf16.mxu0 %v14656_v3  ;;  %v14673_v24 = vpop.f32.mrb[2].mxu1 }
 0x820   : > { %8006 = vmatmul.mubr.bf16.gmra.mrb[188].mxu0 %v14654_v11  ;;  %v8055_v31 = vpop.f32.mrb[3].mxu1 }
 0x821   : > { %v8314_v44 = vpack.c.bf16 %v14670_v62, %v14667_v29  ;;  %8529 = vmatprep.mubr.bf16.mxu0 %v15896_v30 }
 0x822   : > { %8265 = vmatmul.mubr.bf16.gmra.mrb[108].mxu1 %v14539_v59 }
 0x823   : > { %v7747_v63 = vpop.f32.mrb[84].mxu0  ;;  %8272 = vmatprep.mubr.bf16.mxu1 %v14569_v49 }
 0x824   : > { %v7749_v16 = vpop.f32.mrb[85].mxu0  ;;  %v14688_v21 = vadd.f32 %v7747_v63, %v14533_v0  ;;  %v15897_v63 = vpack.c.bf16 %v14548_v7, %v14544_v37 }
 0x825   : > { %v7751_v1 = vpop.f32.mrb[86].mxu0  ;;  %v14685_v14 = vpop.f32.mrb[4].mxu1  ;;  %v14694_v15 = vadd.f32 %v7749_v16, %v14537_v50 }
 0x826   : > { %v14691_v56 = vadd.f32 %v7751_v1, %v14533_v0  ;;  %v7753_v12 = vpop.f32.mrb[87].mxu0  ;;  %v8060_v31 = vpop.f32.mrb[5].mxu1  ;;  %v11525_v1 = vld [vmem:[%s15844_s9 + $0x8] sm:$0xff]  }
 0x827   : > { %v14697_v59 = vadd.f32 %v7753_v12, %v14537_v50  ;;  %v14699_v36 = vpop.f32.mrb[6].mxu1  ;;  %v15898_v12 = vpack.c.bf16 %v14583_v60, %v14579_v33  ;;  %10887 = vmatprep.subr.bf16.mxu1 %v11525_v1 }
 0x828   : > { %v8063_v30 = vpop.f32.mrb[7].mxu1  ;;  %8530 = vmatmul.mubr.bf16.vlgmr.msra.gmra.mrb[192].mxu0 %v15897_v63  ;;  %10888 = vmatpush3.bf16.msra.mxu1 %v11525_v1 }
 0x829   : > { %8537 = vmatprep.mubr.bf16.mxu0 %v15898_v12 }
 0x82a   : > { %8273 = vmatmul.mubr.bf16.gmra.mrb[112].mxu1 %v14567_v6 }
 0x82b   : > { %v7757_v31 = vpop.f32.mrb[88].mxu0  ;;  %8280 = vmatprep.mubr.bf16.mxu1 %v14600_v23 }
 0x82c   : > { %v7759_v37 = vpop.f32.mrb[89].mxu0  ;;  %v14719_v63 = vadd.f32 %v7757_v31, %v14533_v0  ;;  %v15899_v31 = vpack.c.bf16 %v14576_v18, %v14572_v48 }
 0x82d   : > { %v7761_v7 = vpop.f32.mrb[90].mxu0  ;;  %v14716_v30 = vpop.f32.mrb[8].mxu1  ;;  %v14725_v60 = vadd.f32 %v7759_v37, %v14537_v50  ;;  %v15900_v37 = vpack.c.bf16 %v14614_v4, %v14610_v51 }
 0x82e   : > { %v14722_v49 = vadd.f32 %v7761_v7, %v14533_v0  ;;  %v7763_v16 = vpop.f32.mrb[91].mxu0  ;;  %v8068_v33 = vpop.f32.mrb[9].mxu1 }
 0x82f   : > { %v14728_v6 = vadd.f32 %v7763_v16, %v14537_v50  ;;  %v14730_v23 = vpop.f32.mrb[10].mxu1 }
 0x830   : > { %v8071_v12 = vpop.f32.mrb[11].mxu1  ;;  %8538 = vmatmul.mubr.bf16.gmra.mrb[196].mxu0 %v15899_v31 }
 0x831   : > { %8545 = vmatprep.mubr.bf16.mxu0 %v15900_v37 }
 0x832   : > { %8281 = vmatmul.mubr.bf16.gmra.mrb[116].mxu1 %v14598_v9 }
 0x833   : > { %v7767_v16 = vpop.f32.mrb[92].mxu0  ;;  %8288 = vmatprep.mubr.bf16.mxu1 %v14628_v58 }
 0x834   : > { %v7769_v33 = vpop.f32.mrb[93].mxu0  ;;  %v14747_v12 = vadd.f32 %v7767_v16, %v14533_v0  ;;  %v15901_v16 = vpack.c.bf16 %v14607_v13, %v14603_v57 }
 0x835   : > { %v7771_v25 = vpop.f32.mrb[94].mxu0  ;;  %v14744_v1 = vpop.f32.mrb[12].mxu1  ;;  %v14753_v51 = vadd.f32 %v7769_v33, %v14537_v50  ;;  %v15902_v33 = vpack.c.bf16 %v14642_v45, %v14638_v27 }
 0x836   : > { %v14750_v48 = vadd.f32 %v7771_v25, %v14533_v0  ;;  %v7773_v18 = vpop.f32.mrb[95].mxu0  ;;  %v8076_v31 = vpop.f32.mrb[13].mxu1 }
 0x837   : > { %v14756_v9 = vadd.f32 %v7773_v18, %v14537_v50  ;;  %v14758_v4 = vpop.f32.mrb[14].mxu1 }
 0x838   : > { %v8079_v37 = vpop.f32.mrb[15].mxu1  ;;  %8546 = vmatmul.mubr.bf16.gmra.mrb[200].mxu0 %v15901_v16 }
 0x839   : > { %8553 = vmatprep.mubr.bf16.mxu0 %v15902_v33 }
 0x83a   : > { %8289 = vmatmul.mubr.bf16.gmra.mrb[120].mxu1 %v14626_v54 }
 0x83b   : > { %v7777_v18 = vpop.f32.mrb[96].mxu0  ;;  %8296 = vmatprep.mubr.bf16.mxu1 %v14656_v3 }
 0x83c   : > { %v7779_v31 = vpop.f32.mrb[97].mxu0  ;;  %v14775_v37 = vadd.f32 %v7777_v18, %v14533_v0  ;;  %v15904_v18 = vpack.c.bf16 %v14635_v41, %v14631_v2 }
 0x83d   : > { %v7781_v7 = vpop.f32.mrb[98].mxu0  ;;  %v14772_v58 = vpop.f32.mrb[16].mxu1  ;;  %v14781_v27 = vadd.f32 %v7779_v31, %v14537_v50 }
 0x83e   : > { %v14778_v57 = vadd.f32 %v7781_v7, %v14533_v0  ;;  %v7783_v13 = vpop.f32.mrb[99].mxu0  ;;  %v8084_v16 = vpop.f32.mrb[17].mxu1 }
 0x83f   : > { %v14784_v54 = vadd.f32 %v7783_v13, %v14537_v50  ;;  %v14786_v45 = vpop.f32.mrb[18].mxu1 }
 0x840   : > { %15903 = vst [vmem:[#allocation47_spill] sm:$0xff] %v14786_v45  ;;  %v8087_v33 = vpop.f32.mrb[19].mxu1  ;;  %8554 = vmatmul.mubr.bf16.gmra.mrb[204].mxu0 %v15904_v18 }
 0x841   : > { %8561 = vmatprep.mubr.bf16.mxu0 %v8314_v44 }
 0x842   : > { %8297 = vmatmul.mubr.bf16.gmra.mrb[124].mxu1 %v14654_v11 }
 0x843   : > { %v7787_v31 = vpop.f32.mrb[100].mxu0 }
 0x844   : > { %v7789_v13 = vpop.f32.mrb[101].mxu0  ;;  %v14802_v33 = vadd.f32 %v7787_v31, %v14533_v0  ;;  %v15906_v31 = vpack.c.bf16 %v14664_v42, %v14661_v39 }
 0x845   : > { %v7791_v16 = vpop.f32.mrb[102].mxu0  ;;  %v14799_v25 = vpop.f32.mrb[20].mxu1  ;;  %v14808_v3 = vadd.f32 %v7789_v13, %v14537_v50 }
 0x846   : > { %v14805_v2 = vadd.f32 %v7791_v16, %v14533_v0  ;;  %v7793_v41 = vpop.f32.mrb[103].mxu0  ;;  %v8092_v18 = vpop.f32.mrb[21].mxu1  ;;  %v11526_v16 = vld [vmem:[%s15844_s9 + $0x10] sm:$0xff]  }
 0x847   : > { %v14811_v29 = vadd.f32 %v7793_v41, %v14537_v50  ;;  %v14813_v11 = vpop.f32.mrb[22].mxu1  ;;  %v15907_v41 = vpack.c.bf16 %v14697_v59, %v14694_v15  ;;  %10889 = vmatprep.subr.bf16.mxu1 %v11526_v16 }
 0x848   : > { %15905 = vst [vmem:[#allocation48_spill] sm:$0xff] %v14813_v11  ;;  %v8095_v44 = vpop.f32.mrb[23].mxu1  ;;  %8562 = vmatmul.mubr.bf16.gmra.mrb[208].mxu0 %v15906_v31  ;;  %10890 = vmatpush3.bf16.msra.mxu1 %v11526_v16 }
 0x849   : > { %8569 = vmatprep.mubr.bf16.mxu0 %v15907_v41 }
 0x84b   : > { %v7797_v18 = vpop.f32.mrb[104].mxu0 }
 0x84c   : > { %v7799_v62 = vpop.f32.mrb[105].mxu0  ;;  %v14831_v39 = vadd.f32 %v7797_v18, %v14533_v0  ;;  %v15910_v18 = vpack.c.bf16 %v14691_v56, %v14688_v21 }
 0x84d   : > { %v7801_v44 = vpop.f32.mrb[106].mxu0  ;;  %v14828_v7 = vpop.f32.mrb[24].mxu1  ;;  %v14837_v13 = vadd.f32 %v7799_v62, %v14537_v50 }
 0x84e   : > { %15908 = vst [vmem:[#allocation49_spill] sm:$0xff] %v14828_v7  ;;  %v14834_v42 = vadd.f32 %v7801_v44, %v14533_v0  ;;  %v7803_v31 = vpop.f32.mrb[107].mxu0  ;;  %v8100_v45 = vpop.f32.mrb[25].mxu1 }
 0x84f   : > { %v14840_v15 = vadd.f32 %v7803_v31, %v14537_v50  ;;  %v14842_v59 = vpop.f32.mrb[26].mxu1  ;;  %v15911_v45 = vpack.c.bf16 %v14728_v6, %v14725_v60 }
 0x850   : > { %15909 = vst [vmem:[#allocation50_spill] sm:$0xff] %v14842_v59  ;;  %v8103_v41 = vpop.f32.mrb[27].mxu1  ;;  %8570 = vmatmul.mubr.bf16.gmra.mrb[212].mxu0 %v15910_v18 }
 0x851   : > { %8577 = vmatprep.mubr.bf16.mxu0 %v15911_v45 }
 0x853   : > { %v7807_v62 = vpop.f32.mrb[108].mxu0 }
 0x854   : > { %v7809_v31 = vpop.f32.mrb[109].mxu0  ;;  %v14857_v59 = vadd.f32 %v7807_v62, %v14533_v0  ;;  %v15914_v62 = vpack.c.bf16 %v14722_v49, %v14719_v63 }
 0x855   : > { %v7811_v7 = vpop.f32.mrb[110].mxu0  ;;  %v14854_v11 = vpop.f32.mrb[28].mxu1  ;;  %v14863_v18 = vadd.f32 %v7809_v31, %v14537_v50  ;;  %v15915_v31 = vpack.c.bf16 %v14756_v9, %v14753_v51 }
 0x856   : > { %15912 = vst [vmem:[#allocation51_spill] sm:$0xff] %v14854_v11  ;;  %v14860_v41 = vadd.f32 %v7811_v7, %v14533_v0  ;;  %v7813_v21 = vpop.f32.mrb[111].mxu0  ;;  %v8108_v56 = vpop.f32.mrb[29].mxu1 }
 0x857   : > { %v14866_v16 = vadd.f32 %v7813_v21, %v14537_v50  ;;  %v14868_v60 = vpop.f32.mrb[30].mxu1 }
 0x858   : > { %15913 = vst [vmem:[#allocation52_spill] sm:$0xff] %v14868_v60  ;;  %v8111_v45 = vpop.f32.mrb[31].mxu1  ;;  %8578 = vmatmul.mubr.bf16.gmra.mrb[216].mxu0 %v15914_v62 }
 0x859   : > { %8585 = vmatprep.mubr.bf16.mxu0 %v15915_v31 }
 0x85b   : > { %v7817_v56 = vpop.f32.mrb[112].mxu0 }
 0x85c   : > { %v7819_v21 = vpop.f32.mrb[113].mxu0  ;;  %v14883_v60 = vadd.f32 %v7817_v56, %v14533_v0  ;;  %v15918_v56 = vpack.c.bf16 %v14750_v48, %v14747_v12 }
 0x85d   : > { %v7821_v44 = vpop.f32.mrb[114].mxu0  ;;  %v14880_v11 = vpop.f32.mrb[32].mxu1  ;;  %v14889_v62 = vadd.f32 %v7819_v21, %v14537_v50  ;;  %v15919_v21 = vpack.c.bf16 %v14784_v54, %v14781_v27 }
 0x85e   : > { %15916 = vst [vmem:[#allocation53_spill] sm:$0xff] %v14880_v11  ;;  %v14886_v45 = vadd.f32 %v7821_v44, %v14533_v0  ;;  %v7823_v49 = vpop.f32.mrb[115].mxu0  ;;  %v8116_v63 = vpop.f32.mrb[33].mxu1 }
 0x85f   : > { %v14892_v6 = vadd.f32 %v7823_v49, %v14537_v50  ;;  %v14894_v51 = vpop.f32.mrb[34].mxu1 }
 0x860   : > { %15917 = vst [vmem:[#allocation54_spill] sm:$0xff] %v14894_v51  ;;  %v8119_v31 = vpop.f32.mrb[35].mxu1  ;;  %8586 = vmatmul.mubr.bf16.gmra.mrb[220].mxu0 %v15918_v56 }
 0x861   : > { %8593 = vmatprep.mubr.bf16.mxu0 %v15919_v21 }
 0x863   : > { %v7827_v63 = vpop.f32.mrb[116].mxu0 }
 0x864   : > { %v7829_v49 = vpop.f32.mrb[117].mxu0  ;;  %v14909_v51 = vadd.f32 %v7827_v63, %v14533_v0  ;;  %v15922_v63 = vpack.c.bf16 %v14778_v57, %v14775_v37 }
 0x865   : > { %v7831_v7 = vpop.f32.mrb[118].mxu0  ;;  %v14906_v11 = vpop.f32.mrb[36].mxu1  ;;  %v14915_v56 = vadd.f32 %v7829_v49, %v14537_v50 }
 0x866   : > { %15920 = vst [vmem:[#allocation55_spill] sm:$0xff] %v14906_v11  ;;  %v14912_v31 = vadd.f32 %v7831_v7, %v14533_v0  ;;  %v7833_v12 = vpop.f32.mrb[119].mxu0  ;;  %v8124_v48 = vpop.f32.mrb[37].mxu1  ;;  %v11527_v7 = vld [vmem:[%s15844_s9 + $0x18] sm:$0xff]  }
 0x867   : > { %v14918_v9 = vadd.f32 %v7833_v12, %v14537_v50  ;;  %v14920_v27 = vpop.f32.mrb[38].mxu1  ;;  %v15923_v12 = vpack.c.bf16 %v14811_v29, %v14808_v3  ;;  %10891 = vmatprep.subr.bf16.mxu1 %v11527_v7 }
 0x868   : > { %15921 = vst [vmem:[#allocation56_spill] sm:$0xff] %v14920_v27  ;;  %v8127_v21 = vpop.f32.mrb[39].mxu1  ;;  %8594 = vmatmul.mubr.bf16.gmra.mrb[224].mxu0 %v15922_v63  ;;  %10892 = vmatpush3.bf16.msra.mxu1 %v11527_v7 }
 0x869   : > { %8601 = vmatprep.mubr.bf16.mxu0 %v15923_v12 }
 0x86b   : > { %v7837_v48 = vpop.f32.mrb[120].mxu0 }
 0x86c   : > { %v7839_v54 = vpop.f32.mrb[121].mxu0  ;;  %v14938_v37 = vadd.f32 %v7837_v48, %v14533_v0  ;;  %v15926_v48 = vpack.c.bf16 %v14805_v2, %v14802_v33 }
 0x86d   : > { %v7841_v21 = vpop.f32.mrb[122].mxu0  ;;  %v14935_v44 = vpop.f32.mrb[40].mxu1  ;;  %v14944_v49 = vadd.f32 %v7839_v54, %v14537_v50 }
 0x86e   : > { %15924 = vst [vmem:[#allocation57_spill] sm:$0xff] %v14935_v44  ;;  %v14941_v57 = vadd.f32 %v7841_v21, %v14533_v0  ;;  %v7843_v63 = vpop.f32.mrb[123].mxu0  ;;  %v8132_v27 = vpop.f32.mrb[41].mxu1  ;;  %v11528_v21 = vld [vmem:[%s15844_s9 + $0x20] sm:$0xff]  }
 0x86f   : > { %v14947_v3 = vadd.f32 %v7843_v63, %v14537_v50  ;;  %v14949_v29 = vpop.f32.mrb[42].mxu1  ;;  %v15927_v27 = vpack.c.bf16 %v14840_v15, %v14837_v13  ;;  %10893 = vmatprep.subr.bf16.mxu1 %v11528_v21 }
 0x870   : > { %15925 = vst [vmem:[#allocation58_spill] sm:$0xff] %v14949_v29  ;;  %v8135_v12 = vpop.f32.mrb[43].mxu1  ;;  %8602 = vmatmul.mubr.bf16.gmra.mrb[228].mxu0 %v15926_v48  ;;  %10894 = vmatpush3.bf16.msra.mxu1 %v11528_v21 }
 0x871   : > { %8609 = vmatprep.mubr.bf16.mxu0 %v15927_v27 }
 0x873   : > { %v7847_v54 = vpop.f32.mrb[124].mxu0 }
 0x874   : > { %v7849_v63 = vpop.f32.mrb[125].mxu0  ;;  %v14964_v29 = vadd.f32 %v7847_v54, %v14533_v0  ;;  %v15930_v54 = vpack.c.bf16 %v14834_v42, %v14831_v39 }
 0x875   : > { %v7851_v44 = vpop.f32.mrb[126].mxu0  ;;  %v14961_v11 = vpop.f32.mrb[44].mxu1  ;;  %v14970_v48 = vadd.f32 %v7849_v63, %v14537_v50  ;;  %v15931_v63 = vpack.c.bf16 %v14866_v16, %v14863_v18 }
 0x876   : > { %15928 = vst [vmem:[#allocation59_spill] sm:$0xff] %v14961_v11  ;;  %v14967_v12 = vadd.f32 %v7851_v44, %v14533_v0  ;;  %v7853_v33 = vpop.f32.mrb[127].mxu0  ;;  %v8140_v2 = vpop.f32.mrb[45].mxu1 }
 0x877   : > { %v14973_v7 = vadd.f32 %v7853_v33, %v14537_v50  ;;  %v14975_v13 = vpop.f32.mrb[46].mxu1 }
 0x878   : > { %15929 = vst [vmem:[#allocation60_spill] sm:$0xff] %v14975_v13  ;;  %v8143_v27 = vpop.f32.mrb[47].mxu1  ;;  %8610 = vmatmul.mubr.bf16.gmra.mrb[232].mxu0 %v15930_v54 }
 0x879   : > { %8617 = vmatprep.mubr.bf16.mxu0 %v15931_v63 }
 0x87b   : > { %v7857_v2 = vpop.f32.mrb[128].mxu0 }
 0x87c   : > { %v7859_v33 = vpop.f32.mrb[129].mxu0  ;;  %v14993_v27 = vadd.f32 %v7857_v2, %v14533_v0 }
 0x87d   : > { %v7861_v13 = vpop.f32.mrb[130].mxu0  ;;  %v14990_v15 = vpop.f32.mrb[48].mxu1  ;;  %v14999_v16 = vadd.f32 %v7859_v33, %v14537_v50 }
 0x87e   : > { %15932 = vst [vmem:[#allocation61_spill] sm:$0xff] %v14990_v15  ;;  %v14996_v39 = vadd.f32 %v7861_v13, %v14533_v0  ;;  %v7863_v42 = vpop.f32.mrb[131].mxu0  ;;  %v8148_v54 = vpop.f32.mrb[49].mxu1  ;;  %v15934_v13 = vpack.c.bf16 %v14860_v41, %v14857_v59  ;;  %v11530_v59 = vld [vmem:[%s15844_s9 + $0x30] sm:$0xff]  }
 0x87f   : > { %v15002_v18 = vadd.f32 %v7863_v42, %v14537_v50  ;;  %v15004_v63 = vpop.f32.mrb[50].mxu1  ;;  %v11529_v54 = vld [vmem:[%s15844_s9 + $0x28] sm:$0xff]   ;;  %v15935_v42 = vpack.c.bf16 %v14892_v6, %v14889_v62 }
 0x880   : > { %15933 = vst [vmem:[#allocation62_spill] sm:$0xff] %v15004_v63  ;;  %v8151_v2 = vpop.f32.mrb[51].mxu1  ;;  %8618 = vmatmul.mubr.bf16.gmra.mrb[236].mxu0 %v15934_v13  ;;  %10895 = vmatprep.subr.bf16.mxu1 %v11529_v54 }
 0x881   : > { %8625 = vmatprep.mubr.bf16.mxu0 %v15935_v42  ;;  %10896 = vmatpush3.bf16.msra.mxu1 %v11529_v54 }
 0x882   : > { %10897 = vmatprep.subr.bf16.mxu1 %v11530_v59 }
 0x883   : > { %v7867_v21 = vpop.f32.mrb[132].mxu0 }
 0x884   : > { %v7869_v44 = vpop.f32.mrb[133].mxu0  ;;  %v15025_v13 = vadd.f32 %v7867_v21, %v14533_v0 }
 0x885   : > { %v7871_v41 = vpop.f32.mrb[134].mxu0  ;;  %v15022_v2 = vpop.f32.mrb[52].mxu1  ;;  %v15031_v62 = vadd.f32 %v7869_v44, %v14537_v50  ;;  %10898 = vmatpush3.bf16.msra.mxu1 %v11530_v59 }
 0x886   : > { %15936 = vst [vmem:[#allocation63_spill] sm:$0xff] %v15022_v2  ;;  %v15028_v33 = vadd.f32 %v7871_v41, %v14533_v0  ;;  %v7873_v63 = vpop.f32.mrb[135].mxu0  ;;  %v8156_v6 = vpop.f32.mrb[53].mxu1  ;;  %v15938_v41 = vpack.c.bf16 %v14886_v45, %v14883_v60 }
 0x887   : > { %v15034_v54 = vadd.f32 %v7873_v63, %v14537_v50  ;;  %v15036_v42 = vpop.f32.mrb[54].mxu1  ;;  %v11531_v6 = vld [vmem:[%s15844_s9 + $0x38] sm:$0xff]   ;;  %v15939_v63 = vpack.c.bf16 %v14918_v9, %v14915_v56 }
 0x888   : > { %15937 = vst [vmem:[#allocation64_spill] sm:$0xff] %v15036_v42  ;;  %v8159_v21 = vpop.f32.mrb[55].mxu1  ;;  %8626 = vmatmul.mubr.bf16.gmra.mrb[240].mxu0 %v15938_v41  ;;  %10899 = vmatprep.subr.bf16.mxu1 %v11531_v6 }
 0x889   : > { %8633 = vmatprep.mubr.bf16.mxu0 %v15939_v63  ;;  %10900 = vmatpush3.bf16.msra.mxu1 %v11531_v6 }
 0x88b   : > { %v7877_v59 = vpop.f32.mrb[136].mxu0 }
 0x88c   : > { %v7879_v15 = vpop.f32.mrb[137].mxu0  ;;  %v15054_v60 = vadd.f32 %v7877_v59, %v14533_v0  ;;  %v15942_v59 = vpack.c.bf16 %v14912_v31, %v14909_v51 }
 0x88d   : > { %v7881_v21 = vpop.f32.mrb[138].mxu0  ;;  %v15051_v42 = vpop.f32.mrb[56].mxu1  ;;  %v15060_v44 = vadd.f32 %v7879_v15, %v14537_v50  ;;  %v15943_v15 = vpack.c.bf16 %v14947_v3, %v14944_v49 }
 0x88e   : > { %15940 = vst [vmem:[#allocation65_spill] sm:$0xff] %v15051_v42  ;;  %v15057_v45 = vadd.f32 %v7881_v21, %v14533_v0  ;;  %v7883_v41 = vpop.f32.mrb[139].mxu0  ;;  %v8164_v2 = vpop.f32.mrb[57].mxu1 }
 0x88f   : > { %v15063_v9 = vadd.f32 %v7883_v41, %v14537_v50  ;;  %v15065_v56 = vpop.f32.mrb[58].mxu1 }
 0x890   : > { %15941 = vst [vmem:[#allocation66_spill] sm:$0xff] %v15065_v56  ;;  %v8167_v63 = vpop.f32.mrb[59].mxu1  ;;  %8634 = vmatmul.mubr.bf16.gmra.mrb[244].mxu0 %v15942_v59 }
 0x891   : > { %8641 = vmatprep.mubr.bf16.mxu0 %v15943_v15 }
 0x893   : > { %v7887_v2 = vpop.f32.mrb[140].mxu0 }
 0x894   : > { %v7889_v41 = vpop.f32.mrb[141].mxu0  ;;  %v15080_v56 = vadd.f32 %v7887_v2, %v14533_v0  ;;  %v15946_v2 = vpack.c.bf16 %v14941_v57, %v14938_v37 }
 0x895   : > { %v7891_v42 = vpop.f32.mrb[142].mxu0  ;;  %v15077_v11 = vpop.f32.mrb[60].mxu1  ;;  %v15086_v59 = vadd.f32 %v7889_v41, %v14537_v50  ;;  %v15947_v41 = vpack.c.bf16 %v14973_v7, %v14970_v48 }
 0x896   : > { %15944 = vst [vmem:[#allocation67_spill] sm:$0xff] %v15077_v11  ;;  %v15083_v63 = vadd.f32 %v7891_v42, %v14533_v0  ;;  %v7893_v51 = vpop.f32.mrb[143].mxu0  ;;  %v8172_v31 = vpop.f32.mrb[61].mxu1 }
 0x897   : > { %v15089_v6 = vadd.f32 %v7893_v51, %v14537_v50  ;;  %v15091_v49 = vpop.f32.mrb[62].mxu1 }
 0x898   : > { %15945 = vst [vmem:[#allocation68_spill] sm:$0xff] %v15091_v49  ;;  %v8175_v15 = vpop.f32.mrb[63].mxu1  ;;  %8642 = vmatmul.mubr.bf16.gmra.mrb[248].mxu0 %v15946_v2 }
 0x899   : > { %8649 = vmatprep.mubr.bf16.mxu0 %v15947_v41 }
 0x89b   : > { %v7897_v31 = vpop.f32.mrb[144].mxu0 }
 0x89c   : > { %v7899_v51 = vpop.f32.mrb[145].mxu0  ;;  %v15106_v49 = vadd.f32 %v7897_v31, %v14533_v0  ;;  %v15950_v31 = vpack.c.bf16 %v14967_v12, %v14964_v29 }
 0x89d   : > { %v7901_v21 = vpop.f32.mrb[146].mxu0  ;;  %v15103_v11 = vpop.f32.mrb[64].mxu1  ;;  %v15112_v2 = vadd.f32 %v7899_v51, %v14537_v50  ;;  %v15951_v51 = vpack.c.bf16 %v15002_v18, %v14999_v16 }
 0x89e   : > { %15948 = vst [vmem:[#allocation69_spill] sm:$0xff] %v15103_v11  ;;  %v15109_v15 = vadd.f32 %v7901_v21, %v14533_v0  ;;  %v7903_v37 = vpop.f32.mrb[147].mxu0  ;;  %v8180_v57 = vpop.f32.mrb[65].mxu1 }
 0x89f   : > { %v15115_v3 = vadd.f32 %v7903_v37, %v14537_v50  ;;  %v15117_v7 = vpop.f32.mrb[66].mxu1 }
 0x8a0   : > { %15949 = vst [vmem:[#allocation70_spill] sm:$0xff] %v15117_v7  ;;  %v8183_v41 = vpop.f32.mrb[67].mxu1  ;;  %8650 = vmatmul.mubr.bf16.gmra.mrb[252].mxu0 %v15950_v31 }
 0x8a1   : > { %8657 = vmatprep.mubr.bf16.mxu0 %v15951_v51 }
 0x8a3   : > { %v7907_v57 = vpop.f32.mrb[148].mxu0 }
 0x8a4   : > { %v7909_v37 = vpop.f32.mrb[149].mxu0  ;;  %v15132_v7 = vadd.f32 %v7907_v57, %v14533_v0  ;;  %v15954_v57 = vpack.c.bf16 %v14996_v39, %v14993_v27 }
 0x8a5   : > { %v7911_v42 = vpop.f32.mrb[150].mxu0  ;;  %v15129_v11 = vpop.f32.mrb[68].mxu1  ;;  %v15138_v31 = vadd.f32 %v7909_v37, %v14537_v50  ;;  %v15955_v37 = vpack.c.bf16 %v15034_v54, %v15031_v62 }
 0x8a6   : > { %15952 = vst [vmem:[#allocation71_spill] sm:$0xff] %v15129_v11  ;;  %v15135_v41 = vadd.f32 %v7911_v42, %v14533_v0  ;;  %v7913_v29 = vpop.f32.mrb[151].mxu0  ;;  %v8188_v12 = vpop.f32.mrb[69].mxu1 }
 0x8a7   : > { %v15141_v48 = vadd.f32 %v7913_v29, %v14537_v50  ;;  %v15143_v16 = vpop.f32.mrb[70].mxu1 }
 0x8a8   : > { %15953 = vst [vmem:[#allocation72_spill] sm:$0xff] %v15143_v16  ;;  %v8191_v51 = vpop.f32.mrb[71].mxu1  ;;  %8658 = vmatmul.mubr.bf16.gmra.mrb[0].mxu0 %v15954_v57 }
 0x8a9   : > { %8665 = vmatprep.mubr.bf16.mxu0 %v15955_v37 }
 0x8ab   : > { %v7917_v12 = vpop.f32.mrb[152].mxu0 }
 0x8ac   : > { %v7919_v29 = vpop.f32.mrb[153].mxu0  ;;  %v15158_v16 = vadd.f32 %v7917_v12, %v14533_v0  ;;  %v15958_v12 = vpack.c.bf16 %v15028_v33, %v15025_v13 }
 0x8ad   : > { %v7921_v21 = vpop.f32.mrb[154].mxu0  ;;  %v15155_v11 = vpop.f32.mrb[72].mxu1  ;;  %v15164_v57 = vadd.f32 %v7919_v29, %v14537_v50  ;;  %v15959_v29 = vpack.c.bf16 %v15063_v9, %v15060_v44 }
 0x8ae   : > { %15956 = vst [vmem:[#allocation73_spill] sm:$0xff] %v15155_v11  ;;  %v15161_v51 = vadd.f32 %v7921_v21, %v14533_v0  ;;  %v7923_v27 = vpop.f32.mrb[155].mxu0  ;;  %v8196_v39 = vpop.f32.mrb[73].mxu1 }
 0x8af   : > { %v15167_v18 = vadd.f32 %v7923_v27, %v14537_v50  ;;  %v15169_v62 = vpop.f32.mrb[74].mxu1 }
 0x8b0   : > { %15957 = vst [vmem:[#allocation74_spill] sm:$0xff] %v15169_v62  ;;  %v8199_v37 = vpop.f32.mrb[75].mxu1  ;;  %8666 = vmatmul.mubr.bf16.gmra.mrb[4].mxu0 %v15958_v12 }
 0x8b1   : > { %8673 = vmatprep.mubr.bf16.mxu0 %v15959_v29 }
 0x8b3   : > { %v7927_v39 = vpop.f32.mrb[156].mxu0 }
 0x8b4   : > { %v7929_v27 = vpop.f32.mrb[157].mxu0  ;;  %v15184_v62 = vadd.f32 %v7927_v39, %v14533_v0  ;;  %v15962_v39 = vpack.c.bf16 %v15057_v45, %v15054_v60 }
 0x8b5   : > { %v7931_v42 = vpop.f32.mrb[158].mxu0  ;;  %v15181_v11 = vpop.f32.mrb[76].mxu1  ;;  %v15190_v12 = vadd.f32 %v7929_v27, %v14537_v50  ;;  %v15963_v27 = vpack.c.bf16 %v15089_v6, %v15086_v59 }
 0x8b6   : > { %15960 = vst [vmem:[#allocation75_spill] sm:$0xff] %v15181_v11  ;;  %v15187_v37 = vadd.f32 %v7931_v42, %v14533_v0  ;;  %v7933_v33 = vpop.f32.mrb[159].mxu0  ;;  %v8204_v13 = vpop.f32.mrb[77].mxu1 }
 0x8b7   : > { %v15193_v54 = vadd.f32 %v7933_v33, %v14537_v50  ;;  %v15195_v44 = vpop.f32.mrb[78].mxu1 }
 0x8b8   : > { %15961 = vst [vmem:[#allocation76_spill] sm:$0xff] %v15195_v44  ;;  %v8207_v29 = vpop.f32.mrb[79].mxu1  ;;  %8674 = vmatmul.mubr.bf16.gmra.mrb[8].mxu0 %v15962_v39 }
 0x8b9   : > { %8681 = vmatprep.mubr.bf16.mxu0 %v15963_v27 }
 0x8bb   : > { %v7937_v13 = vpop.f32.mrb[160].mxu0 }
 0x8bc   : > { %v7939_v33 = vpop.f32.mrb[161].mxu0  ;;  %v15210_v44 = vadd.f32 %v7937_v13, %v14533_v0  ;;  %v15966_v13 = vpack.c.bf16 %v15083_v63, %v15080_v56 }
 0x8bd   : > { %v7941_v21 = vpop.f32.mrb[162].mxu0  ;;  %v15207_v11 = vpop.f32.mrb[80].mxu1  ;;  %v15216_v39 = vadd.f32 %v7939_v33, %v14537_v50  ;;  %v15967_v33 = vpack.c.bf16 %v15115_v3, %v15112_v2 }
 0x8be   : > { %15964 = vst [vmem:[#allocation77_spill] sm:$0xff] %v15207_v11  ;;  %v15213_v29 = vadd.f32 %v7941_v21, %v14533_v0  ;;  %v7943_v60 = vpop.f32.mrb[163].mxu0  ;;  %v8212_v45 = vpop.f32.mrb[81].mxu1 }
 0x8bf   : > { %v15219_v9 = vadd.f32 %v7943_v60, %v14537_v50  ;;  %v15221_v6 = vpop.f32.mrb[82].mxu1 }
 0x8c0   : > { %15965 = vst [vmem:[#allocation78_spill] sm:$0xff] %v15221_v6  ;;  %v8215_v27 = vpop.f32.mrb[83].mxu1  ;;  %8682 = vmatmul.mubr.bf16.gmra.mrb[12].mxu0 %v15966_v13 }
 0x8c1   : > { %8689 = vmatprep.mubr.bf16.mxu0 %v15967_v33 }
 0x8c3   : > { %v7947_v45 = vpop.f32.mrb[164].mxu0 }
 0x8c4   : > { %v7949_v60 = vpop.f32.mrb[165].mxu0  ;;  %v15236_v6 = vadd.f32 %v7947_v45, %v14533_v0  ;;  %v15970_v45 = vpack.c.bf16 %v15109_v15, %v15106_v49 }
 0x8c5   : > { %v7951_v42 = vpop.f32.mrb[166].mxu0  ;;  %v15233_v11 = vpop.f32.mrb[84].mxu1  ;;  %v15242_v13 = vadd.f32 %v7949_v60, %v14537_v50  ;;  %v15971_v60 = vpack.c.bf16 %v15141_v48, %v15138_v31 }
 0x8c6   : > { %15968 = vst [vmem:[#allocation79_spill] sm:$0xff] %v15233_v11  ;;  %v15239_v27 = vadd.f32 %v7951_v42, %v14533_v0  ;;  %v7953_v56 = vpop.f32.mrb[167].mxu0  ;;  %v8220_v63 = vpop.f32.mrb[85].mxu1 }
 0x8c7   : > { %v15245_v59 = vadd.f32 %v7953_v56, %v14537_v50  ;;  %v15247_v3 = vpop.f32.mrb[86].mxu1 }
 0x8c8   : > { %15969 = vst [vmem:[#allocation80_spill] sm:$0xff] %v15247_v3  ;;  %v8223_v33 = vpop.f32.mrb[87].mxu1  ;;  %8690 = vmatmul.mubr.bf16.gmra.mrb[16].mxu0 %v15970_v45 }
 0x8c9   : > { %8697 = vmatprep.mubr.bf16.mxu0 %v15971_v60 }
 0x8cb   : > { %v7957_v63 = vpop.f32.mrb[168].mxu0 }
 0x8cc   : > { %v7959_v56 = vpop.f32.mrb[169].mxu0  ;;  %v15262_v3 = vadd.f32 %v7957_v63, %v14533_v0  ;;  %v15974_v63 = vpack.c.bf16 %v15135_v41, %v15132_v7 }
 0x8cd   : > { %v7961_v21 = vpop.f32.mrb[170].mxu0  ;;  %v15259_v11 = vpop.f32.mrb[88].mxu1  ;;  %v15268_v45 = vadd.f32 %v7959_v56, %v14537_v50  ;;  %v15975_v56 = vpack.c.bf16 %v15167_v18, %v15164_v57 }
 0x8ce   : > { %15972 = vst [vmem:[#allocation81_spill] sm:$0xff] %v15259_v11  ;;  %v15265_v33 = vadd.f32 %v7961_v21, %v14533_v0  ;;  %v7963_v49 = vpop.f32.mrb[171].mxu0  ;;  %v8228_v15 = vpop.f32.mrb[89].mxu1 }
 0x8cf   : > { %v15271_v2 = vadd.f32 %v7963_v49, %v14537_v50  ;;  %v15273_v48 = vpop.f32.mrb[90].mxu1 }
 0x8d0   : > { %15973 = vst [vmem:[#allocation82_spill] sm:$0xff] %v15273_v48  ;;  %v8231_v60 = vpop.f32.mrb[91].mxu1  ;;  %8698 = vmatmul.mubr.bf16.gmra.mrb[20].mxu0 %v15974_v63 }
 0x8d1   : > { %8705 = vmatprep.mubr.bf16.mxu0 %v15975_v56 }
 0x8d3   : > { %v7967_v15 = vpop.f32.mrb[172].mxu0 }
 0x8d4   : > { %v7969_v49 = vpop.f32.mrb[173].mxu0  ;;  %v15288_v48 = vadd.f32 %v7967_v15, %v14533_v0  ;;  %v15978_v15 = vpack.c.bf16 %v15161_v51, %v15158_v16 }
 0x8d5   : > { %v7971_v42 = vpop.f32.mrb[174].mxu0  ;;  %v15285_v11 = vpop.f32.mrb[92].mxu1  ;;  %v15294_v63 = vadd.f32 %v7969_v49, %v14537_v50  ;;  %v15979_v49 = vpack.c.bf16 %v15193_v54, %v15190_v12 }
 0x8d6   : > { %15976 = vst [vmem:[#allocation83_spill] sm:$0xff] %v15285_v11  ;;  %v15291_v60 = vadd.f32 %v7971_v42, %v14533_v0  ;;  %v7973_v7 = vpop.f32.mrb[175].mxu0  ;;  %v8236_v41 = vpop.f32.mrb[93].mxu1 }
 0x8d7   : > { %v15297_v31 = vadd.f32 %v7973_v7, %v14537_v50  ;;  %v15299_v18 = vpop.f32.mrb[94].mxu1 }
 0x8d8   : > { %15977 = vst [vmem:[#allocation84_spill] sm:$0xff] %v15299_v18  ;;  %v8239_v56 = vpop.f32.mrb[95].mxu1  ;;  %8706 = vmatmul.mubr.bf16.gmra.mrb[24].mxu0 %v15978_v15 }
 0x8d9   : > { %8713 = vmatprep.mubr.bf16.mxu0 %v15979_v49 }
 0x8db   : > { %v7977_v41 = vpop.f32.mrb[176].mxu0 }
 0x8dc   : > { %v7979_v7 = vpop.f32.mrb[177].mxu0  ;;  %v15314_v18 = vadd.f32 %v7977_v41, %v14533_v0  ;;  %v15982_v41 = vpack.c.bf16 %v15187_v37, %v15184_v62 }
 0x8dd   : > { %v7981_v21 = vpop.f32.mrb[178].mxu0  ;;  %v15311_v11 = vpop.f32.mrb[96].mxu1  ;;  %v15320_v15 = vadd.f32 %v7979_v7, %v14537_v50  ;;  %v15983_v7 = vpack.c.bf16 %v15219_v9, %v15216_v39 }
 0x8de   : > { %15980 = vst [vmem:[#allocation85_spill] sm:$0xff] %v15311_v11  ;;  %v15317_v56 = vadd.f32 %v7981_v21, %v14533_v0  ;;  %v7983_v16 = vpop.f32.mrb[179].mxu0  ;;  %v8244_v51 = vpop.f32.mrb[97].mxu1 }
 0x8df   : > { %v15323_v57 = vadd.f32 %v7983_v16, %v14537_v50  ;;  %v15325_v54 = vpop.f32.mrb[98].mxu1 }
 0x8e0   : > { %15981 = vst [vmem:[#allocation86_spill] sm:$0xff] %v15325_v54  ;;  %v8247_v49 = vpop.f32.mrb[99].mxu1  ;;  %8714 = vmatmul.mubr.bf16.gmra.mrb[28].mxu0 %v15982_v41 }
 0x8e1   : > { %8721 = vmatprep.mubr.bf16.mxu0 %v15983_v7 }
 0x8e3   : > { %v7987_v51 = vpop.f32.mrb[180].mxu0 }
 0x8e4   : > { %v7989_v16 = vpop.f32.mrb[181].mxu0  ;;  %v15340_v54 = vadd.f32 %v7987_v51, %v14533_v0  ;;  %v15986_v51 = vpack.c.bf16 %v15213_v29, %v15210_v44 }
 0x8e5   : > { %v7991_v42 = vpop.f32.mrb[182].mxu0  ;;  %v15337_v11 = vpop.f32.mrb[100].mxu1  ;;  %v15346_v41 = vadd.f32 %v7989_v16, %v14537_v50  ;;  %v15987_v16 = vpack.c.bf16 %v15245_v59, %v15242_v13 }
 0x8e6   : > { %15984 = vst [vmem:[#allocation87_spill] sm:$0xff] %v15337_v11  ;;  %v15343_v49 = vadd.f32 %v7991_v42, %v14533_v0  ;;  %v7993_v62 = vpop.f32.mrb[183].mxu0  ;;  %v8252_v37 = vpop.f32.mrb[101].mxu1 }
 0x8e7   : > { %v15349_v12 = vadd.f32 %v7993_v62, %v14537_v50  ;;  %v15351_v9 = vpop.f32.mrb[102].mxu1 }
 0x8e8   : > { %15985 = vst [vmem:[#allocation88_spill] sm:$0xff] %v15351_v9  ;;  %v8255_v7 = vpop.f32.mrb[103].mxu1  ;;  %8722 = vmatmul.mubr.bf16.gmra.mrb[32].mxu0 %v15986_v51 }
 0x8e9   : > { %8729 = vmatprep.mubr.bf16.mxu0 %v15987_v16 }
 0x8eb   : > { %v7997_v37 = vpop.f32.mrb[184].mxu0 }
 0x8ec   : > { %v7999_v62 = vpop.f32.mrb[185].mxu0  ;;  %v15366_v9 = vadd.f32 %v7997_v37, %v14533_v0  ;;  %v15990_v37 = vpack.c.bf16 %v15239_v27, %v15236_v6 }
 0x8ed   : > { %v8001_v21 = vpop.f32.mrb[186].mxu0  ;;  %v15363_v11 = vpop.f32.mrb[104].mxu1  ;;  %v15372_v51 = vadd.f32 %v7999_v62, %v14537_v50  ;;  %v15991_v62 = vpack.c.bf16 %v15271_v2, %v15268_v45 }
 0x8ee   : > { %15988 = vst [vmem:[#allocation89_spill] sm:$0xff] %v15363_v11  ;;  %v15369_v7 = vadd.f32 %v8001_v21, %v14533_v0  ;;  %v8003_v44 = vpop.f32.mrb[187].mxu0  ;;  %v8260_v29 = vpop.f32.mrb[105].mxu1  ;;  %v15995_v21 = vpack.c.bf16 %v15291_v60, %v15288_v48 }
 0x8ef   : > { %v15375_v39 = vadd.f32 %v8003_v44, %v14537_v50  ;;  %v15377_v59 = vpop.f32.mrb[106].mxu1 }
 0x8f0   : > { %15989 = vst [vmem:[#allocation90_spill] sm:$0xff] %v15377_v59  ;;  %v8263_v16 = vpop.f32.mrb[107].mxu1  ;;  %8730 = vmatmul.mubr.bf16.gmra.mrb[36].mxu0 %v15990_v37 }
 0x8f1   : > { %8737 = vmatprep.mubr.bf16.mxu0 %v15991_v62 }
 0x8f3   : > { %v8007_v29 = vpop.f32.mrb[188].mxu0 }
 0x8f4   : > { %v8009_v44 = vpop.f32.mrb[189].mxu0  ;;  %v15392_v59 = vadd.f32 %v8007_v29, %v14533_v0  ;;  %v15992_v29 = vpack.c.bf16 %v15265_v33, %v15262_v3 }
 0x8f5   : > { %v8011_v42 = vpop.f32.mrb[190].mxu0  ;;  %v15389_v11 = vpop.f32.mrb[108].mxu1  ;;  %v15398_v37 = vadd.f32 %v8009_v44, %v14537_v50 }
 0x8f6   : > { %v15395_v16 = vadd.f32 %v8011_v42, %v14533_v0  ;;  %v8013_v6 = vpop.f32.mrb[191].mxu0  ;;  %v8268_v27 = vpop.f32.mrb[109].mxu1  ;;  %v15993_v42 = vpack.c.bf16 %v15297_v31, %v15294_v63 }
 0x8f7   : > { %v15401_v13 = vadd.f32 %v8013_v6, %v14537_v50  ;;  %v15403_v2 = vpop.f32.mrb[110].mxu1  ;;  %v15418_v50 = vld [vmem:[%s15843_s8] ss:$0 sm:$0xff] }
 0x8f8   : > { %v8271_v62 = vpop.f32.mrb[111].mxu1  ;;  %8738 = vmatmul.mubr.bf16.gmra.mrb[40].mxu0 %v15992_v29 }
 0x8f9   : > { %8745 = vmatprep.mubr.bf16.mxu0 %v15993_v42 }
 0x8fb   : > { %v8531_v44 = vpop.f32.mrb[192].mxu0 }
 0x8fc   : > { %v8532_v6 = vadd.f32 %v8531_v44, %v12609_v32  ;;  %v8533_v27 = vpop.f32.mrb[193].mxu0  ;;  %v15996_v32 = vpack.c.bf16 %v15323_v57, %v15320_v15 }
 0x8fd   : > { %v15421_v62 = vpop.f32.mrb[112].mxu1  ;;  %v8534_v3 = vpop.f32.mrb[194].mxu0 }
 0x8fe   : > { %v8793_v33 = vadd.f32 %v15418_v50, %v8532_v6  ;;  %v8535_v29 = vadd.f32 %v8534_v3, %v12615_v38  ;;  %v8276_v45 = vpop.f32.mrb[113].mxu1  ;;  %v8536_v0 = vpop.f32.mrb[195].mxu0 }
 0x8ff   : > { %v15425_v31 = vpop.f32.mrb[114].mxu1 }
 0x900   : > { %15994 = vst [vmem:[#allocation91_spill] sm:$0xff] %v15425_v31  ;;  %v8794_v63 = vadd.f32 %v15418_v50, %v8535_v29  ;;  %v8279_v42 = vpop.f32.mrb[115].mxu1  ;;  %8746 = vmatmul.mubr.bf16.gmra.mrb[44].mxu0 %v15995_v21  ;;  %v8857_v44 = vmax.f32 %v8793_v33, 0.0  ;;  %v15998_v33 = vpack.c.bf16 %v15349_v12, %v15346_v41 }
 0x901   : > { %8753 = vmatprep.mubr.bf16.mxu0 %v15996_v32 }
 0x902   : > { %v8858_v27 = vmax.f32 %v8794_v63, 0.0 }
 0x903   : > { %v8539_v6 = vpop.f32.mrb[196].mxu0 }
 0x904   : > { %v8540_v38 = vadd.f32 %v12606_v22, %v8539_v6  ;;  %v8541_v45 = vpop.f32.mrb[197].mxu0  ;;  %v8921_v0 = vpack.c.bf16 %v8858_v27, %v8857_v44  ;;  %v15997_v22 = vpack.c.bf16 %v15317_v56, %v15314_v18 }
 0x905   : > { %v15435_v3 = vpop.f32.mrb[116].mxu1  ;;  %v8542_v31 = vpop.f32.mrb[198].mxu0 }
 0x906   : > { %v8795_v29 = vadd.f32 %v15418_v50, %v8540_v38  ;;  %v8543_v42 = vadd.f32 %v12612_v40, %v8542_v31  ;;  %v8284_v48 = vpop.f32.mrb[117].mxu1  ;;  %v8544_v60 = vpop.f32.mrb[199].mxu0  ;;  %10901 = vmatprep.mubr.bf16.mxu1 %v8921_v0 }
 0x907   : > { %v15439_v21 = vpop.f32.mrb[118].mxu1 }
 0x908   : > { %v8796_v57 = vadd.f32 %v15418_v50, %v8543_v42  ;;  %v8287_v15 = vpop.f32.mrb[119].mxu1  ;;  %8754 = vmatmul.mubr.bf16.gmra.mrb[48].mxu0 %v15997_v22  ;;  %v8859_v63 = vmax.f32 %v8795_v29, 0.0  ;;  %v15999_v29 = vpack.c.bf16 %v15343_v49, %v15340_v54 }
 0x909   : > { %8761 = vmatprep.mubr.bf16.mxu0 %v15998_v33 }
 0x90a   : > { %v8860_v32 = vmax.f32 %v8796_v57, 0.0 }
 0x90b   : > { %v8547_v44 = vpop.f32.mrb[200].mxu0 }
 0x90c   : > { %v8922_v40 = vpack.c.bf16 %v8860_v32, %v8859_v63  ;;  %v8548_v31 = vadd.f32 %v8547_v44, %v12623_v35  ;;  %v8549_v27 = vpop.f32.mrb[201].mxu0  ;;  %v16000_v35 = vpack.c.bf16 %v15375_v39, %v15372_v51 }
 0x90d   : > { %v15449_v6 = vpop.f32.mrb[120].mxu1  ;;  %v8550_v38 = vpop.f32.mrb[202].mxu0 }
 0x90e   : > { %v8797_v45 = vadd.f32 %v15418_v50, %v8548_v31  ;;  %v8551_v0 = vadd.f32 %v8550_v38, %v12629_v8  ;;  %v8292_v18 = vpop.f32.mrb[121].mxu1  ;;  %v8552_v56 = vpop.f32.mrb[203].mxu0  ;;  %10902 = vmatmul.mubr.bf16.vlgmr.msra.gmra.mrb[128].mxu1 %v8922_v40  ;;  %v16002_v31 = vpack.c.bf16 %v15401_v13, %v15398_v37 }
 0x90f   : > { %v15453_v42 = vpop.f32.mrb[122].mxu1 }
 0x910   : > { %v8798_v12 = vadd.f32 %v15418_v50, %v8551_v0  ;;  %v8295_v41 = vpop.f32.mrb[123].mxu1  ;;  %8762 = vmatmul.mubr.bf16.gmra.mrb[52].mxu0 %v15999_v29  ;;  %v8861_v48 = vmax.f32 %v8797_v45, 0.0 }
 0x911   : > { %8769 = vmatprep.mubr.bf16.mxu0 %v16000_v35 }
 0x912   : > { %v8862_v60 = vmax.f32 %v8798_v12, 0.0 }
 0x913   : > { %v8555_v57 = vpop.f32.mrb[204].mxu0 }
 0x914   : > { %v8556_v8 = vadd.f32 %v12620_v10, %v8555_v57  ;;  %v8557_v15 = vpop.f32.mrb[205].mxu0  ;;  %v8923_v22 = vpack.c.bf16 %v8862_v60, %v8861_v48  ;;  %v16001_v10 = vpack.c.bf16 %v15369_v7, %v15366_v9  ;;  %v16003_v7 = vpack.c.bf16 %v15395_v16, %v15392_v59 }
 0x915   : > { %v15463_v33 = vpop.f32.mrb[124].mxu1  ;;  %v8558_v63 = vpop.f32.mrb[206].mxu0 }
 0x916   : > { %v8799_v32 = vadd.f32 %v15418_v50, %v8556_v8  ;;  %v8559_v44 = vadd.f32 %v12626_v17, %v8558_v63  ;;  %v8300_v54 = vpop.f32.mrb[125].mxu1  ;;  %v8560_v49 = vpop.f32.mrb[207].mxu0  ;;  %10905 = vmatprep.mubr.bf16.mxu1 %v8923_v22 }
 0x917   : > { %v15467_v40 = vpop.f32.mrb[126].mxu1 }
 0x918   : > { %v8800_v39 = vadd.f32 %v15418_v50, %v8559_v44  ;;  %v8303_v51 = vpop.f32.mrb[127].mxu1  ;;  %8770 = vmatmul.mubr.bf16.gmra.mrb[56].mxu0 %v16001_v10  ;;  %v8863_v27 = vmax.f32 %v8799_v32, 0.0 }
 0x919   : > { %8777 = vmatprep.mubr.bf16.mxu0 %v16002_v31 }
 0x91a   : > { %v8864_v38 = vmax.f32 %v8800_v39, 0.0 }
 0x91b   : > { %v8563_v45 = vpop.f32.mrb[208].mxu0 }
 0x91c   : > { %v8924_v17 = vpack.c.bf16 %v8864_v38, %v8863_v27  ;;  %v8564_v0 = vadd.f32 %v8563_v45, %v12643_v20  ;;  %v8565_v18 = vpop.f32.mrb[209].mxu0 }
 0x91d   : > { %v8566_v56 = vpop.f32.mrb[210].mxu0 }
 0x91e   : > { %v8801_v12 = vadd.f32 %v15418_v50, %v8564_v0  ;;  %v8567_v41 = vadd.f32 %v8566_v56, %v12649_v55  ;;  %v8568_v29 = vpop.f32.mrb[211].mxu0  ;;  %10906 = vmatmul.mubr.bf16.gmra.mrb[132].mxu1 %v8924_v17 }
 0x920   : > { %v8802_v9 = vadd.f32 %v15418_v50, %v8567_v41  ;;  %8778 = vmatmul.mubr.bf16.gmra.mrb[60].mxu0 %v16003_v7  ;;  %v8865_v13 = vmax.f32 %v8801_v12, 0.0 }
 0x922   : > { %v8866_v37 = vmax.f32 %v8802_v9, 0.0 }
 0x923   : > { %v8571_v35 = vpop.f32.mrb[212].mxu0 }
 0x924   : > { %v8572_v48 = vadd.f32 %v12640_v5, %v8571_v35  ;;  %v8573_v20 = vpop.f32.mrb[213].mxu0  ;;  %v8925_v60 = vpack.c.bf16 %v8866_v37, %v8865_v13 }
 0x925   : > { %v8574_v57 = vpop.f32.mrb[214].mxu0 }
 0x926   : > { %v8803_v8 = vadd.f32 %v15418_v50, %v8572_v48  ;;  %v8575_v55 = vadd.f32 %v12646_v52, %v8574_v57  ;;  %v8576_v15 = vpop.f32.mrb[215].mxu0  ;;  %10909 = vmatprep.mubr.bf16.mxu1 %v8925_v60 }
 0x928   : > { %v8804_v22 = vadd.f32 %v15418_v50, %v8575_v55  ;;  %v8867_v63 = vmax.f32 %v8803_v8, 0.0 }
 0x92a   : > { %v8868_v32 = vmax.f32 %v8804_v22, 0.0 }
 0x92b   : > { %v8579_v59 = vpop.f32.mrb[216].mxu0 }
 0x92c   : > { %v8926_v16 = vpack.c.bf16 %v8868_v32, %v8867_v63  ;;  %v8580_v44 = vadd.f32 %v8579_v59, %v12657_v34  ;;  %v8581_v54 = vpop.f32.mrb[217].mxu0 }
 0x92d   : > { %v8582_v49 = vpop.f32.mrb[218].mxu0 }
 0x92e   : > { %v8805_v5 = vadd.f32 %v15418_v50, %v8580_v44  ;;  %v8583_v39 = vadd.f32 %v8582_v49, %v12663_v43  ;;  %v8584_v51 = vpop.f32.mrb[219].mxu0  ;;  %10910 = vmatmul.mubr.bf16.gmra.mrb[136].mxu1 %v8926_v16  ;;  %v16004_v49 = vld [vmem:[#allocation4_spill] sm:$0xff] }
 0x930   : > { %v8806_v52 = vadd.f32 %v15418_v50, %v8583_v39  ;;  %v8869_v10 = vmax.f32 %v8805_v5, 0.0 }
 0x932   : > { %v8870_v31 = vmax.f32 %v8806_v52, 0.0  ;;  %v16005_v52 = vld [vmem:[#allocation6_spill] sm:$0xff] }
 0x933   : > { %v8587_v27 = vpop.f32.mrb[220].mxu0 }
 0x934   : > { %v8588_v38 = vadd.f32 %v12654_v19, %v8587_v27  ;;  %v8589_v45 = vpop.f32.mrb[221].mxu0  ;;  %v8927_v17 = vpack.c.bf16 %v8870_v31, %v8869_v10 }
 0x935   : > { %v8590_v0 = vpop.f32.mrb[222].mxu0 }
 0x936   : > { %v8807_v34 = vadd.f32 %v15418_v50, %v8588_v38  ;;  %v8591_v18 = vadd.f32 %v12660_v47, %v8590_v0  ;;  %v8592_v56 = vpop.f32.mrb[223].mxu0  ;;  %10913 = vmatprep.mubr.bf16.mxu1 %v8927_v17  ;;  %v16006_v17 = vld [vmem:[#allocation3_spill] sm:$0xff] }
 0x938   : > { %v8808_v43 = vadd.f32 %v15418_v50, %v8591_v18  ;;  %v8871_v12 = vmax.f32 %v8807_v34, 0.0 }
 0x93a   : > { %v8872_v41 = vmax.f32 %v8808_v43, 0.0 }
 0x93b   : > { %v8595_v29 = vpop.f32.mrb[224].mxu0 }
 0x93c   : > { %v8928_v9 = vpack.c.bf16 %v8872_v41, %v8871_v12  ;;  %v8596_v7 = vadd.f32 %v8595_v29, %v12677_v28  ;;  %v8597_v13 = vpop.f32.mrb[225].mxu0  ;;  %v16007_v12 = vld [vmem:[#allocation5_spill] sm:$0xff] }
 0x93d   : > { %v8598_v37 = vpop.f32.mrb[226].mxu0 }
 0x93e   : > { %v8809_v19 = vadd.f32 %v15418_v50, %v8596_v7  ;;  %v8599_v35 = vadd.f32 %v8598_v37, %v12683_v46  ;;  %v8600_v48 = vpop.f32.mrb[227].mxu0  ;;  %10914 = vmatmul.mubr.bf16.gmra.mrb[140].mxu1 %v8928_v9 }
 0x940   : > { %v8810_v47 = vadd.f32 %v15418_v50, %v8599_v35  ;;  %v8873_v20 = vmax.f32 %v8809_v19, 0.0  ;;  %v16008_v35 = vld [vmem:[#allocation8_spill] sm:$0xff] }
 0x942   : > { %v8874_v60 = vmax.f32 %v8810_v47, 0.0 }
 0x943   : > { %v8603_v57 = vpop.f32.mrb[228].mxu0 }
 0x944   : > { %v8604_v8 = vadd.f32 %v12674_v26, %v8603_v57  ;;  %v8605_v55 = vpop.f32.mrb[229].mxu0  ;;  %v8929_v15 = vpack.c.bf16 %v8874_v60, %v8873_v20  ;;  %v16009_v57 = vld [vmem:[#allocation10_spill] sm:$0xff] }
 0x945   : > { %v8606_v22 = vpop.f32.mrb[230].mxu0 }
 0x946   : > { %v8811_v28 = vadd.f32 %v15418_v50, %v8604_v8  ;;  %v8607_v63 = vadd.f32 %v12680_v61, %v8606_v22  ;;  %v8608_v32 = vpop.f32.mrb[231].mxu0  ;;  %10917 = vmatprep.mubr.bf16.mxu1 %v8929_v15 }
 0x947   : > { %v16010_v32 = vld [vmem:[#allocation7_spill] sm:$0xff] }
 0x948   : > { %v8812_v46 = vadd.f32 %v15418_v50, %v8607_v63  ;;  %v8875_v59 = vmax.f32 %v8811_v28, 0.0 }
 0x94a   : > { %v8876_v16 = vmax.f32 %v8812_v46, 0.0 }
 0x94b   : > { %v8611_v44 = vpop.f32.mrb[232].mxu0 }
 0x94c   : > { %v8930_v54 = vpack.c.bf16 %v8876_v16, %v8875_v59  ;;  %v8612_v5 = vadd.f32 %v8611_v44, %v16004_v49  ;;  %v8613_v39 = vpop.f32.mrb[233].mxu0  ;;  %v16011_v49 = vld [vmem:[#allocation9_spill] sm:$0xff] }
 0x94d   : > { %v8614_v51 = vpop.f32.mrb[234].mxu0 }
 0x94e   : > { %v8813_v26 = vadd.f32 %v15418_v50, %v8612_v5  ;;  %v8615_v10 = vadd.f32 %v8614_v51, %v16005_v52  ;;  %v8616_v31 = vpop.f32.mrb[235].mxu0  ;;  %10918 = vmatmul.mubr.bf16.gmra.mrb[144].mxu1 %v8930_v54 }
 0x950   : > { %v8814_v61 = vadd.f32 %v15418_v50, %v8615_v10  ;;  %v8877_v27 = vmax.f32 %v8813_v26, 0.0 }
 0x952   : > { %v8878_v38 = vmax.f32 %v8814_v61, 0.0  ;;  %v16012_v61 = vld [vmem:[#allocation12_spill] sm:$0xff] }
 0x953   : > { %v8619_v45 = vpop.f32.mrb[236].mxu0 }
 0x954   : > { %v8620_v0 = vadd.f32 %v16006_v17, %v8619_v45  ;;  %v8621_v34 = vpop.f32.mrb[237].mxu0  ;;  %v8931_v18 = vpack.c.bf16 %v8878_v38, %v8877_v27 }
 0x955   : > { %v8622_v56 = vpop.f32.mrb[238].mxu0 }
 0x956   : > { %v8815_v43 = vadd.f32 %v15418_v50, %v8620_v0  ;;  %v8623_v41 = vadd.f32 %v16007_v12, %v8622_v56  ;;  %v8624_v29 = vpop.f32.mrb[239].mxu0  ;;  %10921 = vmatprep.mubr.bf16.mxu1 %v8931_v18  ;;  %v16013_v0 = vld [vmem:[#allocation14_spill] sm:$0xff] }
 0x957   : > { %v16014_v29 = vld [vmem:[#allocation11_spill] sm:$0xff] }
 0x958   : > { %v8816_v9 = vadd.f32 %v15418_v50, %v8623_v41  ;;  %v8879_v7 = vmax.f32 %v8815_v43, 0.0 }
 0x95a   : > { %v8880_v13 = vmax.f32 %v8816_v9, 0.0 }
 0x95b   : > { %v8627_v37 = vpop.f32.mrb[240].mxu0 }
 0x95c   : > { %v8932_v19 = vpack.c.bf16 %v8880_v13, %v8879_v7  ;;  %v8628_v48 = vadd.f32 %v8627_v37, %v16008_v35  ;;  %v8629_v47 = vpop.f32.mrb[241].mxu0  ;;  %v16015_v35 = vld [vmem:[#allocation13_spill] sm:$0xff] }
 0x95d   : > { %v8630_v20 = vpop.f32.mrb[242].mxu0 }
 0x95e   : > { %v8817_v60 = vadd.f32 %v15418_v50, %v8628_v48  ;;  %v8631_v8 = vadd.f32 %v8630_v20, %v16009_v57  ;;  %v8632_v55 = vpop.f32.mrb[243].mxu0  ;;  %10922 = vmatmul.mubr.bf16.gmra.mrb[148].mxu1 %v8932_v19 }
 0x960   : > { %v8818_v15 = vadd.f32 %v15418_v50, %v8631_v8  ;;  %v8881_v22 = vmax.f32 %v8817_v60, 0.0 }
 0x962   : > { %v8882_v28 = vmax.f32 %v8818_v15, 0.0  ;;  %v16016_v15 = vld [vmem:[#allocation16_spill] sm:$0xff] }
 0x963   : > { %v8635_v63 = vpop.f32.mrb[244].mxu0 }
 0x964   : > { %v8636_v46 = vadd.f32 %v16010_v32, %v8635_v63  ;;  %v8637_v59 = vpop.f32.mrb[245].mxu0  ;;  %v8933_v16 = vpack.c.bf16 %v8882_v28, %v8881_v22 }
 0x965   : > { %v8638_v44 = vpop.f32.mrb[246].mxu0 }
 0x966   : > { %v8819_v54 = vadd.f32 %v15418_v50, %v8636_v46  ;;  %v8639_v5 = vadd.f32 %v16011_v49, %v8638_v44  ;;  %v8640_v39 = vpop.f32.mrb[247].mxu0  ;;  %10925 = vmatprep.mubr.bf16.mxu1 %v8933_v16  ;;  %v16017_v46 = vld [vmem:[#allocation18_spill] sm:$0xff] }
 0x967   : > { %v16018_v39 = vld [vmem:[#allocation15_spill] sm:$0xff] }
 0x968   : > { %v8820_v51 = vadd.f32 %v15418_v50, %v8639_v5  ;;  %v8883_v26 = vmax.f32 %v8819_v54, 0.0 }
 0x96a   : > { %v8884_v52 = vmax.f32 %v8820_v51, 0.0 }
 0x96b   : > { %v8643_v10 = vpop.f32.mrb[248].mxu0 }
 0x96c   : > { %v8934_v31 = vpack.c.bf16 %v8884_v52, %v8883_v26  ;;  %v8644_v27 = vadd.f32 %v8643_v10, %v16012_v61  ;;  %v8645_v38 = vpop.f32.mrb[249].mxu0  ;;  %v16019_v61 = vld [vmem:[#allocation17_spill] sm:$0xff] }
 0x96d   : > { %v8646_v45 = vpop.f32.mrb[250].mxu0 }
 0x96e   : > { %v8821_v17 = vadd.f32 %v15418_v50, %v8644_v27  ;;  %v8647_v34 = vadd.f32 %v8646_v45, %v16013_v0  ;;  %v8648_v18 = vpop.f32.mrb[251].mxu0  ;;  %10926 = vmatmul.mubr.bf16.gmra.mrb[152].mxu1 %v8934_v31 }
 0x970   : > { %v8822_v56 = vadd.f32 %v15418_v50, %v8647_v34  ;;  %v8885_v43 = vmax.f32 %v8821_v17, 0.0 }
 0x972   : > { %v8886_v12 = vmax.f32 %v8822_v56, 0.0  ;;  %v16020_v56 = vld [vmem:[#allocation20_spill] sm:$0xff] }
 0x973   : > { %v8651_v41 = vpop.f32.mrb[252].mxu0 }
 0x974   : > { %v8652_v9 = vadd.f32 %v16014_v29, %v8651_v41  ;;  %v8653_v7 = vpop.f32.mrb[253].mxu0  ;;  %v8935_v13 = vpack.c.bf16 %v8886_v12, %v8885_v43 }
 0x975   : > { %v8654_v37 = vpop.f32.mrb[254].mxu0 }
 0x976   : > { %v8823_v19 = vadd.f32 %v15418_v50, %v8652_v9  ;;  %v8655_v48 = vadd.f32 %v16015_v35, %v8654_v37  ;;  %v8656_v47 = vpop.f32.mrb[255].mxu0  ;;  %10929 = vmatprep.mubr.bf16.mxu1 %v8935_v13  ;;  %v16021_v9 = vld [vmem:[#allocation22_spill] sm:$0xff] }
 0x977   : > { %v16022_v47 = vld [vmem:[#allocation19_spill] sm:$0xff] }
 0x978   : > { %v8824_v20 = vadd.f32 %v15418_v50, %v8655_v48  ;;  %v8887_v60 = vmax.f32 %v8823_v19, 0.0 }
 0x97a   : > { %v8888_v57 = vmax.f32 %v8824_v20, 0.0 }
 0x97b   : > { %v8659_v8 = vpop.f32.mrb[0].mxu0 }
 0x97c   : > { %v8936_v55 = vpack.c.bf16 %v8888_v57, %v8887_v60  ;;  %v8660_v22 = vadd.f32 %v8659_v8, %v16016_v15  ;;  %v8661_v28 = vpop.f32.mrb[1].mxu0  ;;  %v16023_v15 = vld [vmem:[#allocation21_spill] sm:$0xff] }
 0x97d   : > { %v8662_v63 = vpop.f32.mrb[2].mxu0 }
 0x97e   : > { %v8825_v32 = vadd.f32 %v15418_v50, %v8660_v22  ;;  %v8663_v59 = vadd.f32 %v8662_v63, %v16017_v46  ;;  %v8664_v16 = vpop.f32.mrb[3].mxu0  ;;  %10930 = vmatmul.mubr.bf16.gmra.mrb[156].mxu1 %v8936_v55 }
 0x980   : > { %v8826_v44 = vadd.f32 %v15418_v50, %v8663_v59  ;;  %v8889_v54 = vmax.f32 %v8825_v32, 0.0 }
 0x982   : > { %v8890_v49 = vmax.f32 %v8826_v44, 0.0  ;;  %v16024_v44 = vld [vmem:[#allocation24_spill] sm:$0xff] }
 0x983   : > { %v8667_v5 = vpop.f32.mrb[4].mxu0 }
 0x984   : > { %v8668_v51 = vadd.f32 %v16018_v39, %v8667_v5  ;;  %v8669_v26 = vpop.f32.mrb[5].mxu0  ;;  %v8937_v52 = vpack.c.bf16 %v8890_v49, %v8889_v54 }
 0x985   : > { %v8670_v10 = vpop.f32.mrb[6].mxu0 }
 0x986   : > { %v8827_v31 = vadd.f32 %v15418_v50, %v8668_v51  ;;  %v8671_v27 = vadd.f32 %v16019_v61, %v8670_v10  ;;  %v8672_v38 = vpop.f32.mrb[7].mxu0  ;;  %10933 = vmatprep.mubr.bf16.mxu1 %v8937_v52  ;;  %v16025_v51 = vld [vmem:[#allocation26_spill] sm:$0xff] }
 0x987   : > { %v16026_v38 = vld [vmem:[#allocation23_spill] sm:$0xff] }
 0x988   : > { %v8828_v45 = vadd.f32 %v15418_v50, %v8671_v27  ;;  %v8891_v17 = vmax.f32 %v8827_v31, 0.0 }
 0x98a   : > { %v8892_v0 = vmax.f32 %v8828_v45, 0.0 }
 0x98b   : > { %v8675_v34 = vpop.f32.mrb[8].mxu0 }
 0x98c   : > { %v8938_v18 = vpack.c.bf16 %v8892_v0, %v8891_v17  ;;  %v8676_v43 = vadd.f32 %v8675_v34, %v16020_v56  ;;  %v8677_v12 = vpop.f32.mrb[9].mxu0  ;;  %v16027_v56 = vld [vmem:[#allocation25_spill] sm:$0xff] }
 0x98d   : > { %v8678_v41 = vpop.f32.mrb[10].mxu0 }
 0x98e   : > { %v8829_v29 = vadd.f32 %v15418_v50, %v8676_v43  ;;  %v8679_v7 = vadd.f32 %v8678_v41, %v16021_v9  ;;  %v8680_v13 = vpop.f32.mrb[11].mxu0  ;;  %10934 = vmatmul.mubr.bf16.gmra.mrb[160].mxu1 %v8938_v18 }
 0x990   : > { %v8830_v37 = vadd.f32 %v15418_v50, %v8679_v7  ;;  %v8893_v19 = vmax.f32 %v8829_v29, 0.0 }
 0x992   : > { %v8894_v35 = vmax.f32 %v8830_v37, 0.0  ;;  %v16028_v37 = vld [vmem:[#allocation28_spill] sm:$0xff] }
 0x993   : > { %v8683_v48 = vpop.f32.mrb[12].mxu0 }
 0x994   : > { %v8684_v20 = vadd.f32 %v16022_v47, %v8683_v48  ;;  %v8685_v60 = vpop.f32.mrb[13].mxu0  ;;  %v8939_v57 = vpack.c.bf16 %v8894_v35, %v8893_v19 }
 0x995   : > { %v8686_v8 = vpop.f32.mrb[14].mxu0 }
 0x996   : > { %v8831_v55 = vadd.f32 %v15418_v50, %v8684_v20  ;;  %v8687_v22 = vadd.f32 %v16023_v15, %v8686_v8  ;;  %v8688_v28 = vpop.f32.mrb[15].mxu0  ;;  %10937 = vmatprep.mubr.bf16.mxu1 %v8939_v57  ;;  %v16029_v20 = vld [vmem:[#allocation30_spill] sm:$0xff] }
 0x997   : > { %v16030_v28 = vld [vmem:[#allocation27_spill] sm:$0xff] }
 0x998   : > { %v8832_v63 = vadd.f32 %v15418_v50, %v8687_v22  ;;  %v8895_v32 = vmax.f32 %v8831_v55, 0.0 }
 0x99a   : > { %v8896_v46 = vmax.f32 %v8832_v63, 0.0 }
 0x99b   : > { %v8691_v59 = vpop.f32.mrb[16].mxu0 }
 0x99c   : > { %v8940_v16 = vpack.c.bf16 %v8896_v46, %v8895_v32  ;;  %v8692_v54 = vadd.f32 %v8691_v59, %v16024_v44  ;;  %v8693_v49 = vpop.f32.mrb[17].mxu0  ;;  %v16031_v44 = vld [vmem:[#allocation29_spill] sm:$0xff] }
 0x99d   : > { %v8694_v5 = vpop.f32.mrb[18].mxu0 }
 0x99e   : > { %v8833_v39 = vadd.f32 %v15418_v50, %v8692_v54  ;;  %v8695_v26 = vadd.f32 %v8694_v5, %v16025_v51  ;;  %v8696_v52 = vpop.f32.mrb[19].mxu0  ;;  %10938 = vmatmul.mubr.bf16.gmra.mrb[164].mxu1 %v8940_v16 }
 0x9a0   : > { %v8834_v10 = vadd.f32 %v15418_v50, %v8695_v26  ;;  %v8897_v31 = vmax.f32 %v8833_v39, 0.0 }
 0x9a2   : > { %v8898_v61 = vmax.f32 %v8834_v10, 0.0  ;;  %v16032_v10 = vld [vmem:[#allocation32_spill] sm:$0xff] }
 0x9a3   : > { %v8699_v27 = vpop.f32.mrb[20].mxu0 }
 0x9a4   : > { %v8700_v45 = vadd.f32 %v16026_v38, %v8699_v27  ;;  %v8701_v17 = vpop.f32.mrb[21].mxu0  ;;  %v8941_v0 = vpack.c.bf16 %v8898_v61, %v8897_v31 }
 0x9a5   : > { %v8702_v34 = vpop.f32.mrb[22].mxu0 }
 0x9a6   : > { %v8835_v18 = vadd.f32 %v15418_v50, %v8700_v45  ;;  %v8703_v43 = vadd.f32 %v16027_v56, %v8702_v34  ;;  %v8704_v12 = vpop.f32.mrb[23].mxu0  ;;  %10941 = vmatprep.mubr.bf16.mxu1 %v8941_v0  ;;  %v16033_v45 = vld [vmem:[#allocation34_spill] sm:$0xff] }
 0x9a7   : > { %v16034_v12 = vld [vmem:[#allocation31_spill] sm:$0xff] }
 0x9a8   : > { %v8836_v41 = vadd.f32 %v15418_v50, %v8703_v43  ;;  %v8899_v29 = vmax.f32 %v8835_v18, 0.0 }
 0x9aa   : > { %v8900_v9 = vmax.f32 %v8836_v41, 0.0 }
 0x9ab   : > { %v8707_v7 = vpop.f32.mrb[24].mxu0 }
 0x9ac   : > { %v8942_v13 = vpack.c.bf16 %v8900_v9, %v8899_v29  ;;  %v8708_v19 = vadd.f32 %v8707_v7, %v16028_v37  ;;  %v8709_v35 = vpop.f32.mrb[25].mxu0  ;;  %v16035_v37 = vld [vmem:[#allocation33_spill] sm:$0xff] }
 0x9ad   : > { %v8710_v48 = vpop.f32.mrb[26].mxu0 }
 0x9ae   : > { %v8837_v47 = vadd.f32 %v15418_v50, %v8708_v19  ;;  %v8711_v60 = vadd.f32 %v8710_v48, %v16029_v20  ;;  %v8712_v57 = vpop.f32.mrb[27].mxu0  ;;  %10942 = vmatmul.mubr.bf16.gmra.mrb[168].mxu1 %v8942_v13 }
 0x9b0   : > { %v8838_v8 = vadd.f32 %v15418_v50, %v8711_v60  ;;  %v8901_v55 = vmax.f32 %v8837_v47, 0.0 }
 0x9b2   : > { %v8902_v15 = vmax.f32 %v8838_v8, 0.0  ;;  %v16036_v8 = vld [vmem:[#allocation36_spill] sm:$0xff] }
 0x9b3   : > { %v8715_v22 = vpop.f32.mrb[28].mxu0 }
 0x9b4   : > { %v8716_v63 = vadd.f32 %v16030_v28, %v8715_v22  ;;  %v8717_v32 = vpop.f32.mrb[29].mxu0  ;;  %v8943_v46 = vpack.c.bf16 %v8902_v15, %v8901_v55 }
 0x9b5   : > { %v8718_v59 = vpop.f32.mrb[30].mxu0 }
 0x9b6   : > { %v8839_v16 = vadd.f32 %v15418_v50, %v8716_v63  ;;  %v8719_v54 = vadd.f32 %v16031_v44, %v8718_v59  ;;  %v8720_v49 = vpop.f32.mrb[31].mxu0  ;;  %10945 = vmatprep.mubr.bf16.mxu1 %v8943_v46  ;;  %v16037_v63 = vld [vmem:[#allocation38_spill] sm:$0xff] }
 0x9b7   : > { %v16038_v49 = vld [vmem:[#allocation35_spill] sm:$0xff] }
 0x9b8   : > { %v8840_v5 = vadd.f32 %v15418_v50, %v8719_v54  ;;  %v8903_v39 = vmax.f32 %v8839_v16, 0.0 }
 0x9ba   : > { %v8904_v51 = vmax.f32 %v8840_v5, 0.0 }
 0x9bb   : > { %v8723_v26 = vpop.f32.mrb[32].mxu0 }
 0x9bc   : > { %v8944_v52 = vpack.c.bf16 %v8904_v51, %v8903_v39  ;;  %v8724_v31 = vadd.f32 %v8723_v26, %v16032_v10  ;;  %v8725_v61 = vpop.f32.mrb[33].mxu0  ;;  %v16039_v10 = vld [vmem:[#allocation37_spill] sm:$0xff] }
 0x9bd   : > { %v8726_v27 = vpop.f32.mrb[34].mxu0 }
 0x9be   : > { %v8841_v38 = vadd.f32 %v15418_v50, %v8724_v31  ;;  %v8727_v17 = vadd.f32 %v8726_v27, %v16033_v45  ;;  %v8728_v0 = vpop.f32.mrb[35].mxu0  ;;  %10946 = vmatmul.mubr.bf16.gmra.mrb[172].mxu1 %v8944_v52 }
 0x9c0   : > { %v8842_v34 = vadd.f32 %v15418_v50, %v8727_v17  ;;  %v8905_v18 = vmax.f32 %v8841_v38, 0.0  ;;  %v16040_v17 = vld [vmem:[#allocation2_spill] sm:$0xff] }
 0x9c1   : > { %v7402_v0 = vsub.s32 2, %v16040_v17 }
 0x9c2   : > { %v8906_v56 = vmax.f32 %v8842_v34, 0.0 }
 0x9c3   : > { %v8731_v43 = vpop.f32.mrb[36].mxu0 }
 0x9c4   : > { %v8732_v41 = vadd.f32 %v16034_v12, %v8731_v43  ;;  %v8733_v29 = vpop.f32.mrb[37].mxu0  ;;  %v8945_v9 = vpack.c.bf16 %v8906_v56, %v8905_v18  ;;  %v16041_v56 = vld [vmem:[#allocation40_spill] sm:$0xff] }
 0x9c5   : > { %v8734_v7 = vpop.f32.mrb[38].mxu0 }
 0x9c6   : > { %v8843_v13 = vadd.f32 %v15418_v50, %v8732_v41  ;;  %v8735_v19 = vadd.f32 %v16035_v37, %v8734_v7  ;;  %v8736_v35 = vpop.f32.mrb[39].mxu0  ;;  %10949 = vmatprep.mubr.bf16.mxu1 %v8945_v9  ;;  %v16042_v9 = vld [vmem:[#allocation42_spill] sm:$0xff] }
 0x9c7   : > { %v11532_v37 = vld [vmem:[%s15841_s6] sm:$0x7] }
 0x9c8   : > { %v8844_v48 = vadd.f32 %v15418_v50, %v8735_v19  ;;  %v8907_v47 = vmax.f32 %v8843_v13, 0.0  ;;  %v15582_v19 = vrot.slane %v11532_v37, %v7402_v0  ;;  %v15587_v35 = vld [vmem:[%s15845_s10] ss:$0 sm:$0xff] }
 0x9c9   : > { %v16046_v37 = vld [vmem:[#allocation46_spill] sm:$0xff] }
 0x9ca   : > { %v8908_v20 = vmax.f32 %v8844_v48, 0.0 }
 0x9cb   : > { %v8739_v60 = vpop.f32.mrb[40].mxu0 }
 0x9cc   : > { %v8946_v57 = vpack.c.bf16 %v8908_v20, %v8907_v47  ;;  %v8740_v55 = vadd.f32 %v8739_v60, %v16036_v8  ;;  %v8741_v15 = vpop.f32.mrb[41].mxu0  ;;  %v8059_v20 = vadd.f32 %v14685_v14, %v15582_v19 }
 0x9cd   : > { %v8742_v22 = vpop.f32.mrb[42].mxu0  ;;  %v8051_v15 = vadd.f32 %v14658_v53, %v15582_v19 }
 0x9ce   : > { %v8845_v28 = vadd.f32 %v15418_v50, %v8740_v55  ;;  %v8743_v32 = vadd.f32 %v8742_v22, %v16037_v63  ;;  %v8744_v46 = vpop.f32.mrb[43].mxu0  ;;  %10950 = vmatmul.mubr.bf16.gmra.mrb[176].mxu1 %v8946_v57  ;;  %v8062_v22 = vadd.f32 %v14699_v36, %v15582_v19 }
 0x9d0   : > { %v8846_v59 = vadd.f32 %v15418_v50, %v8743_v32  ;;  %v8909_v16 = vmax.f32 %v8845_v28, 0.0 }
 0x9d2   : > { %v8910_v44 = vmax.f32 %v8846_v59, 0.0  ;;  %v16043_v59 = vld [vmem:[#allocation39_spill] sm:$0xff] }
 0x9d3   : > { %v8747_v54 = vpop.f32.mrb[44].mxu0 }
 0x9d4   : > { %v8748_v5 = vadd.f32 %v16038_v49, %v8747_v54  ;;  %v8749_v39 = vpop.f32.mrb[45].mxu0  ;;  %v8947_v51 = vpack.c.bf16 %v8910_v44, %v8909_v16 }
 0x9d5   : > { %v8750_v26 = vpop.f32.mrb[46].mxu0 }
 0x9d6   : > { %v8847_v52 = vadd.f32 %v15418_v50, %v8748_v5  ;;  %v8751_v31 = vadd.f32 %v16039_v10, %v8750_v26  ;;  %v8752_v61 = vpop.f32.mrb[47].mxu0  ;;  %10953 = vmatprep.mubr.bf16.mxu1 %v8947_v51  ;;  %v8054_v5 = vadd.f32 %v14673_v24, %v15582_v19 }
 0x9d8   : > { %v8848_v27 = vadd.f32 %v15418_v50, %v8751_v31  ;;  %v8911_v38 = vmax.f32 %v8847_v52, 0.0  ;;  %v16044_v52 = vld [vmem:[#allocation41_spill] sm:$0xff] }
 0x9da   : > { %v8912_v45 = vmax.f32 %v8848_v27, 0.0 }
 0x9db   : > { %v8755_v34 = vpop.f32.mrb[48].mxu0 }
 0x9dc   : > { %v8948_v18 = vpack.c.bf16 %v8912_v45, %v8911_v38  ;;  %v8756_v43 = vadd.f32 %v8755_v34, %v16041_v56  ;;  %v8757_v12 = vpop.f32.mrb[49].mxu0 }
 0x9dd   : > { %v8758_v41 = vpop.f32.mrb[50].mxu0 }
 0x9de   : > { %v8849_v29 = vadd.f32 %v15418_v50, %v8756_v43  ;;  %v8759_v7 = vadd.f32 %v8758_v41, %v16042_v9  ;;  %v8760_v13 = vpop.f32.mrb[51].mxu0  ;;  %10954 = vmatmul.mubr.bf16.gmra.mrb[180].mxu1 %v8948_v18  ;;  %v16045_v41 = vld [vmem:[#allocation44_spill] sm:$0xff] }
 0x9e0   : > { %v8850_v48 = vadd.f32 %v15418_v50, %v8759_v7  ;;  %v8913_v60 = vmax.f32 %v8849_v29, 0.0 }
 0x9e1   : > { %v10903_v47 = vpop.f32.mrb[128].mxu1 }
 0x9e2   : > { %v8914_v57 = vmax.f32 %v8850_v48, 0.0  ;;  %v9067_v8 = vadd.f32 %v10903_v47, %v15587_v35  ;;  %v9058_v55 = vpop.f32.mrb[129].mxu1 }
 0x9e3   : > { %v9059_v28 = vadd.f32 %v15587_v35, %v9058_v55  ;;  %v8763_v63 = vpop.f32.mrb[52].mxu0  ;;  %v10904_v32 = vpop.f32.mrb[130].mxu1 }
 0x9e4   : > { %v9315_v46 = vadd.f32 %v9067_v8, %v8059_v20  ;;  %v8764_v16 = vadd.f32 %v16043_v59, %v8763_v63  ;;  %v9070_v14 = vadd.f32 %v10904_v32, %v15587_v35  ;;  %v8765_v44 = vpop.f32.mrb[53].mxu0  ;;  %v9061_v54 = vpop.f32.mrb[131].mxu1  ;;  %v8949_v49 = vpack.c.bf16 %v8914_v57, %v8913_v60 }
 0x9e5   : > { %v9313_v53 = vadd.f32 %v9059_v28, %v8051_v15  ;;  %v9062_v39 = vadd.f32 %v15587_v35, %v9061_v54  ;;  %v8766_v51 = vpop.f32.mrb[54].mxu0  ;;  %v8075_v57 = vadd.f32 %v14744_v1, %v15582_v19  ;;  %v8067_v28 = vadd.f32 %v14716_v30, %v15582_v19 }
 0x9e6   : > { %v8851_v36 = vadd.f32 %v15418_v50, %v8764_v16  ;;  %v9316_v26 = vadd.f32 %v9070_v14, %v8062_v22  ;;  %v8767_v10 = vadd.f32 %v16044_v52, %v8766_v51  ;;  %v8768_v31 = vpop.f32.mrb[55].mxu0  ;;  %10957 = vmatprep.mubr.bf16.mxu1 %v8949_v49  ;;  %v9379_v27 = vand.u32 2147483647, %v9315_v46  ;;  %v16047_v14 = vld [vmem:[#allocation43_spill] sm:$0xff] }
 0x9e7   : > { %v9314_v61 = vadd.f32 %v9062_v39, %v8054_v5  ;;  %v9377_v17 = vand.u32 2147483647, %v9313_v53  ;;  %v8078_v63 = vadd.f32 %v14758_v4, %v15582_v19  ;;  %v8070_v53 = vadd.f32 %v14730_v23, %v15582_v19 }
 0x9e8   : > { %v9380_v38 = vand.u32 2147483647, %v9316_v26  ;;  %v8852_v45 = vadd.f32 %v15418_v50, %v8767_v10  ;;  %v8915_v0 = vmax.f32 %v8851_v36, 0.0  ;;  %v16048_v26 = vld [vmem:[#allocation45_spill] sm:$0xff] }
 0x9e9   : > { %v9378_v24 = vand.u32 2147483647, %v9314_v61 }
 0x9ea   : > { %v10563_v34 = vpack.c.bf16 %v9380_v38, %v9379_v27  ;;  %v8916_v18 = vmax.f32 %v8852_v45, 0.0 }
 0x9eb   : > { %v10558_v56 = vpack.c.bf16 %v9378_v24, %v9377_v17  ;;  %v8771_v43 = vpop.f32.mrb[56].mxu0 }
 0x9ec   : > { %10715 = vst [vmem:[%s15610_s22 + $0x8] sm:$0xff] %v10563_v34   ;;  %v8950_v12 = vpack.c.bf16 %v8916_v18, %v8915_v0  ;;  %v8772_v29 = vadd.f32 %v8771_v43, %v16045_v41  ;;  %v8773_v9 = vpop.f32.mrb[57].mxu0  ;;  %v8091_v43 = vadd.f32 %v14799_v25, %v15582_v19  ;;  %v16050_v25 = vld [vmem:[#allocation47_spill] sm:$0xff] }
 0x9ed   : > { %10559 = vst [vmem:[%s15610_s22] sm:$0xff] %v10558_v56   ;;  %v8774_v7 = vpop.f32.mrb[58].mxu0 }
 0x9ee   : > { %v8853_v13 = vadd.f32 %v15418_v50, %v8772_v29  ;;  %v8775_v48 = vadd.f32 %v8774_v7, %v16046_v37  ;;  %v8776_v47 = vpop.f32.mrb[59].mxu0  ;;  %10958 = vmatmul.mubr.bf16.gmra.mrb[184].mxu1 %v8950_v12  ;;  %v16049_v7 = vld [vmem:[#allocation48_spill] sm:$0xff] }
 0x9f0   : > { %v8854_v20 = vadd.f32 %v15418_v50, %v8775_v48  ;;  %v8917_v8 = vmax.f32 %v8853_v13, 0.0  ;;  %v8094_v13 = vadd.f32 %v16049_v7, %v15582_v19 }
 0x9f1   : > { %v10907_v60 = vpop.f32.mrb[132].mxu1 }
 0x9f2   : > { %v8918_v55 = vmax.f32 %v8854_v20, 0.0  ;;  %v9083_v15 = vadd.f32 %v10907_v60, %v15587_v35  ;;  %v9074_v22 = vpop.f32.mrb[133].mxu1  ;;  %v8086_v20 = vadd.f32 %v16050_v25, %v15582_v19 }
 0x9f3   : > { %v9075_v32 = vadd.f32 %v15587_v35, %v9074_v22  ;;  %v8779_v46 = vpop.f32.mrb[60].mxu0  ;;  %v10908_v59 = vpop.f32.mrb[134].mxu1 }
 0x9f4   : > { %v9319_v16 = vadd.f32 %v9083_v15, %v8075_v57  ;;  %v8780_v44 = vadd.f32 %v16047_v14, %v8779_v46  ;;  %v9086_v1 = vadd.f32 %v10908_v59, %v15587_v35  ;;  %v8781_v54 = vpop.f32.mrb[61].mxu0  ;;  %v9077_v49 = vpop.f32.mrb[135].mxu1  ;;  %v8951_v5 = vpack.c.bf16 %v8918_v55, %v8917_v8  ;;  %v16051_v59 = vld [vmem:[#allocation51_spill] sm:$0xff] }
 0x9f5   : > { %v9317_v39 = vadd.f32 %v9075_v32, %v8067_v28  ;;  %v9078_v30 = vadd.f32 %v15587_v35, %v9077_v49  ;;  %v8782_v51 = vpop.f32.mrb[62].mxu0 }
 0x9f6   : > { %v8855_v4 = vadd.f32 %v15418_v50, %v8780_v44  ;;  %v9320_v36 = vadd.f32 %v9086_v1, %v8078_v63  ;;  %v8783_v52 = vadd.f32 %v16048_v26, %v8782_v51  ;;  %v8784_v10 = vpop.f32.mrb[63].mxu0  ;;  %10961 = vmatprep.mubr.bf16.mxu1 %v8951_v5  ;;  %v9383_v61 = vand.u32 2147483647, %v9319_v16  ;;  %v16052_v1 = vld [vmem:[#allocation49_spill] sm:$0xff] }
 0x9f7   : > { %v9318_v31 = vadd.f32 %v9078_v30, %v8070_v53  ;;  %v9381_v45 = vand.u32 2147483647, %v9317_v39  ;;  %v8107_v16 = vadd.f32 %v16051_v59, %v15582_v19  ;;  %v8099_v54 = vadd.f32 %v16052_v1, %v15582_v19  ;;  %v16053_v53 = vld [vmem:[#allocation52_spill] sm:$0xff] }
 0x9f8   : > { %v9384_v27 = vand.u32 2147483647, %v9320_v36  ;;  %v8856_v38 = vadd.f32 %v15418_v50, %v8783_v52  ;;  %v8919_v17 = vmax.f32 %v8855_v4, 0.0  ;;  %v8083_v50 = vadd.f32 %v14772_v58, %v15582_v19  ;;  %v16054_v36 = vld [vmem:[#allocation50_spill] sm:$0xff] }
 0x9f9   : > { %v9382_v23 = vand.u32 2147483647, %v9318_v31  ;;  %v8110_v39 = vadd.f32 %v16053_v53, %v15582_v19  ;;  %v8102_v26 = vadd.f32 %v16054_v36, %v15582_v19 }
 0x9fa   : > { %v10573_v24 = vpack.c.bf16 %v9384_v27, %v9383_v61  ;;  %v8920_v0 = vmax.f32 %v8856_v38, 0.0 }
 0x9fb   : > { %v10568_v34 = vpack.c.bf16 %v9382_v23, %v9381_v45 }
 0x9fc   : > { %10717 = vst [vmem:[%s15610_s22 + $0x18] sm:$0xff] %v10573_v24   ;;  %v8952_v18 = vpack.c.bf16 %v8920_v0, %v8919_v17 }
 0x9fd   : > { %10716 = vst [vmem:[%s15610_s22 + $0x10] sm:$0xff] %v10568_v34   ;;  %v16055_v34 = vld [vmem:[#allocation55_spill] sm:$0xff] }
 0x9fe   : > { %10962 = vmatmul.mubr.bf16.gmra.mrb[188].mxu1 %v8952_v18  ;;  %v8123_v18 = vadd.f32 %v16055_v34, %v15582_v19 }
 0xa01   : > { %v10911_v56 = vpop.f32.mrb[136].mxu1 }
 0xa02   : > { %v9099_v12 = vadd.f32 %v10911_v56, %v15587_v35  ;;  %v9090_v41 = vpop.f32.mrb[137].mxu1 }
 0xa03   : > { %v9091_v29 = vadd.f32 %v15587_v35, %v9090_v41  ;;  %v10912_v9 = vpop.f32.mrb[138].mxu1 }
 0xa04   : > { %v9323_v37 = vadd.f32 %v9099_v12, %v8091_v43  ;;  %v9102_v48 = vadd.f32 %v10912_v9, %v15587_v35  ;;  %v9093_v47 = vpop.f32.mrb[139].mxu1  ;;  %v16056_v12 = vld [vmem:[#allocation53_spill] sm:$0xff]  ;;  %v16057_v9 = vld [vmem:[#allocation56_spill] sm:$0xff] }
 0xa05   : > { %v9321_v60 = vadd.f32 %v9091_v29, %v8083_v50  ;;  %v9094_v57 = vadd.f32 %v15587_v35, %v9093_v47  ;;  %v8115_v41 = vadd.f32 %v16056_v12, %v15582_v19  ;;  %v8126_v7 = vadd.f32 %v16057_v9, %v15582_v19  ;;  %v16058_v47 = vld [vmem:[#allocation54_spill] sm:$0xff] }
 0xa06   : > { %v9324_v8 = vadd.f32 %v9102_v48, %v8094_v13  ;;  %v9387_v55 = vand.u32 2147483647, %v9323_v37  ;;  %v8118_v25 = vadd.f32 %v16058_v47, %v15582_v19 }
 0xa07   : > { %v9322_v58 = vadd.f32 %v9094_v57, %v8086_v20  ;;  %v9385_v22 = vand.u32 2147483647, %v9321_v60 }
 0xa08   : > { %v9388_v15 = vand.u32 2147483647, %v9324_v8 }
 0xa09   : > { %v9386_v28 = vand.u32 2147483647, %v9322_v58 }
 0xa0a   : > { %v10583_v63 = vpack.c.bf16 %v9388_v15, %v9387_v55 }
 0xa0b   : > { %v10578_v32 = vpack.c.bf16 %v9386_v28, %v9385_v22 }
 0xa0c   : > { %10719 = vst [vmem:[%s15610_s22 + $0x28] sm:$0xff] %v10583_v63  }
 0xa0d   : > { %10718 = vst [vmem:[%s15610_s22 + $0x20] sm:$0xff] %v10578_v32  }
 0xa11   : > { %v10915_v46 = vpop.f32.mrb[140].mxu1 }
 0xa12   : > { %v9115_v14 = vadd.f32 %v10915_v46, %v15587_v35  ;;  %v9106_v44 = vpop.f32.mrb[141].mxu1  ;;  %v16059_v46 = vld [vmem:[#allocation59_spill] sm:$0xff] }
 0xa13   : > { %v9107_v49 = vadd.f32 %v15587_v35, %v9106_v44  ;;  %v10916_v5 = vpop.f32.mrb[142].mxu1  ;;  %v8139_v59 = vadd.f32 %v16059_v46, %v15582_v19  ;;  %v16060_v44 = vld [vmem:[#allocation57_spill] sm:$0xff] }
 0xa14   : > { %v9327_v30 = vadd.f32 %v9115_v14, %v8107_v16  ;;  %v9118_v51 = vadd.f32 %v10916_v5, %v15587_v35  ;;  %v9109_v4 = vpop.f32.mrb[143].mxu1  ;;  %v8131_v1 = vadd.f32 %v16060_v44, %v15582_v19  ;;  %v16061_v5 = vld [vmem:[#allocation60_spill] sm:$0xff] }
 0xa15   : > { %v9325_v52 = vadd.f32 %v9107_v49, %v8099_v54  ;;  %v9110_v10 = vadd.f32 %v15587_v35, %v9109_v4  ;;  %v8142_v53 = vadd.f32 %v16061_v5, %v15582_v19  ;;  %v16062_v4 = vld [vmem:[#allocation58_spill] sm:$0xff] }
 0xa16   : > { %v9328_v31 = vadd.f32 %v9118_v51, %v8110_v39  ;;  %v9391_v27 = vand.u32 2147483647, %v9327_v30  ;;  %v8134_v36 = vadd.f32 %v16062_v4, %v15582_v19 }
 0xa17   : > { %v9326_v61 = vadd.f32 %v9110_v10, %v8102_v26  ;;  %v9389_v45 = vand.u32 2147483647, %v9325_v52 }
 0xa18   : > { %v9392_v38 = vand.u32 2147483647, %v9328_v31 }
 0xa19   : > { %v9390_v23 = vand.u32 2147483647, %v9326_v61 }
 0xa1a   : > { %v10593_v17 = vpack.c.bf16 %v9392_v38, %v9391_v27 }
 0xa1b   : > { %v10588_v24 = vpack.c.bf16 %v9390_v23, %v9389_v45 }
 0xa1c   : > { %10721 = vst [vmem:[%s15610_s22 + $0x38] sm:$0xff] %v10593_v17  }
 0xa1d   : > { %10720 = vst [vmem:[%s15610_s22 + $0x30] sm:$0xff] %v10588_v24  }
 0xa21   : > { %v10919_v0 = vpop.f32.mrb[144].mxu1 }
 0xa22   : > { %v9131_v56 = vadd.f32 %v10919_v0, %v15587_v35  ;;  %v9122_v43 = vpop.f32.mrb[145].mxu1  ;;  %v16063_v0 = vld [vmem:[#allocation63_spill] sm:$0xff] }
 0xa23   : > { %v9123_v50 = vadd.f32 %v15587_v35, %v9122_v43  ;;  %v10920_v29 = vpop.f32.mrb[146].mxu1  ;;  %v8155_v34 = vadd.f32 %v16063_v0, %v15582_v19  ;;  %v16064_v43 = vld [vmem:[#allocation61_spill] sm:$0xff] }
 0xa24   : > { %v9331_v13 = vadd.f32 %v9131_v56, %v8123_v18  ;;  %v9134_v37 = vadd.f32 %v10920_v29, %v15587_v35  ;;  %v9125_v48 = vpop.f32.mrb[147].mxu1  ;;  %v8147_v12 = vadd.f32 %v16064_v43, %v15582_v19  ;;  %v16065_v29 = vld [vmem:[#allocation64_spill] sm:$0xff] }
 0xa25   : > { %v9329_v20 = vadd.f32 %v9123_v50, %v8115_v41  ;;  %v9126_v60 = vadd.f32 %v15587_v35, %v9125_v48  ;;  %v8158_v9 = vadd.f32 %v16065_v29, %v15582_v19  ;;  %v16066_v48 = vld [vmem:[#allocation62_spill] sm:$0xff] }
 0xa26   : > { %v9332_v57 = vadd.f32 %v9134_v37, %v8126_v7  ;;  %v9395_v58 = vand.u32 2147483647, %v9331_v13  ;;  %v8150_v47 = vadd.f32 %v16066_v48, %v15582_v19 }
 0xa27   : > { %v9330_v8 = vadd.f32 %v9126_v60, %v8118_v25  ;;  %v9393_v15 = vand.u32 2147483647, %v9329_v20 }
 0xa28   : > { %v9396_v55 = vand.u32 2147483647, %v9332_v57 }
 0xa29   : > { %v9394_v22 = vand.u32 2147483647, %v9330_v8 }
 0xa2a   : > { %v10603_v28 = vpack.c.bf16 %v9396_v55, %v9395_v58 }
 0xa2b   : > { %v10598_v63 = vpack.c.bf16 %v9394_v22, %v9393_v15 }
 0xa2c   : > { %10723 = vst [vmem:[%s15610_s22 + $0x48] sm:$0xff] %v10603_v28  }
 0xa2d   : > { %10722 = vst [vmem:[%s15610_s22 + $0x40] sm:$0xff] %v10598_v63  }
 0xa31   : > { %v10923_v32 = vpop.f32.mrb[148].mxu1 }
 0xa32   : > { %v9147_v16 = vadd.f32 %v10923_v32, %v15587_v35  ;;  %v9138_v14 = vpop.f32.mrb[149].mxu1  ;;  %v16067_v32 = vld [vmem:[#allocation67_spill] sm:$0xff] }
 0xa33   : > { %v9139_v54 = vadd.f32 %v15587_v35, %v9138_v14  ;;  %v10924_v49 = vpop.f32.mrb[150].mxu1  ;;  %v8171_v46 = vadd.f32 %v16067_v32, %v15582_v19  ;;  %v16068_v14 = vld [vmem:[#allocation65_spill] sm:$0xff] }
 0xa34   : > { %v9335_v39 = vadd.f32 %v9147_v16, %v8139_v59  ;;  %v9150_v30 = vadd.f32 %v10924_v49, %v15587_v35  ;;  %v9141_v51 = vpop.f32.mrb[151].mxu1  ;;  %v8163_v44 = vadd.f32 %v16068_v14, %v15582_v19  ;;  %v16069_v49 = vld [vmem:[#allocation68_spill] sm:$0xff] }
 0xa35   : > { %v9333_v26 = vadd.f32 %v9139_v54, %v8131_v1  ;;  %v9142_v52 = vadd.f32 %v15587_v35, %v9141_v51  ;;  %v8174_v5 = vadd.f32 %v16069_v49, %v15582_v19  ;;  %v16070_v51 = vld [vmem:[#allocation66_spill] sm:$0xff] }
 0xa36   : > { %v9336_v10 = vadd.f32 %v9150_v30, %v8142_v53  ;;  %v9399_v61 = vand.u32 2147483647, %v9335_v39  ;;  %v8166_v4 = vadd.f32 %v16070_v51, %v15582_v19 }
 0xa37   : > { %v9334_v31 = vadd.f32 %v9142_v52, %v8134_v36  ;;  %v9397_v38 = vand.u32 2147483647, %v9333_v26 }
 0xa38   : > { %v9400_v27 = vand.u32 2147483647, %v9336_v10 }
 0xa39   : > { %v9398_v45 = vand.u32 2147483647, %v9334_v31 }
 0xa3a   : > { %v10613_v23 = vpack.c.bf16 %v9400_v27, %v9399_v61 }
 0xa3b   : > { %v10608_v17 = vpack.c.bf16 %v9398_v45, %v9397_v38 }
 0xa3c   : > { %10725 = vst [vmem:[%s15610_s22 + $0x58] sm:$0xff] %v10613_v23  }
 0xa3d   : > { %10724 = vst [vmem:[%s15610_s22 + $0x50] sm:$0xff] %v10608_v17  }
 0xa41   : > { %v10927_v24 = vpop.f32.mrb[152].mxu1 }
 0xa42   : > { %v9163_v18 = vadd.f32 %v10927_v24, %v15587_v35  ;;  %v9154_v56 = vpop.f32.mrb[153].mxu1  ;;  %v16071_v24 = vld [vmem:[#allocation71_spill] sm:$0xff] }
 0xa43   : > { %v9155_v41 = vadd.f32 %v15587_v35, %v9154_v56  ;;  %v10928_v50 = vpop.f32.mrb[154].mxu1  ;;  %v8187_v0 = vadd.f32 %v16071_v24, %v15582_v19  ;;  %v16072_v56 = vld [vmem:[#allocation69_spill] sm:$0xff] }
 0xa44   : > { %v9339_v7 = vadd.f32 %v9163_v18, %v8155_v34  ;;  %v9166_v13 = vadd.f32 %v10928_v50, %v15587_v35  ;;  %v9157_v37 = vpop.f32.mrb[155].mxu1  ;;  %v8179_v43 = vadd.f32 %v16072_v56, %v15582_v19  ;;  %v16073_v50 = vld [vmem:[#allocation72_spill] sm:$0xff] }
 0xa45   : > { %v9337_v25 = vadd.f32 %v9155_v41, %v8147_v12  ;;  %v9158_v20 = vadd.f32 %v15587_v35, %v9157_v37  ;;  %v8190_v29 = vadd.f32 %v16073_v50, %v15582_v19  ;;  %v16074_v37 = vld [vmem:[#allocation70_spill] sm:$0xff] }
 0xa46   : > { %v9340_v60 = vadd.f32 %v9166_v13, %v8158_v9  ;;  %v9403_v8 = vand.u32 2147483647, %v9339_v7  ;;  %v8182_v48 = vadd.f32 %v16074_v37, %v15582_v19 }
 0xa47   : > { %v9338_v57 = vadd.f32 %v9158_v20, %v8150_v47  ;;  %v9401_v55 = vand.u32 2147483647, %v9337_v25 }
 0xa48   : > { %v9404_v58 = vand.u32 2147483647, %v9340_v60 }
 0xa49   : > { %v9402_v15 = vand.u32 2147483647, %v9338_v57 }
 0xa4a   : > { %v10623_v22 = vpack.c.bf16 %v9404_v58, %v9403_v8 }
 0xa4b   : > { %v10618_v28 = vpack.c.bf16 %v9402_v15, %v9401_v55 }
 0xa4c   : > { %10727 = vst [vmem:[%s15610_s22 + $0x68] sm:$0xff] %v10623_v22  }
 0xa4d   : > { %10726 = vst [vmem:[%s15610_s22 + $0x60] sm:$0xff] %v10618_v28  }
 0xa51   : > { %v10931_v63 = vpop.f32.mrb[156].mxu1 }
 0xa52   : > { %v9179_v59 = vadd.f32 %v10931_v63, %v15587_v35  ;;  %v9170_v16 = vpop.f32.mrb[157].mxu1  ;;  %v16075_v63 = vld [vmem:[#allocation75_spill] sm:$0xff] }
 0xa53   : > { %v9171_v1 = vadd.f32 %v15587_v35, %v9170_v16  ;;  %v10932_v54 = vpop.f32.mrb[158].mxu1  ;;  %v8203_v32 = vadd.f32 %v16075_v63, %v15582_v19  ;;  %v16076_v16 = vld [vmem:[#allocation73_spill] sm:$0xff] }
 0xa54   : > { %v9343_v53 = vadd.f32 %v9179_v59, %v8171_v46  ;;  %v9182_v39 = vadd.f32 %v10932_v54, %v15587_v35  ;;  %v9173_v30 = vpop.f32.mrb[159].mxu1  ;;  %v8195_v14 = vadd.f32 %v16076_v16, %v15582_v19  ;;  %v16077_v54 = vld [vmem:[#allocation76_spill] sm:$0xff] }
 0xa55   : > { %v9341_v36 = vadd.f32 %v9171_v1, %v8163_v44  ;;  %v9174_v26 = vadd.f32 %v15587_v35, %v9173_v30  ;;  %v8206_v49 = vadd.f32 %v16077_v54, %v15582_v19  ;;  %v16078_v30 = vld [vmem:[#allocation74_spill] sm:$0xff] }
 0xa56   : > { %v9344_v52 = vadd.f32 %v9182_v39, %v8174_v5  ;;  %v9407_v31 = vand.u32 2147483647, %v9343_v53  ;;  %v8198_v51 = vadd.f32 %v16078_v30, %v15582_v19 }
 0xa57   : > { %v9342_v10 = vadd.f32 %v9174_v26, %v8166_v4  ;;  %v9405_v27 = vand.u32 2147483647, %v9341_v36 }
 0xa58   : > { %v9408_v61 = vand.u32 2147483647, %v9344_v52 }
 0xa59   : > { %v9406_v38 = vand.u32 2147483647, %v9342_v10 }
 0xa5a   : > { %v10633_v45 = vpack.c.bf16 %v9408_v61, %v9407_v31 }
 0xa5b   : > { %v10628_v23 = vpack.c.bf16 %v9406_v38, %v9405_v27 }
 0xa5c   : > { %10729 = vst [vmem:[%s15610_s22 + $0x78] sm:$0xff] %v10633_v45  }
 0xa5d   : > { %10728 = vst [vmem:[%s15610_s22 + $0x70] sm:$0xff] %v10628_v23  }
 0xa61   : > { %v10935_v17 = vpop.f32.mrb[160].mxu1 }
 0xa62   : > { %v9195_v34 = vadd.f32 %v10935_v17, %v15587_v35  ;;  %v9186_v18 = vpop.f32.mrb[161].mxu1  ;;  %v16079_v17 = vld [vmem:[#allocation79_spill] sm:$0xff] }
 0xa63   : > { %v9187_v12 = vadd.f32 %v15587_v35, %v9186_v18  ;;  %v10936_v41 = vpop.f32.mrb[162].mxu1  ;;  %v8219_v24 = vadd.f32 %v16079_v17, %v15582_v19  ;;  %v16080_v18 = vld [vmem:[#allocation77_spill] sm:$0xff] }
 0xa64   : > { %v9347_v9 = vadd.f32 %v9195_v34, %v8187_v0  ;;  %v9198_v7 = vadd.f32 %v10936_v41, %v15587_v35  ;;  %v9189_v13 = vpop.f32.mrb[163].mxu1  ;;  %v8211_v56 = vadd.f32 %v16080_v18, %v15582_v19  ;;  %v16081_v41 = vld [vmem:[#allocation80_spill] sm:$0xff] }
 0xa65   : > { %v9345_v47 = vadd.f32 %v9187_v12, %v8179_v43  ;;  %v9190_v25 = vadd.f32 %v15587_v35, %v9189_v13  ;;  %v8222_v50 = vadd.f32 %v16081_v41, %v15582_v19  ;;  %v16082_v13 = vld [vmem:[#allocation78_spill] sm:$0xff] }
 0xa66   : > { %v9348_v20 = vadd.f32 %v9198_v7, %v8190_v29  ;;  %v9411_v57 = vand.u32 2147483647, %v9347_v9  ;;  %v8214_v37 = vadd.f32 %v16082_v13, %v15582_v19 }
 0xa67   : > { %v9346_v60 = vadd.f32 %v9190_v25, %v8182_v48  ;;  %v9409_v58 = vand.u32 2147483647, %v9345_v47 }
 0xa68   : > { %v9412_v8 = vand.u32 2147483647, %v9348_v20 }
 0xa69   : > { %v9410_v55 = vand.u32 2147483647, %v9346_v60 }
 0xa6a   : > { %v10643_v15 = vpack.c.bf16 %v9412_v8, %v9411_v57 }
 0xa6b   : > { %v10638_v22 = vpack.c.bf16 %v9410_v55, %v9409_v58 }
 0xa6c   : > { %10731 = vst [vmem:[%s15610_s22 + $0x88] sm:$0xff] %v10643_v15  }
 0xa6d   : > { %10730 = vst [vmem:[%s15610_s22 + $0x80] sm:$0xff] %v10638_v22  }
 0xa71   : > { %v10939_v28 = vpop.f32.mrb[164].mxu1 }
 0xa72   : > { %v9211_v46 = vadd.f32 %v10939_v28, %v15587_v35  ;;  %v9202_v59 = vpop.f32.mrb[165].mxu1  ;;  %v16083_v28 = vld [vmem:[#allocation83_spill] sm:$0xff] }
 0xa73   : > { %v9203_v44 = vadd.f32 %v15587_v35, %v9202_v59  ;;  %v10940_v1 = vpop.f32.mrb[166].mxu1  ;;  %v8235_v63 = vadd.f32 %v16083_v28, %v15582_v19  ;;  %v16084_v59 = vld [vmem:[#allocation81_spill] sm:$0xff] }
 0xa74   : > { %v9351_v5 = vadd.f32 %v9211_v46, %v8203_v32  ;;  %v9214_v53 = vadd.f32 %v10940_v1, %v15587_v35  ;;  %v9205_v39 = vpop.f32.mrb[167].mxu1  ;;  %v8227_v16 = vadd.f32 %v16084_v59, %v15582_v19  ;;  %v16085_v1 = vld [vmem:[#allocation84_spill] sm:$0xff] }
 0xa75   : > { %v9349_v4 = vadd.f32 %v9203_v44, %v8195_v14  ;;  %v9206_v36 = vadd.f32 %v15587_v35, %v9205_v39  ;;  %v8238_v54 = vadd.f32 %v16085_v1, %v15582_v19  ;;  %v16086_v39 = vld [vmem:[#allocation82_spill] sm:$0xff] }
 0xa76   : > { %v9352_v26 = vadd.f32 %v9214_v53, %v8206_v49  ;;  %v9415_v10 = vand.u32 2147483647, %v9351_v5  ;;  %v8230_v30 = vadd.f32 %v16086_v39, %v15582_v19 }
 0xa77   : > { %v9350_v52 = vadd.f32 %v9206_v36, %v8198_v51  ;;  %v9413_v61 = vand.u32 2147483647, %v9349_v4 }
 0xa78   : > { %v9416_v31 = vand.u32 2147483647, %v9352_v26 }
 0xa79   : > { %v9414_v27 = vand.u32 2147483647, %v9350_v52 }
 0xa7a   : > { %v10653_v38 = vpack.c.bf16 %v9416_v31, %v9415_v10 }
 0xa7b   : > { %v10648_v45 = vpack.c.bf16 %v9414_v27, %v9413_v61 }
 0xa7c   : > { %10733 = vst [vmem:[%s15610_s22 + $0x98] sm:$0xff] %v10653_v38  }
 0xa7d   : > { %10732 = vst [vmem:[%s15610_s22 + $0x90] sm:$0xff] %v10648_v45  }
 0xa81   : > { %v10943_v23 = vpop.f32.mrb[168].mxu1 }
 0xa82   : > { %v9227_v0 = vadd.f32 %v10943_v23, %v15587_v35  ;;  %v9218_v34 = vpop.f32.mrb[169].mxu1  ;;  %v16087_v23 = vld [vmem:[#allocation87_spill] sm:$0xff] }
 0xa83   : > { %v9219_v43 = vadd.f32 %v15587_v35, %v9218_v34  ;;  %v10944_v12 = vpop.f32.mrb[170].mxu1  ;;  %v8251_v17 = vadd.f32 %v16087_v23, %v15582_v19  ;;  %v16088_v34 = vld [vmem:[#allocation85_spill] sm:$0xff] }
 0xa84   : > { %v9355_v29 = vadd.f32 %v9227_v0, %v8219_v24  ;;  %v9230_v9 = vadd.f32 %v10944_v12, %v15587_v35  ;;  %v9221_v7 = vpop.f32.mrb[171].mxu1  ;;  %v8243_v18 = vadd.f32 %v16088_v34, %v15582_v19  ;;  %v16089_v12 = vld [vmem:[#allocation88_spill] sm:$0xff] }
 0xa85   : > { %v9353_v48 = vadd.f32 %v9219_v43, %v8211_v56  ;;  %v9222_v47 = vadd.f32 %v15587_v35, %v9221_v7  ;;  %v8254_v41 = vadd.f32 %v16089_v12, %v15582_v19  ;;  %v16090_v7 = vld [vmem:[#allocation86_spill] sm:$0xff] }
 0xa86   : > { %v9356_v25 = vadd.f32 %v9230_v9, %v8222_v50  ;;  %v9419_v60 = vand.u32 2147483647, %v9355_v29  ;;  %v8246_v13 = vadd.f32 %v16090_v7, %v15582_v19 }
 0xa87   : > { %v9354_v20 = vadd.f32 %v9222_v47, %v8214_v37  ;;  %v9417_v8 = vand.u32 2147483647, %v9353_v48 }
 0xa88   : > { %v9420_v57 = vand.u32 2147483647, %v9356_v25 }
 0xa89   : > { %v9418_v58 = vand.u32 2147483647, %v9354_v20 }
 0xa8a   : > { %v10663_v55 = vpack.c.bf16 %v9420_v57, %v9419_v60 }
 0xa8b   : > { %v10658_v15 = vpack.c.bf16 %v9418_v58, %v9417_v8 }
 0xa8c   : > { %10735 = vst [vmem:[%s15610_s22 + $0xa8] sm:$0xff] %v10663_v55  }
 0xa8d   : > { %10734 = vst [vmem:[%s15610_s22 + $0xa0] sm:$0xff] %v10658_v15  }
 0xa91   : > { %v10947_v22 = vpop.f32.mrb[172].mxu1 }
 0xa92   : > { %v9243_v32 = vadd.f32 %v10947_v22, %v15587_v35  ;;  %v9234_v46 = vpop.f32.mrb[173].mxu1  ;;  %v8267_v22 = vadd.f32 %v15389_v11, %v15582_v19  ;;  %v16092_v11 = vld [vmem:[#allocation90_spill] sm:$0xff] }
 0xa93   : > { %v9235_v14 = vadd.f32 %v15587_v35, %v9234_v46  ;;  %v10948_v44 = vpop.f32.mrb[174].mxu1 }
 0xa94   : > { %v9359_v49 = vadd.f32 %v9243_v32, %v8235_v63  ;;  %v9246_v5 = vadd.f32 %v10948_v44, %v15587_v35  ;;  %v9237_v53 = vpop.f32.mrb[175].mxu1  ;;  %v16091_v32 = vld [vmem:[#allocation89_spill] sm:$0xff] }
 0xa95   : > { %v9357_v51 = vadd.f32 %v9235_v14, %v8227_v16  ;;  %v9238_v4 = vadd.f32 %v15587_v35, %v9237_v53  ;;  %v8259_v46 = vadd.f32 %v16091_v32, %v15582_v19  ;;  %v8270_v14 = vadd.f32 %v15403_v2, %v15582_v19 }
 0xa96   : > { %v9360_v36 = vadd.f32 %v9246_v5, %v8238_v54  ;;  %v9423_v52 = vand.u32 2147483647, %v9359_v49  ;;  %v8262_v49 = vadd.f32 %v16092_v11, %v15582_v19 }
 0xa97   : > { %v9358_v26 = vadd.f32 %v9238_v4, %v8230_v30  ;;  %v9421_v31 = vand.u32 2147483647, %v9357_v51 }
 0xa98   : > { %v9424_v10 = vand.u32 2147483647, %v9360_v36 }
 0xa99   : > { %v9422_v61 = vand.u32 2147483647, %v9358_v26 }
 0xa9a   : > { %v10673_v27 = vpack.c.bf16 %v9424_v10, %v9423_v52 }
 0xa9b   : > { %v10668_v38 = vpack.c.bf16 %v9422_v61, %v9421_v31  ;;  %v8283_v31 = vadd.f32 %v15435_v3, %v15582_v19  ;;  %v16093_v3 = vld [vmem:[#allocation91_spill] sm:$0xff] }
 0xa9c   : > { %10737 = vst [vmem:[%s15610_s22 + $0xb8] sm:$0xff] %v10673_v27  }
 0xa9d   : > { %10736 = vst [vmem:[%s15610_s22 + $0xb0] sm:$0xff] %v10668_v38   ;;  %v8275_v38 = vadd.f32 %v15421_v62, %v15582_v19 }
 0xaa1   : > { %v10951_v45 = vpop.f32.mrb[176].mxu1 }
 0xaa2   : > { %v9259_v24 = vadd.f32 %v10951_v45, %v15587_v35  ;;  %v9250_v0 = vpop.f32.mrb[177].mxu1 }
 0xaa3   : > { %v9251_v56 = vadd.f32 %v15587_v35, %v9250_v0  ;;  %v10952_v43 = vpop.f32.mrb[178].mxu1 }
 0xaa4   : > { %v9363_v50 = vadd.f32 %v9259_v24, %v8251_v17  ;;  %v9262_v29 = vadd.f32 %v10952_v43, %v15587_v35  ;;  %v9253_v9 = vpop.f32.mrb[179].mxu1  ;;  %v8286_v17 = vadd.f32 %v15439_v21, %v15582_v19 }
 0xaa5   : > { %v9361_v37 = vadd.f32 %v9251_v56, %v8243_v18  ;;  %v9254_v48 = vadd.f32 %v15587_v35, %v9253_v9  ;;  %v8278_v18 = vadd.f32 %v16093_v3, %v15582_v19 }
 0xaa6   : > { %v9364_v47 = vadd.f32 %v9262_v29, %v8254_v41  ;;  %v9427_v20 = vand.u32 2147483647, %v9363_v50 }
 0xaa7   : > { %v9362_v25 = vadd.f32 %v9254_v48, %v8246_v13  ;;  %v9425_v57 = vand.u32 2147483647, %v9361_v37  ;;  %v8299_v37 = vadd.f32 %v15463_v33, %v15582_v19  ;;  %v8294_v33 = vadd.f32 %v15453_v42, %v15582_v19 }
 0xaa8   : > { %v9428_v60 = vand.u32 2147483647, %v9364_v47 }
 0xaa9   : > { %v9426_v8 = vand.u32 2147483647, %v9362_v25  ;;  %v8291_v25 = vadd.f32 %v15449_v6, %v15582_v19 }
 0xaaa   : > { %v10683_v58 = vpack.c.bf16 %v9428_v60, %v9427_v20 }
 0xaab   : > { %v10678_v55 = vpack.c.bf16 %v9426_v8, %v9425_v57  ;;  %v8302_v57 = vadd.f32 %v15467_v40, %v15582_v19 }
 0xaac   : > { %10739 = vst [vmem:[%s15610_s22 + $0xc8] sm:$0xff] %v10683_v58  }
 0xaad   : > { %10738 = vst [vmem:[%s15610_s22 + $0xc0] sm:$0xff] %v10678_v55  }
 0xab1   : > { %v10955_v15 = vpop.f32.mrb[180].mxu1 }
 0xab2   : > { %v9275_v28 = vadd.f32 %v10955_v15, %v15587_v35  ;;  %v9266_v63 = vpop.f32.mrb[181].mxu1 }
 0xab3   : > { %v9267_v59 = vadd.f32 %v15587_v35, %v9266_v63  ;;  %v10956_v16 = vpop.f32.mrb[182].mxu1 }
 0xab4   : > { %v9367_v44 = vadd.f32 %v9275_v28, %v8267_v22  ;;  %v9278_v1 = vadd.f32 %v10956_v16, %v15587_v35  ;;  %v9269_v54 = vpop.f32.mrb[183].mxu1 }
 0xab5   : > { %v9365_v5 = vadd.f32 %v9267_v59, %v8259_v46  ;;  %v9270_v53 = vadd.f32 %v15587_v35, %v9269_v54 }
 0xab6   : > { %v9368_v39 = vadd.f32 %v9278_v1, %v8270_v14  ;;  %v9431_v51 = vand.u32 2147483647, %v9367_v44 }
 0xab7   : > { %v9366_v30 = vadd.f32 %v9270_v53, %v8262_v49  ;;  %v9429_v36 = vand.u32 2147483647, %v9365_v5 }
 0xab8   : > { %v9432_v4 = vand.u32 2147483647, %v9368_v39 }
 0xab9   : > { %v9430_v26 = vand.u32 2147483647, %v9366_v30 }
 0xaba   : > { %v10693_v52 = vpack.c.bf16 %v9432_v4, %v9431_v51 }
 0xabb   : > { %v10688_v10 = vpack.c.bf16 %v9430_v26, %v9429_v36 }
 0xabc   : > { %10741 = vst [vmem:[%s15610_s22 + $0xd8] sm:$0xff] %v10693_v52  }
 0xabd   : > { %10740 = vst [vmem:[%s15610_s22 + $0xd0] sm:$0xff] %v10688_v10  }
 0xac1   : > { %v10959_v2 = vpop.f32.mrb[184].mxu1 }
 0xac2   : > { %v9291_v61 = vadd.f32 %v10959_v2, %v15587_v35  ;;  %v9282_v27 = vpop.f32.mrb[185].mxu1 }
 0xac3   : > { %v9283_v45 = vadd.f32 %v15587_v35, %v9282_v27  ;;  %v10960_v23 = vpop.f32.mrb[186].mxu1 }
 0xac4   : > { %v9371_v24 = vadd.f32 %v9291_v61, %v8283_v31  ;;  %v9294_v0 = vadd.f32 %v10960_v23, %v15587_v35  ;;  %v9285_v34 = vpop.f32.mrb[187].mxu1 }
 0xac5   : > { %v9369_v56 = vadd.f32 %v9283_v45, %v8275_v38  ;;  %v9286_v43 = vadd.f32 %v15587_v35, %v9285_v34 }
 0xac6   : > { %v9372_v12 = vadd.f32 %v9294_v0, %v8286_v17  ;;  %v9435_v41 = vand.u32 2147483647, %v9371_v24 }
 0xac7   : > { %v9370_v62 = vadd.f32 %v9286_v43, %v8278_v18  ;;  %v9433_v29 = vand.u32 2147483647, %v9369_v56 }
 0xac8   : > { %v9436_v50 = vand.u32 2147483647, %v9372_v12 }
 0xac9   : > { %v9434_v9 = vand.u32 2147483647, %v9370_v62 }
 0xaca   : > { %v10703_v7 = vpack.c.bf16 %v9436_v50, %v9435_v41 }
 0xacb   : > { %v10698_v13 = vpack.c.bf16 %v9434_v9, %v9433_v29 }
 0xacc   : > { %10743 = vst [vmem:[%s15610_s22 + $0xe8] sm:$0xff] %v10703_v7  }
 0xacd   : > { %10742 = vst [vmem:[%s15610_s22 + $0xe0] sm:$0xff] %v10698_v13  }
 0xad1   : > { %v10963_v21 = vpop.f32.mrb[188].mxu1 }
 0xad2   : > { %v9307_v48 = vadd.f32 %v10963_v21, %v15587_v35  ;;  %v9298_v47 = vpop.f32.mrb[189].mxu1 }
 0xad3   : > { %v9299_v20 = vadd.f32 %v15587_v35, %v9298_v47  ;;  %v10964_v60 = vpop.f32.mrb[190].mxu1 }
 0xad4   : > { %v9375_v8 = vadd.f32 %v9307_v48, %v8299_v37  ;;  %v9310_v58 = vadd.f32 %v10964_v60, %v15587_v35  ;;  %v9301_v55 = vpop.f32.mrb[191].mxu1 }
 0xad5   : > { %v9373_v15 = vadd.f32 %v9299_v20, %v8291_v25  ;;  %v9302_v22 = vadd.f32 %v15587_v35, %v9301_v55 }
 0xad6   : > { %v9376_v28 = vadd.f32 %v9310_v58, %v8302_v57  ;;  %v9439_v63 = vand.u32 2147483647, %v9375_v8 }
 0xad7   : > { %v9374_v6 = vadd.f32 %v9302_v22, %v8294_v33  ;;  %v9437_v46 = vand.u32 2147483647, %v9373_v15 }
 0xad8   : > { %v9440_v32 = vand.u32 2147483647, %v9376_v28 }
 0xad9   : > { %v9438_v59 = vand.u32 2147483647, %v9374_v6 }
 0xada   : > { %v10713_v16 = vpack.c.bf16 %v9440_v32, %v9439_v63 }
 0xadb   : > { %v10708_v14 = vpack.c.bf16 %v9438_v59, %v9437_v46 }
 0xadc   : > { %10745 = vst [vmem:[%s15610_s22 + $0xf8] sm:$0xff] %v10713_v16  }
 0xadd   : > { %10744 = vst [vmem:[%s15610_s22 + $0xf0] sm:$0xff] %v10708_v14  }
 0xade PF: > { %s21_s17 = sadd.s32 1, %s11539_s17  }
 0xadf   : > { %p18_p4 = scmp.ge.s32.totalorder %s21_s17, 4  }
 0xae1   :  { %20 = sbr.rel (!%p18_p4) target bundleno = 1 (0x1), region = 106 }

</bundles_post_ra>
